<compile_context>
chip_gen: v7x
topology: tpu7x:2x2x1
jax: 0.10.0
libtpu: 0.0.40
codegen_flags: <defaults>
</compile_context>

<pallas_src>
import math

import jax
import jax.numpy as jnp
from jax.experimental import pallas as pl
from jax.experimental.pallas import tpu as pltpu

# ----------------------------- configuration --------------------------------
MULTIRES = 10
ORIGIN_DIMS = 3 * (1 + 2 * MULTIRES)           # 63
DIRECTION_DIMS = 3 * (1 + 2 * MULTIRES)        # 63
INTERSECT_DIMS = 6 * (1 + 2 * MULTIRES)        # 126
EMB_DIMS = (ORIGIN_DIMS, DIRECTION_DIMS, INTERSECT_DIMS)
EMB_PAD = 128                                   # each stream emb padded to 128 lanes
HID = 128
N_STREAM_LAYERS = 6
CAT_HID = [128, 128, 128, 128, 256]
NEG_SLOPE = 0.01                                # nn.LeakyReLU() default
SPHERE_RADIUS = 2.0
NEAR, FAR = 2.0, 6.0


# ------------------------------ glue (plain JAX) -----------------------------
def embed(x):
    """Standard NeRF positional embedding: [x, sin(2^k x), cos(2^k x)]."""
    outs = [x]
    for k in range(MULTIRES):
        f = 2.0 ** k
        outs.append(jnp.sin(x * f))
        outs.append(jnp.cos(x * f))
    return jnp.concatenate(outs, axis=-1)


def find_intersection_points_with_sphere(rays_o, rays_d, radius):
    # TODO(synk): exact source of find_intersection_points_with_sphere not
    # provided; standard ray/sphere quadratic (sphere centered at origin) used.
    # rays_d must be non-degenerate (|d| > 0) or the divide below yields inf/nan.
    a = jnp.sum(rays_d * rays_d, axis=-1)
    b = 2.0 * jnp.sum(rays_o * rays_d, axis=-1)
    c = jnp.sum(rays_o * rays_o, axis=-1) - radius * radius
    disc = jnp.maximum(b * b - 4.0 * a * c, 0.0)
    sq = jnp.sqrt(disc)
    t1 = (-b - sq) / (2.0 * a)
    t2 = (-b + sq) / (2.0 * a)
    t = jnp.stack([t1, t2], axis=-1)                               # [N, 2]
    pts = rays_o[:, None, :] + t[..., None] * rays_d[:, None, :]   # [N, 2, 3]
    return t, pts


# ----------------------- parameters (logical, f32) ---------------------------
def build_params(key):
    """Synthetic parameters, PyTorch-Linear-style uniform init (logical shapes)."""
    n_linear = 3 * N_STREAM_LAYERS + len(CAT_HID) + 1
    keys = list(jax.random.split(key, n_linear))
    it = iter(keys)

    def linear(f_in, f_out):
        kw, kb = jax.random.split(next(it))
        bound = 1.0 / math.sqrt(f_in)
        w = jax.random.uniform(kw, (f_in, f_out), jnp.float32, -bound, bound)
        b = jax.random.uniform(kb, (f_out,), jnp.float32, -bound, bound)
        return w, b

    streams = []
    for E in EMB_DIMS:
        layers = [linear(2 * E, HID)]                      # layer 0: cat(emb, emb)
        for _ in range(N_STREAM_LAYERS - 1):               # cat(hidden, emb)
            layers.append(linear(HID + E, HID))
        streams.append(layers)

    cat = [linear(3 * HID + sum(EMB_DIMS), CAT_HID[0])]    # skip-connection layer
    for i in range(len(CAT_HID) - 1):
        cat.append(linear(CAT_HID[i], CAT_HID[i + 1]))

    to_depth = linear(CAT_HID[-1], 1)
    return {"streams": streams, "cat": cat, "to_depth": to_depth}


# --------------------- pack params for the kernel (bf16) ---------------------
def pack_params(p):
    """Pack the ~71 logical arrays into 10 zero-padded, MXU-friendly tensors."""
    f32, bf16 = jnp.float32, jnp.bfloat16

    # Stream weights: (3 streams, 6 layers, 256, 128).
    # Rows   0:128 multiply the previous hidden state (padded to 128 lanes),
    # rows 128:256 multiply the (128-lane padded) embedding.
    W_streams = jnp.zeros((3, N_STREAM_LAYERS, 2 * HID, HID), f32)
    B_streams = jnp.zeros((3, N_STREAM_LAYERS, 1, HID), f32)    # 2-D (1,128) rows
    for s, E in enumerate(EMB_DIMS):
        for l, (w, b) in enumerate(p["streams"][s]):
            prev = E if l == 0 else HID
            W_streams = W_streams.at[s, l, :prev, :].set(w[:prev])
            W_streams = W_streams.at[s, l, HID:HID + E, :].set(w[prev:])
            B_streams = B_streams.at[s, l, 0].set(b)

    # cat layer 0: input is [ho|hd|hi|eo_pad|ed_pad|ei_pad] = 768 lanes.
    w0, b0 = p["cat"][0]                                   # (636, 128), (128,)
    W_cat0 = jnp.zeros((6 * HID, HID), f32)
    W_cat0 = W_cat0.at[: 3 * HID].set(w0[: 3 * HID])
    off, col = 3 * HID, 3 * HID
    for E in EMB_DIMS:
        W_cat0 = W_cat0.at[col:col + E].set(w0[off:off + E])
        off += E
        col += HID
    b_cat0 = b0.reshape(1, HID)

    # middle cat layers (128 -> 128) x3, stacked.
    W_mid = jnp.stack([p["cat"][i][0] for i in (1, 2, 3)])                 # (3,128,128)
    B_mid = jnp.stack([p["cat"][i][1].reshape(1, HID) for i in (1, 2, 3)]) # (3,1,128)

    # last cat layer 128 -> 256.
    W_last, b_last = p["cat"][4]
    b_last = b_last.reshape(1, -1)                                   # (1,256)

    # to_depth (256 -> 1), broadcast across 128 lanes so the kernel output is
    # a lane-dense (tb,128) slab (every lane holds the same pre-activation z).
    w_td, b_td = p["to_depth"]                                       # (256,1),(1,)
    W_td = jnp.tile(w_td, (1, HID))                                  # (256,128)
    b_td = jnp.tile(b_td.reshape(1, 1), (1, HID))                    # (1,128)

    return (W_streams.astype(bf16), B_streams,
            W_cat0.astype(bf16), b_cat0,
            W_mid.astype(bf16), B_mid,
            W_last.astype(bf16), b_last,
            W_td.astype(bf16), b_td)


# ------------------------------- Pallas kernel -------------------------------
def depthnet_kernel(e_ref, ws_ref, bs_ref, wc0_ref, bc0_ref,
                    wmid_ref, bmid_ref, wlast_ref, blast_ref,
                    wtd_ref, btd_ref, out_ref, inp_scr, skip_scr):
    bf16, f32 = jnp.bfloat16, jnp.float32

    def leaky(x):                                   # LeakyReLU, 2 VALU ops
        return jnp.maximum(x, NEG_SLOPE * x)

    # --- three embedding streams (purely linear: nn.LeakyReLU(x) in the
    #     reference is constructed, never applied) --------------------------
    for s in range(3):
        emb = e_ref[:, s * EMB_PAD:(s + 1) * EMB_PAD]    # (tb,128) bf16, aligned view
        inp_scr[:, HID:2 * HID] = emb                    # emb half written once/stream
        inp_scr[:, :HID] = emb                           # layer-0 "hidden" = emb
        for l in range(N_STREAM_LAYERS):
            h = (jnp.dot(inp_scr[...], ws_ref[s, l],     # fused K=256 bf16 dot
                         preferred_element_type=f32)
                 + bs_ref[s, l]).astype(bf16)
            if l < N_STREAM_LAYERS - 1:
                inp_scr[:, :HID] = h                     # overwrite hidden half only
            else:
                skip_scr[:, s * HID:(s + 1) * HID] = h   # final h -> skip slab

    # --- cat layer 0 (skip connection): one lane-aligned K=768 matmul -------
    skip_scr[:, 3 * HID:] = e_ref[...]                   # embeddings -> cols 384:768
    x = jnp.dot(skip_scr[...], wc0_ref[...], preferred_element_type=f32) + bc0_ref[...]
    x = leaky(x)

    for l in range(3):                                   # 128 -> 128 cat layers
        x = (jnp.dot(x.astype(bf16), wmid_ref[l], preferred_element_type=f32)
             + bmid_ref[l])
        x = leaky(x)

    x = (jnp.dot(x.astype(bf16), wlast_ref[...], preferred_element_type=f32)
         + blast_ref[...])                               # (tb, 256)
    x = leaky(x)

    # to_depth pre-activation z (weight broadcast over 128 lanes -> lane-dense
    # unmasked bf16 stores).  sigmoid + near/far affine are hoisted to wrapper.
    z = (jnp.dot(x.astype(bf16), wtd_ref[...], preferred_element_type=f32)
         + btd_ref[...])                                 # (tb, 128)
    out_ref[...] = z.astype(out_ref.dtype)


# --------------------------------- wrapper -----------------------------------
def _pick_tb(n):
    """Largest tile <=1024 (multiple of 256) keeping ~8 grid steps, so the
    'parallel' axis still gives v7x's 2 TensorCores several steps each."""
    tb = (n // 8) // 256 * 256
    return int(max(256, min(1024, tb)))


def depthnet_forward(rays_o, rays_d, packed, tb=None):
    n = rays_o.shape[0]
    if tb is None:
        tb = _pick_tb(n)
    assert tb % 8 == 0

    eo = embed(rays_o)                                               # (N, 63)
    ed = embed(rays_d)                                               # (N, 63)
    _, pts = find_intersection_points_with_sphere(rays_o, rays_d, SPHERE_RADIUS)
    ei = embed(pts.reshape(pts.shape[0], 6))                         # (N, 126)

    n_pad = -(-n // tb) * tb                                         # ceil to tb

    def pad_feat(e):
        return jnp.pad(e, ((0, n_pad - n), (0, EMB_PAD - e.shape[1])))

    e_all = jnp.concatenate([pad_feat(eo), pad_feat(ed), pad_feat(ei)],
                            axis=-1).astype(jnp.bfloat16)            # (n_pad, 384)

    in_specs = [pl.BlockSpec((tb, 3 * EMB_PAD), lambda i: (i, 0))]
    for p in packed:
        nd = p.ndim
        in_specs.append(pl.BlockSpec(p.shape, lambda i, _nd=nd: (0,) * _nd))

    macs_per_row = (3 * N_STREAM_LAYERS * 2 * HID * HID   # streams, K=256 dots
                    + 6 * HID * HID                       # cat0 (768 x 128)
                    + 3 * HID * HID                       # mid cat layers
                    + HID * 2 * HID                       # last cat (128 x 256)
                    + 2 * HID * HID)                      # to_depth (256 x 128)
    param_bytes = sum(int(p.size) * p.dtype.itemsize for p in packed)
    cost = pl.CostEstimate(
        flops=2 * int(n_pad) * int(macs_per_row),
        transcendentals=0,                                # sigmoid hoisted out
        bytes_accessed=int(e_all.size) * 2 + int(n_pad) * HID * 2 + param_bytes)

    fn = pl.pallas_call(
        depthnet_kernel,
        out_shape=jax.ShapeDtypeStruct((n_pad, HID), jnp.bfloat16),
        grid=(n_pad // tb,),
        in_specs=in_specs,
        out_specs=pl.BlockSpec((tb, HID), lambda i: (i, 0)),
        scratch_shapes=[pltpu.VMEM((tb, 2 * HID), jnp.bfloat16),   # [h | emb]
                        pltpu.VMEM((tb, 6 * HID), jnp.bfloat16)],  # skip slab
        compiler_params=pltpu.CompilerParams(
            dimension_semantics=("parallel",),
            vmem_limit_bytes=32 * 1024 * 1024,            # safe on v5e/v6e/v7x
        ),
        cost_estimate=cost,
    )
    z = fn(e_all, *packed)                                # (n_pad, 128) bf16
    z = z[:n, :1].astype(jnp.float32)                     # (n, 1)
    depth = jax.nn.sigmoid(z)
    return NEAR * (1.0 - depth) + FAR * depth


# -------------------- pure-JAX reference (bf16-matmul match) ------------------
def depthnet_reference(rays_o, rays_d, params):
    bf16, f32 = jnp.bfloat16, jnp.float32
    eo = embed(rays_o).astype(bf16)
    ed = embed(rays_d).astype(bf16)
    _, pts = find_intersection_points_with_sphere(rays_o, rays_d, SPHERE_RADIUS)
    ei = embed(pts.reshape(pts.shape[0], 6)).astype(bf16)

    def bdot(a, w):
        return jnp.dot(a.astype(bf16), w.astype(bf16), preferred_element_type=f32)

    def run_stream(emb, layers, E):
        h = emb
        for l, (w, b) in enumerate(layers):
            prev = E if l == 0 else HID
            h = (bdot(h, w[:prev]) + bdot(emb, w[prev:]) + b).astype(bf16)
        return h

    ho = run_stream(eo, params["streams"][0], ORIGIN_DIMS)
    hd = run_stream(ed, params["streams"][1], DIRECTION_DIMS)
    hi = run_stream(ei, params["streams"][2], INTERSECT_DIMS)

    w0, b0 = params["cat"][0]
    parts = [bdot(ho, w0[:HID]), bdot(hd, w0[HID:2 * HID]), bdot(hi, w0[2 * HID:3 * HID])]
    off = 3 * HID
    for e, E in zip((eo, ed, ei), EMB_DIMS):
        parts.append(bdot(e, w0[off:off + E]))
        off += E
    x = sum(parts) + b0
    x = jnp.where(x > 0, x, NEG_SLOPE * x)

    for i in (1, 2, 3, 4):
        w, b = params["cat"][i]
        x = bdot(x, w) + b
        x = jnp.where(x > 0, x, NEG_SLOPE * x)

    w_td, b_td = params["to_depth"]
    depth = jax.nn.sigmoid(bdot(x, w_td) + b_td)
    return NEAR * (1.0 - depth) + FAR * depth


# ----------------------------------- main ------------------------------------
if __name__ == "__main__":
    key = jax.random.PRNGKey(0)
    k_o, k_d, k_p = jax.random.split(key, 3)

    N = 384            # not a multiple of tb -> exercises padding; 2-step grid
    # origins inside the sphere so the ray/sphere intersection always exists;
    # directions normalized (required by the intersection stand-in).
    rays_o = jax.random.uniform(k_o, (N, 3), jnp.float32, -0.5, 0.5)
    d = jax.random.normal(k_d, (N, 3), jnp.float32)
    rays_d = d / jnp.linalg.norm(d, axis=-1, keepdims=True)

    params = build_params(k_p)
    packed = pack_params(params)

    out = depthnet_forward(rays_o, rays_d, packed)        # tb auto-selected
    out = jax.block_until_ready(out)
    assert out.shape == (N, 1) and out.dtype == jnp.float32

    ref = depthnet_reference(rays_o, rays_d, params)
    err = float(jnp.max(jnp.abs(out - ref)))
    # bf16-rounded pre-sigmoid z adds <= ~4e-3 on the [2,6]-scaled depth.
    assert err < 1e-2, f"mismatch vs bf16 JAX reference: max abs err = {err}"

    print("KERNEL_OK")
</pallas_src>

<mosaic_0001>
module attributes {stable_mosaic.version = 11 : i64} {
  func.func @depthnet_kernel(%arg0: i32, %arg1: memref<256x384xbf16, #tpu.memory_space<vmem>>, %arg2: memref<3x6x256x128xbf16, #tpu.memory_space<vmem>>, %arg3: memref<3x6x1x128xf32, #tpu.memory_space<vmem>>, %arg4: memref<768x128xbf16, #tpu.memory_space<vmem>>, %arg5: memref<1x128xf32, #tpu.memory_space<vmem>>, %arg6: memref<3x128x128xbf16, #tpu.memory_space<vmem>>, %arg7: memref<3x1x128xf32, #tpu.memory_space<vmem>>, %arg8: memref<128x256xbf16, #tpu.memory_space<vmem>>, %arg9: memref<1x256xf32, #tpu.memory_space<vmem>>, %arg10: memref<256x128xbf16, #tpu.memory_space<vmem>>, %arg11: memref<1x128xf32, #tpu.memory_space<vmem>>, %arg12: memref<256x128xbf16, #tpu.memory_space<vmem>>, %arg13: memref<256x256xbf16, #tpu.memory_space<vmem>>, %arg14: memref<256x768xbf16, #tpu.memory_space<vmem>>) attributes {dimension_semantics = [#tpu.dimension_semantics<parallel>], iteration_bounds = array<i64: 2>, scalar_prefetch = 0 : i64, scratch_operands = 2 : i64, tpu.core_type = #tpu.core_type<tc>, window_params = [{transform_indices = @transform_0, window_bounds = array<i64: 256, 384>}, {pipeline_mode = #tpu.pipeline_mode<synchronous>, transform_indices = @transform_1, window_bounds = array<i64: 3, 6, 256, 128>}, {pipeline_mode = #tpu.pipeline_mode<synchronous>, transform_indices = @transform_2, window_bounds = array<i64: 3, 6, 1, 128>}, {pipeline_mode = #tpu.pipeline_mode<synchronous>, transform_indices = @transform_3, window_bounds = array<i64: 768, 128>}, {pipeline_mode = #tpu.pipeline_mode<synchronous>, transform_indices = @transform_4, window_bounds = array<i64: 1, 128>}, {pipeline_mode = #tpu.pipeline_mode<synchronous>, transform_indices = @transform_5, window_bounds = array<i64: 3, 128, 128>}, {pipeline_mode = #tpu.pipeline_mode<synchronous>, transform_indices = @transform_6, window_bounds = array<i64: 3, 1, 128>}, {pipeline_mode = #tpu.pipeline_mode<synchronous>, transform_indices = @transform_7, window_bounds = array<i64: 128, 256>}, {pipeline_mode = #tpu.pipeline_mode<synchronous>, transform_indices = @transform_8, window_bounds = array<i64: 1, 256>}, {pipeline_mode = #tpu.pipeline_mode<synchronous>, transform_indices = @transform_9, window_bounds = array<i64: 256, 128>}, {pipeline_mode = #tpu.pipeline_mode<synchronous>, transform_indices = @transform_10, window_bounds = array<i64: 1, 128>}, {transform_indices = @transform_11, window_bounds = array<i64: 256, 128>}]} {
    %c0 = arith.constant 0 : index
    %c0_0 = arith.constant 0 : index
    %0 = vector.load %arg1[%c0, %c0_0] : memref<256x384xbf16, #tpu.memory_space<vmem>>, vector<256x128xbf16>
    %c0_1 = arith.constant 0 : index
    %c128 = arith.constant 128 : index
    %1 = vector.load %arg13[%c0_1, %c128] : memref<256x256xbf16, #tpu.memory_space<vmem>>, vector<256x128xbf16>
    tpu.vector_store %arg13[%c0_1, %c128], %0 {strides = array<i32>} : memref<256x256xbf16, #tpu.memory_space<vmem>>, vector<256x128xbf16>,
    %c0_2 = arith.constant 0 : index
    %c0_3 = arith.constant 0 : index
    %2 = vector.load %arg13[%c0_2, %c0_3] : memref<256x256xbf16, #tpu.memory_space<vmem>>, vector<256x128xbf16>
    tpu.vector_store %arg13[%c0_2, %c0_3], %0 {strides = array<i32>} : memref<256x256xbf16, #tpu.memory_space<vmem>>, vector<256x128xbf16>,
    %c0_4 = arith.constant 0 : index
    %c0_5 = arith.constant 0 : index
    %3 = vector.load %arg13[%c0_4, %c0_5] : memref<256x256xbf16, #tpu.memory_space<vmem>>, vector<256x256xbf16>
    %c0_6 = arith.constant 0 : index
    %c0_7 = arith.constant 0 : index
    %c0_8 = arith.constant 0 : index
    %c0_9 = arith.constant 0 : index
    %4 = vector.load %arg2[%c0_6, %c0_7, %c0_8, %c0_9] : memref<3x6x256x128xbf16, #tpu.memory_space<vmem>>, vector<1x1x256x128xbf16>
    %5 = vector.shape_cast %4 : vector<1x1x256x128xbf16> to vector<256x128xbf16>
    %cst = arith.constant dense<0.000000e+00> : vector<256x128xf32>
    %6 = tpu.matmul %3, %5, %cst {dimension_numbers = #tpu.dot_dimension_numbers<[1], [0], [0], [1], [0, 0, 1, 1], [], []>} : vector<256x256xbf16>, vector<256x128xbf16>, vector<256x128xf32> -> vector<256x128xf32>
    %c0_10 = arith.constant 0 : index
    %c0_11 = arith.constant 0 : index
    %c0_12 = arith.constant 0 : index
    %c0_13 = arith.constant 0 : index
    %7 = vector.load %arg3[%c0_10, %c0_11, %c0_12, %c0_13] : memref<3x6x1x128xf32, #tpu.memory_space<vmem>>, vector<1x1x1x128xf32>
    %8 = vector.shape_cast %7 : vector<1x1x1x128xf32> to vector<1x128xf32>
    %9 = vector.broadcast %8 : vector<1x128xf32> to vector<256x128xf32>
    %10 = arith.addf %6, %9 : vector<256x128xf32>
    %11 = arith.truncf %10 : vector<256x128xf32> to vector<256x128xbf16>
    %c0_14 = arith.constant 0 : index
    %c0_15 = arith.constant 0 : index
    %12 = vector.load %arg13[%c0_14, %c0_15] : memref<256x256xbf16, #tpu.memory_space<vmem>>, vector<256x128xbf16>
    tpu.vector_store %arg13[%c0_14, %c0_15], %11 {strides = array<i32>} : memref<256x256xbf16, #tpu.memory_space<vmem>>, vector<256x128xbf16>,
    %c0_16 = arith.constant 0 : index
    %c0_17 = arith.constant 0 : index
    %13 = vector.load %arg13[%c0_16, %c0_17] : memref<256x256xbf16, #tpu.memory_space<vmem>>, vector<256x256xbf16>
    %c0_18 = arith.constant 0 : index
    %c1 = arith.constant 1 : index
    %c0_19 = arith.constant 0 : index
    %c0_20 = arith.constant 0 : index
    %14 = vector.load %arg2[%c0_18, %c1, %c0_19, %c0_20] : memref<3x6x256x128xbf16, #tpu.memory_space<vmem>>, vector<1x1x256x128xbf16>
    %15 = vector.shape_cast %14 : vector<1x1x256x128xbf16> to vector<256x128xbf16>
    %cst_21 = arith.constant dense<0.000000e+00> : vector<256x128xf32>
    %16 = tpu.matmul %13, %15, %cst_21 {dimension_numbers = #tpu.dot_dimension_numbers<[1], [0], [0], [1], [0, 0, 1, 1], [], []>} : vector<256x256xbf16>, vector<256x128xbf16>, vector<256x128xf32> -> vector<256x128xf32>
    %c0_22 = arith.constant 0 : index
    %c1_23 = arith.constant 1 : index
    %c0_24 = arith.constant 0 : index
    %c0_25 = arith.constant 0 : index
    %17 = vector.load %arg3[%c0_22, %c1_23, %c0_24, %c0_25] : memref<3x6x1x128xf32, #tpu.memory_space<vmem>>, vector<1x1x1x128xf32>
    %18 = vector.shape_cast %17 : vector<1x1x1x128xf32> to vector<1x128xf32>
    %19 = vector.broadcast %18 : vector<1x128xf32> to vector<256x128xf32>
    %20 = arith.addf %16, %19 : vector<256x128xf32>
    %21 = arith.truncf %20 : vector<256x128xf32> to vector<256x128xbf16>
    %c0_26 = arith.constant 0 : index
    %c0_27 = arith.constant 0 : index
    %22 = vector.load %arg13[%c0_26, %c0_27] : memref<256x256xbf16, #tpu.memory_space<vmem>>, vector<256x128xbf16>
    tpu.vector_store %arg13[%c0_26, %c0_27], %21 {strides = array<i32>} : memref<256x256xbf16, #tpu.memory_space<vmem>>, vector<256x128xbf16>,
    %c0_28 = arith.constant 0 : index
    %c0_29 = arith.constant 0 : index
    %23 = vector.load %arg13[%c0_28, %c0_29] : memref<256x256xbf16, #tpu.memory_space<vmem>>, vector<256x256xbf16>
    %c0_30 = arith.constant 0 : index
    %c2 = arith.constant 2 : index
    %c0_31 = arith.constant 0 : index
    %c0_32 = arith.constant 0 : index
    %24 = vector.load %arg2[%c0_30, %c2, %c0_31, %c0_32] : memref<3x6x256x128xbf16, #tpu.memory_space<vmem>>, vector<1x1x256x128xbf16>
    %25 = vector.shape_cast %24 : vector<1x1x256x128xbf16> to vector<256x128xbf16>
    %cst_33 = arith.constant dense<0.000000e+00> : vector<256x128xf32>
    %26 = tpu.matmul %23, %25, %cst_33 {dimension_numbers = #tpu.dot_dimension_numbers<[1], [0], [0], [1], [0, 0, 1, 1], [], []>} : vector<256x256xbf16>, vector<256x128xbf16>, vector<256x128xf32> -> vector<256x128xf32>
    %c0_34 = arith.constant 0 : index
    %c2_35 = arith.constant 2 : index
    %c0_36 = arith.constant 0 : index
    %c0_37 = arith.constant 0 : index
    %27 = vector.load %arg3[%c0_34, %c2_35, %c0_36, %c0_37] : memref<3x6x1x128xf32, #tpu.memory_space<vmem>>, vector<1x1x1x128xf32>
    %28 = vector.shape_cast %27 : vector<1x1x1x128xf32> to vector<1x128xf32>
    %29 = vector.broadcast %28 : vector<1x128xf32> to vector<256x128xf32>
    %30 = arith.addf %26, %29 : vector<256x128xf32>
    %31 = arith.truncf %30 : vector<256x128xf32> to vector<256x128xbf16>
    %c0_38 = arith.constant 0 : index
    %c0_39 = arith.constant 0 : index
    %32 = vector.load %arg13[%c0_38, %c0_39] : memref<256x256xbf16, #tpu.memory_space<vmem>>, vector<256x128xbf16>
    tpu.vector_store %arg13[%c0_38, %c0_39], %31 {strides = array<i32>} : memref<256x256xbf16, #tpu.memory_space<vmem>>, vector<256x128xbf16>,
    %c0_40 = arith.constant 0 : index
    %c0_41 = arith.constant 0 : index
    %33 = vector.load %arg13[%c0_40, %c0_41] : memref<256x256xbf16, #tpu.memory_space<vmem>>, vector<256x256xbf16>
    %c0_42 = arith.constant 0 : index
    %c3 = arith.constant 3 : index
    %c0_43 = arith.constant 0 : index
    %c0_44 = arith.constant 0 : index
    %34 = vector.load %arg2[%c0_42, %c3, %c0_43, %c0_44] : memref<3x6x256x128xbf16, #tpu.memory_space<vmem>>, vector<1x1x256x128xbf16>
    %35 = vector.shape_cast %34 : vector<1x1x256x128xbf16> to vector<256x128xbf16>
    %cst_45 = arith.constant dense<0.000000e+00> : vector<256x128xf32>
    %36 = tpu.matmul %33, %35, %cst_45 {dimension_numbers = #tpu.dot_dimension_numbers<[1], [0], [0], [1], [0, 0, 1, 1], [], []>} : vector<256x256xbf16>, vector<256x128xbf16>, vector<256x128xf32> -> vector<256x128xf32>
    %c0_46 = arith.constant 0 : index
    %c3_47 = arith.constant 3 : index
    %c0_48 = arith.constant 0 : index
    %c0_49 = arith.constant 0 : index
    %37 = vector.load %arg3[%c0_46, %c3_47, %c0_48, %c0_49] : memref<3x6x1x128xf32, #tpu.memory_space<vmem>>, vector<1x1x1x128xf32>
    %38 = vector.shape_cast %37 : vector<1x1x1x128xf32> to vector<1x128xf32>
    %39 = vector.broadcast %38 : vector<1x128xf32> to vector<256x128xf32>
    %40 = arith.addf %36, %39 : vector<256x128xf32>
    %41 = arith.truncf %40 : vector<256x128xf32> to vector<256x128xbf16>
    %c0_50 = arith.constant 0 : index
    %c0_51 = arith.constant 0 : index
    %42 = vector.load %arg13[%c0_50, %c0_51] : memref<256x256xbf16, #tpu.memory_space<vmem>>, vector<256x128xbf16>
    tpu.vector_store %arg13[%c0_50, %c0_51], %41 {strides = array<i32>} : memref<256x256xbf16, #tpu.memory_space<vmem>>, vector<256x128xbf16>,
    %c0_52 = arith.constant 0 : index
    %c0_53 = arith.constant 0 : index
    %43 = vector.load %arg13[%c0_52, %c0_53] : memref<256x256xbf16, #tpu.memory_space<vmem>>, vector<256x256xbf16>
    %c0_54 = arith.constant 0 : index
    %c4 = arith.constant 4 : index
    %c0_55 = arith.constant 0 : index
    %c0_56 = arith.constant 0 : index
    %44 = vector.load %arg2[%c0_54, %c4, %c0_55, %c0_56] : memref<3x6x256x128xbf16, #tpu.memory_space<vmem>>, vector<1x1x256x128xbf16>
    %45 = vector.shape_cast %44 : vector<1x1x256x128xbf16> to vector<256x128xbf16>
    %cst_57 = arith.constant dense<0.000000e+00> : vector<256x128xf32>
    %46 = tpu.matmul %43, %45, %cst_57 {dimension_numbers = #tpu.dot_dimension_numbers<[1], [0], [0], [1], [0, 0, 1, 1], [], []>} : vector<256x256xbf16>, vector<256x128xbf16>, vector<256x128xf32> -> vector<256x128xf32>
    %c0_58 = arith.constant 0 : index
    %c4_59 = arith.constant 4 : index
    %c0_60 = arith.constant 0 : index
    %c0_61 = arith.constant 0 : index
    %47 = vector.load %arg3[%c0_58, %c4_59, %c0_60, %c0_61] : memref<3x6x1x128xf32, #tpu.memory_space<vmem>>, vector<1x1x1x128xf32>
    %48 = vector.shape_cast %47 : vector<1x1x1x128xf32> to vector<1x128xf32>
    %49 = vector.broadcast %48 : vector<1x128xf32> to vector<256x128xf32>
    %50 = arith.addf %46, %49 : vector<256x128xf32>
    %51 = arith.truncf %50 : vector<256x128xf32> to vector<256x128xbf16>
    %c0_62 = arith.constant 0 : index
    %c0_63 = arith.constant 0 : index
    %52 = vector.load %arg13[%c0_62, %c0_63] : memref<256x256xbf16, #tpu.memory_space<vmem>>, vector<256x128xbf16>
    tpu.vector_store %arg13[%c0_62, %c0_63], %51 {strides = array<i32>} : memref<256x256xbf16, #tpu.memory_space<vmem>>, vector<256x128xbf16>,
    %c0_64 = arith.constant 0 : index
    %c0_65 = arith.constant 0 : index
    %53 = vector.load %arg13[%c0_64, %c0_65] : memref<256x256xbf16, #tpu.memory_space<vmem>>, vector<256x256xbf16>
    %c0_66 = arith.constant 0 : index
    %c5 = arith.constant 5 : index
    %c0_67 = arith.constant 0 : index
    %c0_68 = arith.constant 0 : index
    %54 = vector.load %arg2[%c0_66, %c5, %c0_67, %c0_68] : memref<3x6x256x128xbf16, #tpu.memory_space<vmem>>, vector<1x1x256x128xbf16>
    %55 = vector.shape_cast %54 : vector<1x1x256x128xbf16> to vector<256x128xbf16>
    %cst_69 = arith.constant dense<0.000000e+00> : vector<256x128xf32>
    %56 = tpu.matmul %53, %55, %cst_69 {dimension_numbers = #tpu.dot_dimension_numbers<[1], [0], [0], [1], [0, 0, 1, 1], [], []>} : vector<256x256xbf16>, vector<256x128xbf16>, vector<256x128xf32> -> vector<256x128xf32>
    %c0_70 = arith.constant 0 : index
    %c5_71 = arith.constant 5 : index
    %c0_72 = arith.constant 0 : index
    %c0_73 = arith.constant 0 : index
    %57 = vector.load %arg3[%c0_70, %c5_71, %c0_72, %c0_73] : memref<3x6x1x128xf32, #tpu.memory_space<vmem>>, vector<1x1x1x128xf32>
    %58 = vector.shape_cast %57 : vector<1x1x1x128xf32> to vector<1x128xf32>
    %59 = vector.broadcast %58 : vector<1x128xf32> to vector<256x128xf32>
    %60 = arith.addf %56, %59 : vector<256x128xf32>
    %61 = arith.truncf %60 : vector<256x128xf32> to vector<256x128xbf16>
    %c0_74 = arith.constant 0 : index
    %c0_75 = arith.constant 0 : index
    %62 = vector.load %arg14[%c0_74, %c0_75] : memref<256x768xbf16, #tpu.memory_space<vmem>>, vector<256x128xbf16>
    tpu.vector_store %arg14[%c0_74, %c0_75], %61 {strides = array<i32>} : memref<256x768xbf16, #tpu.memory_space<vmem>>, vector<256x128xbf16>,
    %c0_76 = arith.constant 0 : index
    %c128_77 = arith.constant 128 : index
    %63 = vector.load %arg1[%c0_76, %c128_77] : memref<256x384xbf16, #tpu.memory_space<vmem>>, vector<256x128xbf16>
    %c0_78 = arith.constant 0 : index
    %c128_79 = arith.constant 128 : index
    %64 = vector.load %arg13[%c0_78, %c128_79] : memref<256x256xbf16, #tpu.memory_space<vmem>>, vector<256x128xbf16>
    tpu.vector_store %arg13[%c0_78, %c128_79], %63 {strides = array<i32>} : memref<256x256xbf16, #tpu.memory_space<vmem>>, vector<256x128xbf16>,
    %c0_80 = arith.constant 0 : index
    %c0_81 = arith.constant 0 : index
    %65 = vector.load %arg13[%c0_80, %c0_81] : memref<256x256xbf16, #tpu.memory_space<vmem>>, vector<256x128xbf16>
    tpu.vector_store %arg13[%c0_80, %c0_81], %63 {strides = array<i32>} : memref<256x256xbf16, #tpu.memory_space<vmem>>, vector<256x128xbf16>,
    %c0_82 = arith.constant 0 : index
    %c0_83 = arith.constant 0 : index
    %66 = vector.load %arg13[%c0_82, %c0_83] : memref<256x256xbf16, #tpu.memory_space<vmem>>, vector<256x256xbf16>
    %c1_84 = arith.constant 1 : index
    %c0_85 = arith.constant 0 : index
    %c0_86 = arith.constant 0 : index
    %c0_87 = arith.constant 0 : index
    %67 = vector.load %arg2[%c1_84, %c0_85, %c0_86, %c0_87] : memref<3x6x256x128xbf16, #tpu.memory_space<vmem>>, vector<1x1x256x128xbf16>
    %68 = vector.shape_cast %67 : vector<1x1x256x128xbf16> to vector<256x128xbf16>
    %cst_88 = arith.constant dense<0.000000e+00> : vector<256x128xf32>
    %69 = tpu.matmul %66, %68, %cst_88 {dimension_numbers = #tpu.dot_dimension_numbers<[1], [0], [0], [1], [0, 0, 1, 1], [], []>} : vector<256x256xbf16>, vector<256x128xbf16>, vector<256x128xf32> -> vector<256x128xf32>
    %c1_89 = arith.constant 1 : index
    %c0_90 = arith.constant 0 : index
    %c0_91 = arith.constant 0 : index
    %c0_92 = arith.constant 0 : index
    %70 = vector.load %arg3[%c1_89, %c0_90, %c0_91, %c0_92] : memref<3x6x1x128xf32, #tpu.memory_space<vmem>>, vector<1x1x1x128xf32>
    %71 = vector.shape_cast %70 : vector<1x1x1x128xf32> to vector<1x128xf32>
    %72 = vector.broadcast %71 : vector<1x128xf32> to vector<256x128xf32>
    %73 = arith.addf %69, %72 : vector<256x128xf32>
    %74 = arith.truncf %73 : vector<256x128xf32> to vector<256x128xbf16>
    %c0_93 = arith.constant 0 : index
    %c0_94 = arith.constant 0 : index
    %75 = vector.load %arg13[%c0_93, %c0_94] : memref<256x256xbf16, #tpu.memory_space<vmem>>, vector<256x128xbf16>
    tpu.vector_store %arg13[%c0_93, %c0_94], %74 {strides = array<i32>} : memref<256x256xbf16, #tpu.memory_space<vmem>>, vector<256x128xbf16>,
    %c0_95 = arith.constant 0 : index
    %c0_96 = arith.constant 0 : index
    %76 = vector.load %arg13[%c0_95, %c0_96] : memref<256x256xbf16, #tpu.memory_space<vmem>>, vector<256x256xbf16>
    %c1_97 = arith.constant 1 : index
    %c1_98 = arith.constant 1 : index
    %c0_99 = arith.constant 0 : index
    %c0_100 = arith.constant 0 : index
    %77 = vector.load %arg2[%c1_97, %c1_98, %c0_99, %c0_100] : memref<3x6x256x128xbf16, #tpu.memory_space<vmem>>, vector<1x1x256x128xbf16>
    %78 = vector.shape_cast %77 : vector<1x1x256x128xbf16> to vector<256x128xbf16>
    %cst_101 = arith.constant dense<0.000000e+00> : vector<256x128xf32>
    %79 = tpu.matmul %76, %78, %cst_101 {dimension_numbers = #tpu.dot_dimension_numbers<[1], [0], [0], [1], [0, 0, 1, 1], [], []>} : vector<256x256xbf16>, vector<256x128xbf16>, vector<256x128xf32> -> vector<256x128xf32>
    %c1_102 = arith.constant 1 : index
    %c1_103 = arith.constant 1 : index
    %c0_104 = arith.constant 0 : index
    %c0_105 = arith.constant 0 : index
    %80 = vector.load %arg3[%c1_102, %c1_103, %c0_104, %c0_105] : memref<3x6x1x128xf32, #tpu.memory_space<vmem>>, vector<1x1x1x128xf32>
    %81 = vector.shape_cast %80 : vector<1x1x1x128xf32> to vector<1x128xf32>
    %82 = vector.broadcast %81 : vector<1x128xf32> to vector<256x128xf32>
    %83 = arith.addf %79, %82 : vector<256x128xf32>
    %84 = arith.truncf %83 : vector<256x128xf32> to vector<256x128xbf16>
    %c0_106 = arith.constant 0 : index
    %c0_107 = arith.constant 0 : index
    %85 = vector.load %arg13[%c0_106, %c0_107] : memref<256x256xbf16, #tpu.memory_space<vmem>>, vector<256x128xbf16>
    tpu.vector_store %arg13[%c0_106, %c0_107], %84 {strides = array<i32>} : memref<256x256xbf16, #tpu.memory_space<vmem>>, vector<256x128xbf16>,
    %c0_108 = arith.constant 0 : index
    %c0_109 = arith.constant 0 : index
    %86 = vector.load %arg13[%c0_108, %c0_109] : memref<256x256xbf16, #tpu.memory_space<vmem>>, vector<256x256xbf16>
    %c1_110 = arith.constant 1 : index
    %c2_111 = arith.constant 2 : index
    %c0_112 = arith.constant 0 : index
    %c0_113 = arith.constant 0 : index
    %87 = vector.load %arg2[%c1_110, %c2_111, %c0_112, %c0_113] : memref<3x6x256x128xbf16, #tpu.memory_space<vmem>>, vector<1x1x256x128xbf16>
    %88 = vector.shape_cast %87 : vector<1x1x256x128xbf16> to vector<256x128xbf16>
    %cst_114 = arith.constant dense<0.000000e+00> : vector<256x128xf32>
    %89 = tpu.matmul %86, %88, %cst_114 {dimension_numbers = #tpu.dot_dimension_numbers<[1], [0], [0], [1], [0, 0, 1, 1], [], []>} : vector<256x256xbf16>, vector<256x128xbf16>, vector<256x128xf32> -> vector<256x128xf32>
    %c1_115 = arith.constant 1 : index
    %c2_116 = arith.constant 2 : index
    %c0_117 = arith.constant 0 : index
    %c0_118 = arith.constant 0 : index
    %90 = vector.load %arg3[%c1_115, %c2_116, %c0_117, %c0_118] : memref<3x6x1x128xf32, #tpu.memory_space<vmem>>, vector<1x1x1x128xf32>
    %91 = vector.shape_cast %90 : vector<1x1x1x128xf32> to vector<1x128xf32>
    %92 = vector.broadcast %91 : vector<1x128xf32> to vector<256x128xf32>
    %93 = arith.addf %89, %92 : vector<256x128xf32>
    %94 = arith.truncf %93 : vector<256x128xf32> to vector<256x128xbf16>
    %c0_119 = arith.constant 0 : index
    %c0_120 = arith.constant 0 : index
    %95 = vector.load %arg13[%c0_119, %c0_120] : memref<256x256xbf16, #tpu.memory_space<vmem>>, vector<256x128xbf16>
    tpu.vector_store %arg13[%c0_119, %c0_120], %94 {strides = array<i32>} : memref<256x256xbf16, #tpu.memory_space<vmem>>, vector<256x128xbf16>,
    %c0_121 = arith.constant 0 : index
    %c0_122 = arith.constant 0 : index
    %96 = vector.load %arg13[%c0_121, %c0_122] : memref<256x256xbf16, #tpu.memory_space<vmem>>, vector<256x256xbf16>
    %c1_123 = arith.constant 1 : index
    %c3_124 = arith.constant 3 : index
    %c0_125 = arith.constant 0 : index
    %c0_126 = arith.constant 0 : index
    %97 = vector.load %arg2[%c1_123, %c3_124, %c0_125, %c0_126] : memref<3x6x256x128xbf16, #tpu.memory_space<vmem>>, vector<1x1x256x128xbf16>
    %98 = vector.shape_cast %97 : vector<1x1x256x128xbf16> to vector<256x128xbf16>
    %cst_127 = arith.constant dense<0.000000e+00> : vector<256x128xf32>
    %99 = tpu.matmul %96, %98, %cst_127 {dimension_numbers = #tpu.dot_dimension_numbers<[1], [0], [0], [1], [0, 0, 1, 1], [], []>} : vector<256x256xbf16>, vector<256x128xbf16>, vector<256x128xf32> -> vector<256x128xf32>
    %c1_128 = arith.constant 1 : index
    %c3_129 = arith.constant 3 : index
    %c0_130 = arith.constant 0 : index
    %c0_131 = arith.constant 0 : index
    %100 = vector.load %arg3[%c1_128, %c3_129, %c0_130, %c0_131] : memref<3x6x1x128xf32, #tpu.memory_space<vmem>>, vector<1x1x1x128xf32>
    %101 = vector.shape_cast %100 : vector<1x1x1x128xf32> to vector<1x128xf32>
    %102 = vector.broadcast %101 : vector<1x128xf32> to vector<256x128xf32>
    %103 = arith.addf %99, %102 : vector<256x128xf32>
    %104 = arith.truncf %103 : vector<256x128xf32> to vector<256x128xbf16>
    %c0_132 = arith.constant 0 : index
    %c0_133 = arith.constant 0 : index
    %105 = vector.load %arg13[%c0_132, %c0_133] : memref<256x256xbf16, #tpu.memory_space<vmem>>, vector<256x128xbf16>
    tpu.vector_store %arg13[%c0_132, %c0_133], %104 {strides = array<i32>} : memref<256x256xbf16, #tpu.memory_space<vmem>>, vector<256x128xbf16>,
    %c0_134 = arith.constant 0 : index
    %c0_135 = arith.constant 0 : index
    %106 = vector.load %arg13[%c0_134, %c0_135] : memref<256x256xbf16, #tpu.memory_space<vmem>>, vector<256x256xbf16>
    %c1_136 = arith.constant 1 : index
    %c4_137 = arith.constant 4 : index
    %c0_138 = arith.constant 0 : index
    %c0_139 = arith.constant 0 : index
    %107 = vector.load %arg2[%c1_136, %c4_137, %c0_138, %c0_139] : memref<3x6x256x128xbf16, #tpu.memory_space<vmem>>, vector<1x1x256x128xbf16>
    %108 = vector.shape_cast %107 : vector<1x1x256x128xbf16> to vector<256x128xbf16>
    %cst_140 = arith.constant dense<0.000000e+00> : vector<256x128xf32>
    %109 = tpu.matmul %106, %108, %cst_140 {dimension_numbers = #tpu.dot_dimension_numbers<[1], [0], [0], [1], [0, 0, 1, 1], [], []>} : vector<256x256xbf16>, vector<256x128xbf16>, vector<256x128xf32> -> vector<256x128xf32>
    %c1_141 = arith.constant 1 : index
    %c4_142 = arith.constant 4 : index
    %c0_143 = arith.constant 0 : index
    %c0_144 = arith.constant 0 : index
    %110 = vector.load %arg3[%c1_141, %c4_142, %c0_143, %c0_144] : memref<3x6x1x128xf32, #tpu.memory_space<vmem>>, vector<1x1x1x128xf32>
    %111 = vector.shape_cast %110 : vector<1x1x1x128xf32> to vector<1x128xf32>
    %112 = vector.broadcast %111 : vector<1x128xf32> to vector<256x128xf32>
    %113 = arith.addf %109, %112 : vector<256x128xf32>
    %114 = arith.truncf %113 : vector<256x128xf32> to vector<256x128xbf16>
    %c0_145 = arith.constant 0 : index
    %c0_146 = arith.constant 0 : index
    %115 = vector.load %arg13[%c0_145, %c0_146] : memref<256x256xbf16, #tpu.memory_space<vmem>>, vector<256x128xbf16>
    tpu.vector_store %arg13[%c0_145, %c0_146], %114 {strides = array<i32>} : memref<256x256xbf16, #tpu.memory_space<vmem>>, vector<256x128xbf16>,
    %c0_147 = arith.constant 0 : index
    %c0_148 = arith.constant 0 : index
    %116 = vector.load %arg13[%c0_147, %c0_148] : memref<256x256xbf16, #tpu.memory_space<vmem>>, vector<256x256xbf16>
    %c1_149 = arith.constant 1 : index
    %c5_150 = arith.constant 5 : index
    %c0_151 = arith.constant 0 : index
    %c0_152 = arith.constant 0 : index
    %117 = vector.load %arg2[%c1_149, %c5_150, %c0_151, %c0_152] : memref<3x6x256x128xbf16, #tpu.memory_space<vmem>>, vector<1x1x256x128xbf16>
    %118 = vector.shape_cast %117 : vector<1x1x256x128xbf16> to vector<256x128xbf16>
    %cst_153 = arith.constant dense<0.000000e+00> : vector<256x128xf32>
    %119 = tpu.matmul %116, %118, %cst_153 {dimension_numbers = #tpu.dot_dimension_numbers<[1], [0], [0], [1], [0, 0, 1, 1], [], []>} : vector<256x256xbf16>, vector<256x128xbf16>, vector<256x128xf32> -> vector<256x128xf32>
    %c1_154 = arith.constant 1 : index
    %c5_155 = arith.constant 5 : index
    %c0_156 = arith.constant 0 : index
    %c0_157 = arith.constant 0 : index
    %120 = vector.load %arg3[%c1_154, %c5_155, %c0_156, %c0_157] : memref<3x6x1x128xf32, #tpu.memory_space<vmem>>, vector<1x1x1x128xf32>
    %121 = vector.shape_cast %120 : vector<1x1x1x128xf32> to vector<1x128xf32>
    %122 = vector.broadcast %121 : vector<1x128xf32> to vector<256x128xf32>
    %123 = arith.addf %119, %122 : vector<256x128xf32>
    %124 = arith.truncf %123 : vector<256x128xf32> to vector<256x128xbf16>
    %c0_158 = arith.constant 0 : index
    %c128_159 = arith.constant 128 : index
    %125 = vector.load %arg14[%c0_158, %c128_159] : memref<256x768xbf16, #tpu.memory_space<vmem>>, vector<256x128xbf16>
    tpu.vector_store %arg14[%c0_158, %c128_159], %124 {strides = array<i32>} : memref<256x768xbf16, #tpu.memory_space<vmem>>, vector<256x128xbf16>,
    %c0_160 = arith.constant 0 : index
    %c256 = arith.constant 256 : index
    %126 = vector.load %arg1[%c0_160, %c256] : memref<256x384xbf16, #tpu.memory_space<vmem>>, vector<256x128xbf16>
    %c0_161 = arith.constant 0 : index
    %c128_162 = arith.constant 128 : index
    %127 = vector.load %arg13[%c0_161, %c128_162] : memref<256x256xbf16, #tpu.memory_space<vmem>>, vector<256x128xbf16>
    tpu.vector_store %arg13[%c0_161, %c128_162], %126 {strides = array<i32>} : memref<256x256xbf16, #tpu.memory_space<vmem>>, vector<256x128xbf16>,
    %c0_163 = arith.constant 0 : index
    %c0_164 = arith.constant 0 : index
    %128 = vector.load %arg13[%c0_163, %c0_164] : memref<256x256xbf16, #tpu.memory_space<vmem>>, vector<256x128xbf16>
    tpu.vector_store %arg13[%c0_163, %c0_164], %126 {strides = array<i32>} : memref<256x256xbf16, #tpu.memory_space<vmem>>, vector<256x128xbf16>,
    %c0_165 = arith.constant 0 : index
    %c0_166 = arith.constant 0 : index
    %129 = vector.load %arg13[%c0_165, %c0_166] : memref<256x256xbf16, #tpu.memory_space<vmem>>, vector<256x256xbf16>
    %c2_167 = arith.constant 2 : index
    %c0_168 = arith.constant 0 : index
    %c0_169 = arith.constant 0 : index
    %c0_170 = arith.constant 0 : index
    %130 = vector.load %arg2[%c2_167, %c0_168, %c0_169, %c0_170] : memref<3x6x256x128xbf16, #tpu.memory_space<vmem>>, vector<1x1x256x128xbf16>
    %131 = vector.shape_cast %130 : vector<1x1x256x128xbf16> to vector<256x128xbf16>
    %cst_171 = arith.constant dense<0.000000e+00> : vector<256x128xf32>
    %132 = tpu.matmul %129, %131, %cst_171 {dimension_numbers = #tpu.dot_dimension_numbers<[1], [0], [0], [1], [0, 0, 1, 1], [], []>} : vector<256x256xbf16>, vector<256x128xbf16>, vector<256x128xf32> -> vector<256x128xf32>
    %c2_172 = arith.constant 2 : index
    %c0_173 = arith.constant 0 : index
    %c0_174 = arith.constant 0 : index
    %c0_175 = arith.constant 0 : index
    %133 = vector.load %arg3[%c2_172, %c0_173, %c0_174, %c0_175] : memref<3x6x1x128xf32, #tpu.memory_space<vmem>>, vector<1x1x1x128xf32>
    %134 = vector.shape_cast %133 : vector<1x1x1x128xf32> to vector<1x128xf32>
    %135 = vector.broadcast %134 : vector<1x128xf32> to vector<256x128xf32>
    %136 = arith.addf %132, %135 : vector<256x128xf32>
    %137 = arith.truncf %136 : vector<256x128xf32> to vector<256x128xbf16>
    %c0_176 = arith.constant 0 : index
    %c0_177 = arith.constant 0 : index
    %138 = vector.load %arg13[%c0_176, %c0_177] : memref<256x256xbf16, #tpu.memory_space<vmem>>, vector<256x128xbf16>
    tpu.vector_store %arg13[%c0_176, %c0_177], %137 {strides = array<i32>} : memref<256x256xbf16, #tpu.memory_space<vmem>>, vector<256x128xbf16>,
    %c0_178 = arith.constant 0 : index
    %c0_179 = arith.constant 0 : index
    %139 = vector.load %arg13[%c0_178, %c0_179] : memref<256x256xbf16, #tpu.memory_space<vmem>>, vector<256x256xbf16>
    %c2_180 = arith.constant 2 : index
    %c1_181 = arith.constant 1 : index
    %c0_182 = arith.constant 0 : index
    %c0_183 = arith.constant 0 : index
    %140 = vector.load %arg2[%c2_180, %c1_181, %c0_182, %c0_183] : memref<3x6x256x128xbf16, #tpu.memory_space<vmem>>, vector<1x1x256x128xbf16>
    %141 = vector.shape_cast %140 : vector<1x1x256x128xbf16> to vector<256x128xbf16>
    %cst_184 = arith.constant dense<0.000000e+00> : vector<256x128xf32>
    %142 = tpu.matmul %139, %141, %cst_184 {dimension_numbers = #tpu.dot_dimension_numbers<[1], [0], [0], [1], [0, 0, 1, 1], [], []>} : vector<256x256xbf16>, vector<256x128xbf16>, vector<256x128xf32> -> vector<256x128xf32>
    %c2_185 = arith.constant 2 : index
    %c1_186 = arith.constant 1 : index
    %c0_187 = arith.constant 0 : index
    %c0_188 = arith.constant 0 : index
    %143 = vector.load %arg3[%c2_185, %c1_186, %c0_187, %c0_188] : memref<3x6x1x128xf32, #tpu.memory_space<vmem>>, vector<1x1x1x128xf32>
    %144 = vector.shape_cast %143 : vector<1x1x1x128xf32> to vector<1x128xf32>
    %145 = vector.broadcast %144 : vector<1x128xf32> to vector<256x128xf32>
    %146 = arith.addf %142, %145 : vector<256x128xf32>
    %147 = arith.truncf %146 : vector<256x128xf32> to vector<256x128xbf16>
    %c0_189 = arith.constant 0 : index
    %c0_190 = arith.constant 0 : index
    %148 = vector.load %arg13[%c0_189, %c0_190] : memref<256x256xbf16, #tpu.memory_space<vmem>>, vector<256x128xbf16>
    tpu.vector_store %arg13[%c0_189, %c0_190], %147 {strides = array<i32>} : memref<256x256xbf16, #tpu.memory_space<vmem>>, vector<256x128xbf16>,
    %c0_191 = arith.constant 0 : index
    %c0_192 = arith.constant 0 : index
    %149 = vector.load %arg13[%c0_191, %c0_192] : memref<256x256xbf16, #tpu.memory_space<vmem>>, vector<256x256xbf16>
    %c2_193 = arith.constant 2 : index
    %c2_194 = arith.constant 2 : index
    %c0_195 = arith.constant 0 : index
    %c0_196 = arith.constant 0 : index
    %150 = vector.load %arg2[%c2_193, %c2_194, %c0_195, %c0_196] : memref<3x6x256x128xbf16, #tpu.memory_space<vmem>>, vector<1x1x256x128xbf16>
    %151 = vector.shape_cast %150 : vector<1x1x256x128xbf16> to vector<256x128xbf16>
    %cst_197 = arith.constant dense<0.000000e+00> : vector<256x128xf32>
    %152 = tpu.matmul %149, %151, %cst_197 {dimension_numbers = #tpu.dot_dimension_numbers<[1], [0], [0], [1], [0, 0, 1, 1], [], []>} : vector<256x256xbf16>, vector<256x128xbf16>, vector<256x128xf32> -> vector<256x128xf32>
    %c2_198 = arith.constant 2 : index
    %c2_199 = arith.constant 2 : index
    %c0_200 = arith.constant 0 : index
    %c0_201 = arith.constant 0 : index
    %153 = vector.load %arg3[%c2_198, %c2_199, %c0_200, %c0_201] : memref<3x6x1x128xf32, #tpu.memory_space<vmem>>, vector<1x1x1x128xf32>
    %154 = vector.shape_cast %153 : vector<1x1x1x128xf32> to vector<1x128xf32>
    %155 = vector.broadcast %154 : vector<1x128xf32> to vector<256x128xf32>
    %156 = arith.addf %152, %155 : vector<256x128xf32>
    %157 = arith.truncf %156 : vector<256x128xf32> to vector<256x128xbf16>
    %c0_202 = arith.constant 0 : index
    %c0_203 = arith.constant 0 : index
    %158 = vector.load %arg13[%c0_202, %c0_203] : memref<256x256xbf16, #tpu.memory_space<vmem>>, vector<256x128xbf16>
    tpu.vector_store %arg13[%c0_202, %c0_203], %157 {strides = array<i32>} : memref<256x256xbf16, #tpu.memory_space<vmem>>, vector<256x128xbf16>,
    %c0_204 = arith.constant 0 : index
    %c0_205 = arith.constant 0 : index
    %159 = vector.load %arg13[%c0_204, %c0_205] : memref<256x256xbf16, #tpu.memory_space<vmem>>, vector<256x256xbf16>
    %c2_206 = arith.constant 2 : index
    %c3_207 = arith.constant 3 : index
    %c0_208 = arith.constant 0 : index
    %c0_209 = arith.constant 0 : index
    %160 = vector.load %arg2[%c2_206, %c3_207, %c0_208, %c0_209] : memref<3x6x256x128xbf16, #tpu.memory_space<vmem>>, vector<1x1x256x128xbf16>
    %161 = vector.shape_cast %160 : vector<1x1x256x128xbf16> to vector<256x128xbf16>
    %cst_210 = arith.constant dense<0.000000e+00> : vector<256x128xf32>
    %162 = tpu.matmul %159, %161, %cst_210 {dimension_numbers = #tpu.dot_dimension_numbers<[1], [0], [0], [1], [0, 0, 1, 1], [], []>} : vector<256x256xbf16>, vector<256x128xbf16>, vector<256x128xf32> -> vector<256x128xf32>
    %c2_211 = arith.constant 2 : index
    %c3_212 = arith.constant 3 : index
    %c0_213 = arith.constant 0 : index
    %c0_214 = arith.constant 0 : index
    %163 = vector.load %arg3[%c2_211, %c3_212, %c0_213, %c0_214] : memref<3x6x1x128xf32, #tpu.memory_space<vmem>>, vector<1x1x1x128xf32>
    %164 = vector.shape_cast %163 : vector<1x1x1x128xf32> to vector<1x128xf32>
    %165 = vector.broadcast %164 : vector<1x128xf32> to vector<256x128xf32>
    %166 = arith.addf %162, %165 : vector<256x128xf32>
    %167 = arith.truncf %166 : vector<256x128xf32> to vector<256x128xbf16>
    %c0_215 = arith.constant 0 : index
    %c0_216 = arith.constant 0 : index
    %168 = vector.load %arg13[%c0_215, %c0_216] : memref<256x256xbf16, #tpu.memory_space<vmem>>, vector<256x128xbf16>
    tpu.vector_store %arg13[%c0_215, %c0_216], %167 {strides = array<i32>} : memref<256x256xbf16, #tpu.memory_space<vmem>>, vector<256x128xbf16>,
    %c0_217 = arith.constant 0 : index
    %c0_218 = arith.constant 0 : index
    %169 = vector.load %arg13[%c0_217, %c0_218] : memref<256x256xbf16, #tpu.memory_space<vmem>>, vector<256x256xbf16>
    %c2_219 = arith.constant 2 : index
    %c4_220 = arith.constant 4 : index
    %c0_221 = arith.constant 0 : index
    %c0_222 = arith.constant 0 : index
    %170 = vector.load %arg2[%c2_219, %c4_220, %c0_221, %c0_222] : memref<3x6x256x128xbf16, #tpu.memory_space<vmem>>, vector<1x1x256x128xbf16>
    %171 = vector.shape_cast %170 : vector<1x1x256x128xbf16> to vector<256x128xbf16>
    %cst_223 = arith.constant dense<0.000000e+00> : vector<256x128xf32>
    %172 = tpu.matmul %169, %171, %cst_223 {dimension_numbers = #tpu.dot_dimension_numbers<[1], [0], [0], [1], [0, 0, 1, 1], [], []>} : vector<256x256xbf16>, vector<256x128xbf16>, vector<256x128xf32> -> vector<256x128xf32>
    %c2_224 = arith.constant 2 : index
    %c4_225 = arith.constant 4 : index
    %c0_226 = arith.constant 0 : index
    %c0_227 = arith.constant 0 : index
    %173 = vector.load %arg3[%c2_224, %c4_225, %c0_226, %c0_227] : memref<3x6x1x128xf32, #tpu.memory_space<vmem>>, vector<1x1x1x128xf32>
    %174 = vector.shape_cast %173 : vector<1x1x1x128xf32> to vector<1x128xf32>
    %175 = vector.broadcast %174 : vector<1x128xf32> to vector<256x128xf32>
    %176 = arith.addf %172, %175 : vector<256x128xf32>
    %177 = arith.truncf %176 : vector<256x128xf32> to vector<256x128xbf16>
    %c0_228 = arith.constant 0 : index
    %c0_229 = arith.constant 0 : index
    %178 = vector.load %arg13[%c0_228, %c0_229] : memref<256x256xbf16, #tpu.memory_space<vmem>>, vector<256x128xbf16>
    tpu.vector_store %arg13[%c0_228, %c0_229], %177 {strides = array<i32>} : memref<256x256xbf16, #tpu.memory_space<vmem>>, vector<256x128xbf16>,
    %c0_230 = arith.constant 0 : index
    %c0_231 = arith.constant 0 : index
    %179 = vector.load %arg13[%c0_230, %c0_231] : memref<256x256xbf16, #tpu.memory_space<vmem>>, vector<256x256xbf16>
    %c2_232 = arith.constant 2 : index
    %c5_233 = arith.constant 5 : index
    %c0_234 = arith.constant 0 : index
    %c0_235 = arith.constant 0 : index
    %180 = vector.load %arg2[%c2_232, %c5_233, %c0_234, %c0_235] : memref<3x6x256x128xbf16, #tpu.memory_space<vmem>>, vector<1x1x256x128xbf16>
    %181 = vector.shape_cast %180 : vector<1x1x256x128xbf16> to vector<256x128xbf16>
    %cst_236 = arith.constant dense<0.000000e+00> : vector<256x128xf32>
    %182 = tpu.matmul %179, %181, %cst_236 {dimension_numbers = #tpu.dot_dimension_numbers<[1], [0], [0], [1], [0, 0, 1, 1], [], []>} : vector<256x256xbf16>, vector<256x128xbf16>, vector<256x128xf32> -> vector<256x128xf32>
    %c2_237 = arith.constant 2 : index
    %c5_238 = arith.constant 5 : index
    %c0_239 = arith.constant 0 : index
    %c0_240 = arith.constant 0 : index
    %183 = vector.load %arg3[%c2_237, %c5_238, %c0_239, %c0_240] : memref<3x6x1x128xf32, #tpu.memory_space<vmem>>, vector<1x1x1x128xf32>
    %184 = vector.shape_cast %183 : vector<1x1x1x128xf32> to vector<1x128xf32>
    %185 = vector.broadcast %184 : vector<1x128xf32> to vector<256x128xf32>
    %186 = arith.addf %182, %185 : vector<256x128xf32>
    %187 = arith.truncf %186 : vector<256x128xf32> to vector<256x128xbf16>
    %c0_241 = arith.constant 0 : index
    %c256_242 = arith.constant 256 : index
    %188 = vector.load %arg14[%c0_241, %c256_242] : memref<256x768xbf16, #tpu.memory_space<vmem>>, vector<256x128xbf16>
    tpu.vector_store %arg14[%c0_241, %c256_242], %187 {strides = array<i32>} : memref<256x768xbf16, #tpu.memory_space<vmem>>, vector<256x128xbf16>,
    %c0_243 = arith.constant 0 : index
    %c0_244 = arith.constant 0 : index
    %189 = vector.load %arg1[%c0_243, %c0_244] : memref<256x384xbf16, #tpu.memory_space<vmem>>, vector<256x384xbf16>
    %c0_245 = arith.constant 0 : index
    %c384 = arith.constant 384 : index
    %190 = vector.load %arg14[%c0_245, %c384] : memref<256x768xbf16, #tpu.memory_space<vmem>>, vector<256x384xbf16>
    tpu.vector_store %arg14[%c0_245, %c384], %189 {strides = array<i32>} : memref<256x768xbf16, #tpu.memory_space<vmem>>, vector<256x384xbf16>,
    %c0_246 = arith.constant 0 : index
    %c0_247 = arith.constant 0 : index
    %191 = vector.load %arg14[%c0_246, %c0_247] : memref<256x768xbf16, #tpu.memory_space<vmem>>, vector<256x768xbf16>
    %c0_248 = arith.constant 0 : index
    %c0_249 = arith.constant 0 : index
    %192 = vector.load %arg4[%c0_248, %c0_249] : memref<768x128xbf16, #tpu.memory_space<vmem>>, vector<768x128xbf16>
    %cst_250 = arith.constant dense<0.000000e+00> : vector<256x128xf32>
    %193 = tpu.matmul %191, %192, %cst_250 {dimension_numbers = #tpu.dot_dimension_numbers<[1], [0], [0], [1], [0, 0, 1, 1], [], []>} : vector<256x768xbf16>, vector<768x128xbf16>, vector<256x128xf32> -> vector<256x128xf32>
    %c0_251 = arith.constant 0 : index
    %c0_252 = arith.constant 0 : index
    %194 = vector.load %arg5[%c0_251, %c0_252] : memref<1x128xf32, #tpu.memory_space<vmem>>, vector<1x128xf32>
    %195 = vector.broadcast %194 : vector<1x128xf32> to vector<256x128xf32>
    %196 = arith.addf %193, %195 : vector<256x128xf32>
    %cst_253 = arith.constant 0.00999999977 : f32
    %197 = vector.broadcast %cst_253 : f32 to vector<256x128xf32>
    %198 = arith.mulf %197, %196 : vector<256x128xf32>
    %199 = arith.maximumf %196, %198 : vector<256x128xf32>
    %200 = arith.truncf %199 : vector<256x128xf32> to vector<256x128xbf16>
    %c0_254 = arith.constant 0 : index
    %c0_255 = arith.constant 0 : index
    %c0_256 = arith.constant 0 : index
    %201 = vector.load %arg6[%c0_254, %c0_255, %c0_256] : memref<3x128x128xbf16, #tpu.memory_space<vmem>>, vector<1x128x128xbf16>
    %202 = vector.shape_cast %201 : vector<1x128x128xbf16> to vector<128x128xbf16>
    %cst_257 = arith.constant dense<0.000000e+00> : vector<256x128xf32>
    %203 = tpu.matmul %200, %202, %cst_257 {dimension_numbers = #tpu.dot_dimension_numbers<[1], [0], [0], [1], [0, 0, 1, 1], [], []>} : vector<256x128xbf16>, vector<128x128xbf16>, vector<256x128xf32> -> vector<256x128xf32>
    %c0_258 = arith.constant 0 : index
    %c0_259 = arith.constant 0 : index
    %c0_260 = arith.constant 0 : index
    %204 = vector.load %arg7[%c0_258, %c0_259, %c0_260] : memref<3x1x128xf32, #tpu.memory_space<vmem>>, vector<1x1x128xf32>
    %205 = vector.shape_cast %204 : vector<1x1x128xf32> to vector<1x128xf32>
    %206 = vector.broadcast %205 : vector<1x128xf32> to vector<256x128xf32>
    %207 = arith.addf %203, %206 : vector<256x128xf32>
    %cst_261 = arith.constant 0.00999999977 : f32
    %208 = vector.broadcast %cst_261 : f32 to vector<256x128xf32>
    %209 = arith.mulf %208, %207 : vector<256x128xf32>
    %210 = arith.maximumf %207, %209 : vector<256x128xf32>
    %211 = arith.truncf %210 : vector<256x128xf32> to vector<256x128xbf16>
    %c1_262 = arith.constant 1 : index
    %c0_263 = arith.constant 0 : index
    %c0_264 = arith.constant 0 : index
    %212 = vector.load %arg6[%c1_262, %c0_263, %c0_264] : memref<3x128x128xbf16, #tpu.memory_space<vmem>>, vector<1x128x128xbf16>
    %213 = vector.shape_cast %212 : vector<1x128x128xbf16> to vector<128x128xbf16>
    %cst_265 = arith.constant dense<0.000000e+00> : vector<256x128xf32>
    %214 = tpu.matmul %211, %213, %cst_265 {dimension_numbers = #tpu.dot_dimension_numbers<[1], [0], [0], [1], [0, 0, 1, 1], [], []>} : vector<256x128xbf16>, vector<128x128xbf16>, vector<256x128xf32> -> vector<256x128xf32>
    %c1_266 = arith.constant 1 : index
    %c0_267 = arith.constant 0 : index
    %c0_268 = arith.constant 0 : index
    %215 = vector.load %arg7[%c1_266, %c0_267, %c0_268] : memref<3x1x128xf32, #tpu.memory_space<vmem>>, vector<1x1x128xf32>
    %216 = vector.shape_cast %215 : vector<1x1x128xf32> to vector<1x128xf32>
    %217 = vector.broadcast %216 : vector<1x128xf32> to vector<256x128xf32>
    %218 = arith.addf %214, %217 : vector<256x128xf32>
    %cst_269 = arith.constant 0.00999999977 : f32
    %219 = vector.broadcast %cst_269 : f32 to vector<256x128xf32>
    %220 = arith.mulf %219, %218 : vector<256x128xf32>
    %221 = arith.maximumf %218, %220 : vector<256x128xf32>
    %222 = arith.truncf %221 : vector<256x128xf32> to vector<256x128xbf16>
    %c2_270 = arith.constant 2 : index
    %c0_271 = arith.constant 0 : index
    %c0_272 = arith.constant 0 : index
    %223 = vector.load %arg6[%c2_270, %c0_271, %c0_272] : memref<3x128x128xbf16, #tpu.memory_space<vmem>>, vector<1x128x128xbf16>
    %224 = vector.shape_cast %223 : vector<1x128x128xbf16> to vector<128x128xbf16>
    %cst_273 = arith.constant dense<0.000000e+00> : vector<256x128xf32>
    %225 = tpu.matmul %222, %224, %cst_273 {dimension_numbers = #tpu.dot_dimension_numbers<[1], [0], [0], [1], [0, 0, 1, 1], [], []>} : vector<256x128xbf16>, vector<128x128xbf16>, vector<256x128xf32> -> vector<256x128xf32>
    %c2_274 = arith.constant 2 : index
    %c0_275 = arith.constant 0 : index
    %c0_276 = arith.constant 0 : index
    %226 = vector.load %arg7[%c2_274, %c0_275, %c0_276] : memref<3x1x128xf32, #tpu.memory_space<vmem>>, vector<1x1x128xf32>
    %227 = vector.shape_cast %226 : vector<1x1x128xf32> to vector<1x128xf32>
    %228 = vector.broadcast %227 : vector<1x128xf32> to vector<256x128xf32>
    %229 = arith.addf %225, %228 : vector<256x128xf32>
    %cst_277 = arith.constant 0.00999999977 : f32
    %230 = vector.broadcast %cst_277 : f32 to vector<256x128xf32>
    %231 = arith.mulf %230, %229 : vector<256x128xf32>
    %232 = arith.maximumf %229, %231 : vector<256x128xf32>
    %233 = arith.truncf %232 : vector<256x128xf32> to vector<256x128xbf16>
    %c0_278 = arith.constant 0 : index
    %c0_279 = arith.constant 0 : index
    %234 = vector.load %arg8[%c0_278, %c0_279] : memref<128x256xbf16, #tpu.memory_space<vmem>>, vector<128x256xbf16>
    %cst_280 = arith.constant dense<0.000000e+00> : vector<256x256xf32>
    %235 = tpu.matmul %233, %234, %cst_280 {dimension_numbers = #tpu.dot_dimension_numbers<[1], [0], [0], [1], [0, 0, 1, 1], [], []>} : vector<256x128xbf16>, vector<128x256xbf16>, vector<256x256xf32> -> vector<256x256xf32>
    %c0_281 = arith.constant 0 : index
    %c0_282 = arith.constant 0 : index
    %236 = vector.load %arg9[%c0_281, %c0_282] : memref<1x256xf32, #tpu.memory_space<vmem>>, vector<1x256xf32>
    %237 = vector.broadcast %236 : vector<1x256xf32> to vector<256x256xf32>
    %238 = arith.addf %235, %237 : vector<256x256xf32>
    %cst_283 = arith.constant 0.00999999977 : f32
    %239 = vector.broadcast %cst_283 : f32 to vector<256x256xf32>
    %240 = arith.mulf %239, %238 : vector<256x256xf32>
    %241 = arith.maximumf %238, %240 : vector<256x256xf32>
    %242 = arith.truncf %241 : vector<256x256xf32> to vector<256x256xbf16>
    %c0_284 = arith.constant 0 : index
    %c0_285 = arith.constant 0 : index
    %243 = vector.load %arg10[%c0_284, %c0_285] : memref<256x128xbf16, #tpu.memory_space<vmem>>, vector<256x128xbf16>
    %cst_286 = arith.constant dense<0.000000e+00> : vector<256x128xf32>
    %244 = tpu.matmul %242, %243, %cst_286 {dimension_numbers = #tpu.dot_dimension_numbers<[1], [0], [0], [1], [0, 0, 1, 1], [], []>} : vector<256x256xbf16>, vector<256x128xbf16>, vector<256x128xf32> -> vector<256x128xf32>
    %c0_287 = arith.constant 0 : index
    %c0_288 = arith.constant 0 : index
    %245 = vector.load %arg11[%c0_287, %c0_288] : memref<1x128xf32, #tpu.memory_space<vmem>>, vector<1x128xf32>
    %246 = vector.broadcast %245 : vector<1x128xf32> to vector<256x128xf32>
    %247 = arith.addf %244, %246 : vector<256x128xf32>
    %248 = arith.truncf %247 : vector<256x128xf32> to vector<256x128xbf16>
    %c0_289 = arith.constant 0 : index
    %c0_290 = arith.constant 0 : index
    %249 = vector.load %arg12[%c0_289, %c0_290] : memref<256x128xbf16, #tpu.memory_space<vmem>>, vector<256x128xbf16>
    tpu.vector_store %arg12[%c0_289, %c0_290], %248 {strides = array<i32>} : memref<256x128xbf16, #tpu.memory_space<vmem>>, vector<256x128xbf16>,
    return
  }
  func.func @transform_0(%arg0: i32) -> (i32, i32) {
    %c0_i32 = arith.constant 0 : i32
    %c0_i32_0 = arith.constant 0 : i32
    return %arg0, %c0_i32 : i32, i32
  }
  func.func @transform_1(%arg0: i32) -> (i32, i32, i32, i32) {
    %c0_i32 = arith.constant 0 : i32
    %c0_i32_0 = arith.constant 0 : i32
    %c0_i32_1 = arith.constant 0 : i32
    %c0_i32_2 = arith.constant 0 : i32
    %c0_i32_3 = arith.constant 0 : i32
    return %c0_i32, %c0_i32_0, %c0_i32_1, %c0_i32_2 : i32, i32, i32, i32
  }
  func.func @transform_2(%arg0: i32) -> (i32, i32, i32, i32) {
    %c0_i32 = arith.constant 0 : i32
    %c0_i32_0 = arith.constant 0 : i32
    %c0_i32_1 = arith.constant 0 : i32
    %c0_i32_2 = arith.constant 0 : i32
    %c0_i32_3 = arith.constant 0 : i32
    return %c0_i32, %c0_i32_0, %c0_i32_1, %c0_i32_2 : i32, i32, i32, i32
  }
  func.func @transform_3(%arg0: i32) -> (i32, i32) {
    %c0_i32 = arith.constant 0 : i32
    %c0_i32_0 = arith.constant 0 : i32
    %c0_i32_1 = arith.constant 0 : i32
    return %c0_i32, %c0_i32_0 : i32, i32
  }
  func.func @transform_4(%arg0: i32) -> (i32, i32) {
    %c0_i32 = arith.constant 0 : i32
    %c0_i32_0 = arith.constant 0 : i32
    %c0_i32_1 = arith.constant 0 : i32
    return %c0_i32, %c0_i32_0 : i32, i32
  }
  func.func @transform_5(%arg0: i32) -> (i32, i32, i32) {
    %c0_i32 = arith.constant 0 : i32
    %c0_i32_0 = arith.constant 0 : i32
    %c0_i32_1 = arith.constant 0 : i32
    %c0_i32_2 = arith.constant 0 : i32
    return %c0_i32, %c0_i32_0, %c0_i32_1 : i32, i32, i32
  }
  func.func @transform_6(%arg0: i32) -> (i32, i32, i32) {
    %c0_i32 = arith.constant 0 : i32
    %c0_i32_0 = arith.constant 0 : i32
    %c0_i32_1 = arith.constant 0 : i32
    %c0_i32_2 = arith.constant 0 : i32
    return %c0_i32, %c0_i32_0, %c0_i32_1 : i32, i32, i32
  }
  func.func @transform_7(%arg0: i32) -> (i32, i32) {
    %c0_i32 = arith.constant 0 : i32
    %c0_i32_0 = arith.constant 0 : i32
    %c0_i32_1 = arith.constant 0 : i32
    return %c0_i32, %c0_i32_0 : i32, i32
  }
  func.func @transform_8(%arg0: i32) -> (i32, i32) {
    %c0_i32 = arith.constant 0 : i32
    %c0_i32_0 = arith.constant 0 : i32
    %c0_i32_1 = arith.constant 0 : i32
    return %c0_i32, %c0_i32_0 : i32, i32
  }
  func.func @transform_9(%arg0: i32) -> (i32, i32) {
    %c0_i32 = arith.constant 0 : i32
    %c0_i32_0 = arith.constant 0 : i32
    %c0_i32_1 = arith.constant 0 : i32
    return %c0_i32, %c0_i32_0 : i32, i32
  }
  func.func @transform_10(%arg0: i32) -> (i32, i32) {
    %c0_i32 = arith.constant 0 : i32
    %c0_i32_0 = arith.constant 0 : i32
    %c0_i32_1 = arith.constant 0 : i32
    return %c0_i32, %c0_i32_0 : i32, i32
  }
  func.func @transform_11(%arg0: i32) -> (i32, i32) {
    %c0_i32 = arith.constant 0 : i32
    %c0_i32_0 = arith.constant 0 : i32
    return %arg0, %c0_i32 : i32, i32
  }
}

</mosaic_0001>

<bundles_post_ra>
// kernel: tpu_custom_call.1
= control target key start
LH: loop header
LB: loop body
LE: loop exit
PB: predicated region body
PF: predicated region fallthrough
CT: control target
= control target key end

     0   :  { %s18147_s0 = inlined_call_operand.hbm [shape: bf16[512,384], index: 0, kind: input, shape index: {}]   ;;  %s18148_s1 = inlined_call_operand.hbm [shape: bf16[3,6,256,128], index: 1, kind: input, shape index: {}]   ;;  %s18149_s2 = inlined_call_operand.hbm [shape: f32[3,6,1,128], index: 2, kind: input, shape index: {}]   ;;  %s18150_s3 = inlined_call_operand.hbm [shape: bf16[768,128], index: 3, kind: input, shape index: {}]   ;;  %s18151_s4 = inlined_call_operand.hbm [shape: f32[1,128], index: 4, kind: input, shape index: {}]   ;;  %s18152_s5 = inlined_call_operand.hbm [shape: bf16[3,128,128], index: 5, kind: input, shape index: {}]   ;;  %s18153_s6 = inlined_call_operand.hbm [shape: f32[3,1,128], index: 6, kind: input, shape index: {}]   ;;  %s18154_s7 = inlined_call_operand.hbm [shape: bf16[128,256], index: 7, kind: input, shape index: {}]   ;;  %s18155_s8 = inlined_call_operand.hbm [shape: f32[1,256], index: 8, kind: input, shape index: {}]   ;;  %s18156_s9 = inlined_call_operand.hbm [shape: bf16[256,128], index: 9, kind: input, shape index: {}]   ;;  %s18157_s10 = inlined_call_operand.hbm [shape: f32[1,128], index: 10, kind: input, shape index: {}]   ;;  %s18158_s11 = inlined_call_operand.hbm [shape: bf16[512,128], index: 11, kind: output, shape index: {}]  }
   0x1   :  { %18202 = sst [smem:[#allocation66_spill]] %s18147_s0 }
   0x2   :  { %18203 = sst [smem:[#allocation67_spill]] %s18148_s1 }
   0x3   :  { %18204 = sst [smem:[#allocation68_spill]] %s18149_s2 }
   0x4   :  { %18205 = sst [smem:[#allocation69_spill]] %s18150_s3 }
   0x5   :  { %18206 = sst [smem:[#allocation70_spill]] %s18158_s11 }
   0x6   :  { %16 = vsyncpa [#allocation5], 0 }
   0x7   :  { %18 = vsyncpa [#allocation5 + $0x1], 0 }
   0x8   :  { %19 = vsyncpa [#allocation8], 0 }
   0x9   :  { %20 = vsyncpa [#allocation11], 0 }
   0xa   :  { %21 = vsyncpa [#allocation14], 0 }
   0xb   :  { %22 = vsyncpa [#allocation17], 0 }
   0xc   :  { %23 = vsyncpa [#allocation20], 0 }
   0xd   :  { %24 = vsyncpa [#allocation6], 0 }
   0xe   :  { %26 = vsyncpa [#allocation6 + $0x1], 0  ;;  %s15646_s17 = smov 0   ;;  %s15648_s18 = smov 0  }
   0xf   :  { %s15650_s19 = smov 0   ;;  %s15652_s20 = smov 0  }
  0x10 LB: > { %s15563_s21 = smov [#allocation7]   ;;  %s15667_s23 = sadd.s32 4294967295, %s15561_s20   ;;  %s15561_s20 = sphi %s15652_s20, %s18383_s20   ;;  %s15557_s19 = sphi %s15650_s19, %s18382_s19   ;;  %s15553_s18 = sphi %s15648_s18, %s18381_s18   ;;  %s15549_s17 = sphi %s15646_s17, %s18380_s17  }
  0x11   : > { %s311_s22 = sshll.u32 %s15563_s21, 4  ;;  %p11000_p0 = scmp.ge.s32.totalorder %s15561_s20, 1  ;;  %s15672_s22 = int_to_ptr.vmem [resolvable:$true] %s311_s22 }
  0x12   : > { %p18162_p1 = scmp.eq.s32.totalorder %s15667_s23, 0  ;;  %p299_p2 = scmp.lt.s32.totalorder %s15561_s20, 3 }
  0x13   : > { %s15564_s25 = smov [#allocation10]   ;;  %s15565_s28 = smov [#allocation13]  }
  0x14   : > { %p15674_p3 = pnand %p11000_p0, %p299_p2  ;;  %s337_s26 = sshll.u32 %s15564_s25, 4  ;;  %s15687_s26 = int_to_ptr.vmem [resolvable:$true] %s337_s26 }
  0x15   : > { %s361_s29 = sshll.u32 %s15565_s28, 4  ;;  %s18210_s1 = sld [smem:[#allocation67_spill]]  ;;  %s15689_s29 = int_to_ptr.vmem [resolvable:$true] %s361_s29 }
  0x16   : > { %s18207_s24 = scalar_select %p15674_p3, 1, 0 }
  0x17   : > { %p14446_p5 = pneg %p15674_p3 }
  0x18   : > { %18208 = sst [smem:[#allocation30_spill]] %s18207_s24 }
  0x19   : > { %p15683_p6 = pnand %p14446_p5, %p18162_p1 }
  0x1b   : > { %s15165_s13 = scalar_lea.hbm %s18210_s1, 36864  ;;  %p15699_p8 = pneg %p15683_p6 }
  0x1c   : > { %p15166_p7 = scmp.ne.s32.totalorder %s18210_s1, %s15165_s13  ;;  %p15172_p11 = scmp.lt.u32.totalorder %s15165_s13, %s18210_s1 }
  0x1e   : > { %p15168_p9 = pnand %p15699_p8, %p15166_p7 }
  0x20   : > { %p15169_p10 = pneg %p15168_p9 }
  0x22   : > { %p15174_p12 = pnand %p15172_p11, %p15169_p10 }
  0x24   : > { %15177 = shalt.err (!%p15174_p12)
}
  0x25   : > { %s15178_s28 = scalar_lea.vmem %s15672_s22, 36864  ;;  %p15186_p5 = scmp.lt.s32.totalorder %s15672_s22, %s15672_s22 }
  0x26   : > { %p15179_p13 = scmp.ne.s32.totalorder %s15672_s22, %s15178_s28  ;;  %p15187_p4 = scmp.lt.s32.totalorder %s15178_s28, %s15178_s28 }
  0x28   : > { %p15181_p0 = pnand %p15179_p13, %p15699_p8  ;;  %p15188_p7 = por %p15187_p4, %p15186_p5 }
  0x2a   : > { %p15182_p2 = pneg %p15181_p0 }
  0x2c   : > { %p15189_p9 = pnand %p15188_p7, %p15182_p2 }
  0x2e   : > { %15192 = shalt.err (!%p15189_p9)
}
  0x2f   : > { %s18164_s30 = smov 64   ;;  %s18165_s12 = smov 4  }
  0x30   : > { %14449 = dma.hbm_to_vmem [thread:$0]  (!%p15683_p6), %s18210_s1, 36864, %s15672_s22, [#allocation8], %s18164_s30, %s18164_s30, %s18165_s12  }
  0x31   : > { %s18212_s3 = sld [smem:[#allocation69_spill]] }
  0x37   : > { %s15193_s25 = scalar_lea.hbm %s18212_s3, 6144 }
  0x38   : > { %p15194_p4 = scmp.ne.s32.totalorder %s18212_s3, %s15193_s25  ;;  %p15200_p12 = scmp.lt.u32.totalorder %s15193_s25, %s18212_s3 }
  0x3a   : > { %p15196_p10 = pnand %p15194_p4, %p15699_p8 }
  0x3c   : > { %p15197_p11 = pneg %p15196_p10 }
  0x3e   : > { %p15202_p13 = pnand %p15200_p12, %p15197_p11 }
  0x40   : > { %15205 = shalt.err (!%p15202_p13)
}
  0x41   : > { %s15206_s22 = scalar_lea.vmem %s15687_s26, 6144  ;;  %p15214_p7 = scmp.lt.s32.totalorder %s15687_s26, %s15687_s26 }
  0x42   : > { %p15207_p0 = scmp.ne.s32.totalorder %s15687_s26, %s15206_s22  ;;  %p15215_p9 = scmp.lt.s32.totalorder %s15206_s22, %s15206_s22 }
  0x44   : > { %p15209_p2 = pnand %p15207_p0, %p15699_p8  ;;  %p15216_p4 = por %p15215_p9, %p15214_p7 }
  0x46   : > { %p15210_p5 = pneg %p15209_p2 }
  0x48   : > { %p15217_p10 = pnand %p15216_p4, %p15210_p5 }
  0x4a   : > { %15220 = shalt.err (!%p15217_p10)
}
  0x4b   : > { %14455 = dma.hbm_to_vmem [thread:$0]  (!%p15683_p6), %s18212_s3, 6144, %s15687_s26, [#allocation11], %s18164_s30, %s18164_s30, %s18165_s12  }
  0x4c   : > { %s15221_s14 = scalar_lea.hbm %s18152_s5, 3072 }
  0x4d   : > { %p15222_p11 = scmp.ne.s32.totalorder %s18152_s5, %s15221_s14  ;;  %p15228_p0 = scmp.lt.u32.totalorder %s15221_s14, %s18152_s5 }
  0x4f   : > { %p15224_p12 = pnand %p15222_p11, %p15699_p8 }
  0x51   : > { %p15225_p13 = pneg %p15224_p12 }
  0x53   : > { %p15230_p2 = pnand %p15228_p0, %p15225_p13 }
  0x55   : > { %15233 = shalt.err (!%p15230_p2)
}
  0x56   : > { %s15234_s26 = scalar_lea.vmem %s15689_s29, 3072  ;;  %p15242_p4 = scmp.lt.s32.totalorder %s15689_s29, %s15689_s29 }
  0x57   : > { %p15235_p5 = scmp.ne.s32.totalorder %s15689_s29, %s15234_s26  ;;  %p15243_p10 = scmp.lt.s32.totalorder %s15234_s26, %s15234_s26 }
  0x59   : > { %p15237_p7 = pnand %p15235_p5, %p15699_p8  ;;  %p15244_p11 = por %p15243_p10, %p15242_p4 }
  0x5b   : > { %p15238_p9 = pneg %p15237_p7 }
  0x5d   : > { %p15245_p12 = pnand %p15244_p11, %p15238_p9 }
  0x5f   : > { %15248 = shalt.err (!%p15245_p12)
}
  0x60   : > { %14461 = dma.hbm_to_vmem [thread:$0]  (!%p15683_p6), %s18152_s5, 3072, %s15689_s29, [#allocation14], %s18164_s30, %s18164_s30, %s18165_s12  }
  0x61   : > { %s15568_s11 = smov [#allocation16]   ;;  %s15249_s15 = scalar_lea.hbm %s18154_s7, 2048 }
  0x62   : > { %s387_s24 = sshll.u32 %s15568_s11, 4  ;;  %p15250_p13 = scmp.ne.s32.totalorder %s18154_s7, %s15249_s15  ;;  %s388_s24 = int_to_ptr.vmem [resolvable:$true] %s387_s24 }
  0x63   : > { %p15256_p5 = scmp.lt.u32.totalorder %s15249_s15, %s18154_s7 }
  0x64   : > { %p15252_p0 = pnand %p15250_p13, %p15699_p8 }
  0x66   : > { %p15253_p2 = pneg %p15252_p0 }
  0x68   : > { %p15258_p7 = pnand %p15256_p5, %p15253_p2 }
  0x6a   : > { %15261 = shalt.err (!%p15258_p7)
}
  0x6b   : > { %s15262_s29 = scalar_lea.vmem %s388_s24, 2048  ;;  %p15270_p11 = scmp.lt.s32.totalorder %s388_s24, %s388_s24 }
  0x6c   : > { %p15263_p9 = scmp.ne.s32.totalorder %s388_s24, %s15262_s29  ;;  %p15271_p12 = scmp.lt.s32.totalorder %s15262_s29, %s15262_s29 }
  0x6e   : > { %p15265_p4 = pnand %p15263_p9, %p15699_p8  ;;  %p15272_p1 = por %p15271_p12, %p15270_p11 }
  0x70   : > { %p15266_p10 = pneg %p15265_p4 }
  0x72   : > { %p15273_p3 = pnand %p15272_p1, %p15266_p10 }
  0x74   : > { %15276 = shalt.err (!%p15273_p3)
}
  0x75   : > { %s15569_s22 = smov 128   ;;  %s15570_s0 = smov 8  }
  0x76   : > { %14467 = dma.hbm_to_vmem [thread:$0]  (!%p15683_p6), %s18154_s7, 2048, %s388_s24, [#allocation17], %s15569_s22, %s15569_s22, %s15570_s0  }
  0x77   : > { %s15571_s14 = smov [#allocation19]   ;;  %s15572_s21 = smov [#allocation9]  }
  0x78   : > { %s411_s15 = sshll.u32 %s15571_s14, 4  ;;  %s324_s25 = sshll.u32 %s15572_s21, 4  ;;  %s412_s15 = int_to_ptr.vmem [resolvable:$true] %s411_s15  ;;  %s15793_s25 = int_to_ptr.vmem [resolvable:$true] %s324_s25 }
  0x79   : > { %s15277_s29 = scalar_lea.hbm %s18156_s9, 2048 }
  0x7a   : > { %p15278_p1 = scmp.ne.s32.totalorder %s18156_s9, %s15277_s29  ;;  %p15284_p0 = scmp.lt.u32.totalorder %s15277_s29, %s18156_s9 }
  0x7c   : > { %p15280_p3 = pnand %p15278_p1, %p15699_p8 }
  0x7e   : > { %p15281_p13 = pneg %p15280_p3 }
  0x80   : > { %p15286_p2 = pnand %p15284_p0, %p15281_p13 }
  0x82   : > { %15289 = shalt.err (!%p15286_p2)
}
  0x83   : > { %s15290_s22 = scalar_lea.vmem %s412_s15, 2048  ;;  %p15298_p4 = scmp.lt.s32.totalorder %s412_s15, %s412_s15 }
  0x84   : > { %p15291_p5 = scmp.ne.s32.totalorder %s412_s15, %s15290_s22  ;;  %p15299_p10 = scmp.lt.s32.totalorder %s15290_s22, %s15290_s22 }
  0x86   : > { %p15293_p7 = pnand %p15291_p5, %p15699_p8  ;;  %p15300_p11 = por %p15299_p10, %p15298_p4 }
  0x88   : > { %p15294_p9 = pneg %p15293_p7 }
  0x8a   : > { %p15301_p12 = pnand %p15300_p11, %p15294_p9 }
  0x8c   : > { %15304 = shalt.err (!%p15301_p12)
}
  0x8d   : > { %s18213_s30 = smov 4   ;;  %s18214_s12 = smov 64  }
  0x8e   : > { %14473 = dma.hbm_to_vmem [thread:$0]  (!%p15683_p6), %s18156_s9, 2048, %s412_s15, [#allocation20], %s18214_s12, %s18214_s12, %s18213_s30  }
  0x8f   : > { %s18215_s2 = sld [smem:[#allocation68_spill]] }
  0x95   : > { %s15305_s28 = scalar_lea.hbm %s18215_s2, 288 }
  0x96   : > { %p15306_p1 = scmp.ne.s32.totalorder %s18215_s2, %s15305_s28  ;;  %p15312_p0 = scmp.lt.u32.totalorder %s15305_s28, %s18215_s2 }
  0x98   : > { %p15308_p3 = pnand %p15306_p1, %p15699_p8 }
  0x9a   : > { %p15309_p13 = pneg %p15308_p3 }
  0x9c   : > { %p15314_p2 = pnand %p15312_p0, %p15309_p13 }
  0x9e   : > { %15317 = shalt.err (!%p15314_p2)
}
  0x9f   : > { %s15318_s15 = scalar_lea.vmem %s15793_s25, 288  ;;  %p15326_p4 = scmp.lt.s32.totalorder %s15793_s25, %s15793_s25 }
  0xa0   : > { %p15319_p5 = scmp.ne.s32.totalorder %s15793_s25, %s15318_s15  ;;  %p15327_p10 = scmp.lt.s32.totalorder %s15318_s15, %s15318_s15 }
  0xa2   : > { %p15321_p7 = pnand %p15319_p5, %p15699_p8  ;;  %p15328_p11 = por %p15327_p10, %p15326_p4 }
  0xa4   : > { %p15322_p9 = pneg %p15321_p7 }
  0xa6   : > { %p15329_p12 = pnand %p15328_p11, %p15322_p9 }
  0xa8   : > { %15332 = shalt.err (!%p15329_p12)
}
  0xa9   : > { %s15573_s22 = smov 16   ;;  %s15574_s30 = smov 1  }
  0xaa   : > { %14452 = dma.hbm_to_vmem [thread:$0]  (!%p15683_p6), %s18215_s2, 288, %s15793_s25, [#allocation8], %s15573_s22, %s15573_s22, %s15574_s30  }
  0xab   : > { %s15575_s13 = smov [#allocation12]   ;;  %s15576_s21 = smov [#allocation15]  }
  0xac   : > { %s351_s14 = sshll.u32 %s15575_s13, 4  ;;  %s374_s28 = sshll.u32 %s15576_s21, 4  ;;  %s352_s14 = int_to_ptr.vmem [resolvable:$true] %s351_s14  ;;  %s15842_s28 = int_to_ptr.vmem [resolvable:$true] %s374_s28 }
  0xad   : > { %s15333_s11 = scalar_lea.hbm %s18151_s4, 16 }
  0xae   : > { %p15334_p1 = scmp.ne.s32.totalorder %s18151_s4, %s15333_s11  ;;  %p15340_p0 = scmp.lt.u32.totalorder %s15333_s11, %s18151_s4 }
  0xb0   : > { %p15336_p3 = pnand %p15334_p1, %p15699_p8 }
  0xb2   : > { %p15337_p13 = pneg %p15336_p3 }
  0xb4   : > { %p15342_p2 = pnand %p15340_p0, %p15337_p13 }
  0xb6   : > { %15345 = shalt.err (!%p15342_p2)
}
  0xb7   : > { %s15346_s0 = scalar_lea.vmem %s352_s14, 16  ;;  %s15353_s13 = scalar_lea.vmem %s352_s14, 32 }
  0xb8   : > { %p15347_p5 = scmp.ne.s32.totalorder %s352_s14, %s15346_s0  ;;  %p15354_p4 = scmp.lt.s32.totalorder %s352_s14, %s352_s14 }
  0xb9   : > { %p15355_p10 = scmp.lt.s32.totalorder %s15353_s13, %s15346_s0 }
  0xba   : > { %p15349_p7 = pnand %p15347_p5, %p15699_p8 }
  0xbb   : > { %p15356_p11 = por %p15355_p10, %p15354_p4 }
  0xbc   : > { %p15350_p9 = pneg %p15349_p7 }
  0xbe   : > { %p15357_p12 = pnand %p15356_p11, %p15350_p9 }
  0xc0   : > { %15360 = shalt.err (!%p15357_p12)
}
  0xc1   : > { %14458 = dma.hbm_to_vmem [thread:$0]  (!%p15683_p6), %s18151_s4, 16, %s352_s14, [#allocation11]  }
  0xc2   : > { %s15361_s24 = scalar_lea.hbm %s18153_s6, 48 }
  0xc3   : > { %p15362_p1 = scmp.ne.s32.totalorder %s18153_s6, %s15361_s24  ;;  %p15368_p0 = scmp.lt.u32.totalorder %s15361_s24, %s18153_s6 }
  0xc5   : > { %p15364_p3 = pnand %p15362_p1, %p15699_p8 }
  0xc7   : > { %p15365_p13 = pneg %p15364_p3 }
  0xc9   : > { %p15370_p2 = pnand %p15368_p0, %p15365_p13 }
  0xcb   : > { %15373 = shalt.err (!%p15370_p2)
}
  0xcc   : > { %s15374_s14 = scalar_lea.vmem %s15842_s28, 48  ;;  %s15381_s13 = scalar_lea.vmem %s15842_s28, 64 }
  0xcd   : > { %p15375_p5 = scmp.ne.s32.totalorder %s15842_s28, %s15374_s14  ;;  %p15382_p4 = scmp.lt.s32.totalorder %s15842_s28, %s15842_s28 }
  0xce   : > { %p15383_p10 = scmp.lt.s32.totalorder %s15381_s13, %s15374_s14 }
  0xcf   : > { %p15377_p7 = pnand %p15375_p5, %p15699_p8 }
  0xd0   : > { %p15384_p11 = por %p15383_p10, %p15382_p4 }
  0xd1   : > { %p15378_p9 = pneg %p15377_p7 }
  0xd3   : > { %p15385_p12 = pnand %p15384_p11, %p15378_p9 }
  0xd5   : > { %15388 = shalt.err (!%p15385_p12)
}
  0xd6   : > { %14464 = dma.hbm_to_vmem [thread:$0]  (!%p15683_p6), %s18153_s6, 48, %s15842_s28, [#allocation14], %s15573_s22, %s15573_s22, %s15574_s30  }
  0xd7   : > { %s15577_s29 = smov [#allocation18]   ;;  %s15578_s24 = smov [#allocation21]  }
  0xd8   : > { %s401_s11 = sshll.u32 %s15577_s29, 4  ;;  %s425_s15 = sshll.u32 %s15578_s24, 4  ;;  %s402_s11 = int_to_ptr.vmem [resolvable:$true] %s401_s11  ;;  %s15889_s15 = int_to_ptr.vmem [resolvable:$true] %s425_s15 }
  0xd9   : > { %s15389_s0 = scalar_lea.hbm %s18155_s8, 32 }
  0xda   : > { %p15390_p1 = scmp.ne.s32.totalorder %s18155_s8, %s15389_s0  ;;  %p15396_p0 = scmp.lt.u32.totalorder %s15389_s0, %s18155_s8 }
  0xdc   : > { %p15392_p3 = pnand %p15390_p1, %p15699_p8 }
  0xde   : > { %p15393_p13 = pneg %p15392_p3 }
  0xe0   : > { %p15398_p2 = pnand %p15396_p0, %p15393_p13 }
  0xe2   : > { %15401 = shalt.err (!%p15398_p2)
}
  0xe3   : > { %s15402_s30 = scalar_lea.vmem %s402_s11, 32  ;;  %p15410_p4 = scmp.lt.s32.totalorder %s402_s11, %s402_s11 }
  0xe4   : > { %p15403_p5 = scmp.ne.s32.totalorder %s402_s11, %s15402_s30  ;;  %p15411_p10 = scmp.lt.s32.totalorder %s15402_s30, %s15402_s30 }
  0xe6   : > { %p15405_p7 = pnand %p15403_p5, %p15699_p8  ;;  %p15412_p11 = por %p15411_p10, %p15410_p4 }
  0xe8   : > { %p15406_p9 = pneg %p15405_p7 }
  0xea   : > { %p15413_p12 = pnand %p15412_p11, %p15406_p9 }
  0xec   : > { %15416 = shalt.err (!%p15413_p12)
}
  0xed   : > { %14470 = dma.hbm_to_vmem [thread:$0]  (!%p15683_p6), %s18155_s8, 32, %s402_s11, [#allocation17]  }
  0xee   : > { %s15417_s12 = scalar_lea.hbm %s18157_s10, 16 }
  0xef   : > { %p15418_p1 = scmp.ne.s32.totalorder %s18157_s10, %s15417_s12  ;;  %p15424_p0 = scmp.lt.u32.totalorder %s15417_s12, %s18157_s10 }
  0xf1   : > { %p15420_p3 = pnand %p15418_p1, %p15699_p8 }
  0xf3   : > { %p15421_p13 = pneg %p15420_p3 }
  0xf5   : > { %p15426_p2 = pnand %p15424_p0, %p15421_p13 }
  0xf7   : > { %15429 = shalt.err (!%p15426_p2)
}
  0xf8   : > { %s15430_s11 = scalar_lea.vmem %s15889_s15, 16  ;;  %s15437_s21 = scalar_lea.vmem %s15889_s15, 32 }
  0xf9   : > { %p15431_p5 = scmp.ne.s32.totalorder %s15889_s15, %s15430_s11  ;;  %p15438_p4 = scmp.lt.s32.totalorder %s15889_s15, %s15889_s15 }
  0xfa   : > { %p15439_p10 = scmp.lt.s32.totalorder %s15437_s21, %s15430_s11 }
  0xfb   : > { %p15433_p7 = pnand %p15431_p5, %p15699_p8 }
  0xfc   : > { %p15440_p11 = por %p15439_p10, %p15438_p4 }
  0xfd   : > { %p15434_p9 = pneg %p15433_p7 }
  0xff   : > { %p15441_p12 = pnand %p15440_p11, %p15434_p9 }
 0x101   : > { %15444 = shalt.err (!%p15441_p12)
}
 0x102   : > { %14476 = dma.hbm_to_vmem [thread:$0]  (!%p15683_p6), %s18157_s10, 16, %s15889_s15, [#allocation20]  }
 0x103   : > { %s10999_s27 = sadd.s32 4294967294, %s15561_s20   ;;  %s15935_s16 = sadd.s32 1, %s15561_s20  }
 0x104   : > { %s36_s28 = ssub.s32 %s15561_s20, %s15935_s16  ;;  %s39_s26 = sadd.s32 1, %s15557_s19 }
 0x105   : > { %p37_p8 = scmp.eq.s32.totalorder %s36_s28, 0  ;;  %p46_p1 = scmp.ne.s32.totalorder %s15557_s19, %s15553_s18 }
 0x106   : > { %p47_p3 = scmp.eq.s32.totalorder %s15561_s20, 0  ;;  %p52_p13 = scmp.ne.s32.totalorder %s15553_s18, %s15549_s17 }
 0x107   : > { %s15946_s29 = scalar_select %p37_p8, %s15557_s19, %s39_s26  }
 0x108   : > { %p48_p0 = por %p47_p3, %p46_p1  ;;  %p18216_p2 = scmp.eq.s32.totalorder %s15667_s23, 0 }
 0x109   : > { %p286_p6 = scmp.eq.s32.totalorder %s15667_s23, 1  ;;  %p292_p7 = scmp.eq.s32.totalorder %s10999_s27, 1 }
 0x10a   : > { %p15950_p5 = por %p18216_p2, %p52_p13  ;;  %p14495_p9 = scmp.lt.s32.totalorder %s15561_s20, 2 }
 0x10b   : > { %s436_s15 = sand.u32 1, %s15557_s19   ;;  %p15957_p4 = por %p286_p6, %p46_p1 }
 0x10c   : > { %p15961_p10 = por %p292_p7, %p52_p13  ;;  %s14399_s0 = smul.u32 384, %s436_s15 }
 0x10d   : > { %s18218_s12 = scalar_select %p15957_p4, 1, 0 }
 0x10e   : > { %s18219_s25 = scalar_select %p15961_p10, 1, 0 }
 0x10f   : > { %s14400_s14 = smul.u32 6144, %s15561_s20  ;;  %p15966_p11 = pnand %p14495_p9, %p48_p0 }
 0x110   : > { %s18221_s22 = sld [smem:[#allocation66_spill]]  ;;  %s440_s27 = scalar_lea.vmem [#allocation4], %s14399_s0 }
 0x111   : > { %s448_s28 = sshll.u32 %s440_s27, 4  ;;  %s15977_s26 = scalar_lea.sflag [#allocation5], %s436_s15  ;;  %s15975_s28 = int_to_ptr.vmem [resolvable:$true] %s448_s28 }
 0x112   : > { %p15447_p8 = pneg %p15966_p11 }
 0x116   : > { %s15973_s30 = scalar_lea.hbm %s18221_s22, %s14400_s14  ;;  %s15450_s21 = scalar_lea.hbm %s18221_s22, 12288 }
 0x117   : > { %s15445_s1 = scalar_lea.hbm %s15973_s30, 6144  ;;  %p15451_p13 = scmp.lt.u32.totalorder %s15973_s30, %s18221_s22 }
 0x118   : > { %p15446_p12 = scmp.ne.s32.totalorder %s15973_s30, %s15445_s1  ;;  %p15452_p0 = scmp.lt.u32.totalorder %s15450_s21, %s15445_s1 }
 0x119   : > { %p15454_p6 = scmp.lt.u32.totalorder %s15445_s1, %s15973_s30 }
 0x11a   : > { %p15448_p1 = pnand %p15447_p8, %p15446_p12  ;;  %p15453_p2 = por %p15452_p0, %p15451_p13 }
 0x11c   : > { %p15449_p3 = pneg %p15448_p1  ;;  %p15455_p7 = por %p15454_p6, %p15453_p2 }
 0x11e   : > { %p15456_p9 = pnand %p15455_p7, %p15449_p3 }
 0x120   : > { %15459 = shalt.err (!%p15456_p9)
}
 0x121   : > { %s15460_s15 = scalar_lea.vmem %s15975_s28, 6144  ;;  %s15579_s0 = smov [#allocation4]  }
 0x122   : > { %p15461_p12 = scmp.ne.s32.totalorder %s15975_s28, %s15460_s15  ;;  %s15465_s27 = sshll.u32 %s15579_s0, 4  ;;  %s15466_s27 = int_to_ptr.vmem [resolvable:$false] %s15465_s27 }
 0x123   : > { %s15467_s2 = scalar_lea.vmem %s15466_s27, 12288  ;;  %p15468_p4 = scmp.lt.s32.totalorder %s15975_s28, %s15466_s27 }
 0x124   : > { %p15463_p1 = pnand %p15461_p12, %p15447_p8  ;;  %p15469_p13 = scmp.lt.s32.totalorder %s15467_s2, %s15460_s15 }
 0x126   : > { %p15464_p10 = pneg %p15463_p1  ;;  %p15470_p0 = por %p15469_p13, %p15468_p4 }
 0x128   : > { %p15471_p2 = pnand %p15470_p0, %p15464_p10 }
 0x12a   : > { %15474 = shalt.err (!%p15471_p2)
}
 0x12b   : > { %s15580_s1 = smov 192   ;;  %s15581_s3 = smov 12  }
 0x12c   : > { %14480 = dma.hbm_to_vmem [thread:$0]  (!%p15966_p11), %s15973_s30, 6144, %s15975_s28, %s15977_s26, %s15580_s1, %s15580_s1, %s15581_s3  }
 0x12d   : > { %s18222_s14 = sld [smem:[#allocation30_spill]] }
 0x133   : > { %p18223_p8 = scmp.ne.s32.totalorder %s18222_s14, 0 }
 0x135   : > { %460 = sbr.rel (%p18223_p8) target bundleno = 5206 (0x1456), region = 64 }
 0x13c   : > { %s16008_s11 = sand.u32 1, %s15553_s18  }
 0x13d   : > { %s14401_s21 = smul.u32 384, %s16008_s11  ;;  %s463_s15 = scalar_lea.sflag [#allocation5], %s16008_s11 }
 0x13f   : > { %s16012_s0 = scalar_lea.vmem [#allocation4], %s14401_s21 }
 0x140   : > { %15520 = dma.done.wait (%p15950_p5), %s463_s15, 6144  }
 0x141   : > { %15522 = vsyncadd (%p15950_p5), %s463_s15, 4294961152  ;;  %p18224_p4 = scmp.eq.s32.totalorder %s15667_s23, 0 }
 0x143   : > { %15524 = dma.done.wait (%p18224_p4), [#allocation8], 37152   ;;  %p18225_p10 = pmov %p18224_p4 }
 0x144   : > { %p18226_p11 = pmov %p18224_p4 }
 0x145   : > { %15526 = vsyncadd (%p18225_p10), [#allocation8], 4294930144 }
 0x146   : > { %15528 = dma.done.wait (%p18226_p11), [#allocation11], 6160   ;;  %p18227_p3 = pmov %p18224_p4 }
 0x148   : > { %15530 = vsyncadd (%p18227_p3), [#allocation11], 4294961136  ;;  %p18228_p6 = pmov %p18227_p3 }
 0x149   : > { %p18229_p7 = pmov %p18227_p3 }
 0x14a   : > { %15532 = dma.done.wait (%p18228_p6), [#allocation14], 3120  }
 0x14b   : > { %15534 = vsyncadd (%p18229_p7), [#allocation14], 4294964176  ;;  %p18230_p5 = pmov %p18227_p3 }
 0x14c   : > { %p18231_p9 = pmov %p18227_p3 }
 0x14d   : > { %15536 = dma.done.wait (%p18230_p5), [#allocation17], 2080  }
 0x14e   : > { %15538 = vsyncadd (%p18231_p9), [#allocation17], 4294965216  ;;  %p18232_p12 = pmov %p18227_p3 }
 0x14f   : > { %p18233_p1 = pmov %p18227_p3 }
 0x150   : > { %15540 = dma.done.wait (%p18232_p12), [#allocation20], 2064  }
 0x151   : > { %15542 = vsyncadd (%p18233_p1), [#allocation20], 4294965232  ;;  %v14560_v0 = vld [vmem:[#allocation7 + $0x40] sm:$0xff]   ;;  %v14562_v2 = vld [vmem:[#allocation7 + $0x48] sm:$0xff]   ;;  %s11026_s24 = sshll.u32 %s16008_s11, 7  ;;  %s11607_s30 = sshll.u32 %s15667_s23, 11 }
 0x152   : > { %v14561_v1 = vld [vmem:[#allocation7] sm:$0xff]   ;;  %11703 = vmatprep.subr.bf16.mxu0 %v14560_v0  ;;  %14383 = vmatprep.subr.bf16.mxu1 %v14560_v0  ;;  %v14563_v3 = vld [vmem:[#allocation7 + $0x8] sm:$0xff]   ;;  %v14564_v4 = vld [vmem:[#allocation7 + $0x50] sm:$0xff]   ;;  %s18048_s13 = scalar_lea.vmem [#allocation22], %s11026_s24  ;;  %s18376_s2 = sld [smem:[#allocation70_spill]] }
 0x153   : > { %11704 = vmatpush3.bf16.msra.mxu0 %v14561_v1  ;;  %14391 = vmatpush3.bf16.msra.mxu1 %v14561_v1  ;;  %v14565_v5 = vld [vmem:[#allocation7 + $0x10] sm:$0xff]   ;;  %v14566_v6 = vld [vmem:[#allocation7 + $0x58] sm:$0xff]   ;;  %v14568_v8 = vld [vmem:[#allocation7 + $0x60] sm:$0xff]   ;;  %s10831_s28 = sshll.u32 %s18048_s13, 4  ;;  %s10818_s3 = scalar_lea.sflag [#allocation6], %s16008_s11  ;;  %s18102_s28 = int_to_ptr.vmem [resolvable:$true] %s10831_s28 }
 0x154   : > { %11705 = vmatprep.subr.bf16.mxu0 %v14562_v2  ;;  %14384 = vmatprep.subr.bf16.mxu1 %v14562_v2  ;;  %v14567_v7 = vld [vmem:[#allocation7 + $0x18] sm:$0xff]   ;;  %v14569_v9 = vld [vmem:[#allocation7 + $0x20] sm:$0xff]   ;;  %v14570_v10 = vld [vmem:[#allocation7 + $0x68] sm:$0xff]   ;;  %s15475_s14 = scalar_lea.vmem %s18102_s28, 2048  ;;  %p18377_p0 = scmp.ne.s32.totalorder %s18218_s12, 0 }
 0x155   : > { %v16039_v11 = vld [vmem:[%s16012_s0] ss:$12 sps:$4 sm:$0xff]   ;;  %v14572_v13 = vld [vmem:[#allocation7 + $0x70] sm:$0xff]   ;;  %v14574_v15 = vld [vmem:[#allocation7 + $0x78] sm:$0xff]   ;;  %p15476_p13 = scmp.ne.s32.totalorder %s18102_s28, %s15475_s14  ;;  %s15583_s23 = smov [#allocation22]  }
 0x156   : > { %907 = vmatprep.mubr.bf16.mxu0 %v16039_v11  ;;  %v14571_v12 = vld [vmem:[#allocation7 + $0x28] sm:$0xff]   ;;  %v14573_v14 = vld [vmem:[#allocation7 + $0x30] sm:$0xff]   ;;  %v14575_v16 = vld [vmem:[#allocation7 + $0x38] sm:$0xff]   ;;  %s15479_s21 = sshll.u32 %s15583_s23, 4  ;;  %s15480_s21 = int_to_ptr.vmem [resolvable:$false] %s15479_s21 }
 0x157   : > { %11706 = vmatpush3.bf16.msra.mxu0 %v14563_v3  ;;  %14392 = vmatpush3.bf16.msra.mxu1 %v14563_v3  ;;  %v14588_v17 = vld [vmem:[%s16012_s0 + $0x120] ss:$12 sps:$4 sm:$0xff]   ;;  %v14577_v18 = vld [vmem:[%s16012_s0 + $0x18] ss:$12 sps:$4 sm:$0xff]   ;;  %v14578_v24 = vld [vmem:[%s16012_s0 + $0x30] ss:$12 sps:$4 sm:$0xff]   ;;  %p15477_p2 = pnand %p15476_p13, %p18377_p0  ;;  %p15482_p4 = scmp.lt.s32.totalorder %s18102_s28, %s15480_s21 }
 0x158   : > { %11707 = vmatprep.subr.bf16.mxu0 %v14564_v4  ;;  %14385 = vmatprep.subr.bf16.mxu1 %v14564_v4  ;;  %v14589_v19 = vld [vmem:[%s16012_s0 + $0x138] ss:$12 sps:$4 sm:$0xff]   ;;  %v14594_v22 = vld [vmem:[#allocation7 + $0xc8] sm:$0xff]   ;;  %v14590_v25 = vld [vmem:[%s16012_s0 + $0x150] ss:$12 sps:$4 sm:$0xff]   ;;  %s18100_s1 = scalar_lea.hbm %s18376_s2, %s11607_s30  ;;  %s15481_s15 = scalar_lea.vmem %s15480_s21, 4096 }
 0x159   : > { %1003 = vmatprep.mubr.bf16.mxu1 %v14588_v17  ;;  %v14592_v20 = vld [vmem:[#allocation7 + $0xc0] sm:$0xff]   ;;  %v14595_v23 = vld [vmem:[#allocation7 + $0x88] sm:$0xff]   ;;  %v14596_v26 = vld [vmem:[#allocation7 + $0xd0] sm:$0xff]   ;;  %p15478_p8 = pneg %p15477_p2  ;;  %p15483_p10 = scmp.lt.s32.totalorder %s15481_s15, %s15475_s14 }
 0x15a   : > { %v14593_v21 = vld [vmem:[#allocation7 + $0x80] sm:$0xff]   ;;  %v14597_v27 = vld [vmem:[#allocation7 + $0x90] sm:$0xff]   ;;  %v14598_v28 = vld [vmem:[#allocation7 + $0xd8] sm:$0xff]  }
 0x15b   : > { %11708 = vmatpush3.bf16.msra.mxu0 %v14565_v5  ;;  %14393 = vmatpush3.bf16.msra.mxu1 %v14565_v5  ;;  %v14599_v29 = vld [vmem:[#allocation7 + $0x98] sm:$0xff]   ;;  %v14579_v30 = vld [vmem:[%s16012_s0 + $0x48] ss:$12 sps:$4 sm:$0xff]   ;;  %v14600_v32 = vld [vmem:[#allocation7 + $0xe0] sm:$0xff]   ;;  %p15484_p11 = por %p15483_p10, %p15482_p4 }
 0x15c   : > { %11709 = vmatprep.subr.bf16.mxu0 %v14566_v6  ;;  %14386 = vmatprep.subr.bf16.mxu1 %v14566_v6  ;;  %v14591_v31 = vld [vmem:[%s16012_s0 + $0x168] ss:$12 sps:$4 sm:$0xff]   ;;  %v14601_v33 = vld [vmem:[#allocation7 + $0xa0] sm:$0xff]   ;;  %v14582_v38 = vld [vmem:[%s16012_s0 + $0x90] ss:$12 sps:$4 sm:$0xff]  }
 0x15d   : > { %v14602_v34 = vld [vmem:[#allocation7 + $0xe8] sm:$0xff]   ;;  %v14581_v37 = vld [vmem:[%s16012_s0 + $0x78] ss:$12 sps:$4 sm:$0xff]   ;;  %v14586_v42 = vld [vmem:[%s16012_s0 + $0xf0] ss:$12 sps:$4 sm:$0xff]   ;;  %p15485_p3 = pnand %p15484_p11, %p15478_p8 }
 0x15e   : > { %v14603_v35 = vld [vmem:[#allocation7 + $0xa8] sm:$0xff]   ;;  %v14585_v41 = vld [vmem:[%s16012_s0 + $0xd8] ss:$12 sps:$4 sm:$0xff]   ;;  %v14604_v44 = vld [vmem:[#allocation7 + $0xf0] sm:$0xff]  }
 0x15f   : > { %11710 = vmatpush3.bf16.msra.mxu0 %v14567_v7  ;;  %14394 = vmatpush3.bf16.msra.mxu1 %v14567_v7  ;;  %v14580_v36 = vld [vmem:[%s16012_s0 + $0x60] ss:$12 sps:$4 sm:$0xff]   ;;  %v14583_v39 = vld [vmem:[%s16012_s0 + $0xa8] ss:$12 sps:$4 sm:$0xff]   ;;  %v14606_v46 = vld [vmem:[#allocation7 + $0xf8] sm:$0xff]  }
 0x160   : > { %11711 = vmatprep.subr.bf16.mxu0 %v14568_v8  ;;  %14387 = vmatprep.subr.bf16.mxu1 %v14568_v8  ;;  %v14584_v40 = vld [vmem:[%s16012_s0 + $0xc0] ss:$12 sps:$4 sm:$0xff]   ;;  %v14587_v43 = vld [vmem:[%s16012_s0 + $0x108] ss:$12 sps:$4 sm:$0xff]   ;;  %v14607_v47 = vld [vmem:[#allocation7 + $0xb8] sm:$0xff]  }
 0x161   : > { %v14605_v45 = vld [vmem:[#allocation7 + $0xb0] sm:$0xff]   ;;  %v14608_v56 = vld [vmem:[#allocation7 + $0x140] sm:$0xff]   ;;  %v14610_v58 = vld [vmem:[#allocation7 + $0x148] sm:$0xff]  }
 0x162   : > { %v14609_v57 = vld [vmem:[#allocation7 + $0x100] sm:$0xff]   ;;  %v14611_v1 = vld [vmem:[#allocation7 + $0x108] sm:$0xff]   ;;  %v14612_v5 = vld [vmem:[#allocation7 + $0x150] sm:$0xff]  }
 0x163   : > { %11712 = vmatpush3.bf16.msra.mxu0 %v14569_v9  ;;  %14395 = vmatpush3.bf16.msra.mxu1 %v14569_v9  ;;  %v16060_v59 = vld [vmem:[#allocation9] ss:$0 sm:$0xff]  ;;  %v14613_v6 = vld [vmem:[#allocation7 + $0x110] sm:$0xff]  }
 0x164   : > { %11713 = vmatprep.subr.bf16.mxu0 %v14570_v10  ;;  %14388 = vmatprep.subr.bf16.mxu1 %v14570_v10 }
 0x167   : > { %11714 = vmatpush3.bf16.msra.mxu0 %v14571_v12  ;;  %14396 = vmatpush3.bf16.msra.mxu1 %v14571_v12 }
 0x168   : > { %11715 = vmatprep.subr.bf16.mxu0 %v14572_v13  ;;  %14389 = vmatprep.subr.bf16.mxu1 %v14572_v13 }
 0x16b   : > { %11716 = vmatpush3.bf16.msra.mxu0 %v14573_v14  ;;  %14397 = vmatpush3.bf16.msra.mxu1 %v14573_v14 }
 0x16c   : > { %11717 = vmatprep.subr.bf16.mxu0 %v14574_v15  ;;  %14390 = vmatprep.subr.bf16.mxu1 %v14574_v15 }
 0x16f   : > { %11718 = vmatpush3.bf16.msra.mxu0 %v14575_v16  ;;  %14398 = vmatpush3.bf16.msra.mxu1 %v14575_v16 }
 0x170   : > { %11815 = vmatprep.subr.bf16.mxu1 %v14592_v20  ;;  %11927 = vmatprep.subr.bf16.mxu0 %v14608_v56 }
 0x172   : > { %908 = vmatmul.mubr.bf16.vlgmr.msra.gmra.mrb[0].mxu0 %v16039_v11  ;;  %1004 = vmatmul.mubr.bf16.vlgmr.msra.gmra.mrb[0].mxu1 %v14588_v17 }
 0x173   : > { %915 = vmatprep.mubr.bf16.mxu0 %v14577_v18  ;;  %1011 = vmatprep.mubr.bf16.mxu1 %v14589_v19 }
 0x174   : > { %11816 = vmatpush3.bf16.msra.mxu1 %v14593_v21  ;;  %11928 = vmatpush3.bf16.msra.mxu0 %v14609_v57  ;;  %v14615_v21 = vld [vmem:[#allocation7 + $0x118] sm:$0xff]  }
 0x175   : > { %11817 = vmatprep.subr.bf16.mxu1 %v14594_v22  ;;  %11929 = vmatprep.subr.bf16.mxu0 %v14610_v58  ;;  %v14622_v57 = vld [vmem:[#allocation7 + $0x178] sm:$0xff]  }
 0x178   : > { %11818 = vmatpush3.bf16.msra.mxu1 %v14595_v23  ;;  %11930 = vmatpush3.bf16.msra.mxu0 %v14611_v1 }
 0x179   : > { %11819 = vmatprep.subr.bf16.mxu1 %v14596_v26  ;;  %11931 = vmatprep.subr.bf16.mxu0 %v14612_v5 }
 0x17a   : > { %916 = vmatmul.mubr.bf16.gmra.mrb[4].mxu0 %v14577_v18  ;;  %1012 = vmatmul.mubr.bf16.gmra.mrb[4].mxu1 %v14589_v19  ;;  %v16073_v19 = vld [vmem:[%s16012_s0 + $0x18] ss:$12 sps:$4 sm:$0xff]  }
 0x17b   : > { %923 = vmatprep.mubr.bf16.mxu0 %v14578_v24  ;;  %1019 = vmatprep.mubr.bf16.mxu1 %v14590_v25 }
 0x17c   : > { %11820 = vmatpush3.bf16.msra.mxu1 %v14597_v27  ;;  %11932 = vmatpush3.bf16.msra.mxu0 %v14613_v6  ;;  %v14623_v6 = vld [vmem:[#allocation7 + $0x138] sm:$0xff]  }
 0x17d   : > { %11821 = vmatprep.subr.bf16.mxu1 %v14598_v28 }
 0x180   : > { %11822 = vmatpush3.bf16.msra.mxu1 %v14599_v29  ;;  %v14617_v29 = vld [vmem:[#allocation7 + $0x120] sm:$0xff]  }
 0x181   : > { %11823 = vmatprep.subr.bf16.mxu1 %v14600_v32 }
 0x182   : > { %924 = vmatmul.mubr.bf16.gmra.mrb[8].mxu0 %v14578_v24  ;;  %1020 = vmatmul.mubr.bf16.gmra.mrb[8].mxu1 %v14590_v25  ;;  %v14616_v25 = vld [vmem:[#allocation7 + $0x160] sm:$0xff]  }
 0x183   : > { %931 = vmatprep.mubr.bf16.mxu0 %v14579_v30  ;;  %1027 = vmatprep.mubr.bf16.mxu1 %v14591_v31 }
 0x184   : > { %11824 = vmatpush3.bf16.msra.mxu1 %v14601_v33 }
 0x185   : > { %11825 = vmatprep.subr.bf16.mxu1 %v14602_v34  ;;  %v14618_v34 = vld [vmem:[#allocation7 + $0x168] sm:$0xff]  }
 0x188   : > { %11826 = vmatpush3.bf16.msra.mxu1 %v14603_v35 }
 0x189   : > { %11827 = vmatprep.subr.bf16.mxu1 %v14604_v44  ;;  %v14619_v44 = vld [vmem:[#allocation7 + $0x128] sm:$0xff]  }
 0x18a   : > { %932 = vmatmul.mubr.bf16.gmra.mrb[12].mxu0 %v14579_v30  ;;  %1028 = vmatmul.mubr.bf16.gmra.mrb[12].mxu1 %v14591_v31 }
 0x18b   : > { %939 = vmatprep.mubr.bf16.mxu0 %v14580_v36  ;;  %1269 = vmatprep.mubr.bf16.mxu1 %v16039_v11 }
 0x18c   : > { %11828 = vmatpush3.bf16.msra.mxu1 %v14605_v45 }
 0x18d   : > { %11829 = vmatprep.subr.bf16.mxu1 %v14606_v46 }
 0x190   : > { %11830 = vmatpush3.bf16.msra.mxu1 %v14607_v47 }
 0x192   : > { %940 = vmatmul.mubr.bf16.gmra.mrb[16].mxu0 %v14580_v36 }
 0x193   : > { %947 = vmatprep.mubr.bf16.mxu0 %v14581_v37 }
 0x19a   : > { %948 = vmatmul.mubr.bf16.gmra.mrb[20].mxu0 %v14581_v37 }
 0x19b   : > { %955 = vmatprep.mubr.bf16.mxu0 %v14582_v38 }
 0x1a2   : > { %956 = vmatmul.mubr.bf16.gmra.mrb[24].mxu0 %v14582_v38 }
 0x1a3   : > { %963 = vmatprep.mubr.bf16.mxu0 %v14583_v39 }
 0x1aa   : > { %964 = vmatmul.mubr.bf16.gmra.mrb[28].mxu0 %v14583_v39 }
 0x1ab   : > { %971 = vmatprep.mubr.bf16.mxu0 %v14584_v40 }
 0x1b2   : > { %972 = vmatmul.mubr.bf16.gmra.mrb[32].mxu0 %v14584_v40 }
 0x1b3   : > { %979 = vmatprep.mubr.bf16.mxu0 %v14585_v41 }
 0x1ba   : > { %980 = vmatmul.mubr.bf16.gmra.mrb[36].mxu0 %v14585_v41 }
 0x1bb   : > { %987 = vmatprep.mubr.bf16.mxu0 %v14586_v42 }
 0x1c2   : > { %988 = vmatmul.mubr.bf16.gmra.mrb[40].mxu0 %v14586_v42  ;;  %v16087_v42 = vld [vmem:[%s16012_s0 + $0x30] ss:$12 sps:$4 sm:$0xff]  }
 0x1c3   : > { %995 = vmatprep.mubr.bf16.mxu0 %v14587_v43 }
 0x1ca   : > { %996 = vmatmul.mubr.bf16.gmra.mrb[44].mxu0 %v14587_v43 }
 0x1cb   : > { %1631 = vmatprep.mubr.bf16.mxu0 %v16039_v11  ;;  %v14614_v11 = vld [vmem:[#allocation7 + $0x158] sm:$0xff]  }
 0x1cc   : > { %11933 = vmatprep.subr.bf16.mxu0 %v14614_v11 }
 0x1cd   : > { %11934 = vmatpush3.bf16.msra.mxu0 %v14615_v21 }
 0x1ce   : > { %11935 = vmatprep.subr.bf16.mxu0 %v14616_v25 }
 0x1d1   : > { %11936 = vmatpush3.bf16.msra.mxu0 %v14617_v29 }
 0x1d2   : > { %11937 = vmatprep.subr.bf16.mxu0 %v14618_v34 }
 0x1d5   : > { %11938 = vmatpush3.bf16.msra.mxu0 %v14619_v44 }
 0x245   : > { %v11719_v48 = vpop.f32.mrb[0].mxu0  ;;  %v11791_v49 = vpop.f32.mrb[0].mxu1 }
 0x246   : > { %v11720_v50 = vpop.f32.mrb[1].mxu0  ;;  %v11792_v51 = vpop.f32.mrb[1].mxu1 }
 0x247   : > { %v11721_v52 = vadd.f32 %v11720_v50, %v11719_v48  ;;  %v11722_v53 = vpop.f32.mrb[2].mxu0  ;;  %v11793_v54 = vadd.f32 %v11792_v51, %v11791_v49  ;;  %v11794_v55 = vpop.f32.mrb[2].mxu1  ;;  %v14620_v48 = vld [vmem:[#allocation7 + $0x170] sm:$0xff]  }
 0x248   : > { %v11723_v60 = vpop.f32.mrb[3].mxu0  ;;  %v11795_v61 = vpop.f32.mrb[3].mxu1  ;;  %11939 = vmatprep.subr.bf16.mxu0 %v14620_v48 }
 0x249   : > { %v11724_v62 = vadd.f32 %v11723_v60, %v11722_v53  ;;  %v16063_v63 = vadd.f32 %v11793_v54, %v16060_v59  ;;  %v11796_v0 = vadd.f32 %v11795_v61, %v11794_v55  ;;  %v910_v2 = vadd.f32 %v11721_v52, %v16060_v59  ;;  %v14621_v52 = vld [vmem:[#allocation7 + $0x130] sm:$0xff]  }
 0x24a   : > { %11940 = vmatpush3.bf16.msra.mxu0 %v14621_v52 }
 0x24b   : > { %v913_v3 = vadd.f32 %v11724_v62, %v16060_v59  ;;  %v16068_v4 = vadd.f32 %v11796_v0, %v16060_v59  ;;  %11941 = vmatprep.subr.bf16.mxu0 %v14622_v57 }
 0x24d   : > { %v1036_v7 = vpack.c.bf16 %v913_v3, %v910_v2  ;;  %v11725_v8 = vpop.f32.mrb[4].mxu0  ;;  %v11797_v9 = vpop.f32.mrb[4].mxu1  ;;  %v1048_v10 = vpack.c.bf16 %v16068_v4, %v16063_v63  ;;  %v16101_v3 = vld [vmem:[%s16012_s0 + $0x48] ss:$12 sps:$4 sm:$0xff]   ;;  %v16191_v63 = vld [vmem:[%s16012_s0] ss:$12 sps:$4 sm:$0xff]  }
 0x24e   : > { %v11726_v12 = vpop.f32.mrb[5].mxu0  ;;  %v11798_v13 = vpop.f32.mrb[5].mxu1  ;;  %11942 = vmatpush3.bf16.msra.mxu0 %v14623_v6  ;;  %v14624_v4 = vld [vmem:[#allocation7 + $0x1c0] sm:$0xff]  }
 0x24f   : > { %v11727_v14 = vadd.f32 %v11726_v12, %v11725_v8  ;;  %v11728_v15 = vpop.f32.mrb[6].mxu0  ;;  %1270 = vmatmul.mubr.bf16.vlgmr.msra.gmra.mrb[16].mxu1 %v1036_v7  ;;  %v11799_v16 = vadd.f32 %v11798_v13, %v11797_v9  ;;  %v11800_v17 = vpop.f32.mrb[6].mxu1  ;;  %12039 = vmatprep.subr.bf16.mxu1 %v14624_v4 }
 0x250   : > { %v11729_v18 = vpop.f32.mrb[7].mxu0  ;;  %1277 = vmatprep.mubr.bf16.mxu1 %v16073_v19  ;;  %v11801_v20 = vpop.f32.mrb[7].mxu1 }
 0x251   : > { %v11730_v22 = vadd.f32 %v11729_v18, %v11728_v15  ;;  %v16077_v23 = vadd.f32 %v11799_v16, %v16060_v59  ;;  %v11802_v24 = vadd.f32 %v11801_v20, %v11800_v17  ;;  %v918_v26 = vadd.f32 %v11727_v14, %v16060_v59 }
 0x253   : > { %v921_v27 = vadd.f32 %v11730_v22, %v16060_v59  ;;  %v16082_v28 = vadd.f32 %v11802_v24, %v16060_v59  ;;  %v16115_v22 = vld [vmem:[%s16012_s0 + $0x60] ss:$12 sps:$4 sm:$0xff]  }
 0x255   : > { %v11731_v30 = vpop.f32.mrb[8].mxu0  ;;  %v1037_v31 = vpack.c.bf16 %v921_v27, %v918_v26  ;;  %v11803_v32 = vpop.f32.mrb[8].mxu1  ;;  %v1049_v33 = vpack.c.bf16 %v16082_v28, %v16077_v23  ;;  %v14626_v23 = vld [vmem:[#allocation7 + $0x1c8] sm:$0xff]  }
 0x256   : > { %v11732_v35 = vpop.f32.mrb[9].mxu0  ;;  %v11804_v36 = vpop.f32.mrb[9].mxu1  ;;  %v14627_v28 = vld [vmem:[#allocation7 + $0x188] sm:$0xff]  }
 0x257   : > { %v11733_v37 = vadd.f32 %v11732_v35, %v11731_v30  ;;  %v11734_v38 = vpop.f32.mrb[10].mxu0  ;;  %1278 = vmatmul.mubr.bf16.gmra.mrb[20].mxu1 %v1037_v31  ;;  %v11805_v39 = vadd.f32 %v11804_v36, %v11803_v32  ;;  %v11806_v40 = vpop.f32.mrb[10].mxu1  ;;  %v16121_v35 = vld [vmem:[%s16012_s0 + $0x78] ss:$12 sps:$4 sm:$0xff]  }
 0x258   : > { %v11735_v41 = vpop.f32.mrb[11].mxu0  ;;  %1285 = vmatprep.mubr.bf16.mxu1 %v16087_v42  ;;  %v11807_v43 = vpop.f32.mrb[11].mxu1 }
 0x259   : > { %v11736_v45 = vadd.f32 %v11735_v41, %v11734_v38  ;;  %v16091_v46 = vadd.f32 %v11805_v39, %v16060_v59  ;;  %v11808_v47 = vadd.f32 %v11807_v43, %v11806_v40  ;;  %v926_v49 = vadd.f32 %v11733_v37, %v16060_v59 }
 0x25b   : > { %v929_v50 = vadd.f32 %v11736_v45, %v16060_v59  ;;  %v16096_v51 = vadd.f32 %v11808_v47, %v16060_v59  ;;  %v16127_v47 = vld [vmem:[%s16012_s0 + $0x90] ss:$12 sps:$4 sm:$0xff]  }
 0x25d   : > { %v11737_v53 = vpop.f32.mrb[12].mxu0  ;;  %v1038_v54 = vpack.c.bf16 %v929_v50, %v926_v49  ;;  %v11809_v55 = vpop.f32.mrb[12].mxu1  ;;  %v1050_v56 = vpack.c.bf16 %v16096_v51, %v16091_v46 }
 0x25e   : > { %v11738_v58 = vpop.f32.mrb[13].mxu0  ;;  %v11810_v60 = vpop.f32.mrb[13].mxu1 }
 0x25f   : > { %v11739_v61 = vadd.f32 %v11738_v58, %v11737_v53  ;;  %v11740_v62 = vpop.f32.mrb[14].mxu0  ;;  %1286 = vmatmul.mubr.bf16.gmra.mrb[24].mxu1 %v1038_v54  ;;  %v11811_v0 = vadd.f32 %v11810_v60, %v11809_v55  ;;  %v11812_v1 = vpop.f32.mrb[14].mxu1  ;;  %v16133_v60 = vld [vmem:[%s16012_s0 + $0xa8] ss:$12 sps:$4 sm:$0xff]  }
 0x260   : > { %v11741_v2 = vpop.f32.mrb[15].mxu0  ;;  %1293 = vmatprep.mubr.bf16.mxu1 %v16101_v3  ;;  %v11813_v5 = vpop.f32.mrb[15].mxu1 }
 0x261   : > { %v11742_v7 = vadd.f32 %v11741_v2, %v11740_v62  ;;  %v16105_v8 = vadd.f32 %v11811_v0, %v16060_v59  ;;  %v11814_v9 = vadd.f32 %v11813_v5, %v11812_v1  ;;  %v934_v11 = vadd.f32 %v11739_v61, %v16060_v59 }
 0x263   : > { %v937_v12 = vadd.f32 %v11742_v7, %v16060_v59  ;;  %v16110_v13 = vadd.f32 %v11814_v9, %v16060_v59 }
 0x265   : > { %v11743_v14 = vpop.f32.mrb[16].mxu0  ;;  %v1039_v15 = vpack.c.bf16 %v937_v12, %v934_v11  ;;  %v1051_v16 = vpack.c.bf16 %v16110_v13, %v16105_v8  ;;  %v16139_v11 = vld [vmem:[%s16012_s0 + $0xc0] ss:$12 sps:$4 sm:$0xff]   ;;  %v14630_v8 = vld [vmem:[#allocation7 + $0x1d8] sm:$0xff]  }
 0x266   : > { %v11744_v17 = vpop.f32.mrb[17].mxu0  ;;  %v16194_v13 = vld [vmem:[#allocation9 + $0x1] ss:$0 sm:$0xff] }
 0x267   : > { %v11745_v18 = vadd.f32 %v11744_v17, %v11743_v14  ;;  %v11746_v20 = vpop.f32.mrb[18].mxu0  ;;  %1294 = vmatmul.mubr.bf16.gmra.mrb[28].mxu1 %v1039_v15 }
 0x268   : > { %v11747_v21 = vpop.f32.mrb[19].mxu0  ;;  %1301 = vmatprep.mubr.bf16.mxu1 %v16115_v22 }
 0x269   : > { %v11748_v24 = vadd.f32 %v11747_v21, %v11746_v20  ;;  %v942_v25 = vadd.f32 %v11745_v18, %v16060_v59 }
 0x26b   : > { %v945_v26 = vadd.f32 %v11748_v24, %v16060_v59 }
 0x26d   : > { %v11749_v27 = vpop.f32.mrb[20].mxu0  ;;  %v1040_v29 = vpack.c.bf16 %v945_v26, %v942_v25  ;;  %v16145_v26 = vld [vmem:[%s16012_s0 + $0xd8] ss:$12 sps:$4 sm:$0xff]  }
 0x26e   : > { %v11750_v30 = vpop.f32.mrb[21].mxu0 }
 0x26f   : > { %v11751_v31 = vadd.f32 %v11750_v30, %v11749_v27  ;;  %v11752_v32 = vpop.f32.mrb[22].mxu0  ;;  %1302 = vmatmul.mubr.bf16.gmra.mrb[32].mxu1 %v1040_v29 }
 0x270   : > { %v11753_v34 = vpop.f32.mrb[23].mxu0  ;;  %1309 = vmatprep.mubr.bf16.mxu1 %v16121_v35 }
 0x271   : > { %v11754_v36 = vadd.f32 %v11753_v34, %v11752_v32  ;;  %v950_v37 = vadd.f32 %v11751_v31, %v16060_v59 }
 0x273   : > { %v953_v38 = vadd.f32 %v11754_v36, %v16060_v59 }
 0x275   : > { %v11755_v39 = vpop.f32.mrb[24].mxu0  ;;  %v1041_v40 = vpack.c.bf16 %v953_v38, %v950_v37 }
 0x276   : > { %v11756_v41 = vpop.f32.mrb[25].mxu0 }
 0x277   : > { %v11757_v43 = vadd.f32 %v11756_v41, %v11755_v39  ;;  %v11758_v44 = vpop.f32.mrb[26].mxu0  ;;  %1310 = vmatmul.mubr.bf16.gmra.mrb[36].mxu1 %v1041_v40  ;;  %v16151_v39 = vld [vmem:[%s16012_s0 + $0xf0] ss:$12 sps:$4 sm:$0xff]  }
 0x278   : > { %v11759_v45 = vpop.f32.mrb[27].mxu0  ;;  %1317 = vmatprep.mubr.bf16.mxu1 %v16127_v47 }
 0x279   : > { %v11760_v48 = vadd.f32 %v11759_v45, %v11758_v44  ;;  %v958_v49 = vadd.f32 %v11757_v43, %v16060_v59 }
 0x27b   : > { %v961_v50 = vadd.f32 %v11760_v48, %v16060_v59 }
 0x27d   : > { %v11761_v52 = vpop.f32.mrb[28].mxu0  ;;  %v1042_v53 = vpack.c.bf16 %v961_v50, %v958_v49 }
 0x27e   : > { %v11762_v54 = vpop.f32.mrb[29].mxu0 }
 0x27f   : > { %v11763_v55 = vadd.f32 %v11762_v54, %v11761_v52  ;;  %v11764_v57 = vpop.f32.mrb[30].mxu0  ;;  %1318 = vmatmul.mubr.bf16.gmra.mrb[40].mxu1 %v1042_v53  ;;  %v16157_v53 = vld [vmem:[%s16012_s0 + $0x108] ss:$12 sps:$4 sm:$0xff]  }
 0x280   : > { %v11765_v58 = vpop.f32.mrb[31].mxu0  ;;  %1325 = vmatprep.mubr.bf16.mxu1 %v16133_v60 }
 0x281   : > { %v11766_v61 = vadd.f32 %v11765_v58, %v11764_v57  ;;  %v966_v62 = vadd.f32 %v11763_v55, %v16060_v59 }
 0x283   : > { %v969_v0 = vadd.f32 %v11766_v61, %v16060_v59  ;;  %v16163_v61 = vld [vmem:[%s16012_s0 + $0x120] ss:$12 sps:$4 sm:$0xff]  }
 0x285   : > { %v11767_v1 = vpop.f32.mrb[32].mxu0  ;;  %v1043_v2 = vpack.c.bf16 %v969_v0, %v966_v62  ;;  %v16170_v62 = vld [vmem:[%s16012_s0 + $0x138] ss:$12 sps:$4 sm:$0xff]   ;;  %v16177_v0 = vld [vmem:[%s16012_s0 + $0x150] ss:$12 sps:$4 sm:$0xff]  }
 0x286   : > { %v11768_v5 = vpop.f32.mrb[33].mxu0 }
 0x287   : > { %v11769_v6 = vadd.f32 %v11768_v5, %v11767_v1  ;;  %v11770_v7 = vpop.f32.mrb[34].mxu0  ;;  %1326 = vmatmul.mubr.bf16.gmra.mrb[44].mxu1 %v1043_v2  ;;  %v14628_v1 = vld [vmem:[#allocation7 + $0x1d0] sm:$0xff]  }
 0x288   : > { %v11771_v9 = vpop.f32.mrb[35].mxu0  ;;  %1333 = vmatprep.mubr.bf16.mxu1 %v16139_v11  ;;  %v14629_v2 = vld [vmem:[#allocation7 + $0x190] sm:$0xff]  }
 0x289   : > { %v11772_v12 = vadd.f32 %v11771_v9, %v11770_v7  ;;  %v974_v14 = vadd.f32 %v11769_v6, %v16060_v59  ;;  %v14631_v6 = vld [vmem:[#allocation7 + $0x198] sm:$0xff]  }
 0x28b   : > { %v977_v15 = vadd.f32 %v11772_v12, %v16060_v59  ;;  %v14632_v12 = vld [vmem:[#allocation7 + $0x1e0] sm:$0xff]  }
 0x28d   : > { %v11773_v17 = vpop.f32.mrb[36].mxu0  ;;  %v1044_v18 = vpack.c.bf16 %v977_v15, %v974_v14 }
 0x28e   : > { %v11774_v20 = vpop.f32.mrb[37].mxu0 }
 0x28f   : > { %v11775_v21 = vadd.f32 %v11774_v20, %v11773_v17  ;;  %v11776_v24 = vpop.f32.mrb[38].mxu0  ;;  %1334 = vmatmul.mubr.bf16.gmra.mrb[48].mxu1 %v1044_v18  ;;  %v14633_v18 = vld [vmem:[#allocation7 + $0x1a0] sm:$0xff]  }
 0x290   : > { %v11777_v25 = vpop.f32.mrb[39].mxu0  ;;  %1341 = vmatprep.mubr.bf16.mxu1 %v16145_v26 }
 0x291   : > { %v11778_v27 = vadd.f32 %v11777_v25, %v11776_v24  ;;  %v982_v29 = vadd.f32 %v11775_v21, %v16060_v59  ;;  %v14634_v24 = vld [vmem:[#allocation7 + $0x1e8] sm:$0xff]  }
 0x293   : > { %v985_v30 = vadd.f32 %v11778_v27, %v16060_v59 }
 0x295   : > { %v11779_v31 = vpop.f32.mrb[40].mxu0  ;;  %v1045_v32 = vpack.c.bf16 %v985_v30, %v982_v29  ;;  %v14635_v29 = vld [vmem:[#allocation7 + $0x1a8] sm:$0xff]  }
 0x296   : > { %v11780_v34 = vpop.f32.mrb[41].mxu0 }
 0x297   : > { %v11781_v36 = vadd.f32 %v11780_v34, %v11779_v31  ;;  %v11782_v37 = vpop.f32.mrb[42].mxu0  ;;  %1342 = vmatmul.mubr.bf16.gmra.mrb[52].mxu1 %v1045_v32  ;;  %v14636_v32 = vld [vmem:[#allocation7 + $0x1f0] sm:$0xff]  }
 0x298   : > { %v11783_v38 = vpop.f32.mrb[43].mxu0  ;;  %1349 = vmatprep.mubr.bf16.mxu1 %v16151_v39 }
 0x299   : > { %v11784_v40 = vadd.f32 %v11783_v38, %v11782_v37  ;;  %v990_v41 = vadd.f32 %v11781_v36, %v16060_v59  ;;  %v14637_v38 = vld [vmem:[#allocation7 + $0x1b0] sm:$0xff]  }
 0x29b   : > { %v993_v43 = vadd.f32 %v11784_v40, %v16060_v59 }
 0x29d   : > { %v11785_v44 = vpop.f32.mrb[44].mxu0  ;;  %v1046_v45 = vpack.c.bf16 %v993_v43, %v990_v41  ;;  %v14638_v43 = vld [vmem:[#allocation7 + $0x1f8] sm:$0xff]  }
 0x29e   : > { %v11786_v48 = vpop.f32.mrb[45].mxu0 }
 0x29f   : > { %v11787_v49 = vadd.f32 %v11786_v48, %v11785_v44  ;;  %v11788_v50 = vpop.f32.mrb[46].mxu0  ;;  %1350 = vmatmul.mubr.bf16.gmra.mrb[56].mxu1 %v1046_v45  ;;  %v14639_v45 = vld [vmem:[#allocation7 + $0x1b8] sm:$0xff]  }
 0x2a0   : > { %v11789_v52 = vpop.f32.mrb[47].mxu0  ;;  %1357 = vmatprep.mubr.bf16.mxu1 %v16157_v53 }
 0x2a1   : > { %v11790_v54 = vadd.f32 %v11789_v52, %v11788_v50  ;;  %v998_v55 = vadd.f32 %v11787_v49, %v16060_v59 }
 0x2a3   : > { %v1001_v57 = vadd.f32 %v11790_v54, %v16060_v59  ;;  %v16184_v59 = vld [vmem:[%s16012_s0 + $0x168] ss:$12 sps:$4 sm:$0xff]  }
 0x2a5   : > { %v1047_v58 = vpack.c.bf16 %v1001_v57, %v998_v55 }
 0x2a7   : > { %1358 = vmatmul.mubr.bf16.gmra.mrb[60].mxu1 %v1047_v58 }
 0x2a8   : > { %1365 = vmatprep.mubr.bf16.mxu1 %v16163_v61 }
 0x2af   : > { %1366 = vmatmul.mubr.bf16.gmra.mrb[64].mxu1 %v1048_v10  ;;  %v14625_v10 = vld [vmem:[#allocation7 + $0x180] sm:$0xff]  }
 0x2b0   : > { %1373 = vmatprep.mubr.bf16.mxu1 %v16170_v62  ;;  %12040 = vmatpush3.bf16.msra.mxu1 %v14625_v10 }
 0x2b1   : > { %12041 = vmatprep.subr.bf16.mxu1 %v14626_v23 }
 0x2b4   : > { %12042 = vmatpush3.bf16.msra.mxu1 %v14627_v28 }
 0x2b5   : > { %12043 = vmatprep.subr.bf16.mxu1 %v14628_v1 }
 0x2b7   : > { %1374 = vmatmul.mubr.bf16.gmra.mrb[68].mxu1 %v1049_v33 }
 0x2b8   : > { %1381 = vmatprep.mubr.bf16.mxu1 %v16177_v0  ;;  %12044 = vmatpush3.bf16.msra.mxu1 %v14629_v2 }
 0x2b9   : > { %12045 = vmatprep.subr.bf16.mxu1 %v14630_v8 }
 0x2bc   : > { %12046 = vmatpush3.bf16.msra.mxu1 %v14631_v6 }
 0x2bd   : > { %12047 = vmatprep.subr.bf16.mxu1 %v14632_v12 }
 0x2bf   : > { %1382 = vmatmul.mubr.bf16.gmra.mrb[72].mxu1 %v1050_v56 }
 0x2c0   : > { %1389 = vmatprep.mubr.bf16.mxu1 %v16184_v59  ;;  %12048 = vmatpush3.bf16.msra.mxu1 %v14633_v18 }
 0x2c1   : > { %12049 = vmatprep.subr.bf16.mxu1 %v14634_v24 }
 0x2c4   : > { %12050 = vmatpush3.bf16.msra.mxu1 %v14635_v29 }
 0x2c5   : > { %12051 = vmatprep.subr.bf16.mxu1 %v14636_v32 }
 0x2c7   : > { %1390 = vmatmul.mubr.bf16.gmra.mrb[76].mxu1 %v1051_v16 }
 0x2c8   : > { %1993 = vmatprep.mubr.bf16.mxu1 %v16191_v63  ;;  %12052 = vmatpush3.bf16.msra.mxu1 %v14637_v38 }
 0x2c9   : > { %12053 = vmatprep.subr.bf16.mxu1 %v14638_v43 }
 0x2cc   : > { %12054 = vmatpush3.bf16.msra.mxu1 %v14639_v45 }
 0x322   : > { %v11831_v33 = vpop.f32.mrb[16].mxu1 }
 0x323   : > { %v11832_v46 = vpop.f32.mrb[17].mxu1 }
 0x324   : > { %v11833_v51 = vadd.f32 %v11832_v46, %v11831_v33  ;;  %v11834_v56 = vpop.f32.mrb[18].mxu1 }
 0x325   : > { %v11835_v16 = vpop.f32.mrb[19].mxu1 }
 0x326   : > { %v11836_v5 = vadd.f32 %v11835_v16, %v11834_v56  ;;  %v1272_v7 = vadd.f32 %v11833_v51, %v16194_v13 }
 0x328   : > { %v1275_v9 = vadd.f32 %v11836_v5, %v16194_v13 }
 0x32a   : > { %v1398_v14 = vpack.c.bf16 %v1275_v9, %v1272_v7  ;;  %v11837_v15 = vpop.f32.mrb[20].mxu1 }
 0x32b   : > { %v11838_v17 = vpop.f32.mrb[21].mxu1 }
 0x32c   : > { %v11839_v20 = vadd.f32 %v11838_v17, %v11837_v15  ;;  %v11840_v21 = vpop.f32.mrb[22].mxu1  ;;  %1632 = vmatmul.mubr.bf16.vlgmr.msra.gmra.mrb[48].mxu0 %v1398_v14 }
 0x32d   : > { %v11841_v25 = vpop.f32.mrb[23].mxu1  ;;  %1639 = vmatprep.mubr.bf16.mxu0 %v16073_v19 }
 0x32e   : > { %v11842_v27 = vadd.f32 %v11841_v25, %v11840_v21  ;;  %v1280_v30 = vadd.f32 %v11839_v20, %v16194_v13 }
 0x330   : > { %v1283_v31 = vadd.f32 %v11842_v27, %v16194_v13 }
 0x332   : > { %v11843_v34 = vpop.f32.mrb[24].mxu1  ;;  %v1399_v36 = vpack.c.bf16 %v1283_v31, %v1280_v30 }
 0x333   : > { %v11844_v37 = vpop.f32.mrb[25].mxu1 }
 0x334   : > { %v11845_v40 = vadd.f32 %v11844_v37, %v11843_v34  ;;  %v11846_v41 = vpop.f32.mrb[26].mxu1  ;;  %1640 = vmatmul.mubr.bf16.gmra.mrb[52].mxu0 %v1399_v36 }
 0x335   : > { %v11847_v19 = vpop.f32.mrb[27].mxu1  ;;  %1647 = vmatprep.mubr.bf16.mxu0 %v16087_v42 }
 0x336   : > { %v11848_v44 = vadd.f32 %v11847_v19, %v11846_v41  ;;  %v1288_v48 = vadd.f32 %v11845_v40, %v16194_v13 }
 0x338   : > { %v1291_v49 = vadd.f32 %v11848_v44, %v16194_v13 }
 0x33a   : > { %v11849_v50 = vpop.f32.mrb[28].mxu1  ;;  %v1400_v52 = vpack.c.bf16 %v1291_v49, %v1288_v48 }
 0x33b   : > { %v11850_v54 = vpop.f32.mrb[29].mxu1 }
 0x33c   : > { %v11851_v55 = vadd.f32 %v11850_v54, %v11849_v50  ;;  %v11852_v57 = vpop.f32.mrb[30].mxu1  ;;  %1648 = vmatmul.mubr.bf16.gmra.mrb[56].mxu0 %v1400_v52 }
 0x33d   : > { %v11853_v58 = vpop.f32.mrb[31].mxu1  ;;  %1655 = vmatprep.mubr.bf16.mxu0 %v16101_v3 }
 0x33e   : > { %v11854_v4 = vadd.f32 %v11853_v58, %v11852_v57  ;;  %v1296_v42 = vadd.f32 %v11851_v55, %v16194_v13 }
 0x340   : > { %v1299_v10 = vadd.f32 %v11854_v4, %v16194_v13 }
 0x342   : > { %v11855_v23 = vpop.f32.mrb[32].mxu1  ;;  %v1401_v28 = vpack.c.bf16 %v1299_v10, %v1296_v42 }
 0x343   : > { %v11856_v33 = vpop.f32.mrb[33].mxu1 }
 0x344   : > { %v11857_v46 = vadd.f32 %v11856_v33, %v11855_v23  ;;  %v11858_v51 = vpop.f32.mrb[34].mxu1  ;;  %1656 = vmatmul.mubr.bf16.gmra.mrb[60].mxu0 %v1401_v28 }
 0x345   : > { %v11859_v56 = vpop.f32.mrb[35].mxu1  ;;  %1663 = vmatprep.mubr.bf16.mxu0 %v16115_v22 }
 0x346   : > { %v11860_v1 = vadd.f32 %v11859_v56, %v11858_v51  ;;  %v1304_v2 = vadd.f32 %v11857_v46, %v16194_v13 }
 0x348   : > { %v1307_v8 = vadd.f32 %v11860_v1, %v16194_v13 }
 0x34a   : > { %v11861_v3 = vpop.f32.mrb[36].mxu1  ;;  %v1402_v16 = vpack.c.bf16 %v1307_v8, %v1304_v2 }
 0x34b   : > { %v11862_v5 = vpop.f32.mrb[37].mxu1 }
 0x34c   : > { %v11863_v6 = vadd.f32 %v11862_v5, %v11861_v3  ;;  %v11864_v7 = vpop.f32.mrb[38].mxu1  ;;  %1664 = vmatmul.mubr.bf16.gmra.mrb[64].mxu0 %v1402_v16 }
 0x34d   : > { %v11865_v9 = vpop.f32.mrb[39].mxu1  ;;  %1671 = vmatprep.mubr.bf16.mxu0 %v16121_v35 }
 0x34e   : > { %v11866_v12 = vadd.f32 %v11865_v9, %v11864_v7  ;;  %v1312_v14 = vadd.f32 %v11863_v6, %v16194_v13 }
 0x350   : > { %v1315_v15 = vadd.f32 %v11866_v12, %v16194_v13 }
 0x352   : > { %v11867_v22 = vpop.f32.mrb[40].mxu1  ;;  %v1403_v17 = vpack.c.bf16 %v1315_v15, %v1312_v14 }
 0x353   : > { %v11868_v18 = vpop.f32.mrb[41].mxu1 }
 0x354   : > { %v11869_v20 = vadd.f32 %v11868_v18, %v11867_v22  ;;  %v11870_v21 = vpop.f32.mrb[42].mxu1  ;;  %1672 = vmatmul.mubr.bf16.gmra.mrb[68].mxu0 %v1403_v17 }
 0x355   : > { %v11871_v24 = vpop.f32.mrb[43].mxu1  ;;  %1679 = vmatprep.mubr.bf16.mxu0 %v16127_v47 }
 0x356   : > { %v11872_v25 = vadd.f32 %v11871_v24, %v11870_v21  ;;  %v1320_v27 = vadd.f32 %v11869_v20, %v16194_v13 }
 0x358   : > { %v1323_v29 = vadd.f32 %v11872_v25, %v16194_v13 }
 0x35a   : > { %v11873_v35 = vpop.f32.mrb[44].mxu1  ;;  %v1404_v30 = vpack.c.bf16 %v1323_v29, %v1320_v27 }
 0x35b   : > { %v11874_v31 = vpop.f32.mrb[45].mxu1 }
 0x35c   : > { %v11875_v32 = vadd.f32 %v11874_v31, %v11873_v35  ;;  %v11876_v34 = vpop.f32.mrb[46].mxu1  ;;  %1680 = vmatmul.mubr.bf16.gmra.mrb[72].mxu0 %v1404_v30 }
 0x35d   : > { %v11877_v36 = vpop.f32.mrb[47].mxu1  ;;  %1687 = vmatprep.mubr.bf16.mxu0 %v16133_v60 }
 0x35e   : > { %v11878_v37 = vadd.f32 %v11877_v36, %v11876_v34  ;;  %v1328_v38 = vadd.f32 %v11875_v32, %v16194_v13 }
 0x360   : > { %v1331_v40 = vadd.f32 %v11878_v37, %v16194_v13 }
 0x362   : > { %v11879_v41 = vpop.f32.mrb[48].mxu1  ;;  %v1405_v43 = vpack.c.bf16 %v1331_v40, %v1328_v38 }
 0x363   : > { %v11880_v19 = vpop.f32.mrb[49].mxu1 }
 0x364   : > { %v11881_v44 = vadd.f32 %v11880_v19, %v11879_v41  ;;  %v11882_v45 = vpop.f32.mrb[50].mxu1  ;;  %1688 = vmatmul.mubr.bf16.gmra.mrb[76].mxu0 %v1405_v43 }
 0x365   : > { %v11883_v48 = vpop.f32.mrb[51].mxu1  ;;  %1695 = vmatprep.mubr.bf16.mxu0 %v16139_v11 }
 0x366   : > { %v11884_v49 = vadd.f32 %v11883_v48, %v11882_v45  ;;  %v1336_v50 = vadd.f32 %v11881_v44, %v16194_v13 }
 0x368   : > { %v1339_v52 = vadd.f32 %v11884_v49, %v16194_v13 }
 0x36a   : > { %v11885_v54 = vpop.f32.mrb[52].mxu1  ;;  %v1406_v55 = vpack.c.bf16 %v1339_v52, %v1336_v50 }
 0x36b   : > { %v11886_v57 = vpop.f32.mrb[53].mxu1 }
 0x36c   : > { %v11887_v58 = vadd.f32 %v11886_v57, %v11885_v54  ;;  %v11888_v4 = vpop.f32.mrb[54].mxu1  ;;  %1696 = vmatmul.mubr.bf16.gmra.mrb[80].mxu0 %v1406_v55 }
 0x36d   : > { %v11889_v42 = vpop.f32.mrb[55].mxu1  ;;  %1703 = vmatprep.mubr.bf16.mxu0 %v16145_v26 }
 0x36e   : > { %v11890_v10 = vadd.f32 %v11889_v42, %v11888_v4  ;;  %v1344_v23 = vadd.f32 %v11887_v58, %v16194_v13 }
 0x370   : > { %v1347_v28 = vadd.f32 %v11890_v10, %v16194_v13 }
 0x372   : > { %v11891_v33 = vpop.f32.mrb[56].mxu1  ;;  %v1407_v46 = vpack.c.bf16 %v1347_v28, %v1344_v23 }
 0x373   : > { %v11892_v51 = vpop.f32.mrb[57].mxu1 }
 0x374   : > { %v11893_v56 = vadd.f32 %v11892_v51, %v11891_v33  ;;  %v11894_v1 = vpop.f32.mrb[58].mxu1  ;;  %1704 = vmatmul.mubr.bf16.gmra.mrb[84].mxu0 %v1407_v46 }
 0x375   : > { %v11895_v2 = vpop.f32.mrb[59].mxu1  ;;  %1711 = vmatprep.mubr.bf16.mxu0 %v16151_v39 }
 0x376   : > { %v11896_v8 = vadd.f32 %v11895_v2, %v11894_v1  ;;  %v1352_v3 = vadd.f32 %v11893_v56, %v16194_v13  ;;  %v14640_v56 = vld [vmem:[#allocation7 + $0x240] sm:$0xff]   ;;  %v14642_v2 = vld [vmem:[#allocation7 + $0x248] sm:$0xff]  }
 0x377   : > { %v14641_v1 = vld [vmem:[#allocation7 + $0x200] sm:$0xff]   ;;  %12151 = vmatprep.subr.bf16.mxu0 %v14640_v56 }
 0x378   : > { %v1355_v16 = vadd.f32 %v11896_v8, %v16194_v13  ;;  %12152 = vmatpush3.bf16.msra.mxu0 %v14641_v1  ;;  %v14643_v8 = vld [vmem:[#allocation7 + $0x208] sm:$0xff]  }
 0x379   : > { %12153 = vmatprep.subr.bf16.mxu0 %v14642_v2 }
 0x37a   : > { %v11897_v5 = vpop.f32.mrb[60].mxu1  ;;  %v1408_v6 = vpack.c.bf16 %v1355_v16, %v1352_v3 }
 0x37b   : > { %v11898_v7 = vpop.f32.mrb[61].mxu1 }
 0x37c   : > { %v11899_v9 = vadd.f32 %v11898_v7, %v11897_v5  ;;  %v11900_v12 = vpop.f32.mrb[62].mxu1  ;;  %1712 = vmatmul.mubr.bf16.gmra.mrb[88].mxu0 %v1408_v6  ;;  %v14644_v7 = vld [vmem:[#allocation7 + $0x250] sm:$0xff]  }
 0x37d   : > { %v11901_v14 = vpop.f32.mrb[63].mxu1  ;;  %1719 = vmatprep.mubr.bf16.mxu0 %v16157_v53  ;;  %12154 = vmatpush3.bf16.msra.mxu0 %v14643_v8 }
 0x37e   : > { %v11902_v15 = vadd.f32 %v11901_v14, %v11900_v12  ;;  %v1360_v22 = vadd.f32 %v11899_v9, %v16194_v13  ;;  %v14645_v9 = vld [vmem:[#allocation7 + $0x210] sm:$0xff]   ;;  %v14646_v12 = vld [vmem:[#allocation7 + $0x258] sm:$0xff]   ;;  %12155 = vmatprep.subr.bf16.mxu0 %v14644_v7  ;;  %v16267_v7 = vld [vmem:[%s16012_s0 + $0x60] ss:$12 sps:$4 sm:$0xff]  }
 0x380   : > { %v1363_v17 = vadd.f32 %v11902_v15, %v16194_v13 }
 0x381   : > { %12156 = vmatpush3.bf16.msra.mxu0 %v14645_v9 }
 0x382   : > { %v11903_v18 = vpop.f32.mrb[64].mxu1  ;;  %v1409_v20 = vpack.c.bf16 %v1363_v17, %v1360_v22  ;;  %v14647_v22 = vld [vmem:[#allocation7 + $0x218] sm:$0xff]   ;;  %12157 = vmatprep.subr.bf16.mxu0 %v14646_v12 }
 0x383   : > { %v11904_v21 = vpop.f32.mrb[65].mxu1 }
 0x384   : > { %v11905_v24 = vadd.f32 %v11904_v21, %v11903_v18  ;;  %v11906_v25 = vpop.f32.mrb[66].mxu1  ;;  %1720 = vmatmul.mubr.bf16.gmra.mrb[92].mxu0 %v1409_v20  ;;  %v14648_v20 = vld [vmem:[#allocation7 + $0x260] sm:$0xff]  }
 0x385   : > { %v11907_v27 = vpop.f32.mrb[67].mxu1  ;;  %1727 = vmatprep.mubr.bf16.mxu0 %v16163_v61  ;;  %12158 = vmatpush3.bf16.msra.mxu0 %v14647_v22 }
 0x386   : > { %v11908_v29 = vadd.f32 %v11907_v27, %v11906_v25  ;;  %v1368_v35 = vadd.f32 %v11905_v24, %v16194_v13  ;;  %v14649_v27 = vld [vmem:[#allocation7 + $0x220] sm:$0xff]   ;;  %12159 = vmatprep.subr.bf16.mxu0 %v14648_v20 }
 0x388   : > { %v1371_v30 = vadd.f32 %v11908_v29, %v16194_v13 }
 0x389   : > { %12160 = vmatpush3.bf16.msra.mxu0 %v14649_v27 }
 0x38a   : > { %v11909_v31 = vpop.f32.mrb[68].mxu1  ;;  %v1410_v32 = vpack.c.bf16 %v1371_v30, %v1368_v35  ;;  %v14650_v30 = vld [vmem:[#allocation7 + $0x268] sm:$0xff]  }
 0x38b   : > { %v11910_v34 = vpop.f32.mrb[69].mxu1  ;;  %12161 = vmatprep.subr.bf16.mxu0 %v14650_v30 }
 0x38c   : > { %v11911_v36 = vadd.f32 %v11910_v34, %v11909_v31  ;;  %v11912_v37 = vpop.f32.mrb[70].mxu1  ;;  %1728 = vmatmul.mubr.bf16.gmra.mrb[96].mxu0 %v1410_v32  ;;  %v16249_v32 = vld [vmem:[%s16012_s0 + $0x18] ss:$12 sps:$4 sm:$0xff]  }
 0x38d   : > { %v11913_v38 = vpop.f32.mrb[71].mxu1  ;;  %1735 = vmatprep.mubr.bf16.mxu0 %v16170_v62 }
 0x38e   : > { %v11914_v40 = vadd.f32 %v11913_v38, %v11912_v37  ;;  %v1376_v41 = vadd.f32 %v11911_v36, %v16194_v13  ;;  %v14651_v36 = vld [vmem:[#allocation7 + $0x228] sm:$0xff]  }
 0x38f   : > { %12162 = vmatpush3.bf16.msra.mxu0 %v14651_v36 }
 0x390   : > { %v1379_v43 = vadd.f32 %v11914_v40, %v16194_v13  ;;  %v14652_v40 = vld [vmem:[#allocation7 + $0x270] sm:$0xff]  }
 0x391   : > { %12163 = vmatprep.subr.bf16.mxu0 %v14652_v40 }
 0x392   : > { %v11915_v19 = vpop.f32.mrb[72].mxu1  ;;  %v1411_v44 = vpack.c.bf16 %v1379_v43, %v1376_v41 }
 0x393   : > { %v11916_v45 = vpop.f32.mrb[73].mxu1 }
 0x394   : > { %v11917_v48 = vadd.f32 %v11916_v45, %v11915_v19  ;;  %v11918_v49 = vpop.f32.mrb[74].mxu1  ;;  %1736 = vmatmul.mubr.bf16.gmra.mrb[100].mxu0 %v1411_v44  ;;  %v14653_v44 = vld [vmem:[#allocation7 + $0x230] sm:$0xff]  }
 0x395   : > { %v11919_v50 = vpop.f32.mrb[75].mxu1  ;;  %1743 = vmatprep.mubr.bf16.mxu0 %v16177_v0  ;;  %12164 = vmatpush3.bf16.msra.mxu0 %v14653_v44 }
 0x396   : > { %v11920_v52 = vadd.f32 %v11919_v50, %v11918_v49  ;;  %v1384_v54 = vadd.f32 %v11917_v48, %v16194_v13  ;;  %v14654_v49 = vld [vmem:[#allocation7 + $0x278] sm:$0xff]  }
 0x397   : > { %12165 = vmatprep.subr.bf16.mxu0 %v14654_v49 }
 0x398   : > { %v1387_v55 = vadd.f32 %v11920_v52, %v16194_v13  ;;  %v16255_v52 = vld [vmem:[%s16012_s0 + $0x30] ss:$12 sps:$4 sm:$0xff]  }
 0x39a   : > { %v11921_v57 = vpop.f32.mrb[76].mxu1  ;;  %v1412_v58 = vpack.c.bf16 %v1387_v55, %v1384_v54  ;;  %v14655_v55 = vld [vmem:[#allocation7 + $0x238] sm:$0xff]  }
 0x39b   : > { %v11922_v4 = vpop.f32.mrb[77].mxu1  ;;  %12166 = vmatpush3.bf16.msra.mxu0 %v14655_v55 }
 0x39c   : > { %v11923_v42 = vadd.f32 %v11922_v4, %v11921_v57  ;;  %v11924_v10 = vpop.f32.mrb[78].mxu1  ;;  %1744 = vmatmul.mubr.bf16.gmra.mrb[104].mxu0 %v1412_v58 }
 0x39d   : > { %v11925_v23 = vpop.f32.mrb[79].mxu1  ;;  %1751 = vmatprep.mubr.bf16.mxu0 %v16184_v59 }
 0x39e   : > { %v11926_v28 = vadd.f32 %v11925_v23, %v11924_v10  ;;  %v1392_v33 = vadd.f32 %v11923_v42, %v16194_v13 }
 0x3a0   : > { %v1395_v46 = vadd.f32 %v11926_v28, %v16194_v13  ;;  %v16244_v13 = vld [vmem:[#allocation9 + $0x2] ss:$0 sm:$0xff] }
 0x3a2   : > { %v1413_v51 = vpack.c.bf16 %v1395_v46, %v1392_v33  ;;  %v16261_v46 = vld [vmem:[%s16012_s0 + $0x48] ss:$12 sps:$4 sm:$0xff]  }
 0x3a4   : > { %1752 = vmatmul.mubr.bf16.gmra.mrb[108].mxu0 %v1413_v51 }
 0x3a5   : > { %2355 = vmatprep.mubr.bf16.mxu0 %v16191_v63 }
 0x3ff   : > { %v11943_v3 = vpop.f32.mrb[48].mxu0 }
 0x400   : > { %v11944_v16 = vpop.f32.mrb[49].mxu0 }
 0x401   : > { %v11945_v5 = vadd.f32 %v11944_v16, %v11943_v3  ;;  %v11946_v6 = vpop.f32.mrb[50].mxu0 }
 0x402   : > { %v11947_v14 = vpop.f32.mrb[51].mxu0 }
 0x403   : > { %v11948_v15 = vadd.f32 %v11947_v14, %v11946_v6  ;;  %v1634_v17 = vadd.f32 %v11945_v5, %v16244_v13 }
 0x405   : > { %v1637_v18 = vadd.f32 %v11948_v15, %v16244_v13 }
 0x407   : > { %v1760_v21 = vpack.c.bf16 %v1637_v18, %v1634_v17  ;;  %v11949_v24 = vpop.f32.mrb[52].mxu0 }
 0x408   : > { %v11950_v25 = vpop.f32.mrb[53].mxu0 }
 0x409   : > { %v11951_v29 = vadd.f32 %v11950_v25, %v11949_v24  ;;  %v11952_v35 = vpop.f32.mrb[54].mxu0  ;;  %1994 = vmatmul.mubr.bf16.vlgmr.msra.gmra.mrb[80].mxu1 %v1760_v21  ;;  %v16273_v24 = vld [vmem:[%s16012_s0 + $0x78] ss:$12 sps:$4 sm:$0xff]  }
 0x40a   : > { %v11953_v31 = vpop.f32.mrb[55].mxu0  ;;  %2001 = vmatprep.mubr.bf16.mxu1 %v16249_v32 }
 0x40b   : > { %v11954_v34 = vadd.f32 %v11953_v31, %v11952_v35  ;;  %v1642_v37 = vadd.f32 %v11951_v29, %v16244_v13 }
 0x40d   : > { %v1645_v38 = vadd.f32 %v11954_v34, %v16244_v13 }
 0x40f   : > { %v11955_v41 = vpop.f32.mrb[56].mxu0  ;;  %v1761_v43 = vpack.c.bf16 %v1645_v38, %v1642_v37 }
 0x410   : > { %v11956_v19 = vpop.f32.mrb[57].mxu0 }
 0x411   : > { %v11957_v45 = vadd.f32 %v11956_v19, %v11955_v41  ;;  %v11958_v48 = vpop.f32.mrb[58].mxu0  ;;  %2002 = vmatmul.mubr.bf16.gmra.mrb[84].mxu1 %v1761_v43 }
 0x412   : > { %v11959_v50 = vpop.f32.mrb[59].mxu0  ;;  %2009 = vmatprep.mubr.bf16.mxu1 %v16255_v52 }
 0x413   : > { %v11960_v54 = vadd.f32 %v11959_v50, %v11958_v48  ;;  %v1650_v57 = vadd.f32 %v11957_v45, %v16244_v13 }
 0x415   : > { %v1653_v58 = vadd.f32 %v11960_v54, %v16244_v13 }
 0x417   : > { %v11961_v4 = vpop.f32.mrb[60].mxu0  ;;  %v1762_v42 = vpack.c.bf16 %v1653_v58, %v1650_v57 }
 0x418   : > { %v11962_v10 = vpop.f32.mrb[61].mxu0 }
 0x419   : > { %v11963_v23 = vadd.f32 %v11962_v10, %v11961_v4  ;;  %v11964_v28 = vpop.f32.mrb[62].mxu0  ;;  %2010 = vmatmul.mubr.bf16.gmra.mrb[88].mxu1 %v1762_v42 }
 0x41a   : > { %v11965_v33 = vpop.f32.mrb[63].mxu0  ;;  %2017 = vmatprep.mubr.bf16.mxu1 %v16261_v46 }
 0x41b   : > { %v11966_v51 = vadd.f32 %v11965_v33, %v11964_v28  ;;  %v1658_v56 = vadd.f32 %v11963_v23, %v16244_v13 }
 0x41d   : > { %v1661_v1 = vadd.f32 %v11966_v51, %v16244_v13 }
 0x41f   : > { %v11967_v2 = vpop.f32.mrb[64].mxu0  ;;  %v1763_v8 = vpack.c.bf16 %v1661_v1, %v1658_v56 }
 0x420   : > { %v11968_v3 = vpop.f32.mrb[65].mxu0 }
 0x421   : > { %v11969_v16 = vadd.f32 %v11968_v3, %v11967_v2  ;;  %v11970_v5 = vpop.f32.mrb[66].mxu0  ;;  %2018 = vmatmul.mubr.bf16.gmra.mrb[92].mxu1 %v1763_v8 }
 0x422   : > { %v11971_v6 = vpop.f32.mrb[67].mxu0  ;;  %2025 = vmatprep.mubr.bf16.mxu1 %v16267_v7 }
 0x423   : > { %v11972_v9 = vadd.f32 %v11971_v6, %v11970_v5  ;;  %v1666_v12 = vadd.f32 %v11969_v16, %v16244_v13 }
 0x425   : > { %v1669_v14 = vadd.f32 %v11972_v9, %v16244_v13 }
 0x427   : > { %v11973_v15 = vpop.f32.mrb[68].mxu0  ;;  %v1764_v22 = vpack.c.bf16 %v1669_v14, %v1666_v12 }
 0x428   : > { %v11974_v17 = vpop.f32.mrb[69].mxu0 }
 0x429   : > { %v11975_v18 = vadd.f32 %v11974_v17, %v11973_v15  ;;  %v11976_v20 = vpop.f32.mrb[70].mxu0  ;;  %2026 = vmatmul.mubr.bf16.gmra.mrb[96].mxu1 %v1764_v22 }
 0x42a   : > { %v11977_v21 = vpop.f32.mrb[71].mxu0  ;;  %2033 = vmatprep.mubr.bf16.mxu1 %v16273_v24 }
 0x42b   : > { %v11978_v25 = vadd.f32 %v11977_v21, %v11976_v20  ;;  %v1674_v27 = vadd.f32 %v11975_v18, %v16244_v13 }
 0x42d   : > { %v1677_v29 = vadd.f32 %v11978_v25, %v16244_v13 }
 0x42f   : > { %v11979_v35 = vpop.f32.mrb[72].mxu0  ;;  %v1765_v30 = vpack.c.bf16 %v1677_v29, %v1674_v27 }
 0x430   : > { %v11980_v31 = vpop.f32.mrb[73].mxu0 }
 0x431   : > { %v11981_v34 = vadd.f32 %v11980_v31, %v11979_v35  ;;  %v11982_v36 = vpop.f32.mrb[74].mxu0  ;;  %2034 = vmatmul.mubr.bf16.gmra.mrb[100].mxu1 %v1765_v30 }
 0x432   : > { %v11983_v37 = vpop.f32.mrb[75].mxu0  ;;  %2041 = vmatprep.mubr.bf16.mxu1 %v16127_v47 }
 0x433   : > { %v11984_v38 = vadd.f32 %v11983_v37, %v11982_v36  ;;  %v1682_v40 = vadd.f32 %v11981_v34, %v16244_v13 }
 0x435   : > { %v1685_v41 = vadd.f32 %v11984_v38, %v16244_v13 }
 0x437   : > { %v11985_v43 = vpop.f32.mrb[76].mxu0  ;;  %v1766_v19 = vpack.c.bf16 %v1685_v41, %v1682_v40 }
 0x438   : > { %v11986_v44 = vpop.f32.mrb[77].mxu0 }
 0x439   : > { %v11987_v45 = vadd.f32 %v11986_v44, %v11985_v43  ;;  %v11988_v48 = vpop.f32.mrb[78].mxu0  ;;  %2042 = vmatmul.mubr.bf16.gmra.mrb[104].mxu1 %v1766_v19 }
 0x43a   : > { %v11989_v49 = vpop.f32.mrb[79].mxu0  ;;  %2049 = vmatprep.mubr.bf16.mxu1 %v16133_v60 }
 0x43b   : > { %v11990_v50 = vadd.f32 %v11989_v49, %v11988_v48  ;;  %v1690_v54 = vadd.f32 %v11987_v45, %v16244_v13  ;;  %v14656_v48 = vld [vmem:[#allocation7 + $0x340] sm:$0xff]  }
 0x43c   : > { %12375 = vmatprep.subr.bf16.mxu0 %v14656_v48 }
 0x43d   : > { %v1693_v55 = vadd.f32 %v11990_v50, %v16244_v13 }
 0x43f   : > { %v11991_v47 = vpop.f32.mrb[80].mxu0  ;;  %v1767_v57 = vpack.c.bf16 %v1693_v55, %v1690_v54 }
 0x440   : > { %v11992_v58 = vpop.f32.mrb[81].mxu0 }
 0x441   : > { %v11993_v4 = vadd.f32 %v11992_v58, %v11991_v47  ;;  %v11994_v42 = vpop.f32.mrb[82].mxu0  ;;  %2050 = vmatmul.mubr.bf16.gmra.mrb[108].mxu1 %v1767_v57 }
 0x442   : > { %v11995_v10 = vpop.f32.mrb[83].mxu0  ;;  %2057 = vmatprep.mubr.bf16.mxu1 %v16139_v11 }
 0x443   : > { %v11996_v23 = vadd.f32 %v11995_v10, %v11994_v42  ;;  %v1698_v28 = vadd.f32 %v11993_v4, %v16244_v13 }
 0x445   : > { %v1701_v33 = vadd.f32 %v11996_v23, %v16244_v13 }
 0x447   : > { %v11997_v60 = vpop.f32.mrb[84].mxu0  ;;  %v1768_v51 = vpack.c.bf16 %v1701_v33, %v1698_v28 }
 0x448   : > { %v11998_v56 = vpop.f32.mrb[85].mxu0 }
 0x449   : > { %v11999_v1 = vadd.f32 %v11998_v56, %v11997_v60  ;;  %v12000_v2 = vpop.f32.mrb[86].mxu0  ;;  %2058 = vmatmul.mubr.bf16.gmra.mrb[112].mxu1 %v1768_v51 }
 0x44a   : > { %v12001_v8 = vpop.f32.mrb[87].mxu0  ;;  %2065 = vmatprep.mubr.bf16.mxu1 %v16145_v26 }
 0x44b   : > { %v12002_v3 = vadd.f32 %v12001_v8, %v12000_v2  ;;  %v1706_v16 = vadd.f32 %v11999_v1, %v16244_v13 }
 0x44d   : > { %v1709_v5 = vadd.f32 %v12002_v3, %v16244_v13 }
 0x44f   : > { %v12003_v11 = vpop.f32.mrb[88].mxu0  ;;  %v1769_v6 = vpack.c.bf16 %v1709_v5, %v1706_v16 }
 0x450   : > { %v12004_v9 = vpop.f32.mrb[89].mxu0 }
 0x451   : > { %v12005_v12 = vadd.f32 %v12004_v9, %v12003_v11  ;;  %v12006_v14 = vpop.f32.mrb[90].mxu0  ;;  %2066 = vmatmul.mubr.bf16.gmra.mrb[116].mxu1 %v1769_v6  ;;  %v14668_v11 = vld [vmem:[#allocation7 + $0x2c0] sm:$0xff]   ;;  %v14672_v9 = vld [vmem:[#allocation7 + $0x2c8] sm:$0xff]  }
 0x452   : > { %v12007_v15 = vpop.f32.mrb[91].mxu0  ;;  %2073 = vmatprep.mubr.bf16.mxu1 %v16151_v39  ;;  %v14669_v6 = vld [vmem:[#allocation7 + $0x280] sm:$0xff]   ;;  %12263 = vmatprep.subr.bf16.mxu1 %v14668_v11  ;;  %v14674_v11 = vld [vmem:[#allocation7 + $0x378] sm:$0xff]  }
 0x453   : > { %v12008_v22 = vadd.f32 %v12007_v15, %v12006_v14  ;;  %v1714_v17 = vadd.f32 %v12005_v12, %v16244_v13  ;;  %12264 = vmatpush3.bf16.msra.mxu1 %v14669_v6  ;;  %v14673_v12 = vld [vmem:[#allocation7 + $0x288] sm:$0xff]  }
 0x454   : > { %12265 = vmatprep.subr.bf16.mxu1 %v14672_v9 }
 0x455   : > { %v1717_v18 = vadd.f32 %v12008_v22, %v16244_v13 }
 0x457   : > { %v12009_v26 = vpop.f32.mrb[92].mxu0  ;;  %v1770_v20 = vpack.c.bf16 %v1717_v18, %v1714_v17  ;;  %12266 = vmatpush3.bf16.msra.mxu1 %v14673_v12  ;;  %v14676_v17 = vld [vmem:[#allocation7 + $0x2d0] sm:$0xff]  }
 0x458   : > { %v12010_v21 = vpop.f32.mrb[93].mxu0  ;;  %v14677_v18 = vld [vmem:[#allocation7 + $0x290] sm:$0xff]   ;;  %12267 = vmatprep.subr.bf16.mxu1 %v14676_v17 }
 0x459   : > { %v12011_v25 = vadd.f32 %v12010_v21, %v12009_v26  ;;  %v12012_v27 = vpop.f32.mrb[94].mxu0  ;;  %2074 = vmatmul.mubr.bf16.gmra.mrb[120].mxu1 %v1770_v20  ;;  %v16309_v26 = vld [vmem:[#allocation9 + $0x3] ss:$0 sm:$0xff] }
 0x45a   : > { %v12013_v29 = vpop.f32.mrb[95].mxu0  ;;  %2081 = vmatprep.mubr.bf16.mxu1 %v16157_v53 }
 0x45b   : > { %v12014_v35 = vadd.f32 %v12013_v29, %v12012_v27  ;;  %v1722_v30 = vadd.f32 %v12011_v25, %v16244_v13  ;;  %12268 = vmatpush3.bf16.msra.mxu1 %v14677_v18  ;;  %v14657_v25 = vld [vmem:[#allocation7 + $0x300] sm:$0xff]  }
 0x45d   : > { %v1725_v31 = vadd.f32 %v12014_v35, %v16244_v13  ;;  %v14658_v35 = vld [vmem:[#allocation7 + $0x348] sm:$0xff]  }
 0x45f   : > { %v12015_v39 = vpop.f32.mrb[96].mxu0  ;;  %v1771_v34 = vpack.c.bf16 %v1725_v31, %v1722_v30 }
 0x460   : > { %v12016_v36 = vpop.f32.mrb[97].mxu0 }
 0x461   : > { %v12017_v37 = vadd.f32 %v12016_v36, %v12015_v39  ;;  %v12018_v38 = vpop.f32.mrb[98].mxu0  ;;  %2082 = vmatmul.mubr.bf16.gmra.mrb[124].mxu1 %v1771_v34  ;;  %v14659_v36 = vld [vmem:[#allocation7 + $0x308] sm:$0xff]  }
 0x462   : > { %v12019_v40 = vpop.f32.mrb[99].mxu0  ;;  %2089 = vmatprep.mubr.bf16.mxu1 %v16163_v61 }
 0x463   : > { %v12020_v41 = vadd.f32 %v12019_v40, %v12018_v38  ;;  %v1730_v43 = vadd.f32 %v12017_v37, %v16244_v13  ;;  %v14660_v38 = vld [vmem:[#allocation7 + $0x350] sm:$0xff]  }
 0x465   : > { %v1733_v19 = vadd.f32 %v12020_v41, %v16244_v13 }
 0x467   : > { %v12021_v53 = vpop.f32.mrb[100].mxu0  ;;  %v1772_v44 = vpack.c.bf16 %v1733_v19, %v1730_v43  ;;  %v14661_v43 = vld [vmem:[#allocation7 + $0x310] sm:$0xff]  }
 0x468   : > { %v12022_v45 = vpop.f32.mrb[101].mxu0 }
 0x469   : > { %v12023_v49 = vadd.f32 %v12022_v45, %v12021_v53  ;;  %v12024_v50 = vpop.f32.mrb[102].mxu0  ;;  %2090 = vmatmul.mubr.bf16.gmra.mrb[128].mxu1 %v1772_v44  ;;  %v14662_v44 = vld [vmem:[#allocation7 + $0x358] sm:$0xff]  }
 0x46a   : > { %v12025_v54 = vpop.f32.mrb[103].mxu0  ;;  %2097 = vmatprep.mubr.bf16.mxu1 %v16170_v62 }
 0x46b   : > { %v12026_v55 = vadd.f32 %v12025_v54, %v12024_v50  ;;  %v1738_v47 = vadd.f32 %v12023_v49, %v16244_v13  ;;  %v14680_v50 = vld [vmem:[#allocation7 + $0x2d8] sm:$0xff]  }
 0x46c   : > { %v14681_v54 = vld [vmem:[#allocation7 + $0x298] sm:$0xff]   ;;  %12269 = vmatprep.subr.bf16.mxu1 %v14680_v50 }
 0x46d   : > { %v1741_v61 = vadd.f32 %v12026_v55, %v16244_v13  ;;  %12270 = vmatpush3.bf16.msra.mxu1 %v14681_v54 }
 0x46f   : > { %v12027_v57 = vpop.f32.mrb[104].mxu0  ;;  %v1773_v58 = vpack.c.bf16 %v1741_v61, %v1738_v47  ;;  %v14663_v47 = vld [vmem:[#allocation7 + $0x318] sm:$0xff]  }
 0x470   : > { %v12028_v4 = vpop.f32.mrb[105].mxu0 }
 0x471   : > { %v12029_v42 = vadd.f32 %v12028_v4, %v12027_v57  ;;  %v12030_v10 = vpop.f32.mrb[106].mxu0  ;;  %2098 = vmatmul.mubr.bf16.gmra.mrb[132].mxu1 %v1773_v58  ;;  %v14664_v57 = vld [vmem:[#allocation7 + $0x360] sm:$0xff]  }
 0x472   : > { %v12031_v23 = vpop.f32.mrb[107].mxu0  ;;  %2105 = vmatprep.mubr.bf16.mxu1 %v16177_v0 }
 0x473   : > { %v12032_v28 = vadd.f32 %v12031_v23, %v12030_v10  ;;  %v1746_v33 = vadd.f32 %v12029_v42, %v16244_v13  ;;  %v14665_v42 = vld [vmem:[#allocation7 + $0x320] sm:$0xff]  }
 0x475   : > { %v1749_v62 = vadd.f32 %v12032_v28, %v16244_v13  ;;  %v14666_v28 = vld [vmem:[#allocation7 + $0x368] sm:$0xff]  }
 0x477   : > { %v12033_v60 = vpop.f32.mrb[108].mxu0  ;;  %v1774_v51 = vpack.c.bf16 %v1749_v62, %v1746_v33 }
 0x478   : > { %v12034_v56 = vpop.f32.mrb[109].mxu0 }
 0x479   : > { %v12035_v1 = vadd.f32 %v12034_v56, %v12033_v60  ;;  %v12036_v2 = vpop.f32.mrb[110].mxu0  ;;  %2106 = vmatmul.mubr.bf16.gmra.mrb[136].mxu1 %v1774_v51  ;;  %v14667_v56 = vld [vmem:[#allocation7 + $0x328] sm:$0xff]  }
 0x47a   : > { %v12037_v8 = vpop.f32.mrb[111].mxu0  ;;  %2113 = vmatprep.mubr.bf16.mxu1 %v16184_v59 }
 0x47b   : > { %v12038_v3 = vadd.f32 %v12037_v8, %v12036_v2  ;;  %v1754_v16 = vadd.f32 %v12035_v1, %v16244_v13  ;;  %v14670_v2 = vld [vmem:[#allocation7 + $0x370] sm:$0xff]  }
 0x47d   : > { %v1757_v5 = vadd.f32 %v12038_v3, %v16244_v13 }
 0x47f   : > { %v1775_v0 = vpack.c.bf16 %v1757_v5, %v1754_v16  ;;  %v14671_v16 = vld [vmem:[#allocation7 + $0x330] sm:$0xff]  }
 0x481   : > { %2114 = vmatmul.mubr.bf16.gmra.mrb[140].mxu1 %v1775_v0 }
 0x482   : > { %2717 = vmatprep.mubr.bf16.mxu1 %v16191_v63 }
 0x4dc   : > { %v12055_v14 = vpop.f32.mrb[80].mxu1 }
 0x4dd   : > { %v12056_v15 = vpop.f32.mrb[81].mxu1 }
 0x4de   : > { %v12057_v59 = vadd.f32 %v12056_v15, %v12055_v14  ;;  %v12058_v22 = vpop.f32.mrb[82].mxu1  ;;  %v14684_v14 = vld [vmem:[#allocation7 + $0x2e0] sm:$0xff]  }
 0x4df   : > { %v12059_v13 = vpop.f32.mrb[83].mxu1  ;;  %v14685_v15 = vld [vmem:[#allocation7 + $0x2a0] sm:$0xff]   ;;  %12271 = vmatprep.subr.bf16.mxu1 %v14684_v14 }
 0x4e0   : > { %v12060_v20 = vadd.f32 %v12059_v13, %v12058_v22  ;;  %v1996_v63 = vadd.f32 %v12057_v59, %v16309_v26  ;;  %v14675_v22 = vld [vmem:[#allocation7 + $0x338] sm:$0xff]   ;;  %12272 = vmatpush3.bf16.msra.mxu1 %v14685_v15 }
 0x4e2   : > { %v1999_v21 = vadd.f32 %v12060_v20, %v16309_v26 }
 0x4e4   : > { %v2122_v27 = vpack.c.bf16 %v1999_v21, %v1996_v63  ;;  %v12061_v29 = vpop.f32.mrb[84].mxu1 }
 0x4e5   : > { %v12062_v30 = vpop.f32.mrb[85].mxu1 }
 0x4e6   : > { %v12063_v31 = vadd.f32 %v12062_v30, %v12061_v29  ;;  %v12064_v39 = vpop.f32.mrb[86].mxu1  ;;  %2356 = vmatmul.mubr.bf16.vlgmr.msra.gmra.mrb[112].mxu0 %v2122_v27 }
 0x4e7   : > { %12376 = vmatpush3.bf16.msra.mxu0 %v14657_v25  ;;  %v12065_v34 = vpop.f32.mrb[87].mxu1  ;;  %2363 = vmatprep.mubr.bf16.mxu0 %v16249_v32 }
 0x4e8   : > { %v12066_v37 = vadd.f32 %v12065_v34, %v12064_v39  ;;  %12377 = vmatprep.subr.bf16.mxu0 %v14658_v35  ;;  %v2004_v40 = vadd.f32 %v12063_v31, %v16309_v26 }
 0x4ea   : > { %v2007_v41 = vadd.f32 %v12066_v37, %v16309_v26 }
 0x4eb   : > { %12378 = vmatpush3.bf16.msra.mxu0 %v14659_v36 }
 0x4ec   : > { %v12067_v19 = vpop.f32.mrb[88].mxu1  ;;  %v2123_v53 = vpack.c.bf16 %v2007_v41, %v2004_v40  ;;  %12379 = vmatprep.subr.bf16.mxu0 %v14660_v38  ;;  %v14688_v40 = vld [vmem:[#allocation7 + $0x2e8] sm:$0xff]  }
 0x4ed   : > { %v12068_v45 = vpop.f32.mrb[89].mxu1  ;;  %v14689_v41 = vld [vmem:[#allocation7 + $0x2a8] sm:$0xff]   ;;  %12273 = vmatprep.subr.bf16.mxu1 %v14688_v40 }
 0x4ee   : > { %v12069_v48 = vadd.f32 %v12068_v45, %v12067_v19  ;;  %v12070_v49 = vpop.f32.mrb[90].mxu1  ;;  %2364 = vmatmul.mubr.bf16.gmra.mrb[116].mxu0 %v2123_v53  ;;  %v16329_v19 = vld [vmem:[%s16012_s0 + $0x90] ss:$12 sps:$4 sm:$0xff]   ;;  %12274 = vmatpush3.bf16.msra.mxu1 %v14689_v41 }
 0x4ef   : > { %v12071_v55 = vpop.f32.mrb[91].mxu1  ;;  %2371 = vmatprep.mubr.bf16.mxu0 %v16255_v52  ;;  %12380 = vmatpush3.bf16.msra.mxu0 %v14661_v43 }
 0x4f0   : > { %v12072_v61 = vadd.f32 %v12071_v55, %v12070_v49  ;;  %12381 = vmatprep.subr.bf16.mxu0 %v14662_v44  ;;  %v2012_v58 = vadd.f32 %v12069_v48, %v16309_v26 }
 0x4f2   : > { %v2015_v4 = vadd.f32 %v12072_v61, %v16309_v26  ;;  %v16335_v61 = vld [vmem:[%s16012_s0 + $0xa8] ss:$12 sps:$4 sm:$0xff]  }
 0x4f3   : > { %12382 = vmatpush3.bf16.msra.mxu0 %v14663_v47 }
 0x4f4   : > { %v12073_v10 = vpop.f32.mrb[92].mxu1  ;;  %v2124_v23 = vpack.c.bf16 %v2015_v4, %v2012_v58  ;;  %12383 = vmatprep.subr.bf16.mxu0 %v14664_v57 }
 0x4f5   : > { %v12074_v33 = vpop.f32.mrb[93].mxu1 }
 0x4f6   : > { %v12075_v62 = vadd.f32 %v12074_v33, %v12073_v10  ;;  %v12076_v60 = vpop.f32.mrb[94].mxu1  ;;  %2372 = vmatmul.mubr.bf16.gmra.mrb[120].mxu0 %v2124_v23 }
 0x4f7   : > { %v12077_v51 = vpop.f32.mrb[95].mxu1  ;;  %2379 = vmatprep.mubr.bf16.mxu0 %v16261_v46  ;;  %12384 = vmatpush3.bf16.msra.mxu0 %v14665_v42 }
 0x4f8   : > { %v12078_v1 = vadd.f32 %v12077_v51, %v12076_v60  ;;  %12385 = vmatprep.subr.bf16.mxu0 %v14666_v28  ;;  %v2020_v8 = vadd.f32 %v12075_v62, %v16309_v26  ;;  %v14692_v62 = vld [vmem:[#allocation7 + $0x2f0] sm:$0xff]  }
 0x4f9   : > { %v14693_v60 = vld [vmem:[#allocation7 + $0x2b0] sm:$0xff]   ;;  %12275 = vmatprep.subr.bf16.mxu1 %v14692_v62  ;;  %v16371_v62 = vld [vmem:[%s16012_s0 + $0x138] ss:$12 sps:$4 sm:$0xff]  }
 0x4fa   : > { %v2023_v3 = vadd.f32 %v12078_v1, %v16309_v26  ;;  %12276 = vmatpush3.bf16.msra.mxu1 %v14693_v60 }
 0x4fb   : > { %12386 = vmatpush3.bf16.msra.mxu0 %v14667_v56  ;;  %v16341_v56 = vld [vmem:[%s16012_s0 + $0xc0] ss:$12 sps:$4 sm:$0xff]  }
 0x4fc   : > { %v12079_v5 = vpop.f32.mrb[96].mxu1  ;;  %v2125_v0 = vpack.c.bf16 %v2023_v3, %v2020_v8  ;;  %12387 = vmatprep.subr.bf16.mxu0 %v14670_v2 }
 0x4fd   : > { %v12080_v6 = vpop.f32.mrb[97].mxu1 }
 0x4fe   : > { %v12081_v9 = vadd.f32 %v12080_v6, %v12079_v5  ;;  %v12082_v12 = vpop.f32.mrb[98].mxu1  ;;  %2380 = vmatmul.mubr.bf16.gmra.mrb[124].mxu0 %v2125_v0 }
 0x4ff   : > { %v12083_v59 = vpop.f32.mrb[99].mxu1  ;;  %2387 = vmatprep.mubr.bf16.mxu0 %v16267_v7  ;;  %12388 = vmatpush3.bf16.msra.mxu0 %v14671_v16 }
 0x500   : > { %v12084_v17 = vadd.f32 %v12083_v59, %v12082_v12  ;;  %12389 = vmatprep.subr.bf16.mxu0 %v14674_v11  ;;  %v2028_v18 = vadd.f32 %v12081_v9, %v16309_v26  ;;  %v16347_v9 = vld [vmem:[%s16012_s0 + $0xd8] ss:$12 sps:$4 sm:$0xff]  }
 0x502   : > { %v2031_v13 = vadd.f32 %v12084_v17, %v16309_v26 }
 0x503   : > { %12390 = vmatpush3.bf16.msra.mxu0 %v14675_v22 }
 0x504   : > { %v12085_v20 = vpop.f32.mrb[100].mxu1  ;;  %v2126_v63 = vpack.c.bf16 %v2031_v13, %v2028_v18 }
 0x505   : > { %v12086_v21 = vpop.f32.mrb[101].mxu1 }
 0x506   : > { %v12087_v25 = vadd.f32 %v12086_v21, %v12085_v20  ;;  %v12088_v27 = vpop.f32.mrb[102].mxu1  ;;  %2388 = vmatmul.mubr.bf16.gmra.mrb[128].mxu0 %v2126_v63  ;;  %v14696_v20 = vld [vmem:[#allocation7 + $0x2f8] sm:$0xff]  }
 0x507   : > { %v12089_v29 = vpop.f32.mrb[103].mxu1  ;;  %2395 = vmatprep.mubr.bf16.mxu0 %v16273_v24  ;;  %v14697_v63 = vld [vmem:[#allocation7 + $0x2b8] sm:$0xff]   ;;  %12277 = vmatprep.subr.bf16.mxu1 %v14696_v20  ;;  %v16383_v20 = vld [vmem:[%s16012_s0 + $0x168] ss:$12 sps:$4 sm:$0xff]  }
 0x508   : > { %v12090_v35 = vadd.f32 %v12089_v29, %v12088_v27  ;;  %v2036_v30 = vadd.f32 %v12087_v25, %v16309_v26  ;;  %v16353_v25 = vld [vmem:[%s16012_s0 + $0xf0] ss:$12 sps:$4 sm:$0xff]   ;;  %12278 = vmatpush3.bf16.msra.mxu1 %v14697_v63 }
 0x50a   : > { %v2039_v31 = vadd.f32 %v12090_v35, %v16309_v26 }
 0x50c   : > { %v12091_v39 = vpop.f32.mrb[104].mxu1  ;;  %v2127_v34 = vpack.c.bf16 %v2039_v31, %v2036_v30 }
 0x50d   : > { %v12092_v36 = vpop.f32.mrb[105].mxu1 }
 0x50e   : > { %v12093_v37 = vadd.f32 %v12092_v36, %v12091_v39  ;;  %v12094_v38 = vpop.f32.mrb[106].mxu1  ;;  %2396 = vmatmul.mubr.bf16.gmra.mrb[132].mxu0 %v2127_v34 }
 0x50f   : > { %v12095_v43 = vpop.f32.mrb[107].mxu1  ;;  %2403 = vmatprep.mubr.bf16.mxu0 %v16329_v19 }
 0x510   : > { %v12096_v53 = vadd.f32 %v12095_v43, %v12094_v38  ;;  %v2044_v44 = vadd.f32 %v12093_v37, %v16309_v26  ;;  %v16359_v38 = vld [vmem:[%s16012_s0 + $0x108] ss:$12 sps:$4 sm:$0xff]  }
 0x512   : > { %v2047_v45 = vadd.f32 %v12096_v53, %v16309_v26 }
 0x514   : > { %v12097_v48 = vpop.f32.mrb[108].mxu1  ;;  %v2128_v49 = vpack.c.bf16 %v2047_v45, %v2044_v44 }
 0x515   : > { %v12098_v50 = vpop.f32.mrb[109].mxu1 }
 0x516   : > { %v12099_v54 = vadd.f32 %v12098_v50, %v12097_v48  ;;  %v12100_v55 = vpop.f32.mrb[110].mxu1  ;;  %2404 = vmatmul.mubr.bf16.gmra.mrb[136].mxu0 %v2128_v49 }
 0x517   : > { %v12101_v47 = vpop.f32.mrb[111].mxu1  ;;  %2411 = vmatprep.mubr.bf16.mxu0 %v16335_v61 }
 0x518   : > { %v12102_v57 = vadd.f32 %v12101_v47, %v12100_v55  ;;  %v2052_v58 = vadd.f32 %v12099_v54, %v16309_v26  ;;  %v16365_v54 = vld [vmem:[%s16012_s0 + $0x120] ss:$12 sps:$4 sm:$0xff]  }
 0x51a   : > { %v2055_v4 = vadd.f32 %v12102_v57, %v16309_v26 }
 0x51c   : > { %v12103_v42 = vpop.f32.mrb[112].mxu1  ;;  %v2129_v10 = vpack.c.bf16 %v2055_v4, %v2052_v58 }
 0x51d   : > { %v12104_v23 = vpop.f32.mrb[113].mxu1 }
 0x51e   : > { %v12105_v28 = vadd.f32 %v12104_v23, %v12103_v42  ;;  %v12106_v33 = vpop.f32.mrb[114].mxu1  ;;  %2412 = vmatmul.mubr.bf16.gmra.mrb[140].mxu0 %v2129_v10  ;;  %v14700_v10 = vld [vmem:[#allocation7 + $0x3c0] sm:$0xff]  }
 0x51f   : > { %v12107_v51 = vpop.f32.mrb[115].mxu1  ;;  %2419 = vmatprep.mubr.bf16.mxu0 %v16341_v56  ;;  %12487 = vmatprep.subr.bf16.mxu1 %v14700_v10 }
 0x520   : > { %v12108_v1 = vadd.f32 %v12107_v51, %v12106_v33  ;;  %v2060_v2 = vadd.f32 %v12105_v28, %v16309_v26 }
 0x522   : > { %v2063_v8 = vadd.f32 %v12108_v1, %v16309_v26 }
 0x524   : > { %v12109_v3 = vpop.f32.mrb[116].mxu1  ;;  %v2130_v16 = vpack.c.bf16 %v2063_v8, %v2060_v2 }
 0x525   : > { %v12110_v5 = vpop.f32.mrb[117].mxu1 }
 0x526   : > { %v12111_v0 = vadd.f32 %v12110_v5, %v12109_v3  ;;  %v12112_v11 = vpop.f32.mrb[118].mxu1  ;;  %2420 = vmatmul.mubr.bf16.gmra.mrb[144].mxu0 %v2130_v16 }
 0x527   : > { %v12113_v6 = vpop.f32.mrb[119].mxu1  ;;  %2427 = vmatprep.mubr.bf16.mxu0 %v16347_v9 }
 0x528   : > { %v12114_v12 = vadd.f32 %v12113_v6, %v12112_v11  ;;  %v2068_v14 = vadd.f32 %v12111_v0, %v16309_v26  ;;  %v16377_v11 = vld [vmem:[%s16012_s0 + $0x150] ss:$12 sps:$4 sm:$0xff]  }
 0x52a   : > { %v2071_v15 = vadd.f32 %v12114_v12, %v16309_v26 }
 0x52c   : > { %v12115_v59 = vpop.f32.mrb[120].mxu1  ;;  %v2131_v22 = vpack.c.bf16 %v2071_v15, %v2068_v14 }
 0x52d   : > { %v12116_v17 = vpop.f32.mrb[121].mxu1 }
 0x52e   : > { %v12117_v18 = vadd.f32 %v12116_v17, %v12115_v59  ;;  %v12118_v13 = vpop.f32.mrb[122].mxu1  ;;  %2428 = vmatmul.mubr.bf16.gmra.mrb[148].mxu0 %v2131_v22 }
 0x52f   : > { %v12119_v21 = vpop.f32.mrb[123].mxu1  ;;  %2435 = vmatprep.mubr.bf16.mxu0 %v16353_v25 }
 0x530   : > { %v12120_v27 = vadd.f32 %v12119_v21, %v12118_v13  ;;  %v2076_v29 = vadd.f32 %v12117_v18, %v16309_v26 }
 0x532   : > { %v2079_v35 = vadd.f32 %v12120_v27, %v16309_v26 }
 0x534   : > { %v12121_v30 = vpop.f32.mrb[124].mxu1  ;;  %v2132_v31 = vpack.c.bf16 %v2079_v35, %v2076_v29  ;;  %v16389_v29 = vld [vmem:[%s16012_s0 + $0x4] ss:$12 sps:$4 sm:$0xff]  }
 0x535   : > { %v12122_v39 = vpop.f32.mrb[125].mxu1 }
 0x536   : > { %v12123_v34 = vadd.f32 %v12122_v39, %v12121_v30  ;;  %v12124_v36 = vpop.f32.mrb[126].mxu1  ;;  %2436 = vmatmul.mubr.bf16.gmra.mrb[152].mxu0 %v2132_v31  ;;  %v16393_v30 = vld [vmem:[%s16012_s0 + $0x1c] ss:$12 sps:$4 sm:$0xff]   ;;  %v16398_v31 = vld [vmem:[%s16012_s0 + $0x34] ss:$12 sps:$4 sm:$0xff]  }
 0x537   : > { %v12125_v37 = vpop.f32.mrb[127].mxu1  ;;  %2443 = vmatprep.mubr.bf16.mxu0 %v16359_v38  ;;  %v16408_v39 = vld [vmem:[%s16012_s0 + $0x64] ss:$12 sps:$4 sm:$0xff]  }
 0x538   : > { %v12126_v40 = vadd.f32 %v12125_v37, %v12124_v36  ;;  %v2084_v41 = vadd.f32 %v12123_v34, %v16309_v26  ;;  %v16413_v34 = vld [vmem:[%s16012_s0 + $0x7c] ss:$12 sps:$4 sm:$0xff]   ;;  %v16418_v36 = vld [vmem:[%s16012_s0 + $0x94] ss:$12 sps:$4 sm:$0xff]   ;;  %v16423_v37 = vld [vmem:[%s16012_s0 + $0xac] ss:$12 sps:$4 sm:$0xff]  }
 0x53a   : > { %v2087_v43 = vadd.f32 %v12126_v40, %v16309_v26  ;;  %v16428_v40 = vld [vmem:[%s16012_s0 + $0xc4] ss:$12 sps:$4 sm:$0xff]  }
 0x53c   : > { %v12127_v53 = vpop.f32.mrb[128].mxu1  ;;  %v2133_v44 = vpack.c.bf16 %v2087_v43, %v2084_v41  ;;  %v16433_v41 = vld [vmem:[%s16012_s0 + $0xdc] ss:$12 sps:$4 sm:$0xff]   ;;  %v16438_v43 = vld [vmem:[%s16012_s0 + $0xf4] ss:$12 sps:$4 sm:$0xff]  }
 0x53d   : > { %v12128_v45 = vpop.f32.mrb[129].mxu1 }
 0x53e   : > { %v12129_v48 = vadd.f32 %v12128_v45, %v12127_v53  ;;  %v12130_v49 = vpop.f32.mrb[130].mxu1  ;;  %2444 = vmatmul.mubr.bf16.gmra.mrb[156].mxu0 %v2133_v44  ;;  %v16443_v53 = vld [vmem:[%s16012_s0 + $0x10c] ss:$12 sps:$4 sm:$0xff]  }
 0x53f   : > { %v12131_v50 = vpop.f32.mrb[131].mxu1  ;;  %2451 = vmatprep.mubr.bf16.mxu0 %v16365_v54 }
 0x540   : > { %v12132_v55 = vadd.f32 %v12131_v50, %v12130_v49  ;;  %v2092_v47 = vadd.f32 %v12129_v48, %v16309_v26  ;;  %v16448_v50 = vld [vmem:[%s16012_s0 + $0x124] ss:$12 sps:$4 sm:$0xff]  }
 0x542   : > { %v2095_v57 = vadd.f32 %v12132_v55, %v16309_v26  ;;  %v16450_v55 = vld [vmem:[#allocation9 + $0x4] ss:$0 sm:$0xff] }
 0x544   : > { %v12133_v58 = vpop.f32.mrb[132].mxu1  ;;  %v2134_v4 = vpack.c.bf16 %v2095_v57, %v2092_v47 }
 0x545   : > { %v12134_v42 = vpop.f32.mrb[133].mxu1 }
 0x546   : > { %v12135_v23 = vadd.f32 %v12134_v42, %v12133_v58  ;;  %v12136_v28 = vpop.f32.mrb[134].mxu1  ;;  %2452 = vmatmul.mubr.bf16.gmra.mrb[160].mxu0 %v2134_v4  ;;  %v14701_v42 = vld [vmem:[#allocation7 + $0x380] sm:$0xff]  }
 0x547   : > { %v12137_v33 = vpop.f32.mrb[135].mxu1  ;;  %2459 = vmatprep.mubr.bf16.mxu0 %v16371_v62 }
 0x548   : > { %v12138_v60 = vadd.f32 %v12137_v33, %v12136_v28  ;;  %v2100_v51 = vadd.f32 %v12135_v23, %v16309_v26  ;;  %v14704_v28 = vld [vmem:[#allocation7 + $0x3c8] sm:$0xff]  }
 0x54a   : > { %v2103_v1 = vadd.f32 %v12138_v60, %v16309_v26 }
 0x54c   : > { %v12139_v2 = vpop.f32.mrb[136].mxu1  ;;  %v2135_v8 = vpack.c.bf16 %v2103_v1, %v2100_v51  ;;  %v16457_v1 = vld [vmem:[%s16012_s0 + $0x13c] ss:$12 sps:$4 sm:$0xff]  }
 0x54d   : > { %v12140_v3 = vpop.f32.mrb[137].mxu1 }
 0x54e   : > { %v12141_v16 = vadd.f32 %v12140_v3, %v12139_v2  ;;  %v12142_v5 = vpop.f32.mrb[138].mxu1  ;;  %2460 = vmatmul.mubr.bf16.gmra.mrb[164].mxu0 %v2135_v8  ;;  %v14705_v8 = vld [vmem:[#allocation7 + $0x388] sm:$0xff]  }
 0x54f   : > { %v12143_v0 = vpop.f32.mrb[139].mxu1  ;;  %2467 = vmatprep.mubr.bf16.mxu0 %v16377_v11 }
 0x550   : > { %v12144_v6 = vadd.f32 %v12143_v0, %v12142_v5  ;;  %v2108_v12 = vadd.f32 %v12141_v16, %v16309_v26  ;;  %v14708_v16 = vld [vmem:[#allocation7 + $0x3d0] sm:$0xff]  }
 0x552   : > { %v2111_v14 = vadd.f32 %v12144_v6, %v16309_v26  ;;  %v14709_v6 = vld [vmem:[#allocation7 + $0x390] sm:$0xff]  }
 0x554   : > { %v12145_v15 = vpop.f32.mrb[140].mxu1  ;;  %v2136_v59 = vpack.c.bf16 %v2111_v14, %v2108_v12 }
 0x555   : > { %v12146_v22 = vpop.f32.mrb[141].mxu1 }
 0x556   : > { %v12147_v17 = vadd.f32 %v12146_v22, %v12145_v15  ;;  %v12148_v18 = vpop.f32.mrb[142].mxu1  ;;  %2468 = vmatmul.mubr.bf16.gmra.mrb[168].mxu0 %v2136_v59  ;;  %v14710_v15 = vld [vmem:[#allocation7 + $0x3d8] sm:$0xff]  }
 0x557   : > { %v12149_v13 = vpop.f32.mrb[143].mxu1  ;;  %2475 = vmatprep.mubr.bf16.mxu0 %v16383_v20 }
 0x558   : > { %v12150_v63 = vadd.f32 %v12149_v13, %v12148_v18  ;;  %v2116_v21 = vadd.f32 %v12147_v17, %v16309_v26  ;;  %v16465_v17 = vld [vmem:[%s16012_s0 + $0x154] ss:$12 sps:$4 sm:$0xff]   ;;  %v14711_v13 = vld [vmem:[#allocation7 + $0x398] sm:$0xff]  }
 0x55a   : > { %v2119_v27 = vadd.f32 %v12150_v63, %v16309_v26  ;;  %v16403_v26 = vld [vmem:[%s16012_s0 + $0x4c] ss:$12 sps:$4 sm:$0xff]  }
 0x55c   : > { %v2137_v35 = vpack.c.bf16 %v2119_v27, %v2116_v21  ;;  %v14712_v21 = vld [vmem:[#allocation7 + $0x3e0] sm:$0xff]  }
 0x55e   : > { %2476 = vmatmul.mubr.bf16.gmra.mrb[172].mxu0 %v2137_v35 }
 0x55f   : > { %3239 = vmatprep.mubr.bf16.mxu0 %v16389_v29 }
 0x566   : > { %3240 = vmatmul.mubr.bf16.vlgmr.msra.gmra.mrb[176].mxu0 %v16389_v29 }
 0x567   : > { %3247 = vmatprep.mubr.bf16.mxu0 %v16393_v30 }
 0x56e   : > { %3248 = vmatmul.mubr.bf16.gmra.mrb[180].mxu0 %v16393_v30 }
 0x56f   : > { %3255 = vmatprep.mubr.bf16.mxu0 %v16398_v31 }
 0x576   : > { %3256 = vmatmul.mubr.bf16.gmra.mrb[184].mxu0 %v16398_v31 }
 0x577   : > { %3263 = vmatprep.mubr.bf16.mxu0 %v16403_v26 }
 0x57e   : > { %3264 = vmatmul.mubr.bf16.gmra.mrb[188].mxu0 %v16403_v26 }
 0x57f   : > { %3271 = vmatprep.mubr.bf16.mxu0 %v16408_v39 }
 0x586   : > { %3272 = vmatmul.mubr.bf16.gmra.mrb[192].mxu0 %v16408_v39 }
 0x587   : > { %3279 = vmatprep.mubr.bf16.mxu0 %v16413_v34 }
 0x58e   : > { %3280 = vmatmul.mubr.bf16.gmra.mrb[196].mxu0 %v16413_v34 }
 0x58f   : > { %3287 = vmatprep.mubr.bf16.mxu0 %v16418_v36 }
 0x596   : > { %3288 = vmatmul.mubr.bf16.gmra.mrb[200].mxu0 %v16418_v36 }
 0x597   : > { %3295 = vmatprep.mubr.bf16.mxu0 %v16423_v37 }
 0x59e   : > { %3296 = vmatmul.mubr.bf16.gmra.mrb[204].mxu0 %v16423_v37 }
 0x59f   : > { %3303 = vmatprep.mubr.bf16.mxu0 %v16428_v40 }
 0x5a6   : > { %3304 = vmatmul.mubr.bf16.gmra.mrb[208].mxu0 %v16428_v40 }
 0x5a7   : > { %3311 = vmatprep.mubr.bf16.mxu0 %v16433_v41 }
 0x5ae   : > { %3312 = vmatmul.mubr.bf16.gmra.mrb[212].mxu0 %v16433_v41 }
 0x5af   : > { %3319 = vmatprep.mubr.bf16.mxu0 %v16438_v43 }
 0x5b6   : > { %3320 = vmatmul.mubr.bf16.gmra.mrb[216].mxu0 %v16438_v43 }
 0x5b7   : > { %3327 = vmatprep.mubr.bf16.mxu0 %v16443_v53 }
 0x5b9   : > { %v12167_v44 = vpop.f32.mrb[112].mxu0 }
 0x5ba   : > { %v12168_v45 = vpop.f32.mrb[113].mxu0 }
 0x5bb   : > { %v12169_v48 = vadd.f32 %v12168_v45, %v12167_v44  ;;  %v12170_v49 = vpop.f32.mrb[114].mxu0  ;;  %v14713_v44 = vld [vmem:[#allocation7 + $0x3a0] sm:$0xff]  }
 0x5bc   : > { %v12171_v47 = vpop.f32.mrb[115].mxu0 }
 0x5bd   : > { %v12172_v57 = vadd.f32 %v12171_v47, %v12170_v49  ;;  %v2358_v58 = vadd.f32 %v12169_v48, %v16450_v55 }
 0x5be   : > { %3328 = vmatmul.mubr.bf16.gmra.mrb[220].mxu0 %v16443_v53 }
 0x5bf   : > { %v2361_v4 = vadd.f32 %v12172_v57, %v16450_v55  ;;  %3335 = vmatprep.mubr.bf16.mxu0 %v16448_v50 }
 0x5c1   : > { %v2484_v10 = vpack.c.bf16 %v2361_v4, %v2358_v58  ;;  %v12173_v23 = vpop.f32.mrb[116].mxu0  ;;  %v16473_v58 = vld [vmem:[%s16012_s0 + $0x16c] ss:$12 sps:$4 sm:$0xff]  }
 0x5c2   : > { %v12174_v33 = vpop.f32.mrb[117].mxu0 }
 0x5c3   : > { %v12175_v60 = vadd.f32 %v12174_v33, %v12173_v23  ;;  %v12176_v51 = vpop.f32.mrb[118].mxu0  ;;  %2718 = vmatmul.mubr.bf16.vlgmr.msra.gmra.mrb[144].mxu1 %v2484_v10  ;;  %v14716_v23 = vld [vmem:[#allocation7 + $0x3f0] sm:$0xff]  }
 0x5c4   : > { %12488 = vmatpush3.bf16.msra.mxu1 %v14701_v42  ;;  %v12177_v2 = vpop.f32.mrb[119].mxu0  ;;  %2725 = vmatprep.mubr.bf16.mxu1 %v16249_v32  ;;  %v14715_v42 = vld [vmem:[#allocation7 + $0x3a8] sm:$0xff]  }
 0x5c5   : > { %v12178_v3 = vadd.f32 %v12177_v2, %v12176_v51  ;;  %12489 = vmatprep.subr.bf16.mxu1 %v14704_v28  ;;  %v2366_v5 = vadd.f32 %v12175_v60, %v16450_v55  ;;  %v14717_v60 = vld [vmem:[#allocation7 + $0x3b0] sm:$0xff]  }
 0x5c6   : > { %3336 = vmatmul.mubr.bf16.gmra.mrb[224].mxu0 %v16448_v50 }
 0x5c7   : > { %v2369_v0 = vadd.f32 %v12178_v3, %v16450_v55  ;;  %3343 = vmatprep.mubr.bf16.mxu0 %v16457_v1 }
 0x5c8   : > { %12490 = vmatpush3.bf16.msra.mxu1 %v14705_v8  ;;  %v14718_v8 = vld [vmem:[#allocation7 + $0x3f8] sm:$0xff]  }
 0x5c9   : > { %v12179_v12 = vpop.f32.mrb[120].mxu0  ;;  %v2485_v14 = vpack.c.bf16 %v2369_v0, %v2366_v5  ;;  %12491 = vmatprep.subr.bf16.mxu1 %v14708_v16  ;;  %v14719_v0 = vld [vmem:[#allocation7 + $0x3b8] sm:$0xff]  }
 0x5ca   : > { %v12180_v32 = vpop.f32.mrb[121].mxu0 }
 0x5cb   : > { %v12181_v59 = vadd.f32 %v12180_v32, %v12179_v12  ;;  %v12182_v22 = vpop.f32.mrb[122].mxu0  ;;  %2726 = vmatmul.mubr.bf16.gmra.mrb[148].mxu1 %v2485_v14 }
 0x5cc   : > { %v12183_v18 = vpop.f32.mrb[123].mxu0  ;;  %2733 = vmatprep.mubr.bf16.mxu1 %v16255_v52  ;;  %12492 = vmatpush3.bf16.msra.mxu1 %v14709_v6  ;;  %v14714_v52 = vld [vmem:[#allocation7 + $0x3e8] sm:$0xff]  }
 0x5cd   : > { %v12184_v63 = vadd.f32 %v12183_v18, %v12182_v22  ;;  %12493 = vmatprep.subr.bf16.mxu1 %v14710_v15  ;;  %v2374_v27 = vadd.f32 %v12181_v59, %v16450_v55 }
 0x5ce   : > { %3344 = vmatmul.mubr.bf16.gmra.mrb[228].mxu0 %v16457_v1 }
 0x5cf   : > { %v2377_v35 = vadd.f32 %v12184_v63, %v16450_v55  ;;  %3351 = vmatprep.mubr.bf16.mxu0 %v16465_v17 }
 0x5d0   : > { %12494 = vmatpush3.bf16.msra.mxu1 %v14711_v13 }
 0x5d1   : > { %v12185_v45 = vpop.f32.mrb[124].mxu0  ;;  %v2486_v48 = vpack.c.bf16 %v2377_v35, %v2374_v27  ;;  %12495 = vmatprep.subr.bf16.mxu1 %v14712_v21 }
 0x5d2   : > { %v12186_v49 = vpop.f32.mrb[125].mxu0 }
 0x5d3   : > { %v12187_v47 = vadd.f32 %v12186_v49, %v12185_v45  ;;  %v12188_v57 = vpop.f32.mrb[126].mxu0  ;;  %2734 = vmatmul.mubr.bf16.gmra.mrb[152].mxu1 %v2486_v48 }
 0x5d4   : > { %v12189_v4 = vpop.f32.mrb[127].mxu0  ;;  %2741 = vmatprep.mubr.bf16.mxu1 %v16261_v46  ;;  %12496 = vmatpush3.bf16.msra.mxu1 %v14713_v44 }
 0x5d5   : > { %v12190_v10 = vadd.f32 %v12189_v4, %v12188_v57  ;;  %12497 = vmatprep.subr.bf16.mxu1 %v14714_v52  ;;  %v2382_v28 = vadd.f32 %v12187_v47, %v16450_v55 }
 0x5d6   : > { %3352 = vmatmul.mubr.bf16.gmra.mrb[232].mxu0 %v16465_v17 }
 0x5d7   : > { %v2385_v33 = vadd.f32 %v12190_v10, %v16450_v55  ;;  %3359 = vmatprep.mubr.bf16.mxu0 %v16473_v58 }
 0x5d8   : > { %12498 = vmatpush3.bf16.msra.mxu1 %v14715_v42 }
 0x5d9   : > { %v12191_v51 = vpop.f32.mrb[128].mxu0  ;;  %v2487_v2 = vpack.c.bf16 %v2385_v33, %v2382_v28  ;;  %12499 = vmatprep.subr.bf16.mxu1 %v14716_v23 }
 0x5da   : > { %v12192_v46 = vpop.f32.mrb[129].mxu0 }
 0x5db   : > { %v12193_v3 = vadd.f32 %v12192_v46, %v12191_v51  ;;  %v12194_v16 = vpop.f32.mrb[130].mxu0  ;;  %2742 = vmatmul.mubr.bf16.gmra.mrb[156].mxu1 %v2487_v2 }
 0x5dc   : > { %v12195_v5 = vpop.f32.mrb[131].mxu0  ;;  %2749 = vmatprep.mubr.bf16.mxu1 %v16267_v7  ;;  %12500 = vmatpush3.bf16.msra.mxu1 %v14717_v60 }
 0x5dd   : > { %v12196_v6 = vadd.f32 %v12195_v5, %v12194_v16  ;;  %12501 = vmatprep.subr.bf16.mxu1 %v14718_v8  ;;  %v2390_v12 = vadd.f32 %v12193_v3, %v16450_v55 }
 0x5de   : > { %3360 = vmatmul.mubr.bf16.gmra.mrb[236].mxu0 %v16473_v58 }
 0x5df   : > { %v2393_v14 = vadd.f32 %v12196_v6, %v16450_v55  ;;  %3963 = vmatprep.mubr.bf16.mxu0 %v16389_v29 }
 0x5e0   : > { %12502 = vmatpush3.bf16.msra.mxu1 %v14719_v0 }
 0x5e1   : > { %v12197_v15 = vpop.f32.mrb[132].mxu0  ;;  %v2488_v32 = vpack.c.bf16 %v2393_v14, %v2390_v12 }
 0x5e2   : > { %v12198_v59 = vpop.f32.mrb[133].mxu0 }
 0x5e3   : > { %v12199_v22 = vadd.f32 %v12198_v59, %v12197_v15  ;;  %v12200_v18 = vpop.f32.mrb[134].mxu0  ;;  %2750 = vmatmul.mubr.bf16.gmra.mrb[160].mxu1 %v2488_v32 }
 0x5e4   : > { %v12201_v7 = vpop.f32.mrb[135].mxu0  ;;  %2757 = vmatprep.mubr.bf16.mxu1 %v16273_v24 }
 0x5e5   : > { %v12202_v13 = vadd.f32 %v12201_v7, %v12200_v18  ;;  %v2398_v63 = vadd.f32 %v12199_v22, %v16450_v55 }
 0x5e7   : > { %v2401_v21 = vadd.f32 %v12202_v13, %v16450_v55 }
 0x5e9   : > { %v12203_v27 = vpop.f32.mrb[136].mxu0  ;;  %v2489_v35 = vpack.c.bf16 %v2401_v21, %v2398_v63 }
 0x5ea   : > { %v12204_v44 = vpop.f32.mrb[137].mxu0 }
 0x5eb   : > { %v12205_v45 = vadd.f32 %v12204_v44, %v12203_v27  ;;  %v12206_v48 = vpop.f32.mrb[138].mxu0  ;;  %2758 = vmatmul.mubr.bf16.gmra.mrb[164].mxu1 %v2489_v35 }
 0x5ec   : > { %v12207_v52 = vpop.f32.mrb[139].mxu0  ;;  %2765 = vmatprep.mubr.bf16.mxu1 %v16329_v19 }
 0x5ed   : > { %v12208_v49 = vadd.f32 %v12207_v52, %v12206_v48  ;;  %v2406_v47 = vadd.f32 %v12205_v45, %v16450_v55 }
 0x5ef   : > { %v2409_v57 = vadd.f32 %v12208_v49, %v16450_v55 }
 0x5f1   : > { %v12209_v24 = vpop.f32.mrb[140].mxu0  ;;  %v2490_v4 = vpack.c.bf16 %v2409_v57, %v2406_v47 }
 0x5f2   : > { %v12210_v42 = vpop.f32.mrb[141].mxu0 }
 0x5f3   : > { %v12211_v10 = vadd.f32 %v12210_v42, %v12209_v24  ;;  %v12212_v23 = vpop.f32.mrb[142].mxu0  ;;  %2766 = vmatmul.mubr.bf16.gmra.mrb[168].mxu1 %v2490_v4 }
 0x5f4   : > { %v12213_v28 = vpop.f32.mrb[143].mxu0  ;;  %2773 = vmatprep.mubr.bf16.mxu1 %v16335_v61 }
 0x5f5   : > { %v12214_v33 = vadd.f32 %v12213_v28, %v12212_v23  ;;  %v2414_v60 = vadd.f32 %v12211_v10, %v16450_v55 }
 0x5f7   : > { %v2417_v51 = vadd.f32 %v12214_v33, %v16450_v55 }
 0x5f9   : > { %v12215_v19 = vpop.f32.mrb[144].mxu0  ;;  %v2491_v2 = vpack.c.bf16 %v2417_v51, %v2414_v60 }
 0x5fa   : > { %v12216_v8 = vpop.f32.mrb[145].mxu0 }
 0x5fb   : > { %v12217_v46 = vadd.f32 %v12216_v8, %v12215_v19  ;;  %v12218_v3 = vpop.f32.mrb[146].mxu0  ;;  %2774 = vmatmul.mubr.bf16.gmra.mrb[172].mxu1 %v2491_v2 }
 0x5fc   : > { %v12219_v16 = vpop.f32.mrb[147].mxu0  ;;  %2781 = vmatprep.mubr.bf16.mxu1 %v16341_v56 }
 0x5fd   : > { %v12220_v5 = vadd.f32 %v12219_v16, %v12218_v3  ;;  %v2422_v0 = vadd.f32 %v12217_v46, %v16450_v55  ;;  %v14720_v16 = vld [vmem:[#allocation7 + $0x440] sm:$0xff]  }
 0x5fe   : > { %12599 = vmatprep.subr.bf16.mxu0 %v14720_v16 }
 0x5ff   : > { %v2425_v6 = vadd.f32 %v12220_v5, %v16450_v55  ;;  %v14721_v5 = vld [vmem:[#allocation7 + $0x400] sm:$0xff]  }
 0x600   : > { %12600 = vmatpush3.bf16.msra.mxu0 %v14721_v5 }
 0x601   : > { %v12221_v61 = vpop.f32.mrb[148].mxu0  ;;  %v2492_v12 = vpack.c.bf16 %v2425_v6, %v2422_v0 }
 0x602   : > { %v12222_v14 = vpop.f32.mrb[149].mxu0 }
 0x603   : > { %v12223_v15 = vadd.f32 %v12222_v14, %v12221_v61  ;;  %v12224_v32 = vpop.f32.mrb[150].mxu0  ;;  %2782 = vmatmul.mubr.bf16.gmra.mrb[176].mxu1 %v2492_v12 }
 0x604   : > { %v12225_v59 = vpop.f32.mrb[151].mxu0  ;;  %2789 = vmatprep.mubr.bf16.mxu1 %v16347_v9 }
 0x605   : > { %v12226_v22 = vadd.f32 %v12225_v59, %v12224_v32  ;;  %v2430_v18 = vadd.f32 %v12223_v15, %v16450_v55 }
 0x607   : > { %v2433_v7 = vadd.f32 %v12226_v22, %v16450_v55 }
 0x609   : > { %v12227_v56 = vpop.f32.mrb[152].mxu0  ;;  %v2493_v13 = vpack.c.bf16 %v2433_v7, %v2430_v18 }
 0x60a   : > { %v12228_v63 = vpop.f32.mrb[153].mxu0 }
 0x60b   : > { %v12229_v21 = vadd.f32 %v12228_v63, %v12227_v56  ;;  %v12230_v27 = vpop.f32.mrb[154].mxu0  ;;  %2790 = vmatmul.mubr.bf16.gmra.mrb[180].mxu1 %v2493_v13 }
 0x60c   : > { %v12231_v35 = vpop.f32.mrb[155].mxu0  ;;  %2797 = vmatprep.mubr.bf16.mxu1 %v16353_v25 }
 0x60d   : > { %v12232_v44 = vadd.f32 %v12231_v35, %v12230_v27  ;;  %v2438_v45 = vadd.f32 %v12229_v21, %v16450_v55  ;;  %v14722_v35 = vld [vmem:[#allocation7 + $0x448] sm:$0xff]  }
 0x60e   : > { %12601 = vmatprep.subr.bf16.mxu0 %v14722_v35 }
 0x60f   : > { %v2441_v48 = vadd.f32 %v12232_v44, %v16450_v55  ;;  %v14723_v44 = vld [vmem:[#allocation7 + $0x408] sm:$0xff]  }
 0x610   : > { %12602 = vmatpush3.bf16.msra.mxu0 %v14723_v44 }
 0x611   : > { %v12233_v9 = vpop.f32.mrb[156].mxu0  ;;  %v2494_v52 = vpack.c.bf16 %v2441_v48, %v2438_v45 }
 0x612   : > { %v12234_v49 = vpop.f32.mrb[157].mxu0 }
 0x613   : > { %v12235_v47 = vadd.f32 %v12234_v49, %v12233_v9  ;;  %v12236_v57 = vpop.f32.mrb[158].mxu0  ;;  %2798 = vmatmul.mubr.bf16.gmra.mrb[184].mxu1 %v2494_v52 }
 0x614   : > { %v12237_v24 = vpop.f32.mrb[159].mxu0  ;;  %2805 = vmatprep.mubr.bf16.mxu1 %v16359_v38 }
 0x615   : > { %v12238_v4 = vadd.f32 %v12237_v24, %v12236_v57  ;;  %v2446_v42 = vadd.f32 %v12235_v47, %v16450_v55 }
 0x617   : > { %v2449_v10 = vadd.f32 %v12238_v4, %v16450_v55 }
 0x619   : > { %v12239_v25 = vpop.f32.mrb[160].mxu0  ;;  %v2495_v23 = vpack.c.bf16 %v2449_v10, %v2446_v42  ;;  %v16518_v10 = vld [vmem:[#allocation9 + $0x6] ss:$0 sm:$0xff] }
 0x61a   : > { %v12240_v28 = vpop.f32.mrb[161].mxu0 }
 0x61b   : > { %v12241_v33 = vadd.f32 %v12240_v28, %v12239_v25  ;;  %v12242_v60 = vpop.f32.mrb[162].mxu0  ;;  %2806 = vmatmul.mubr.bf16.gmra.mrb[188].mxu1 %v2495_v23 }
 0x61c   : > { %v12243_v51 = vpop.f32.mrb[163].mxu0  ;;  %2813 = vmatprep.mubr.bf16.mxu1 %v16365_v54 }
 0x61d   : > { %v12244_v19 = vadd.f32 %v12243_v51, %v12242_v60  ;;  %v2454_v2 = vadd.f32 %v12241_v33, %v16450_v55 }
 0x61f   : > { %v2457_v8 = vadd.f32 %v12244_v19, %v16450_v55  ;;  %v14725_v19 = vld [vmem:[#allocation7 + $0x410] sm:$0xff]  }
 0x621   : > { %v12245_v38 = vpop.f32.mrb[164].mxu0  ;;  %v2496_v46 = vpack.c.bf16 %v2457_v8, %v2454_v2 }
 0x622   : > { %v12246_v3 = vpop.f32.mrb[165].mxu0 }
 0x623   : > { %v12247_v0 = vadd.f32 %v12246_v3, %v12245_v38  ;;  %v12248_v6 = vpop.f32.mrb[166].mxu0  ;;  %2814 = vmatmul.mubr.bf16.gmra.mrb[192].mxu1 %v2496_v46 }
 0x624   : > { %v12249_v61 = vpop.f32.mrb[167].mxu0  ;;  %2821 = vmatprep.mubr.bf16.mxu1 %v16371_v62 }
 0x625   : > { %v12250_v12 = vadd.f32 %v12249_v61, %v12248_v6  ;;  %v2462_v54 = vadd.f32 %v12247_v0, %v16450_v55 }
 0x627   : > { %v2465_v14 = vadd.f32 %v12250_v12, %v16450_v55 }
 0x629   : > { %v12251_v15 = vpop.f32.mrb[168].mxu0  ;;  %v2497_v32 = vpack.c.bf16 %v2465_v14, %v2462_v54 }
 0x62a   : > { %v12252_v59 = vpop.f32.mrb[169].mxu0 }
 0x62b   : > { %v12253_v22 = vadd.f32 %v12252_v59, %v12251_v15  ;;  %v12254_v18 = vpop.f32.mrb[170].mxu0  ;;  %2822 = vmatmul.mubr.bf16.gmra.mrb[196].mxu1 %v2497_v32 }
 0x62c   : > { %v12255_v7 = vpop.f32.mrb[171].mxu0  ;;  %2829 = vmatprep.mubr.bf16.mxu1 %v16377_v11 }
 0x62d   : > { %v12256_v56 = vadd.f32 %v12255_v7, %v12254_v18  ;;  %v2470_v13 = vadd.f32 %v12253_v22, %v16450_v55  ;;  %v14726_v18 = vld [vmem:[#allocation7 + $0x458] sm:$0xff]  }
 0x62e   : > { %v14727_v7 = vld [vmem:[#allocation7 + $0x418] sm:$0xff]  }
 0x62f   : > { %v2473_v62 = vadd.f32 %v12256_v56, %v16450_v55 }
 0x631   : > { %v12257_v63 = vpop.f32.mrb[172].mxu0  ;;  %v2498_v21 = vpack.c.bf16 %v2473_v62, %v2470_v13 }
 0x632   : > { %v12258_v27 = vpop.f32.mrb[173].mxu0 }
 0x633   : > { %v12259_v45 = vadd.f32 %v12258_v27, %v12257_v63  ;;  %v12260_v48 = vpop.f32.mrb[174].mxu0  ;;  %2830 = vmatmul.mubr.bf16.gmra.mrb[200].mxu1 %v2498_v21 }
 0x634   : > { %v12261_v9 = vpop.f32.mrb[175].mxu0  ;;  %2837 = vmatprep.mubr.bf16.mxu1 %v16383_v20 }
 0x635   : > { %v12262_v52 = vadd.f32 %v12261_v9, %v12260_v48  ;;  %v2478_v11 = vadd.f32 %v12259_v45, %v16450_v55 }
 0x637   : > { %v2481_v49 = vadd.f32 %v12262_v52, %v16450_v55  ;;  %v14724_v55 = vld [vmem:[#allocation7 + $0x450] sm:$0xff]  }
 0x638   : > { %12603 = vmatprep.subr.bf16.mxu0 %v14724_v55 }
 0x639   : > { %v12391_v47 = vpop.f32.mrb[176].mxu0  ;;  %v2499_v57 = vpack.c.bf16 %v2481_v49, %v2478_v11  ;;  %12604 = vmatpush3.bf16.msra.mxu0 %v14725_v19 }
 0x63a   : > { %v12392_v24 = vpop.f32.mrb[177].mxu0  ;;  %12605 = vmatprep.subr.bf16.mxu0 %v14726_v18 }
 0x63b   : > { %v12393_v4 = vadd.f32 %v12392_v24, %v12391_v47  ;;  %2838 = vmatmul.mubr.bf16.gmra.mrb[204].mxu1 %v2499_v57  ;;  %v12394_v42 = vpop.f32.mrb[178].mxu0  ;;  %v14728_v24 = vld [vmem:[#allocation7 + $0x460] sm:$0xff]  }
 0x63c   : > { %v12395_v25 = vpop.f32.mrb[179].mxu0  ;;  %3601 = vmatprep.mubr.bf16.mxu1 %v16389_v29 }
 0x63d   : > { %v12396_v23 = vadd.f32 %v12395_v25, %v12394_v42  ;;  %v3242_v20 = vadd.f32 %v12393_v4, %v16518_v10  ;;  %12606 = vmatpush3.bf16.msra.mxu0 %v14727_v7  ;;  %v14729_v4 = vld [vmem:[#allocation7 + $0x420] sm:$0xff]  }
 0x63e   : > { %12607 = vmatprep.subr.bf16.mxu0 %v14728_v24 }
 0x63f   : > { %v3245_v28 = vadd.f32 %v12396_v23, %v16518_v10 }
 0x641   : > { %v3368_v33 = vpack.c.bf16 %v3245_v28, %v3242_v20  ;;  %v12397_v60 = vpop.f32.mrb[180].mxu0  ;;  %12608 = vmatpush3.bf16.msra.mxu0 %v14729_v4 }
 0x642   : > { %v12398_v51 = vpop.f32.mrb[181].mxu0 }
 0x643   : > { %v12399_v2 = vadd.f32 %v12398_v51, %v12397_v60  ;;  %v12400_v8 = vpop.f32.mrb[182].mxu0  ;;  %3602 = vmatmul.mubr.bf16.vlgmr.msra.gmra.mrb[208].mxu1 %v3368_v33 }
 0x644   : > { %v12401_v38 = vpop.f32.mrb[183].mxu0  ;;  %3609 = vmatprep.mubr.bf16.mxu1 %v16393_v30 }
 0x645   : > { %v12402_v46 = vadd.f32 %v12401_v38, %v12400_v8  ;;  %v3250_v3 = vadd.f32 %v12399_v2, %v16518_v10 }
 0x647   : > { %v3253_v16 = vadd.f32 %v12402_v46, %v16518_v10 }
 0x649   : > { %v12403_v5 = vpop.f32.mrb[184].mxu0  ;;  %v3369_v0 = vpack.c.bf16 %v3253_v16, %v3250_v3 }
 0x64a   : > { %v12404_v6 = vpop.f32.mrb[185].mxu0 }
 0x64b   : > { %v12405_v61 = vadd.f32 %v12404_v6, %v12403_v5  ;;  %v12406_v12 = vpop.f32.mrb[186].mxu0  ;;  %3610 = vmatmul.mubr.bf16.gmra.mrb[212].mxu1 %v3369_v0  ;;  %v14730_v5 = vld [vmem:[#allocation7 + $0x468] sm:$0xff]  }
 0x64c   : > { %v12407_v54 = vpop.f32.mrb[187].mxu0  ;;  %3617 = vmatprep.mubr.bf16.mxu1 %v16398_v31  ;;  %v14731_v0 = vld [vmem:[#allocation7 + $0x428] sm:$0xff]   ;;  %12609 = vmatprep.subr.bf16.mxu0 %v14730_v5 }
 0x64d   : > { %v12408_v14 = vadd.f32 %v12407_v54, %v12406_v12  ;;  %v3258_v15 = vadd.f32 %v12405_v61, %v16518_v10  ;;  %12610 = vmatpush3.bf16.msra.mxu0 %v14731_v0 }
 0x64f   : > { %v3261_v30 = vadd.f32 %v12408_v14, %v16518_v10 }
 0x651   : > { %v12409_v32 = vpop.f32.mrb[188].mxu0  ;;  %v3370_v59 = vpack.c.bf16 %v3261_v30, %v3258_v15 }
 0x652   : > { %v12410_v22 = vpop.f32.mrb[189].mxu0 }
 0x653   : > { %v12411_v56 = vadd.f32 %v12410_v22, %v12409_v32  ;;  %v12412_v13 = vpop.f32.mrb[190].mxu0  ;;  %3618 = vmatmul.mubr.bf16.gmra.mrb[216].mxu1 %v3370_v59 }
 0x654   : > { %v12413_v62 = vpop.f32.mrb[191].mxu0  ;;  %3625 = vmatprep.mubr.bf16.mxu1 %v16403_v26 }
 0x655   : > { %v12414_v63 = vadd.f32 %v12413_v62, %v12412_v13  ;;  %v3266_v31 = vadd.f32 %v12411_v56, %v16518_v10 }
 0x657   : > { %v3269_v21 = vadd.f32 %v12414_v63, %v16518_v10 }
 0x659   : > { %v12415_v27 = vpop.f32.mrb[192].mxu0  ;;  %v3371_v35 = vpack.c.bf16 %v3269_v21, %v3266_v31  ;;  %v14732_v31 = vld [vmem:[#allocation7 + $0x470] sm:$0xff]  }
 0x65a   : > { %v12416_v44 = vpop.f32.mrb[193].mxu0  ;;  %v14733_v21 = vld [vmem:[#allocation7 + $0x430] sm:$0xff]   ;;  %12611 = vmatprep.subr.bf16.mxu0 %v14732_v31 }
 0x65b   : > { %v12417_v45 = vadd.f32 %v12416_v44, %v12415_v27  ;;  %v12418_v48 = vpop.f32.mrb[194].mxu0  ;;  %3626 = vmatmul.mubr.bf16.gmra.mrb[220].mxu1 %v3371_v35  ;;  %12612 = vmatpush3.bf16.msra.mxu0 %v14733_v21 }
 0x65c   : > { %v12419_v9 = vpop.f32.mrb[195].mxu0  ;;  %3633 = vmatprep.mubr.bf16.mxu1 %v16408_v39 }
 0x65d   : > { %v12420_v52 = vadd.f32 %v12419_v9, %v12418_v48  ;;  %v3274_v11 = vadd.f32 %v12417_v45, %v16518_v10 }
 0x65f   : > { %v3277_v26 = vadd.f32 %v12420_v52, %v16518_v10 }
 0x661   : > { %v12421_v49 = vpop.f32.mrb[196].mxu0  ;;  %v3372_v47 = vpack.c.bf16 %v3277_v26, %v3274_v11 }
 0x662   : > { %v12422_v57 = vpop.f32.mrb[197].mxu0 }
 0x663   : > { %v12423_v42 = vadd.f32 %v12422_v57, %v12421_v49  ;;  %v12424_v25 = vpop.f32.mrb[198].mxu0  ;;  %3634 = vmatmul.mubr.bf16.gmra.mrb[224].mxu1 %v3372_v47 }
 0x664   : > { %v12425_v23 = vpop.f32.mrb[199].mxu0  ;;  %3641 = vmatprep.mubr.bf16.mxu1 %v16413_v34 }
 0x665   : > { %v12426_v20 = vadd.f32 %v12425_v23, %v12424_v25  ;;  %v3282_v39 = vadd.f32 %v12423_v42, %v16518_v10  ;;  %v14734_v23 = vld [vmem:[#allocation7 + $0x478] sm:$0xff]  }
 0x666   : > { %12613 = vmatprep.subr.bf16.mxu0 %v14734_v23 }
 0x667   : > { %v3285_v28 = vadd.f32 %v12426_v20, %v16518_v10  ;;  %v14735_v20 = vld [vmem:[#allocation7 + $0x438] sm:$0xff]  }
 0x668   : > { %12614 = vmatpush3.bf16.msra.mxu0 %v14735_v20 }
 0x669   : > { %v12427_v33 = vpop.f32.mrb[200].mxu0  ;;  %v3373_v60 = vpack.c.bf16 %v3285_v28, %v3282_v39 }
 0x66a   : > { %v12428_v51 = vpop.f32.mrb[201].mxu0 }
 0x66b   : > { %v12429_v55 = vadd.f32 %v12428_v51, %v12427_v33  ;;  %v12430_v19 = vpop.f32.mrb[202].mxu0  ;;  %3642 = vmatmul.mubr.bf16.gmra.mrb[228].mxu1 %v3373_v60 }
 0x66c   : > { %v12431_v2 = vpop.f32.mrb[203].mxu0  ;;  %3649 = vmatprep.mubr.bf16.mxu1 %v16418_v36 }
 0x66d   : > { %v12432_v8 = vadd.f32 %v12431_v2, %v12430_v19  ;;  %v3290_v38 = vadd.f32 %v12429_v55, %v16518_v10 }
 0x66f   : > { %v3293_v34 = vadd.f32 %v12432_v8, %v16518_v10 }
 0x671   : > { %v12433_v46 = vpop.f32.mrb[204].mxu0  ;;  %v3374_v3 = vpack.c.bf16 %v3293_v34, %v3290_v38  ;;  %v16556_v38 = vld [vmem:[#allocation9 + $0x5] ss:$0 sm:$0xff] }
 0x672   : > { %v12434_v16 = vpop.f32.mrb[205].mxu0 }
 0x673   : > { %v12435_v6 = vadd.f32 %v12434_v16, %v12433_v46  ;;  %v12436_v61 = vpop.f32.mrb[206].mxu0  ;;  %3650 = vmatmul.mubr.bf16.gmra.mrb[232].mxu1 %v3374_v3 }
 0x674   : > { %v12437_v12 = vpop.f32.mrb[207].mxu0  ;;  %3657 = vmatprep.mubr.bf16.mxu1 %v16423_v37 }
 0x675   : > { %v12438_v54 = vadd.f32 %v12437_v12, %v12436_v61  ;;  %v3298_v36 = vadd.f32 %v12435_v6, %v16518_v10 }
 0x677   : > { %v3301_v14 = vadd.f32 %v12438_v54, %v16518_v10 }
 0x679   : > { %v12439_v15 = vpop.f32.mrb[208].mxu0  ;;  %v3375_v30 = vpack.c.bf16 %v3301_v14, %v3298_v36 }
 0x67a   : > { %v12440_v32 = vpop.f32.mrb[209].mxu0 }
 0x67b   : > { %v12441_v59 = vadd.f32 %v12440_v32, %v12439_v15  ;;  %v12442_v22 = vpop.f32.mrb[210].mxu0  ;;  %3658 = vmatmul.mubr.bf16.gmra.mrb[236].mxu1 %v3375_v30 }
 0x67c   : > { %v12443_v18 = vpop.f32.mrb[211].mxu0  ;;  %3665 = vmatprep.mubr.bf16.mxu1 %v16428_v40 }
 0x67d   : > { %v12444_v7 = vadd.f32 %v12443_v18, %v12442_v22  ;;  %v3306_v56 = vadd.f32 %v12441_v59, %v16518_v10 }
 0x67f   : > { %v3309_v37 = vadd.f32 %v12444_v7, %v16518_v10 }
 0x681   : > { %v12445_v13 = vpop.f32.mrb[212].mxu0  ;;  %v3376_v62 = vpack.c.bf16 %v3309_v37, %v3306_v56 }
 0x682   : > { %v12446_v63 = vpop.f32.mrb[213].mxu0 }
 0x683   : > { %v12447_v27 = vadd.f32 %v12446_v63, %v12445_v13  ;;  %v12448_v35 = vpop.f32.mrb[214].mxu0  ;;  %3666 = vmatmul.mubr.bf16.gmra.mrb[240].mxu1 %v3376_v62 }
 0x684   : > { %v12449_v44 = vpop.f32.mrb[215].mxu0  ;;  %3673 = vmatprep.mubr.bf16.mxu1 %v16433_v41 }
 0x685   : > { %v12450_v45 = vadd.f32 %v12449_v44, %v12448_v35  ;;  %v3314_v40 = vadd.f32 %v12447_v27, %v16518_v10  ;;  %v14759_v35 = vld [vmem:[#allocation7 + $0x518] sm:$0xff]  }
 0x687   : > { %v3317_v48 = vadd.f32 %v12450_v45, %v16518_v10 }
 0x689   : > { %v12451_v9 = vpop.f32.mrb[216].mxu0  ;;  %v3377_v52 = vpack.c.bf16 %v3317_v48, %v3314_v40 }
 0x68a   : > { %v12452_v11 = vpop.f32.mrb[217].mxu0 }
 0x68b   : > { %v12453_v26 = vadd.f32 %v12452_v11, %v12451_v9  ;;  %v12454_v49 = vpop.f32.mrb[218].mxu0  ;;  %3674 = vmatmul.mubr.bf16.gmra.mrb[244].mxu1 %v3377_v52 }
 0x68c   : > { %v12455_v47 = vpop.f32.mrb[219].mxu0  ;;  %3681 = vmatprep.mubr.bf16.mxu1 %v16438_v43 }
 0x68d   : > { %v12456_v57 = vadd.f32 %v12455_v47, %v12454_v49  ;;  %v3322_v24 = vadd.f32 %v12453_v26, %v16518_v10 }
 0x68f   : > { %v3325_v41 = vadd.f32 %v12456_v57, %v16518_v10 }
 0x691   : > { %v12457_v4 = vpop.f32.mrb[220].mxu0  ;;  %v3378_v42 = vpack.c.bf16 %v3325_v41, %v3322_v24 }
 0x692   : > { %v12458_v25 = vpop.f32.mrb[221].mxu0 }
 0x693   : > { %v12459_v39 = vadd.f32 %v12458_v25, %v12457_v4  ;;  %v12460_v28 = vpop.f32.mrb[222].mxu0  ;;  %3682 = vmatmul.mubr.bf16.gmra.mrb[248].mxu1 %v3378_v42 }
 0x694   : > { %v12461_v33 = vpop.f32.mrb[223].mxu0  ;;  %3689 = vmatprep.mubr.bf16.mxu1 %v16443_v53 }
 0x695   : > { %v12462_v60 = vadd.f32 %v12461_v33, %v12460_v28  ;;  %v3330_v51 = vadd.f32 %v12459_v39, %v16518_v10 }
 0x696   : > { %v12279_v43 = vpop.f32.mrb[144].mxu1 }
 0x697   : > { %v3333_v55 = vadd.f32 %v12462_v60, %v16518_v10  ;;  %v12280_v19 = vpop.f32.mrb[145].mxu1 }
 0x698   : > { %v12281_v2 = vadd.f32 %v12280_v19, %v12279_v43  ;;  %v12282_v8 = vpop.f32.mrb[146].mxu1 }
 0x699   : > { %v12283_v34 = vpop.f32.mrb[147].mxu1  ;;  %v12463_v46 = vpop.f32.mrb[224].mxu0  ;;  %v3379_v3 = vpack.c.bf16 %v3333_v55, %v3330_v51 }
 0x69a   : > { %v12284_v16 = vadd.f32 %v12283_v34, %v12282_v8  ;;  %v12464_v5 = vpop.f32.mrb[225].mxu0  ;;  %v16559_v6 = vadd.f32 %v12281_v2, %v16556_v38 }
 0x69b   : > { %v12465_v0 = vadd.f32 %v12464_v5, %v12463_v46  ;;  %v12466_v53 = vpop.f32.mrb[226].mxu0  ;;  %3690 = vmatmul.mubr.bf16.gmra.mrb[252].mxu1 %v3379_v3 }
 0x69c   : > { %v16562_v61 = vadd.f32 %v12284_v16, %v16556_v38  ;;  %v12467_v12 = vpop.f32.mrb[227].mxu0  ;;  %3697 = vmatprep.mubr.bf16.mxu1 %v16448_v50 }
 0x69d   : > { %v12468_v54 = vadd.f32 %v12467_v12, %v12466_v53  ;;  %v3338_v15 = vadd.f32 %v12465_v0, %v16518_v10 }
 0x69e   : > { %v12285_v14 = vpop.f32.mrb[148].mxu1 }
 0x69f   : > { %v3341_v30 = vadd.f32 %v12468_v54, %v16518_v10  ;;  %v12286_v32 = vpop.f32.mrb[149].mxu1 }
 0x6a0   : > { %v12287_v59 = vadd.f32 %v12286_v32, %v12285_v14  ;;  %v12288_v22 = vpop.f32.mrb[150].mxu1 }
 0x6a1   : > { %v3380_v18 = vpack.c.bf16 %v3341_v30, %v3338_v15  ;;  %v12289_v7 = vpop.f32.mrb[151].mxu1  ;;  %v12469_v56 = vpop.f32.mrb[228].mxu0 }
 0x6a2   : > { %v12290_v37 = vadd.f32 %v12289_v7, %v12288_v22  ;;  %v12470_v13 = vpop.f32.mrb[229].mxu0  ;;  %v16570_v50 = vadd.f32 %v12287_v59, %v16556_v38 }
 0x6a3   : > { %v12471_v62 = vadd.f32 %v12470_v13, %v12469_v56  ;;  %v12472_v63 = vpop.f32.mrb[230].mxu0  ;;  %3698 = vmatmul.mubr.bf16.gmra.mrb[0].mxu1 %v3380_v18 }
 0x6a4   : > { %v16573_v31 = vadd.f32 %v12290_v37, %v16556_v38  ;;  %v12473_v21 = vpop.f32.mrb[231].mxu0  ;;  %3705 = vmatprep.mubr.bf16.mxu1 %v16457_v1 }
 0x6a5   : > { %v12474_v27 = vadd.f32 %v12473_v21, %v12472_v63  ;;  %v3346_v45 = vadd.f32 %v12471_v62, %v16518_v10 }
 0x6a6   : > { %v12291_v44 = vpop.f32.mrb[152].mxu1 }
 0x6a7   : > { %v3349_v40 = vadd.f32 %v12474_v27, %v16518_v10  ;;  %v12292_v48 = vpop.f32.mrb[153].mxu1 }
 0x6a8   : > { %v12293_v9 = vadd.f32 %v12292_v48, %v12291_v44  ;;  %v12294_v52 = vpop.f32.mrb[154].mxu1 }
 0x6a9   : > { %v3381_v11 = vpack.c.bf16 %v3349_v40, %v3346_v45  ;;  %v12295_v26 = vpop.f32.mrb[155].mxu1  ;;  %v12475_v49 = vpop.f32.mrb[232].mxu0 }
 0x6aa   : > { %v12296_v47 = vadd.f32 %v12295_v26, %v12294_v52  ;;  %v12476_v57 = vpop.f32.mrb[233].mxu0  ;;  %v16581_v1 = vadd.f32 %v12293_v9, %v16556_v38 }
 0x6ab   : > { %v12477_v24 = vadd.f32 %v12476_v57, %v12475_v49  ;;  %v12478_v41 = vpop.f32.mrb[234].mxu0  ;;  %3706 = vmatmul.mubr.bf16.gmra.mrb[4].mxu1 %v3381_v11 }
 0x6ac   : > { %v16584_v4 = vadd.f32 %v12296_v47, %v16556_v38  ;;  %v12479_v42 = vpop.f32.mrb[235].mxu0  ;;  %3713 = vmatprep.mubr.bf16.mxu1 %v16465_v17 }
 0x6ad   : > { %v12480_v25 = vadd.f32 %v12479_v42, %v12478_v41  ;;  %v3354_v39 = vadd.f32 %v12477_v24, %v16518_v10 }
 0x6ae   : > { %v12297_v20 = vpop.f32.mrb[156].mxu1 }
 0x6af   : > { %v3357_v28 = vadd.f32 %v12480_v25, %v16518_v10  ;;  %v12298_v33 = vpop.f32.mrb[157].mxu1 }
 0x6b0   : > { %v12299_v60 = vadd.f32 %v12298_v33, %v12297_v20  ;;  %v12300_v43 = vpop.f32.mrb[158].mxu1 }
 0x6b1   : > { %v3382_v51 = vpack.c.bf16 %v3357_v28, %v3354_v39  ;;  %v12301_v55 = vpop.f32.mrb[159].mxu1  ;;  %v12481_v19 = vpop.f32.mrb[236].mxu0 }
 0x6b2   : > { %v12302_v2 = vadd.f32 %v12301_v55, %v12300_v43  ;;  %v12482_v8 = vpop.f32.mrb[237].mxu0  ;;  %v16592_v17 = vadd.f32 %v12299_v60, %v16556_v38 }
 0x6b3   : > { %v12483_v34 = vadd.f32 %v12482_v8, %v12481_v19  ;;  %v12484_v46 = vpop.f32.mrb[238].mxu0  ;;  %3714 = vmatmul.mubr.bf16.gmra.mrb[8].mxu1 %v3382_v51 }
 0x6b4   : > { %v16595_v3 = vadd.f32 %v12302_v2, %v16556_v38  ;;  %v12485_v16 = vpop.f32.mrb[239].mxu0  ;;  %3721 = vmatprep.mubr.bf16.mxu1 %v16473_v58 }
 0x6b5   : > { %v12486_v5 = vadd.f32 %v12485_v16, %v12484_v46  ;;  %v3362_v12 = vadd.f32 %v12483_v34, %v16518_v10 }
 0x6b6   : > { %v12303_v53 = vpop.f32.mrb[160].mxu1 }
 0x6b7   : > { %v3365_v54 = vadd.f32 %v12486_v5, %v16518_v10  ;;  %v12304_v14 = vpop.f32.mrb[161].mxu1 }
 0x6b8   : > { %v12305_v15 = vadd.f32 %v12304_v14, %v12303_v53  ;;  %v12306_v30 = vpop.f32.mrb[162].mxu1 }
 0x6b9   : > { %v3383_v32 = vpack.c.bf16 %v3365_v54, %v3362_v12  ;;  %v12307_v59 = vpop.f32.mrb[163].mxu1 }
 0x6ba   : > { %v12308_v22 = vadd.f32 %v12307_v59, %v12306_v30  ;;  %v16603_v18 = vadd.f32 %v12305_v15, %v16556_v38 }
 0x6bb   : > { %3722 = vmatmul.mubr.bf16.gmra.mrb[12].mxu1 %v3383_v32 }
 0x6bc   : > { %v16606_v58 = vadd.f32 %v12308_v22, %v16556_v38  ;;  %4325 = vmatprep.mubr.bf16.mxu1 %v16389_v29 }
 0x6be   : > { %v12309_v56 = vpop.f32.mrb[164].mxu1 }
 0x6bf   : > { %v12310_v10 = vpop.f32.mrb[165].mxu1 }
 0x6c0   : > { %v12311_v37 = vadd.f32 %v12310_v10, %v12309_v56  ;;  %v12312_v13 = vpop.f32.mrb[166].mxu1 }
 0x6c1   : > { %v12313_v62 = vpop.f32.mrb[167].mxu1 }
 0x6c2   : > { %v12314_v63 = vadd.f32 %v12313_v62, %v12312_v13  ;;  %v16612_v21 = vadd.f32 %v12311_v37, %v16556_v38 }
 0x6c4   : > { %v16615_v27 = vadd.f32 %v12314_v63, %v16556_v38 }
 0x6c6   : > { %v12315_v45 = vpop.f32.mrb[168].mxu1 }
 0x6c7   : > { %v12316_v29 = vpop.f32.mrb[169].mxu1 }
 0x6c8   : > { %v12317_v40 = vadd.f32 %v12316_v29, %v12315_v45  ;;  %v12318_v48 = vpop.f32.mrb[170].mxu1 }
 0x6c9   : > { %v12319_v9 = vpop.f32.mrb[171].mxu1 }
 0x6ca   : > { %v12320_v52 = vadd.f32 %v12319_v9, %v12318_v48  ;;  %v16620_v11 = vadd.f32 %v12317_v40, %v16556_v38 }
 0x6cc   : > { %v16623_v26 = vadd.f32 %v12320_v52, %v16556_v38 }
 0x6ce   : > { %v12321_v47 = vpop.f32.mrb[172].mxu1 }
 0x6cf   : > { %v12322_v57 = vpop.f32.mrb[173].mxu1 }
 0x6d0   : > { %v12323_v24 = vadd.f32 %v12322_v57, %v12321_v47  ;;  %v12324_v41 = vpop.f32.mrb[174].mxu1 }
 0x6d1   : > { %v12325_v42 = vpop.f32.mrb[175].mxu1 }
 0x6d2   : > { %v12326_v25 = vadd.f32 %v12325_v42, %v12324_v41  ;;  %v16628_v20 = vadd.f32 %v12323_v24, %v16556_v38 }
 0x6d4   : > { %18234 = vst [vmem:[#allocation31_spill] sm:$0xff] %v16628_v20  ;;  %v16631_v39 = vadd.f32 %v12326_v25, %v16556_v38 }
 0x6d6   : > { %18235 = vst [vmem:[#allocation32_spill] sm:$0xff] %v16631_v39  ;;  %v12327_v33 = vpop.f32.mrb[176].mxu1 }
 0x6d7   : > { %v12328_v60 = vpop.f32.mrb[177].mxu1 }
 0x6d8   : > { %v12329_v43 = vadd.f32 %v12328_v60, %v12327_v33  ;;  %v12330_v51 = vpop.f32.mrb[178].mxu1 }
 0x6d9   : > { %v12331_v55 = vpop.f32.mrb[179].mxu1 }
 0x6da   : > { %v12332_v19 = vadd.f32 %v12331_v55, %v12330_v51  ;;  %v16636_v2 = vadd.f32 %v12329_v43, %v16556_v38 }
 0x6dc   : > { %18236 = vst [vmem:[#allocation33_spill] sm:$0xff] %v16636_v2  ;;  %v16639_v8 = vadd.f32 %v12332_v19, %v16556_v38 }
 0x6de   : > { %18237 = vst [vmem:[#allocation34_spill] sm:$0xff] %v16639_v8  ;;  %v12333_v46 = vpop.f32.mrb[180].mxu1 }
 0x6df   : > { %v12334_v16 = vpop.f32.mrb[181].mxu1 }
 0x6e0   : > { %v12335_v5 = vadd.f32 %v12334_v16, %v12333_v46  ;;  %v12336_v53 = vpop.f32.mrb[182].mxu1  ;;  %v14736_v16 = vld [vmem:[#allocation7 + $0x4c0] sm:$0xff]  }
 0x6e1   : > { %v12337_v12 = vpop.f32.mrb[183].mxu1  ;;  %12711 = vmatprep.subr.bf16.mxu1 %v14736_v16 }
 0x6e2   : > { %v12338_v54 = vadd.f32 %v12337_v12, %v12336_v53  ;;  %v16644_v14 = vadd.f32 %v12335_v5, %v16556_v38  ;;  %v14737_v5 = vld [vmem:[#allocation7 + $0x480] sm:$0xff]  }
 0x6e3   : > { %12712 = vmatpush3.bf16.msra.mxu1 %v14737_v5 }
 0x6e4   : > { %18238 = vst [vmem:[#allocation35_spill] sm:$0xff] %v16644_v14  ;;  %v16647_v15 = vadd.f32 %v12338_v54, %v16556_v38 }
 0x6e6   : > { %18239 = vst [vmem:[#allocation36_spill] sm:$0xff] %v16647_v15  ;;  %v12339_v32 = vpop.f32.mrb[184].mxu1 }
 0x6e7   : > { %v12340_v59 = vpop.f32.mrb[185].mxu1 }
 0x6e8   : > { %v12341_v22 = vadd.f32 %v12340_v59, %v12339_v32  ;;  %v12342_v56 = vpop.f32.mrb[186].mxu1 }
 0x6e9   : > { %v12343_v10 = vpop.f32.mrb[187].mxu1 }
 0x6ea   : > { %v12344_v37 = vadd.f32 %v12343_v10, %v12342_v56  ;;  %v16652_v13 = vadd.f32 %v12341_v22, %v16556_v38  ;;  %v14750_v10 = vld [vmem:[#allocation7 + $0x4f8] sm:$0xff]  }
 0x6ec   : > { %18240 = vst [vmem:[#allocation37_spill] sm:$0xff] %v16652_v13  ;;  %v16655_v62 = vadd.f32 %v12344_v37, %v16556_v38 }
 0x6ee   : > { %18241 = vst [vmem:[#allocation38_spill] sm:$0xff] %v16655_v62  ;;  %v12345_v45 = vpop.f32.mrb[188].mxu1 }
 0x6ef   : > { %v12346_v29 = vpop.f32.mrb[189].mxu1 }
 0x6f0   : > { %v12347_v40 = vadd.f32 %v12346_v29, %v12345_v45  ;;  %v12348_v48 = vpop.f32.mrb[190].mxu1 }
 0x6f1   : > { %v12349_v9 = vpop.f32.mrb[191].mxu1 }
 0x6f2   : > { %v12350_v52 = vadd.f32 %v12349_v9, %v12348_v48  ;;  %v16660_v47 = vadd.f32 %v12347_v40, %v16556_v38 }
 0x6f4   : > { %18242 = vst [vmem:[#allocation39_spill] sm:$0xff] %v16660_v47  ;;  %v16663_v57 = vadd.f32 %v12350_v52, %v16556_v38 }
 0x6f6   : > { %18243 = vst [vmem:[#allocation40_spill] sm:$0xff] %v16663_v57  ;;  %v12351_v41 = vpop.f32.mrb[192].mxu1 }
 0x6f7   : > { %v12352_v42 = vpop.f32.mrb[193].mxu1 }
 0x6f8   : > { %v12353_v25 = vadd.f32 %v12352_v42, %v12351_v41  ;;  %v12354_v33 = vpop.f32.mrb[194].mxu1 }
 0x6f9   : > { %v12355_v60 = vpop.f32.mrb[195].mxu1 }
 0x6fa   : > { %v12356_v43 = vadd.f32 %v12355_v60, %v12354_v33  ;;  %v16668_v51 = vadd.f32 %v12353_v25, %v16556_v38  ;;  %v14738_v33 = vld [vmem:[#allocation7 + $0x4c8] sm:$0xff]  }
 0x6fb   : > { %v14739_v60 = vld [vmem:[#allocation7 + $0x488] sm:$0xff]   ;;  %12713 = vmatprep.subr.bf16.mxu1 %v14738_v33 }
 0x6fc   : > { %18244 = vst [vmem:[#allocation41_spill] sm:$0xff] %v16668_v51  ;;  %v16671_v55 = vadd.f32 %v12356_v43, %v16556_v38  ;;  %12714 = vmatpush3.bf16.msra.mxu1 %v14739_v60 }
 0x6fe   : > { %18245 = vst [vmem:[#allocation42_spill] sm:$0xff] %v16671_v55  ;;  %v12357_v46 = vpop.f32.mrb[196].mxu1 }
 0x6ff   : > { %v12358_v53 = vpop.f32.mrb[197].mxu1 }
 0x700   : > { %v12359_v12 = vadd.f32 %v12358_v53, %v12357_v46  ;;  %v12360_v54 = vpop.f32.mrb[198].mxu1 }
 0x701   : > { %v12361_v32 = vpop.f32.mrb[199].mxu1 }
 0x702   : > { %v12362_v59 = vadd.f32 %v12361_v32, %v12360_v54  ;;  %v16676_v22 = vadd.f32 %v12359_v12, %v16556_v38 }
 0x704   : > { %18246 = vst [vmem:[#allocation43_spill] sm:$0xff] %v16676_v22  ;;  %v16679_v56 = vadd.f32 %v12362_v59, %v16556_v38 }
 0x706   : > { %18247 = vst [vmem:[#allocation44_spill] sm:$0xff] %v16679_v56  ;;  %v12363_v37 = vpop.f32.mrb[200].mxu1 }
 0x707   : > { %v12364_v45 = vpop.f32.mrb[201].mxu1 }
 0x708   : > { %v12365_v29 = vadd.f32 %v12364_v45, %v12363_v37  ;;  %v12366_v40 = vpop.f32.mrb[202].mxu1 }
 0x709   : > { %v12367_v48 = vpop.f32.mrb[203].mxu1 }
 0x70a   : > { %v12368_v9 = vadd.f32 %v12367_v48, %v12366_v40  ;;  %v16684_v52 = vadd.f32 %v12365_v29, %v16556_v38  ;;  %v14740_v40 = vld [vmem:[#allocation7 + $0x4d0] sm:$0xff]  }
 0x70b   : > { %v14741_v48 = vld [vmem:[#allocation7 + $0x490] sm:$0xff]   ;;  %12715 = vmatprep.subr.bf16.mxu1 %v14740_v40 }
 0x70c   : > { %18248 = vst [vmem:[#allocation45_spill] sm:$0xff] %v16684_v52  ;;  %v16687_v41 = vadd.f32 %v12368_v9, %v16556_v38  ;;  %v14742_v9 = vld [vmem:[#allocation7 + $0x4d8] sm:$0xff]   ;;  %12716 = vmatpush3.bf16.msra.mxu1 %v14741_v48  ;;  %v14762_v52 = vld [vmem:[#allocation7 + $0x568] sm:$0xff]  }
 0x70d   : > { %12717 = vmatprep.subr.bf16.mxu1 %v14742_v9  ;;  %v16704_v48 = vld [vmem:[%s16012_s0 + $0x1c] ss:$12 sps:$4 sm:$0xff]  }
 0x70e   : > { %18249 = vst [vmem:[#allocation46_spill] sm:$0xff] %v16687_v41  ;;  %v12369_v25 = vpop.f32.mrb[204].mxu1 }
 0x70f   : > { %v12370_v43 = vpop.f32.mrb[205].mxu1 }
 0x710   : > { %v12371_v46 = vadd.f32 %v12370_v43, %v12369_v25  ;;  %v12372_v16 = vpop.f32.mrb[206].mxu1  ;;  %v16699_v25 = vld [vmem:[#allocation9 + $0x7] ss:$0 sm:$0xff]  ;;  %v14743_v43 = vld [vmem:[#allocation7 + $0x498] sm:$0xff]  }
 0x711   : > { %v12373_v5 = vpop.f32.mrb[207].mxu1  ;;  %12718 = vmatpush3.bf16.msra.mxu1 %v14743_v43  ;;  %v14748_v43 = vld [vmem:[#allocation7 + $0x4f0] sm:$0xff]  }
 0x712   : > { %v12374_v53 = vadd.f32 %v12373_v5, %v12372_v16  ;;  %v16692_v12 = vadd.f32 %v12371_v46, %v16556_v38  ;;  %v14744_v16 = vld [vmem:[#allocation7 + $0x4e0] sm:$0xff]  }
 0x713   : > { %12719 = vmatprep.subr.bf16.mxu1 %v14744_v16  ;;  %v14749_v16 = vld [vmem:[#allocation7 + $0x4b0] sm:$0xff]  }
 0x714   : > { %18250 = vst [vmem:[#allocation47_spill] sm:$0xff] %v16692_v12  ;;  %v16695_v54 = vadd.f32 %v12374_v53, %v16556_v38 }
 0x716   : > { %18251 = vst [vmem:[#allocation48_spill] sm:$0xff] %v16695_v54  ;;  %v12503_v59 = vpop.f32.mrb[208].mxu1 }
 0x717   : > { %v12504_v37 = vpop.f32.mrb[209].mxu1 }
 0x718   : > { %v12505_v45 = vadd.f32 %v12504_v37, %v12503_v59  ;;  %v12506_v29 = vpop.f32.mrb[210].mxu1  ;;  %v14745_v37 = vld [vmem:[#allocation7 + $0x4a0] sm:$0xff]  }
 0x719   : > { %v12507_v33 = vpop.f32.mrb[211].mxu1  ;;  %12720 = vmatpush3.bf16.msra.mxu1 %v14745_v37  ;;  %v16710_v37 = vld [vmem:[%s16012_s0 + $0x34] ss:$12 sps:$4 sm:$0xff]  }
 0x71a   : > { %v12508_v60 = vadd.f32 %v12507_v33, %v12506_v29  ;;  %v3604_v38 = vadd.f32 %v12505_v45, %v16699_v25  ;;  %v14746_v29 = vld [vmem:[#allocation7 + $0x4e8] sm:$0xff]  }
 0x71b   : > { %v14747_v33 = vld [vmem:[#allocation7 + $0x4a8] sm:$0xff]   ;;  %12721 = vmatprep.subr.bf16.mxu1 %v14746_v29  ;;  %v14751_v29 = vld [vmem:[#allocation7 + $0x4b8] sm:$0xff]  }
 0x71c   : > { %v3607_v46 = vadd.f32 %v12508_v60, %v16699_v25 }
 0x71d   : > { %12722 = vmatpush3.bf16.msra.mxu1 %v14747_v33 }
 0x71e   : > { %v3730_v5 = vpack.c.bf16 %v3607_v46, %v3604_v38  ;;  %v12509_v53 = vpop.f32.mrb[212].mxu1  ;;  %12723 = vmatprep.subr.bf16.mxu1 %v14748_v43 }
 0x71f   : > { %v12510_v59 = vpop.f32.mrb[213].mxu1 }
 0x720   : > { %v12511_v32 = vadd.f32 %v12510_v59, %v12509_v53  ;;  %v12512_v42 = vpop.f32.mrb[214].mxu1  ;;  %3964 = vmatmul.mubr.bf16.vlgmr.msra.gmra.mrb[240].mxu0 %v3730_v5 }
 0x721   : > { %v12513_v40 = vpop.f32.mrb[215].mxu1  ;;  %3971 = vmatprep.mubr.bf16.mxu0 %v16704_v48  ;;  %12724 = vmatpush3.bf16.msra.mxu1 %v14749_v16 }
 0x722   : > { %v12514_v45 = vadd.f32 %v12513_v40, %v12512_v42  ;;  %v3612_v9 = vadd.f32 %v12511_v32, %v16699_v25  ;;  %12725 = vmatprep.subr.bf16.mxu1 %v14750_v10 }
 0x724   : > { %v3615_v60 = vadd.f32 %v12514_v45, %v16699_v25 }
 0x725   : > { %12726 = vmatpush3.bf16.msra.mxu1 %v14751_v29 }
 0x726   : > { %v12515_v38 = vpop.f32.mrb[216].mxu1  ;;  %v3731_v46 = vpack.c.bf16 %v3615_v60, %v3612_v9 }
 0x727   : > { %v12516_v5 = vpop.f32.mrb[217].mxu1 }
 0x728   : > { %v12517_v53 = vadd.f32 %v12516_v5, %v12515_v38  ;;  %v12518_v59 = vpop.f32.mrb[218].mxu1  ;;  %3972 = vmatmul.mubr.bf16.gmra.mrb[244].mxu0 %v3731_v46  ;;  %v16716_v5 = vld [vmem:[%s16012_s0 + $0x4c] ss:$12 sps:$4 sm:$0xff]  }
 0x729   : > { %v12519_v42 = vpop.f32.mrb[219].mxu1  ;;  %3979 = vmatprep.mubr.bf16.mxu0 %v16710_v37 }
 0x72a   : > { %v12520_v32 = vadd.f32 %v12519_v42, %v12518_v59  ;;  %v3620_v40 = vadd.f32 %v12517_v53, %v16699_v25 }
 0x72c   : > { %v3623_v45 = vadd.f32 %v12520_v32, %v16699_v25 }
 0x72e   : > { %v12521_v33 = vpop.f32.mrb[220].mxu1  ;;  %v3732_v9 = vpack.c.bf16 %v3623_v45, %v3620_v40 }
 0x72f   : > { %v12522_v60 = vpop.f32.mrb[221].mxu1 }
 0x730   : > { %v12523_v43 = vadd.f32 %v12522_v60, %v12521_v33  ;;  %v12524_v38 = vpop.f32.mrb[222].mxu1  ;;  %3980 = vmatmul.mubr.bf16.gmra.mrb[248].mxu0 %v3732_v9  ;;  %v16722_v33 = vld [vmem:[%s16012_s0 + $0x64] ss:$12 sps:$4 sm:$0xff]  }
 0x731   : > { %v12525_v46 = vpop.f32.mrb[223].mxu1  ;;  %3987 = vmatprep.mubr.bf16.mxu0 %v16716_v5 }
 0x732   : > { %v12526_v16 = vadd.f32 %v12525_v46, %v12524_v38  ;;  %v3628_v59 = vadd.f32 %v12523_v43, %v16699_v25 }
 0x734   : > { %v3631_v53 = vadd.f32 %v12526_v16, %v16699_v25 }
 0x736   : > { %v12527_v42 = vpop.f32.mrb[224].mxu1  ;;  %v3733_v10 = vpack.c.bf16 %v3631_v53, %v3628_v59 }
 0x737   : > { %v12528_v32 = vpop.f32.mrb[225].mxu1 }
 0x738   : > { %v12529_v40 = vadd.f32 %v12528_v32, %v12527_v42  ;;  %v12530_v29 = vpop.f32.mrb[226].mxu1  ;;  %3988 = vmatmul.mubr.bf16.gmra.mrb[252].mxu0 %v3733_v10  ;;  %v16728_v42 = vld [vmem:[%s16012_s0 + $0x7c] ss:$12 sps:$4 sm:$0xff]  }
 0x739   : > { %v12531_v45 = vpop.f32.mrb[227].mxu1  ;;  %3995 = vmatprep.mubr.bf16.mxu0 %v16722_v33 }
 0x73a   : > { %v12532_v9 = vadd.f32 %v12531_v45, %v12530_v29  ;;  %v3636_v60 = vadd.f32 %v12529_v40, %v16699_v25 }
 0x73c   : > { %v3639_v38 = vadd.f32 %v12532_v9, %v16699_v25 }
 0x73e   : > { %v3734_v43 = vpack.c.bf16 %v3639_v38, %v3636_v60  ;;  %v12533_v46 = vpop.f32.mrb[228].mxu1 }
 0x73f   : > { %v12534_v16 = vpop.f32.mrb[229].mxu1 }
 0x740   : > { %v12535_v19 = vadd.f32 %v12534_v16, %v12533_v46  ;;  %v12536_v59 = vpop.f32.mrb[230].mxu1  ;;  %3996 = vmatmul.mubr.bf16.gmra.mrb[0].mxu0 %v3734_v43  ;;  %v16734_v16 = vld [vmem:[%s16012_s0 + $0x94] ss:$12 sps:$4 sm:$0xff]  }
 0x741   : > { %v12537_v53 = vpop.f32.mrb[231].mxu1  ;;  %4003 = vmatprep.mubr.bf16.mxu0 %v16728_v42 }
 0x742   : > { %v12538_v10 = vadd.f32 %v12537_v53, %v12536_v59  ;;  %v3644_v32 = vadd.f32 %v12535_v19, %v16699_v25 }
 0x744   : > { %v3647_v29 = vadd.f32 %v12538_v10, %v16699_v25 }
 0x746   : > { %v3735_v40 = vpack.c.bf16 %v3647_v29, %v3644_v32  ;;  %v12539_v45 = vpop.f32.mrb[232].mxu1 }
 0x747   : > { %v12540_v9 = vpop.f32.mrb[233].mxu1 }
 0x748   : > { %v12541_v60 = vadd.f32 %v12540_v9, %v12539_v45  ;;  %v12542_v38 = vpop.f32.mrb[234].mxu1  ;;  %4004 = vmatmul.mubr.bf16.gmra.mrb[4].mxu0 %v3735_v40  ;;  %v16740_v9 = vld [vmem:[%s16012_s0 + $0xac] ss:$12 sps:$4 sm:$0xff]  }
 0x749   : > { %v12543_v46 = vpop.f32.mrb[235].mxu1  ;;  %4011 = vmatprep.mubr.bf16.mxu0 %v16734_v16 }
 0x74a   : > { %v12544_v43 = vadd.f32 %v12543_v46, %v12542_v38  ;;  %v3652_v24 = vadd.f32 %v12541_v60, %v16699_v25 }
 0x74c   : > { %v3655_v59 = vadd.f32 %v12544_v43, %v16699_v25 }
 0x74e   : > { %v3736_v19 = vpack.c.bf16 %v3655_v59, %v3652_v24  ;;  %v12545_v53 = vpop.f32.mrb[236].mxu1 }
 0x74f   : > { %v12546_v10 = vpop.f32.mrb[237].mxu1 }
 0x750   : > { %v12547_v32 = vadd.f32 %v12546_v10, %v12545_v53  ;;  %v12548_v29 = vpop.f32.mrb[238].mxu1  ;;  %4012 = vmatmul.mubr.bf16.gmra.mrb[8].mxu0 %v3736_v19  ;;  %v16746_v10 = vld [vmem:[%s16012_s0 + $0xc4] ss:$12 sps:$4 sm:$0xff]  }
 0x751   : > { %v12549_v45 = vpop.f32.mrb[239].mxu1  ;;  %4019 = vmatprep.mubr.bf16.mxu0 %v16740_v9 }
 0x752   : > { %v12550_v40 = vadd.f32 %v12549_v45, %v12548_v29  ;;  %v3660_v63 = vadd.f32 %v12547_v32, %v16699_v25 }
 0x754   : > { %v3663_v38 = vadd.f32 %v12550_v40, %v16699_v25 }
 0x756   : > { %v3737_v60 = vpack.c.bf16 %v3663_v38, %v3660_v63  ;;  %v12551_v46 = vpop.f32.mrb[240].mxu1 }
 0x757   : > { %v12552_v43 = vpop.f32.mrb[241].mxu1 }
 0x758   : > { %v12553_v24 = vadd.f32 %v12552_v43, %v12551_v46  ;;  %v12554_v59 = vpop.f32.mrb[242].mxu1  ;;  %4020 = vmatmul.mubr.bf16.gmra.mrb[12].mxu0 %v3737_v60  ;;  %v16752_v43 = vld [vmem:[%s16012_s0 + $0xdc] ss:$12 sps:$4 sm:$0xff]  }
 0x759   : > { %v12555_v53 = vpop.f32.mrb[243].mxu1  ;;  %4027 = vmatprep.mubr.bf16.mxu0 %v16746_v10 }
 0x75a   : > { %v12556_v19 = vadd.f32 %v12555_v53, %v12554_v59  ;;  %v3668_v30 = vadd.f32 %v12553_v24, %v16699_v25 }
 0x75c   : > { %v3671_v29 = vadd.f32 %v12556_v19, %v16699_v25 }
 0x75e   : > { %v3738_v32 = vpack.c.bf16 %v3671_v29, %v3668_v30  ;;  %v12557_v45 = vpop.f32.mrb[244].mxu1 }
 0x75f   : > { %v12558_v40 = vpop.f32.mrb[245].mxu1 }
 0x760   : > { %v12559_v63 = vadd.f32 %v12558_v40, %v12557_v45  ;;  %v12560_v38 = vpop.f32.mrb[246].mxu1  ;;  %4028 = vmatmul.mubr.bf16.gmra.mrb[16].mxu0 %v3738_v32  ;;  %v16758_v40 = vld [vmem:[%s16012_s0 + $0xf4] ss:$12 sps:$4 sm:$0xff]  }
 0x761   : > { %v12561_v46 = vpop.f32.mrb[247].mxu1  ;;  %4035 = vmatprep.mubr.bf16.mxu0 %v16752_v43 }
 0x762   : > { %v12562_v60 = vadd.f32 %v12561_v46, %v12560_v38  ;;  %v3676_v34 = vadd.f32 %v12559_v63, %v16699_v25 }
 0x764   : > { %v3679_v59 = vadd.f32 %v12562_v60, %v16699_v25 }
 0x766   : > { %v3739_v24 = vpack.c.bf16 %v3679_v59, %v3676_v34  ;;  %v12563_v53 = vpop.f32.mrb[248].mxu1 }
 0x767   : > { %v12564_v19 = vpop.f32.mrb[249].mxu1 }
 0x768   : > { %v12565_v30 = vadd.f32 %v12564_v19, %v12563_v53  ;;  %v12566_v29 = vpop.f32.mrb[250].mxu1  ;;  %4036 = vmatmul.mubr.bf16.gmra.mrb[20].mxu0 %v3739_v24  ;;  %v16764_v19 = vld [vmem:[%s16012_s0 + $0x10c] ss:$12 sps:$4 sm:$0xff]  }
 0x769   : > { %v12567_v45 = vpop.f32.mrb[251].mxu1  ;;  %4043 = vmatprep.mubr.bf16.mxu0 %v16758_v40 }
 0x76a   : > { %v12568_v32 = vadd.f32 %v12567_v45, %v12566_v29  ;;  %v3684_v28 = vadd.f32 %v12565_v30, %v16699_v25 }
 0x76c   : > { %v3687_v38 = vadd.f32 %v12568_v32, %v16699_v25 }
 0x76e   : > { %v3740_v63 = vpack.c.bf16 %v3687_v38, %v3684_v28  ;;  %v12569_v46 = vpop.f32.mrb[252].mxu1 }
 0x76f   : > { %v12570_v60 = vpop.f32.mrb[253].mxu1 }
 0x770   : > { %v12571_v34 = vadd.f32 %v12570_v60, %v12569_v46  ;;  %v12572_v59 = vpop.f32.mrb[254].mxu1  ;;  %4044 = vmatmul.mubr.bf16.gmra.mrb[24].mxu0 %v3740_v63  ;;  %v16770_v60 = vld [vmem:[%s16012_s0 + $0x124] ss:$12 sps:$4 sm:$0xff]  }
 0x771   : > { %v12573_v53 = vpop.f32.mrb[255].mxu1  ;;  %4051 = vmatprep.mubr.bf16.mxu0 %v16764_v19 }
 0x772   : > { %v12574_v24 = vadd.f32 %v12573_v53, %v12572_v59  ;;  %v3692_v49 = vadd.f32 %v12571_v34, %v16699_v25 }
 0x774   : > { %v3695_v29 = vadd.f32 %v12574_v24, %v16699_v25 }
 0x776   : > { %v3741_v30 = vpack.c.bf16 %v3695_v29, %v3692_v49  ;;  %v12575_v45 = vpop.f32.mrb[0].mxu1 }
 0x777   : > { %v12576_v32 = vpop.f32.mrb[1].mxu1 }
 0x778   : > { %v12577_v28 = vadd.f32 %v12576_v32, %v12575_v45  ;;  %v12578_v38 = vpop.f32.mrb[2].mxu1  ;;  %4052 = vmatmul.mubr.bf16.gmra.mrb[28].mxu0 %v3741_v30  ;;  %v16776_v32 = vld [vmem:[%s16012_s0 + $0x13c] ss:$12 sps:$4 sm:$0xff]  }
 0x779   : > { %v12579_v46 = vpop.f32.mrb[3].mxu1  ;;  %4059 = vmatprep.mubr.bf16.mxu0 %v16770_v60 }
 0x77a   : > { %v12580_v63 = vadd.f32 %v12579_v46, %v12578_v38  ;;  %v3700_v44 = vadd.f32 %v12577_v28, %v16699_v25 }
 0x77c   : > { %v3703_v59 = vadd.f32 %v12580_v63, %v16699_v25 }
 0x77e   : > { %v3742_v34 = vpack.c.bf16 %v3703_v59, %v3700_v44  ;;  %v12581_v53 = vpop.f32.mrb[4].mxu1 }
 0x77f   : > { %v12582_v24 = vpop.f32.mrb[5].mxu1 }
 0x780   : > { %v12583_v49 = vadd.f32 %v12582_v24, %v12581_v53  ;;  %v12584_v29 = vpop.f32.mrb[6].mxu1  ;;  %4060 = vmatmul.mubr.bf16.gmra.mrb[32].mxu0 %v3742_v34  ;;  %v16782_v24 = vld [vmem:[%s16012_s0 + $0x154] ss:$12 sps:$4 sm:$0xff]  }
 0x781   : > { %v12585_v45 = vpop.f32.mrb[7].mxu1  ;;  %4067 = vmatprep.mubr.bf16.mxu0 %v16776_v32 }
 0x782   : > { %v12586_v30 = vadd.f32 %v12585_v45, %v12584_v29  ;;  %v3708_v7 = vadd.f32 %v12583_v49, %v16699_v25 }
 0x784   : > { %v3711_v38 = vadd.f32 %v12586_v30, %v16699_v25 }
 0x786   : > { %v3743_v28 = vpack.c.bf16 %v3711_v38, %v3708_v7  ;;  %v12587_v46 = vpop.f32.mrb[8].mxu1 }
 0x787   : > { %v12588_v63 = vpop.f32.mrb[9].mxu1 }
 0x788   : > { %v12589_v44 = vadd.f32 %v12588_v63, %v12587_v46  ;;  %v12590_v59 = vpop.f32.mrb[10].mxu1  ;;  %4068 = vmatmul.mubr.bf16.gmra.mrb[36].mxu0 %v3743_v28  ;;  %v16788_v63 = vld [vmem:[%s16012_s0 + $0x16c] ss:$12 sps:$4 sm:$0xff]  }
 0x789   : > { %v12591_v53 = vpop.f32.mrb[11].mxu1  ;;  %4075 = vmatprep.mubr.bf16.mxu0 %v16782_v24 }
 0x78a   : > { %v12592_v34 = vadd.f32 %v12591_v53, %v12590_v59  ;;  %v3716_v0 = vadd.f32 %v12589_v44, %v16699_v25  ;;  %v16794_v53 = vld [vmem:[%s16012_s0 + $0x4] ss:$12 sps:$4 sm:$0xff]  }
 0x78c   : > { %v3719_v49 = vadd.f32 %v12592_v34, %v16699_v25  ;;  %v14753_v34 = vld [vmem:[#allocation7 + $0x500] sm:$0xff]  }
 0x78e   : > { %v3744_v29 = vpack.c.bf16 %v3719_v49, %v3716_v0  ;;  %v12593_v45 = vpop.f32.mrb[12].mxu1  ;;  %v14752_v0 = vld [vmem:[#allocation7 + $0x540] sm:$0xff]   ;;  %v14754_v49 = vld [vmem:[#allocation7 + $0x548] sm:$0xff]  }
 0x78f   : > { %v12594_v7 = vpop.f32.mrb[13].mxu1  ;;  %12823 = vmatprep.subr.bf16.mxu0 %v14752_v0 }
 0x790   : > { %v12595_v30 = vadd.f32 %v12594_v7, %v12593_v45  ;;  %v12596_v38 = vpop.f32.mrb[14].mxu1  ;;  %4076 = vmatmul.mubr.bf16.gmra.mrb[40].mxu0 %v3744_v29  ;;  %v14755_v29 = vld [vmem:[#allocation7 + $0x508] sm:$0xff]  }
 0x791   : > { %v12597_v46 = vpop.f32.mrb[15].mxu1  ;;  %4083 = vmatprep.mubr.bf16.mxu0 %v16788_v63  ;;  %12824 = vmatpush3.bf16.msra.mxu0 %v14753_v34 }
 0x792   : > { %v12598_v28 = vadd.f32 %v12597_v46, %v12596_v38  ;;  %v3724_v23 = vadd.f32 %v12595_v30, %v16699_v25  ;;  %12825 = vmatprep.subr.bf16.mxu0 %v14754_v49  ;;  %v14756_v46 = vld [vmem:[#allocation7 + $0x550] sm:$0xff]   ;;  %v14760_v49 = vld [vmem:[#allocation7 + $0x560] sm:$0xff]  }
 0x794   : > { %v3727_v59 = vadd.f32 %v12598_v28, %v16699_v25  ;;  %v14757_v25 = vld [vmem:[#allocation7 + $0x510] sm:$0xff]   ;;  %v16797_v28 = vld [vmem:[#allocation9 + $0x8] ss:$0 sm:$0xff] }
 0x795   : > { %12826 = vmatpush3.bf16.msra.mxu0 %v14755_v29 }
 0x796   : > { %v3745_v44 = vpack.c.bf16 %v3727_v59, %v3724_v23  ;;  %v14758_v23 = vld [vmem:[#allocation7 + $0x558] sm:$0xff]   ;;  %12827 = vmatprep.subr.bf16.mxu0 %v14756_v46 }
 0x798   : > { %4084 = vmatmul.mubr.bf16.gmra.mrb[44].mxu0 %v3745_v44 }
 0x799   : > { %4687 = vmatprep.mubr.bf16.mxu0 %v16794_v53  ;;  %12828 = vmatpush3.bf16.msra.mxu0 %v14757_v25 }
 0x79a   : > { %12829 = vmatprep.subr.bf16.mxu0 %v14758_v23 }
 0x79d   : > { %12830 = vmatpush3.bf16.msra.mxu0 %v14759_v35 }
 0x79e   : > { %12831 = vmatprep.subr.bf16.mxu0 %v14760_v49 }
 0x7f3   : > { %v12615_v45 = vpop.f32.mrb[240].mxu0 }
 0x7f4   : > { %v12616_v7 = vpop.f32.mrb[241].mxu0 }
 0x7f5   : > { %v12617_v38 = vadd.f32 %v12616_v7, %v12615_v45  ;;  %v12618_v30 = vpop.f32.mrb[242].mxu0  ;;  %v14761_v7 = vld [vmem:[#allocation7 + $0x520] sm:$0xff]  }
 0x7f6   : > { %v12619_v59 = vpop.f32.mrb[243].mxu0  ;;  %12832 = vmatpush3.bf16.msra.mxu0 %v14761_v7 }
 0x7f7   : > { %v12620_v44 = vadd.f32 %v12619_v59, %v12618_v30  ;;  %v3966_v0 = vadd.f32 %v12617_v38, %v16797_v28  ;;  %v14763_v38 = vld [vmem:[#allocation7 + $0x528] sm:$0xff]   ;;  %12833 = vmatprep.subr.bf16.mxu0 %v14762_v52  ;;  %v14764_v59 = vld [vmem:[#allocation7 + $0x570] sm:$0xff]  }
 0x7f9   : > { %v3969_v34 = vadd.f32 %v12620_v44, %v16797_v28 }
 0x7fa   : > { %12834 = vmatpush3.bf16.msra.mxu0 %v14763_v38 }
 0x7fb   : > { %v4092_v29 = vpack.c.bf16 %v3969_v34, %v3966_v0  ;;  %v12621_v36 = vpop.f32.mrb[244].mxu0  ;;  %12835 = vmatprep.subr.bf16.mxu0 %v14764_v59 }
 0x7fc   : > { %v12622_v45 = vpop.f32.mrb[245].mxu0 }
 0x7fd   : > { %v12623_v12 = vadd.f32 %v12622_v45, %v12621_v36  ;;  %v12624_v54 = vpop.f32.mrb[246].mxu0  ;;  %4326 = vmatmul.mubr.bf16.vlgmr.msra.gmra.mrb[16].mxu1 %v4092_v29  ;;  %v14765_v36 = vld [vmem:[#allocation7 + $0x530] sm:$0xff]   ;;  %v14766_v29 = vld [vmem:[#allocation7 + $0x578] sm:$0xff]  }
 0x7fe   : > { %v12625_v30 = vpop.f32.mrb[247].mxu0  ;;  %4333 = vmatprep.mubr.bf16.mxu1 %v16704_v48  ;;  %12836 = vmatpush3.bf16.msra.mxu0 %v14765_v36 }
 0x7ff   : > { %v12626_v46 = vadd.f32 %v12625_v30, %v12624_v54  ;;  %v3974_v25 = vadd.f32 %v12623_v12, %v16797_v28  ;;  %v14767_v12 = vld [vmem:[#allocation7 + $0x538] sm:$0xff]   ;;  %12837 = vmatprep.subr.bf16.mxu0 %v14766_v29 }
 0x801   : > { %v3977_v23 = vadd.f32 %v12626_v46, %v16797_v28 }
 0x802   : > { %12838 = vmatpush3.bf16.msra.mxu0 %v14767_v12 }
 0x803   : > { %v4093_v44 = vpack.c.bf16 %v3977_v23, %v3974_v25  ;;  %v12627_v35 = vpop.f32.mrb[248].mxu0 }
 0x804   : > { %v12628_v0 = vpop.f32.mrb[249].mxu0 }
 0x805   : > { %v12629_v34 = vadd.f32 %v12628_v0, %v12627_v35  ;;  %v12630_v49 = vpop.f32.mrb[250].mxu0  ;;  %4334 = vmatmul.mubr.bf16.gmra.mrb[20].mxu1 %v4093_v44 }
 0x806   : > { %v12631_v45 = vpop.f32.mrb[251].mxu0  ;;  %4341 = vmatprep.mubr.bf16.mxu1 %v16710_v37 }
 0x807   : > { %v12632_v54 = vadd.f32 %v12631_v45, %v12630_v49  ;;  %v3982_v7 = vadd.f32 %v12629_v34, %v16797_v28 }
 0x809   : > { %v3985_v52 = vadd.f32 %v12632_v54, %v16797_v28 }
 0x80b   : > { %v4094_v30 = vpack.c.bf16 %v3985_v52, %v3982_v7  ;;  %v12633_v46 = vpop.f32.mrb[252].mxu0 }
 0x80c   : > { %v12634_v38 = vpop.f32.mrb[253].mxu0 }
 0x80d   : > { %v12635_v25 = vadd.f32 %v12634_v38, %v12633_v46  ;;  %v12636_v23 = vpop.f32.mrb[254].mxu0  ;;  %4342 = vmatmul.mubr.bf16.gmra.mrb[24].mxu1 %v4094_v30 }
 0x80e   : > { %v12637_v59 = vpop.f32.mrb[255].mxu0  ;;  %4349 = vmatprep.mubr.bf16.mxu1 %v16716_v5 }
 0x80f   : > { %v12638_v44 = vadd.f32 %v12637_v59, %v12636_v23  ;;  %v3990_v35 = vadd.f32 %v12635_v25, %v16797_v28 }
 0x811   : > { %v3993_v0 = vadd.f32 %v12638_v44, %v16797_v28 }
 0x813   : > { %v4095_v36 = vpack.c.bf16 %v3993_v0, %v3990_v35  ;;  %v12639_v34 = vpop.f32.mrb[0].mxu0 }
 0x814   : > { %v12640_v49 = vpop.f32.mrb[1].mxu0 }
 0x815   : > { %v12641_v45 = vadd.f32 %v12640_v49, %v12639_v34  ;;  %v12642_v29 = vpop.f32.mrb[2].mxu0  ;;  %4350 = vmatmul.mubr.bf16.gmra.mrb[28].mxu1 %v4095_v36 }
 0x816   : > { %v12643_v54 = vpop.f32.mrb[3].mxu0  ;;  %4357 = vmatprep.mubr.bf16.mxu1 %v16722_v33 }
 0x817   : > { %v12644_v12 = vadd.f32 %v12643_v54, %v12642_v29  ;;  %v3998_v7 = vadd.f32 %v12641_v45, %v16797_v28 }
 0x819   : > { %v4001_v52 = vadd.f32 %v12644_v12, %v16797_v28 }
 0x81b   : > { %v4096_v30 = vpack.c.bf16 %v4001_v52, %v3998_v7  ;;  %v12645_v46 = vpop.f32.mrb[4].mxu0 }
 0x81c   : > { %v12646_v38 = vpop.f32.mrb[5].mxu0 }
 0x81d   : > { %v12647_v25 = vadd.f32 %v12646_v38, %v12645_v46  ;;  %v12648_v23 = vpop.f32.mrb[6].mxu0  ;;  %4358 = vmatmul.mubr.bf16.gmra.mrb[32].mxu1 %v4096_v30 }
 0x81e   : > { %v12649_v59 = vpop.f32.mrb[7].mxu0  ;;  %4365 = vmatprep.mubr.bf16.mxu1 %v16728_v42 }
 0x81f   : > { %v12650_v44 = vadd.f32 %v12649_v59, %v12648_v23  ;;  %v4006_v35 = vadd.f32 %v12647_v25, %v16797_v28 }
 0x821   : > { %v4009_v0 = vadd.f32 %v12650_v44, %v16797_v28 }
 0x823   : > { %v4097_v36 = vpack.c.bf16 %v4009_v0, %v4006_v35  ;;  %v12651_v34 = vpop.f32.mrb[8].mxu0 }
 0x824   : > { %v12652_v49 = vpop.f32.mrb[9].mxu0 }
 0x825   : > { %v12653_v45 = vadd.f32 %v12652_v49, %v12651_v34  ;;  %v12654_v29 = vpop.f32.mrb[10].mxu0  ;;  %4366 = vmatmul.mubr.bf16.gmra.mrb[36].mxu1 %v4097_v36 }
 0x826   : > { %v12655_v54 = vpop.f32.mrb[11].mxu0  ;;  %4373 = vmatprep.mubr.bf16.mxu1 %v16734_v16 }
 0x827   : > { %v12656_v12 = vadd.f32 %v12655_v54, %v12654_v29  ;;  %v4014_v7 = vadd.f32 %v12653_v45, %v16797_v28 }
 0x829   : > { %v4017_v52 = vadd.f32 %v12656_v12, %v16797_v28 }
 0x82b   : > { %v4098_v30 = vpack.c.bf16 %v4017_v52, %v4014_v7  ;;  %v12657_v46 = vpop.f32.mrb[12].mxu0 }
 0x82c   : > { %v12658_v38 = vpop.f32.mrb[13].mxu0 }
 0x82d   : > { %v12659_v25 = vadd.f32 %v12658_v38, %v12657_v46  ;;  %v12660_v23 = vpop.f32.mrb[14].mxu0  ;;  %4374 = vmatmul.mubr.bf16.gmra.mrb[40].mxu1 %v4098_v30 }
 0x82e   : > { %v12661_v59 = vpop.f32.mrb[15].mxu0  ;;  %4381 = vmatprep.mubr.bf16.mxu1 %v16740_v9 }
 0x82f   : > { %v12662_v44 = vadd.f32 %v12661_v59, %v12660_v23  ;;  %v4022_v35 = vadd.f32 %v12659_v25, %v16797_v28 }
 0x831   : > { %v4025_v0 = vadd.f32 %v12662_v44, %v16797_v28 }
 0x833   : > { %v4099_v36 = vpack.c.bf16 %v4025_v0, %v4022_v35  ;;  %v12663_v34 = vpop.f32.mrb[16].mxu0 }
 0x834   : > { %v12664_v49 = vpop.f32.mrb[17].mxu0 }
 0x835   : > { %v12665_v45 = vadd.f32 %v12664_v49, %v12663_v34  ;;  %v12666_v29 = vpop.f32.mrb[18].mxu0  ;;  %4382 = vmatmul.mubr.bf16.gmra.mrb[44].mxu1 %v4099_v36 }
 0x836   : > { %v12667_v54 = vpop.f32.mrb[19].mxu0  ;;  %4389 = vmatprep.mubr.bf16.mxu1 %v16746_v10 }
 0x837   : > { %v12668_v12 = vadd.f32 %v12667_v54, %v12666_v29  ;;  %v4030_v7 = vadd.f32 %v12665_v45, %v16797_v28 }
 0x839   : > { %v4033_v52 = vadd.f32 %v12668_v12, %v16797_v28 }
 0x83b   : > { %v4100_v30 = vpack.c.bf16 %v4033_v52, %v4030_v7  ;;  %v12669_v46 = vpop.f32.mrb[20].mxu0 }
 0x83c   : > { %v12670_v38 = vpop.f32.mrb[21].mxu0 }
 0x83d   : > { %v12671_v25 = vadd.f32 %v12670_v38, %v12669_v46  ;;  %v12672_v23 = vpop.f32.mrb[22].mxu0  ;;  %4390 = vmatmul.mubr.bf16.gmra.mrb[48].mxu1 %v4100_v30 }
 0x83e   : > { %v12673_v59 = vpop.f32.mrb[23].mxu0  ;;  %4397 = vmatprep.mubr.bf16.mxu1 %v16752_v43 }
 0x83f   : > { %v12674_v44 = vadd.f32 %v12673_v59, %v12672_v23  ;;  %v4038_v35 = vadd.f32 %v12671_v25, %v16797_v28 }
 0x841   : > { %v4041_v0 = vadd.f32 %v12674_v44, %v16797_v28 }
 0x843   : > { %v4101_v36 = vpack.c.bf16 %v4041_v0, %v4038_v35  ;;  %v12675_v34 = vpop.f32.mrb[24].mxu0 }
 0x844   : > { %v12676_v49 = vpop.f32.mrb[25].mxu0 }
 0x845   : > { %v12677_v45 = vadd.f32 %v12676_v49, %v12675_v34  ;;  %v12678_v29 = vpop.f32.mrb[26].mxu0  ;;  %4398 = vmatmul.mubr.bf16.gmra.mrb[52].mxu1 %v4101_v36 }
 0x846   : > { %v12679_v54 = vpop.f32.mrb[27].mxu0  ;;  %4405 = vmatprep.mubr.bf16.mxu1 %v16758_v40 }
 0x847   : > { %v12680_v12 = vadd.f32 %v12679_v54, %v12678_v29  ;;  %v4046_v7 = vadd.f32 %v12677_v45, %v16797_v28 }
 0x849   : > { %v4049_v52 = vadd.f32 %v12680_v12, %v16797_v28 }
 0x84b   : > { %v4102_v30 = vpack.c.bf16 %v4049_v52, %v4046_v7  ;;  %v12681_v46 = vpop.f32.mrb[28].mxu0 }
 0x84c   : > { %v12682_v38 = vpop.f32.mrb[29].mxu0 }
 0x84d   : > { %v12683_v25 = vadd.f32 %v12682_v38, %v12681_v46  ;;  %v12684_v23 = vpop.f32.mrb[30].mxu0  ;;  %4406 = vmatmul.mubr.bf16.gmra.mrb[56].mxu1 %v4102_v30 }
 0x84e   : > { %v12685_v59 = vpop.f32.mrb[31].mxu0  ;;  %4413 = vmatprep.mubr.bf16.mxu1 %v16764_v19 }
 0x84f   : > { %v12686_v44 = vadd.f32 %v12685_v59, %v12684_v23  ;;  %v4054_v35 = vadd.f32 %v12683_v25, %v16797_v28  ;;  %v14768_v25 = vld [vmem:[#allocation7 + $0x640] sm:$0xff]  }
 0x850   : > { %13047 = vmatprep.subr.bf16.mxu0 %v14768_v25 }
 0x851   : > { %v4057_v0 = vadd.f32 %v12686_v44, %v16797_v28 }
 0x853   : > { %v4103_v36 = vpack.c.bf16 %v4057_v0, %v4054_v35  ;;  %v12687_v34 = vpop.f32.mrb[32].mxu0 }
 0x854   : > { %v12688_v49 = vpop.f32.mrb[33].mxu0 }
 0x855   : > { %v12689_v45 = vadd.f32 %v12688_v49, %v12687_v34  ;;  %v12690_v29 = vpop.f32.mrb[34].mxu0  ;;  %4414 = vmatmul.mubr.bf16.gmra.mrb[60].mxu1 %v4103_v36 }
 0x856   : > { %v12691_v54 = vpop.f32.mrb[35].mxu0  ;;  %4421 = vmatprep.mubr.bf16.mxu1 %v16770_v60 }
 0x857   : > { %v12692_v12 = vadd.f32 %v12691_v54, %v12690_v29  ;;  %v4062_v7 = vadd.f32 %v12689_v45, %v16797_v28 }
 0x859   : > { %v4065_v52 = vadd.f32 %v12692_v12, %v16797_v28 }
 0x85b   : > { %v4104_v30 = vpack.c.bf16 %v4065_v52, %v4062_v7  ;;  %v12693_v46 = vpop.f32.mrb[36].mxu0 }
 0x85c   : > { %v12694_v38 = vpop.f32.mrb[37].mxu0 }
 0x85d   : > { %v12695_v23 = vadd.f32 %v12694_v38, %v12693_v46  ;;  %v12696_v59 = vpop.f32.mrb[38].mxu0  ;;  %4422 = vmatmul.mubr.bf16.gmra.mrb[64].mxu1 %v4104_v30 }
 0x85e   : > { %v12697_v44 = vpop.f32.mrb[39].mxu0  ;;  %4429 = vmatprep.mubr.bf16.mxu1 %v16776_v32 }
 0x85f   : > { %v12698_v35 = vadd.f32 %v12697_v44, %v12696_v59  ;;  %v4070_v0 = vadd.f32 %v12695_v23, %v16797_v28 }
 0x861   : > { %v4073_v36 = vadd.f32 %v12698_v35, %v16797_v28 }
 0x863   : > { %v4105_v34 = vpack.c.bf16 %v4073_v36, %v4070_v0  ;;  %v12699_v49 = vpop.f32.mrb[40].mxu0 }
 0x864   : > { %v12700_v45 = vpop.f32.mrb[41].mxu0 }
 0x865   : > { %v12701_v29 = vadd.f32 %v12700_v45, %v12699_v49  ;;  %v12702_v54 = vpop.f32.mrb[42].mxu0  ;;  %4430 = vmatmul.mubr.bf16.gmra.mrb[68].mxu1 %v4105_v34  ;;  %v14780_v49 = vld [vmem:[#allocation7 + $0x5c0] sm:$0xff]  }
 0x866   : > { %v12703_v12 = vpop.f32.mrb[43].mxu0  ;;  %4437 = vmatprep.mubr.bf16.mxu1 %v16782_v24  ;;  %v14781_v45 = vld [vmem:[#allocation7 + $0x580] sm:$0xff]   ;;  %12935 = vmatprep.subr.bf16.mxu1 %v14780_v49 }
 0x867   : > { %v12704_v7 = vadd.f32 %v12703_v12, %v12702_v54  ;;  %v4078_v52 = vadd.f32 %v12701_v29, %v16797_v28  ;;  %12936 = vmatpush3.bf16.msra.mxu1 %v14781_v45  ;;  %v14784_v29 = vld [vmem:[#allocation7 + $0x5c8] sm:$0xff]  }
 0x868   : > { %v14785_v54 = vld [vmem:[#allocation7 + $0x588] sm:$0xff]   ;;  %12937 = vmatprep.subr.bf16.mxu1 %v14784_v29 }
 0x869   : > { %v4081_v30 = vadd.f32 %v12704_v7, %v16797_v28 }
 0x86b   : > { %v4106_v46 = vpack.c.bf16 %v4081_v30, %v4078_v52  ;;  %v12705_v38 = vpop.f32.mrb[44].mxu0  ;;  %12938 = vmatpush3.bf16.msra.mxu1 %v14785_v54  ;;  %v14771_v54 = vld [vmem:[#allocation7 + $0x608] sm:$0xff]  }
 0x86c   : > { %v12706_v25 = vpop.f32.mrb[45].mxu0 }
 0x86d   : > { %v12707_v23 = vadd.f32 %v12706_v25, %v12705_v38  ;;  %v12708_v59 = vpop.f32.mrb[46].mxu0  ;;  %4438 = vmatmul.mubr.bf16.gmra.mrb[72].mxu1 %v4106_v46  ;;  %v14788_v46 = vld [vmem:[#allocation7 + $0x5d0] sm:$0xff]   ;;  %v16847_v25 = vld [vmem:[#allocation9 + $0x9] ss:$0 sm:$0xff] }
 0x86e   : > { %v12709_v44 = vpop.f32.mrb[47].mxu0  ;;  %4445 = vmatprep.mubr.bf16.mxu1 %v16788_v63  ;;  %v14789_v38 = vld [vmem:[#allocation7 + $0x590] sm:$0xff]   ;;  %12939 = vmatprep.subr.bf16.mxu1 %v14788_v46 }
 0x86f   : > { %v12710_v35 = vadd.f32 %v12709_v44, %v12708_v59  ;;  %v4086_v0 = vadd.f32 %v12707_v23, %v16797_v28  ;;  %12940 = vmatpush3.bf16.msra.mxu1 %v14789_v38  ;;  %v14769_v44 = vld [vmem:[#allocation7 + $0x600] sm:$0xff]   ;;  %v14773_v46 = vld [vmem:[#allocation7 + $0x610] sm:$0xff]  }
 0x871   : > { %v4089_v36 = vadd.f32 %v12710_v35, %v16797_v28 }
 0x873   : > { %v4107_v34 = vpack.c.bf16 %v4089_v36, %v4086_v0  ;;  %v14770_v36 = vld [vmem:[#allocation7 + $0x648] sm:$0xff]  }
 0x875   : > { %4446 = vmatmul.mubr.bf16.gmra.mrb[76].mxu1 %v4107_v34 }
 0x876   : > { %5049 = vmatprep.mubr.bf16.mxu1 %v16794_v53 }
 0x8d0   : > { %v12727_v12 = vpop.f32.mrb[16].mxu1 }
 0x8d1   : > { %v12728_v7 = vpop.f32.mrb[17].mxu1 }
 0x8d2   : > { %v12729_v52 = vadd.f32 %v12728_v7, %v12727_v12  ;;  %v12730_v30 = vpop.f32.mrb[18].mxu1  ;;  %v14772_v7 = vld [vmem:[#allocation7 + $0x650] sm:$0xff]  }
 0x8d3   : > { %v12731_v28 = vpop.f32.mrb[19].mxu1 }
 0x8d4   : > { %v12732_v23 = vadd.f32 %v12731_v28, %v12730_v30  ;;  %v4328_v53 = vadd.f32 %v12729_v52, %v16847_v25 }
 0x8d6   : > { %v4331_v59 = vadd.f32 %v12732_v23, %v16847_v25  ;;  %v14774_v23 = vld [vmem:[#allocation7 + $0x658] sm:$0xff]  }
 0x8d8   : > { %v4454_v35 = vpack.c.bf16 %v4331_v59, %v4328_v53  ;;  %v12733_v0 = vpop.f32.mrb[20].mxu1 }
 0x8d9   : > { %v12734_v34 = vpop.f32.mrb[21].mxu1 }
 0x8da   : > { %v12735_v49 = vadd.f32 %v12734_v34, %v12733_v0  ;;  %v12736_v45 = vpop.f32.mrb[22].mxu1  ;;  %4688 = vmatmul.mubr.bf16.vlgmr.msra.gmra.mrb[48].mxu0 %v4454_v35  ;;  %v14792_v35 = vld [vmem:[#allocation7 + $0x5d8] sm:$0xff]  }
 0x8db   : > { %13048 = vmatpush3.bf16.msra.mxu0 %v14769_v44  ;;  %v12737_v29 = vpop.f32.mrb[23].mxu1  ;;  %4695 = vmatprep.mubr.bf16.mxu0 %v16704_v48  ;;  %v14793_v48 = vld [vmem:[#allocation7 + $0x598] sm:$0xff]  }
 0x8dc   : > { %v12738_v12 = vadd.f32 %v12737_v29, %v12736_v45  ;;  %13049 = vmatprep.subr.bf16.mxu0 %v14770_v36  ;;  %v4336_v52 = vadd.f32 %v12735_v49, %v16847_v25  ;;  %v14775_v36 = vld [vmem:[#allocation7 + $0x618] sm:$0xff]   ;;  %v14776_v49 = vld [vmem:[#allocation7 + $0x660] sm:$0xff]   ;;  %12941 = vmatprep.subr.bf16.mxu1 %v14792_v35  ;;  %v14783_v35 = vld [vmem:[#allocation7 + $0x630] sm:$0xff]  }
 0x8dd   : > { %12942 = vmatpush3.bf16.msra.mxu1 %v14793_v48 }
 0x8de   : > { %v4339_v30 = vadd.f32 %v12738_v12, %v16847_v25 }
 0x8df   : > { %13050 = vmatpush3.bf16.msra.mxu0 %v14771_v54  ;;  %v14777_v54 = vld [vmem:[#allocation7 + $0x620] sm:$0xff]  }
 0x8e0   : > { %v4455_v38 = vpack.c.bf16 %v4339_v30, %v4336_v52  ;;  %v12739_v28 = vpop.f32.mrb[24].mxu1  ;;  %13051 = vmatprep.subr.bf16.mxu0 %v14772_v7  ;;  %v14778_v52 = vld [vmem:[#allocation7 + $0x668] sm:$0xff]  }
 0x8e1   : > { %v12740_v53 = vpop.f32.mrb[25].mxu1 }
 0x8e2   : > { %v12741_v59 = vadd.f32 %v12740_v53, %v12739_v28  ;;  %v12742_v44 = vpop.f32.mrb[26].mxu1  ;;  %4696 = vmatmul.mubr.bf16.gmra.mrb[52].mxu0 %v4455_v38  ;;  %v14779_v28 = vld [vmem:[#allocation7 + $0x628] sm:$0xff]   ;;  %v14782_v53 = vld [vmem:[#allocation7 + $0x670] sm:$0xff]  }
 0x8e3   : > { %v12743_v0 = vpop.f32.mrb[27].mxu1  ;;  %4703 = vmatprep.mubr.bf16.mxu0 %v16710_v37  ;;  %13052 = vmatpush3.bf16.msra.mxu0 %v14773_v46 }
 0x8e4   : > { %v12744_v34 = vadd.f32 %v12743_v0, %v12742_v44  ;;  %13053 = vmatprep.subr.bf16.mxu0 %v14774_v23  ;;  %v4344_v45 = vadd.f32 %v12741_v59, %v16847_v25 }
 0x8e6   : > { %v4347_v29 = vadd.f32 %v12744_v34, %v16847_v25 }
 0x8e7   : > { %13054 = vmatpush3.bf16.msra.mxu0 %v14775_v36  ;;  %v14786_v36 = vld [vmem:[#allocation7 + $0x678] sm:$0xff]  }
 0x8e8   : > { %v4456_v12 = vpack.c.bf16 %v4347_v29, %v4344_v45  ;;  %v12745_v7 = vpop.f32.mrb[28].mxu1  ;;  %13055 = vmatprep.subr.bf16.mxu0 %v14776_v49  ;;  %v14797_v29 = vld [vmem:[#allocation7 + $0x5a0] sm:$0xff]  }
 0x8e9   : > { %v12746_v30 = vpop.f32.mrb[29].mxu1 }
 0x8ea   : > { %v12747_v38 = vadd.f32 %v12746_v30, %v12745_v7  ;;  %v12748_v37 = vpop.f32.mrb[30].mxu1  ;;  %4704 = vmatmul.mubr.bf16.gmra.mrb[56].mxu0 %v4456_v12  ;;  %v14787_v12 = vld [vmem:[#allocation7 + $0x638] sm:$0xff]  }
 0x8eb   : > { %v12749_v46 = vpop.f32.mrb[31].mxu1  ;;  %4711 = vmatprep.mubr.bf16.mxu0 %v16716_v5  ;;  %13056 = vmatpush3.bf16.msra.mxu0 %v14777_v54  ;;  %v14796_v5 = vld [vmem:[#allocation7 + $0x5e0] sm:$0xff]  }
 0x8ec   : > { %v12750_v23 = vadd.f32 %v12749_v46, %v12748_v37  ;;  %13057 = vmatprep.subr.bf16.mxu0 %v14778_v52  ;;  %v4352_v59 = vadd.f32 %v12747_v38, %v16847_v25  ;;  %12943 = vmatprep.subr.bf16.mxu1 %v14796_v5 }
 0x8ed   : > { %12944 = vmatpush3.bf16.msra.mxu1 %v14797_v29 }
 0x8ee   : > { %v4355_v44 = vadd.f32 %v12750_v23, %v16847_v25 }
 0x8ef   : > { %13058 = vmatpush3.bf16.msra.mxu0 %v14779_v28 }
 0x8f0   : > { %v4457_v48 = vpack.c.bf16 %v4355_v44, %v4352_v59  ;;  %v12751_v0 = vpop.f32.mrb[32].mxu1  ;;  %13059 = vmatprep.subr.bf16.mxu0 %v14782_v53 }
 0x8f1   : > { %v12752_v34 = vpop.f32.mrb[33].mxu1 }
 0x8f2   : > { %v12753_v49 = vadd.f32 %v12752_v34, %v12751_v0  ;;  %v12754_v45 = vpop.f32.mrb[34].mxu1  ;;  %4712 = vmatmul.mubr.bf16.gmra.mrb[60].mxu0 %v4457_v48 }
 0x8f3   : > { %v12755_v54 = vpop.f32.mrb[35].mxu1  ;;  %4719 = vmatprep.mubr.bf16.mxu0 %v16722_v33  ;;  %13060 = vmatpush3.bf16.msra.mxu0 %v14783_v35 }
 0x8f4   : > { %v12756_v7 = vadd.f32 %v12755_v54, %v12754_v45  ;;  %13061 = vmatprep.subr.bf16.mxu0 %v14786_v36  ;;  %v4360_v52 = vadd.f32 %v12753_v49, %v16847_v25  ;;  %v14800_v49 = vld [vmem:[#allocation7 + $0x5e8] sm:$0xff]  }
 0x8f5   : > { %v14801_v45 = vld [vmem:[#allocation7 + $0x5a8] sm:$0xff]   ;;  %12945 = vmatprep.subr.bf16.mxu1 %v14800_v49 }
 0x8f6   : > { %v4363_v30 = vadd.f32 %v12756_v7, %v16847_v25  ;;  %12946 = vmatpush3.bf16.msra.mxu1 %v14801_v45 }
 0x8f7   : > { %13062 = vmatpush3.bf16.msra.mxu0 %v14787_v12 }
 0x8f8   : > { %v4458_v38 = vpack.c.bf16 %v4363_v30, %v4360_v52  ;;  %v12757_v37 = vpop.f32.mrb[36].mxu1 }
 0x8f9   : > { %v12758_v46 = vpop.f32.mrb[37].mxu1 }
 0x8fa   : > { %v12759_v28 = vadd.f32 %v12758_v46, %v12757_v37  ;;  %v12760_v23 = vpop.f32.mrb[38].mxu1  ;;  %4720 = vmatmul.mubr.bf16.gmra.mrb[64].mxu0 %v4458_v38 }
 0x8fb   : > { %v12761_v53 = vpop.f32.mrb[39].mxu1  ;;  %4727 = vmatprep.mubr.bf16.mxu0 %v16728_v42 }
 0x8fc   : > { %v12762_v33 = vadd.f32 %v12761_v53, %v12760_v23  ;;  %v4368_v59 = vadd.f32 %v12759_v28, %v16847_v25 }
 0x8fe   : > { %v4371_v44 = vadd.f32 %v12762_v33, %v16847_v25 }
 0x900   : > { %v4459_v35 = vpack.c.bf16 %v4371_v44, %v4368_v59  ;;  %v12763_v48 = vpop.f32.mrb[40].mxu1 }
 0x901   : > { %v12764_v0 = vpop.f32.mrb[41].mxu1 }
 0x902   : > { %v12765_v36 = vadd.f32 %v12764_v0, %v12763_v48  ;;  %v12766_v34 = vpop.f32.mrb[42].mxu1  ;;  %4728 = vmatmul.mubr.bf16.gmra.mrb[68].mxu0 %v4459_v35  ;;  %v14804_v35 = vld [vmem:[#allocation7 + $0x5f0] sm:$0xff]  }
 0x903   : > { %v12767_v5 = vpop.f32.mrb[43].mxu1  ;;  %4735 = vmatprep.mubr.bf16.mxu0 %v16734_v16  ;;  %v14805_v48 = vld [vmem:[#allocation7 + $0x5b0] sm:$0xff]   ;;  %12947 = vmatprep.subr.bf16.mxu1 %v14804_v35 }
 0x904   : > { %v12768_v29 = vadd.f32 %v12767_v5, %v12766_v34  ;;  %v4376_v42 = vadd.f32 %v12765_v36, %v16847_v25  ;;  %12948 = vmatpush3.bf16.msra.mxu1 %v14805_v48 }
 0x906   : > { %v4379_v54 = vadd.f32 %v12768_v29, %v16847_v25 }
 0x908   : > { %v4460_v12 = vpack.c.bf16 %v4379_v54, %v4376_v42  ;;  %v12769_v7 = vpop.f32.mrb[44].mxu1 }
 0x909   : > { %v12770_v52 = vpop.f32.mrb[45].mxu1 }
 0x90a   : > { %v12771_v30 = vadd.f32 %v12770_v52, %v12769_v7  ;;  %v12772_v38 = vpop.f32.mrb[46].mxu1  ;;  %4736 = vmatmul.mubr.bf16.gmra.mrb[72].mxu0 %v4460_v12 }
 0x90b   : > { %v12773_v37 = vpop.f32.mrb[47].mxu1  ;;  %4743 = vmatprep.mubr.bf16.mxu0 %v16740_v9 }
 0x90c   : > { %v12774_v46 = vadd.f32 %v12773_v37, %v12772_v38  ;;  %v4384_v28 = vadd.f32 %v12771_v30, %v16847_v25 }
 0x90e   : > { %v4387_v16 = vadd.f32 %v12774_v46, %v16847_v25 }
 0x910   : > { %v4461_v23 = vpack.c.bf16 %v4387_v16, %v4384_v28  ;;  %v12775_v53 = vpop.f32.mrb[48].mxu1  ;;  %v14808_v28 = vld [vmem:[#allocation7 + $0x5f8] sm:$0xff]  }
 0x911   : > { %v12776_v33 = vpop.f32.mrb[49].mxu1  ;;  %v14809_v16 = vld [vmem:[#allocation7 + $0x5b8] sm:$0xff]   ;;  %12949 = vmatprep.subr.bf16.mxu1 %v14808_v28 }
 0x912   : > { %v12777_v59 = vadd.f32 %v12776_v33, %v12775_v53  ;;  %v12778_v44 = vpop.f32.mrb[50].mxu1  ;;  %4744 = vmatmul.mubr.bf16.gmra.mrb[76].mxu0 %v4461_v23  ;;  %12950 = vmatpush3.bf16.msra.mxu1 %v14809_v16 }
 0x913   : > { %v12779_v0 = vpop.f32.mrb[51].mxu1  ;;  %4751 = vmatprep.mubr.bf16.mxu0 %v16746_v10 }
 0x914   : > { %v12780_v36 = vadd.f32 %v12779_v0, %v12778_v44  ;;  %v4392_v9 = vadd.f32 %v12777_v59, %v16847_v25 }
 0x916   : > { %v4395_v34 = vadd.f32 %v12780_v36, %v16847_v25 }
 0x918   : > { %v4462_v49 = vpack.c.bf16 %v4395_v34, %v4392_v9  ;;  %v12781_v45 = vpop.f32.mrb[52].mxu1 }
 0x919   : > { %v12782_v5 = vpop.f32.mrb[53].mxu1 }
 0x91a   : > { %v12783_v29 = vadd.f32 %v12782_v5, %v12781_v45  ;;  %v12784_v42 = vpop.f32.mrb[54].mxu1  ;;  %4752 = vmatmul.mubr.bf16.gmra.mrb[80].mxu0 %v4462_v49 }
 0x91b   : > { %v12785_v54 = vpop.f32.mrb[55].mxu1  ;;  %4759 = vmatprep.mubr.bf16.mxu0 %v16752_v43 }
 0x91c   : > { %v12786_v12 = vadd.f32 %v12785_v54, %v12784_v42  ;;  %v4400_v7 = vadd.f32 %v12783_v29, %v16847_v25 }
 0x91e   : > { %v4403_v10 = vadd.f32 %v12786_v12, %v16847_v25 }
 0x920   : > { %v4463_v52 = vpack.c.bf16 %v4403_v10, %v4400_v7  ;;  %v12787_v30 = vpop.f32.mrb[56].mxu1 }
 0x921   : > { %v12788_v38 = vpop.f32.mrb[57].mxu1 }
 0x922   : > { %v12789_v37 = vadd.f32 %v12788_v38, %v12787_v30  ;;  %v12790_v46 = vpop.f32.mrb[58].mxu1  ;;  %4760 = vmatmul.mubr.bf16.gmra.mrb[84].mxu0 %v4463_v52  ;;  %v14812_v38 = vld [vmem:[#allocation7 + $0x6c0] sm:$0xff]  }
 0x923   : > { %v12791_v23 = vpop.f32.mrb[59].mxu1  ;;  %4767 = vmatprep.mubr.bf16.mxu0 %v16758_v40  ;;  %13159 = vmatprep.subr.bf16.mxu1 %v14812_v38  ;;  %v16941_v38 = vld [vmem:[%s16012_s0 + $0xe0] ss:$12 sps:$4 sm:$0xff]  }
 0x924   : > { %v12792_v53 = vadd.f32 %v12791_v23, %v12790_v46  ;;  %v4408_v43 = vadd.f32 %v12789_v37, %v16847_v25 }
 0x926   : > { %v4411_v33 = vadd.f32 %v12792_v53, %v16847_v25 }
 0x928   : > { %v4464_v59 = vpack.c.bf16 %v4411_v33, %v4408_v43  ;;  %v12793_v44 = vpop.f32.mrb[60].mxu1 }
 0x929   : > { %v12794_v35 = vpop.f32.mrb[61].mxu1 }
 0x92a   : > { %v12795_v48 = vadd.f32 %v12794_v35, %v12793_v44  ;;  %v12796_v0 = vpop.f32.mrb[62].mxu1  ;;  %4768 = vmatmul.mubr.bf16.gmra.mrb[88].mxu0 %v4464_v59 }
 0x92b   : > { %v12797_v36 = vpop.f32.mrb[63].mxu1  ;;  %4775 = vmatprep.mubr.bf16.mxu0 %v16764_v19 }
 0x92c   : > { %v12798_v9 = vadd.f32 %v12797_v36, %v12796_v0  ;;  %v4416_v34 = vadd.f32 %v12795_v48, %v16847_v25 }
 0x92e   : > { %v4419_v40 = vadd.f32 %v12798_v9, %v16847_v25 }
 0x930   : > { %v4465_v49 = vpack.c.bf16 %v4419_v40, %v4416_v34  ;;  %v12799_v45 = vpop.f32.mrb[64].mxu1 }
 0x931   : > { %v12800_v5 = vpop.f32.mrb[65].mxu1 }
 0x932   : > { %v12801_v29 = vadd.f32 %v12800_v5, %v12799_v45  ;;  %v12802_v42 = vpop.f32.mrb[66].mxu1  ;;  %4776 = vmatmul.mubr.bf16.gmra.mrb[92].mxu0 %v4465_v49 }
 0x933   : > { %v12803_v54 = vpop.f32.mrb[67].mxu1  ;;  %4783 = vmatprep.mubr.bf16.mxu0 %v16770_v60 }
 0x934   : > { %v12804_v12 = vadd.f32 %v12803_v54, %v12802_v42  ;;  %v4424_v7 = vadd.f32 %v12801_v29, %v16847_v25  ;;  %v16897_v42 = vld [vmem:[%s16012_s0 + $0x8] ss:$12 sps:$4 sm:$0xff]  }
 0x936   : > { %v4427_v10 = vadd.f32 %v12804_v12, %v16847_v25  ;;  %v16901_v12 = vld [vmem:[%s16012_s0 + $0x20] ss:$12 sps:$4 sm:$0xff]  }
 0x938   : > { %v4466_v19 = vpack.c.bf16 %v4427_v10, %v4424_v7  ;;  %v12805_v52 = vpop.f32.mrb[68].mxu1  ;;  %v16916_v7 = vld [vmem:[%s16012_s0 + $0x68] ss:$12 sps:$4 sm:$0xff]   ;;  %v16921_v10 = vld [vmem:[%s16012_s0 + $0x80] ss:$12 sps:$4 sm:$0xff]  }
 0x939   : > { %v12806_v30 = vpop.f32.mrb[69].mxu1 }
 0x93a   : > { %v12807_v37 = vadd.f32 %v12806_v30, %v12805_v52  ;;  %v12808_v46 = vpop.f32.mrb[70].mxu1  ;;  %4784 = vmatmul.mubr.bf16.gmra.mrb[96].mxu0 %v4466_v19  ;;  %v16926_v19 = vld [vmem:[%s16012_s0 + $0x98] ss:$12 sps:$4 sm:$0xff]   ;;  %v16931_v52 = vld [vmem:[%s16012_s0 + $0xb0] ss:$12 sps:$4 sm:$0xff]  }
 0x93b   : > { %v12809_v28 = vpop.f32.mrb[71].mxu1  ;;  %4791 = vmatprep.mubr.bf16.mxu0 %v16776_v32  ;;  %v16936_v30 = vld [vmem:[%s16012_s0 + $0xc8] ss:$12 sps:$4 sm:$0xff]  }
 0x93c   : > { %v12810_v16 = vadd.f32 %v12809_v28, %v12808_v46  ;;  %v4432_v23 = vadd.f32 %v12807_v37, %v16847_v25  ;;  %v16946_v37 = vld [vmem:[%s16012_s0 + $0xf8] ss:$12 sps:$4 sm:$0xff]   ;;  %v16951_v46 = vld [vmem:[%s16012_s0 + $0x110] ss:$12 sps:$4 sm:$0xff]  }
 0x93e   : > { %v4435_v60 = vadd.f32 %v12810_v16, %v16847_v25 }
 0x940   : > { %v4467_v53 = vpack.c.bf16 %v4435_v60, %v4432_v23  ;;  %v12811_v43 = vpop.f32.mrb[72].mxu1 }
 0x941   : > { %v12812_v33 = vpop.f32.mrb[73].mxu1 }
 0x942   : > { %v12813_v59 = vadd.f32 %v12812_v33, %v12811_v43  ;;  %v12814_v44 = vpop.f32.mrb[74].mxu1  ;;  %4792 = vmatmul.mubr.bf16.gmra.mrb[100].mxu0 %v4467_v53  ;;  %v16956_v53 = vld [vmem:[%s16012_s0 + $0x128] ss:$12 sps:$4 sm:$0xff]  }
 0x943   : > { %v12815_v35 = vpop.f32.mrb[75].mxu1  ;;  %4799 = vmatprep.mubr.bf16.mxu0 %v16782_v24  ;;  %v16958_v43 = vld [vmem:[#allocation9 + $0xa] ss:$0 sm:$0xff] }
 0x944   : > { %v12816_v48 = vadd.f32 %v12815_v35, %v12814_v44  ;;  %v4440_v0 = vadd.f32 %v12813_v59, %v16847_v25 }
 0x946   : > { %v4443_v32 = vadd.f32 %v12816_v48, %v16847_v25  ;;  %v14813_v48 = vld [vmem:[#allocation7 + $0x680] sm:$0xff]  }
 0x948   : > { %v4468_v36 = vpack.c.bf16 %v4443_v32, %v4440_v0  ;;  %v12817_v9 = vpop.f32.mrb[76].mxu1 }
 0x949   : > { %v12818_v34 = vpop.f32.mrb[77].mxu1 }
 0x94a   : > { %v12819_v40 = vadd.f32 %v12818_v34, %v12817_v9  ;;  %v12820_v49 = vpop.f32.mrb[78].mxu1  ;;  %4800 = vmatmul.mubr.bf16.gmra.mrb[104].mxu0 %v4468_v36  ;;  %v14816_v36 = vld [vmem:[#allocation7 + $0x6c8] sm:$0xff]  }
 0x94b   : > { %v12821_v45 = vpop.f32.mrb[79].mxu1  ;;  %4807 = vmatprep.mubr.bf16.mxu0 %v16788_v63  ;;  %v16906_v63 = vld [vmem:[%s16012_s0 + $0x38] ss:$12 sps:$4 sm:$0xff]  }
 0x94c   : > { %v12822_v5 = vadd.f32 %v12821_v45, %v12820_v49  ;;  %v4448_v24 = vadd.f32 %v12819_v40, %v16847_v25  ;;  %v16965_v49 = vld [vmem:[%s16012_s0 + $0x140] ss:$12 sps:$4 sm:$0xff]  }
 0x94e   : > { %v4451_v29 = vadd.f32 %v12822_v5, %v16847_v25  ;;  %v16911_v25 = vld [vmem:[%s16012_s0 + $0x50] ss:$12 sps:$4 sm:$0xff]  }
 0x94f   : > { %v15119_v5 = vld [vmem:[%s16012_s0 + $0x1c] ss:$12 sps:$4 sm:$0xff]  }
 0x950   : > { %v4469_v54 = vpack.c.bf16 %v4451_v29, %v4448_v24  ;;  %v14817_v24 = vld [vmem:[#allocation7 + $0x688] sm:$0xff]  }
 0x952   : > { %4808 = vmatmul.mubr.bf16.gmra.mrb[108].mxu0 %v4469_v54  ;;  %v14820_v54 = vld [vmem:[#allocation7 + $0x6d0] sm:$0xff]  }
 0x953   : > { %5571 = vmatprep.mubr.bf16.mxu0 %v16897_v42 }
 0x95a   : > { %5572 = vmatmul.mubr.bf16.vlgmr.msra.gmra.mrb[112].mxu0 %v16897_v42 }
 0x95b   : > { %5579 = vmatprep.mubr.bf16.mxu0 %v16901_v12 }
 0x962   : > { %5580 = vmatmul.mubr.bf16.gmra.mrb[116].mxu0 %v16901_v12 }
 0x963   : > { %5587 = vmatprep.mubr.bf16.mxu0 %v16906_v63 }
 0x96a   : > { %5588 = vmatmul.mubr.bf16.gmra.mrb[120].mxu0 %v16906_v63 }
 0x96b   : > { %5595 = vmatprep.mubr.bf16.mxu0 %v16911_v25 }
 0x972   : > { %5596 = vmatmul.mubr.bf16.gmra.mrb[124].mxu0 %v16911_v25 }
 0x973   : > { %5603 = vmatprep.mubr.bf16.mxu0 %v16916_v7 }
 0x97a   : > { %5604 = vmatmul.mubr.bf16.gmra.mrb[128].mxu0 %v16916_v7 }
 0x97b   : > { %5611 = vmatprep.mubr.bf16.mxu0 %v16921_v10 }
 0x982   : > { %5612 = vmatmul.mubr.bf16.gmra.mrb[132].mxu0 %v16921_v10 }
 0x983   : > { %5619 = vmatprep.mubr.bf16.mxu0 %v16926_v19 }
 0x98a   : > { %5620 = vmatmul.mubr.bf16.gmra.mrb[136].mxu0 %v16926_v19 }
 0x98b   : > { %5627 = vmatprep.mubr.bf16.mxu0 %v16931_v52 }
 0x992   : > { %5628 = vmatmul.mubr.bf16.gmra.mrb[140].mxu0 %v16931_v52 }
 0x993   : > { %5635 = vmatprep.mubr.bf16.mxu0 %v16936_v30 }
 0x99a   : > { %5636 = vmatmul.mubr.bf16.gmra.mrb[144].mxu0 %v16936_v30 }
 0x99b   : > { %5643 = vmatprep.mubr.bf16.mxu0 %v16941_v38 }
 0x9a2   : > { %5644 = vmatmul.mubr.bf16.gmra.mrb[148].mxu0 %v16941_v38 }
 0x9a3   : > { %5651 = vmatprep.mubr.bf16.mxu0 %v16946_v37 }
 0x9aa   : > { %5652 = vmatmul.mubr.bf16.gmra.mrb[152].mxu0 %v16946_v37 }
 0x9ab   : > { %5659 = vmatprep.mubr.bf16.mxu0 %v16951_v46 }
 0x9ad   : > { %v12839_v28 = vpop.f32.mrb[48].mxu0 }
 0x9ae   : > { %v12840_v16 = vpop.f32.mrb[49].mxu0 }
 0x9af   : > { %v12841_v23 = vadd.f32 %v12840_v16, %v12839_v28  ;;  %v12842_v60 = vpop.f32.mrb[50].mxu0 }
 0x9b0   : > { %v12843_v33 = vpop.f32.mrb[51].mxu0 }
 0x9b1   : > { %v12844_v59 = vadd.f32 %v12843_v33, %v12842_v60  ;;  %v4690_v44 = vadd.f32 %v12841_v23, %v16958_v43  ;;  %v14821_v23 = vld [vmem:[#allocation7 + $0x690] sm:$0xff]  }
 0x9b2   : > { %5660 = vmatmul.mubr.bf16.gmra.mrb[156].mxu0 %v16951_v46 }
 0x9b3   : > { %v4693_v35 = vadd.f32 %v12844_v59, %v16958_v43  ;;  %5667 = vmatprep.mubr.bf16.mxu0 %v16956_v53  ;;  %v14822_v59 = vld [vmem:[#allocation7 + $0x6d8] sm:$0xff]  }
 0x9b5   : > { %v4816_v0 = vpack.c.bf16 %v4693_v35, %v4690_v44  ;;  %v12845_v32 = vpop.f32.mrb[52].mxu0 }
 0x9b6   : > { %v12846_v9 = vpop.f32.mrb[53].mxu0 }
 0x9b7   : > { %v12847_v34 = vadd.f32 %v12846_v9, %v12845_v32  ;;  %v12848_v40 = vpop.f32.mrb[54].mxu0  ;;  %5050 = vmatmul.mubr.bf16.vlgmr.msra.gmra.mrb[80].mxu1 %v4816_v0  ;;  %v16973_v0 = vld [vmem:[%s16012_s0 + $0x158] ss:$12 sps:$4 sm:$0xff]  }
 0x9b8   : > { %13160 = vmatpush3.bf16.msra.mxu1 %v14813_v48  ;;  %v12849_v45 = vpop.f32.mrb[55].mxu0  ;;  %5057 = vmatprep.mubr.bf16.mxu1 %v15119_v5  ;;  %v14823_v9 = vld [vmem:[#allocation7 + $0x698] sm:$0xff]  }
 0x9b9   : > { %v12850_v29 = vadd.f32 %v12849_v45, %v12848_v40  ;;  %13161 = vmatprep.subr.bf16.mxu1 %v14816_v36  ;;  %v4698_v28 = vadd.f32 %v12847_v34, %v16958_v43  ;;  %v15120_v36 = vld [vmem:[%s16012_s0 + $0x34] ss:$12 sps:$4 sm:$0xff]  }
 0x9ba   : > { %5668 = vmatmul.mubr.bf16.gmra.mrb[160].mxu0 %v16956_v53  ;;  %v14824_v40 = vld [vmem:[#allocation7 + $0x6e0] sm:$0xff]  }
 0x9bb   : > { %v4701_v16 = vadd.f32 %v12850_v29, %v16958_v43  ;;  %5675 = vmatprep.mubr.bf16.mxu0 %v16965_v49 }
 0x9bc   : > { %13162 = vmatpush3.bf16.msra.mxu1 %v14817_v24  ;;  %v14825_v24 = vld [vmem:[#allocation7 + $0x6a0] sm:$0xff]  }
 0x9bd   : > { %v4817_v60 = vpack.c.bf16 %v4701_v16, %v4698_v28  ;;  %v12851_v33 = vpop.f32.mrb[56].mxu0  ;;  %13163 = vmatprep.subr.bf16.mxu1 %v14820_v54  ;;  %v14826_v28 = vld [vmem:[#allocation7 + $0x6e8] sm:$0xff]  }
 0x9be   : > { %v12852_v44 = vpop.f32.mrb[57].mxu0 }
 0x9bf   : > { %v12853_v35 = vadd.f32 %v12852_v44, %v12851_v33  ;;  %v12854_v48 = vpop.f32.mrb[58].mxu0  ;;  %5058 = vmatmul.mubr.bf16.gmra.mrb[84].mxu1 %v4817_v60  ;;  %v16981_v33 = vld [vmem:[%s16012_s0 + $0x170] ss:$12 sps:$4 sm:$0xff]   ;;  %v15121_v44 = vld [vmem:[%s16012_s0 + $0x4c] ss:$12 sps:$4 sm:$0xff]  }
 0x9c0   : > { %v12855_v32 = vpop.f32.mrb[59].mxu0  ;;  %5065 = vmatprep.mubr.bf16.mxu1 %v15120_v36  ;;  %13164 = vmatpush3.bf16.msra.mxu1 %v14821_v23 }
 0x9c1   : > { %v12856_v34 = vadd.f32 %v12855_v32, %v12854_v48  ;;  %13165 = vmatprep.subr.bf16.mxu1 %v14822_v59  ;;  %v4706_v45 = vadd.f32 %v12853_v35, %v16958_v43  ;;  %v14827_v35 = vld [vmem:[#allocation7 + $0x6a8] sm:$0xff]   ;;  %v14828_v32 = vld [vmem:[#allocation7 + $0x6f0] sm:$0xff]  }
 0x9c2   : > { %5676 = vmatmul.mubr.bf16.gmra.mrb[164].mxu0 %v16965_v49 }
 0x9c3   : > { %v4709_v5 = vadd.f32 %v12856_v34, %v16958_v43  ;;  %5683 = vmatprep.mubr.bf16.mxu0 %v16973_v0  ;;  %v14829_v34 = vld [vmem:[#allocation7 + $0x6b0] sm:$0xff]  }
 0x9c4   : > { %13166 = vmatpush3.bf16.msra.mxu1 %v14823_v9 }
 0x9c5   : > { %v4818_v29 = vpack.c.bf16 %v4709_v5, %v4706_v45  ;;  %v12857_v54 = vpop.f32.mrb[60].mxu0  ;;  %13167 = vmatprep.subr.bf16.mxu1 %v14824_v40  ;;  %v14830_v5 = vld [vmem:[#allocation7 + $0x6f8] sm:$0xff]  }
 0x9c6   : > { %v12858_v16 = vpop.f32.mrb[61].mxu0 }
 0x9c7   : > { %v12859_v23 = vadd.f32 %v12858_v16, %v12857_v54  ;;  %v12860_v60 = vpop.f32.mrb[62].mxu0  ;;  %5066 = vmatmul.mubr.bf16.gmra.mrb[88].mxu1 %v4818_v29  ;;  %v15122_v16 = vld [vmem:[%s16012_s0 + $0x64] ss:$12 sps:$4 sm:$0xff]  }
 0x9c8   : > { %v12861_v59 = vpop.f32.mrb[63].mxu0  ;;  %5073 = vmatprep.mubr.bf16.mxu1 %v15121_v44  ;;  %13168 = vmatpush3.bf16.msra.mxu1 %v14825_v24 }
 0x9c9   : > { %v12862_v48 = vadd.f32 %v12861_v59, %v12860_v60  ;;  %13169 = vmatprep.subr.bf16.mxu1 %v14826_v28  ;;  %v4714_v36 = vadd.f32 %v12859_v23, %v16958_v43  ;;  %v14831_v23 = vld [vmem:[#allocation7 + $0x6b8] sm:$0xff]  }
 0x9ca   : > { %5684 = vmatmul.mubr.bf16.gmra.mrb[168].mxu0 %v16973_v0 }
 0x9cb   : > { %v4717_v9 = vadd.f32 %v12862_v48, %v16958_v43  ;;  %5691 = vmatprep.mubr.bf16.mxu0 %v16981_v33 }
 0x9cc   : > { %13170 = vmatpush3.bf16.msra.mxu1 %v14827_v35 }
 0x9cd   : > { %v4819_v40 = vpack.c.bf16 %v4717_v9, %v4714_v36  ;;  %v12863_v45 = vpop.f32.mrb[64].mxu0  ;;  %13171 = vmatprep.subr.bf16.mxu1 %v14828_v32 }
 0x9ce   : > { %v12864_v24 = vpop.f32.mrb[65].mxu0 }
 0x9cf   : > { %v12865_v29 = vadd.f32 %v12864_v24, %v12863_v45  ;;  %v12866_v54 = vpop.f32.mrb[66].mxu0  ;;  %5074 = vmatmul.mubr.bf16.gmra.mrb[92].mxu1 %v4819_v40  ;;  %v15123_v40 = vld [vmem:[%s16012_s0 + $0x7c] ss:$12 sps:$4 sm:$0xff]  }
 0x9d0   : > { %v12867_v28 = vpop.f32.mrb[67].mxu0  ;;  %5081 = vmatprep.mubr.bf16.mxu1 %v15122_v16  ;;  %13172 = vmatpush3.bf16.msra.mxu1 %v14829_v34 }
 0x9d1   : > { %v12868_v60 = vadd.f32 %v12867_v28, %v12866_v54  ;;  %13173 = vmatprep.subr.bf16.mxu1 %v14830_v5  ;;  %v4722_v59 = vadd.f32 %v12865_v29, %v16958_v43 }
 0x9d2   : > { %5692 = vmatmul.mubr.bf16.gmra.mrb[172].mxu0 %v16981_v33 }
 0x9d3   : > { %v4725_v44 = vadd.f32 %v12868_v60, %v16958_v43  ;;  %6295 = vmatprep.mubr.bf16.mxu0 %v16897_v42 }
 0x9d4   : > { %13174 = vmatpush3.bf16.msra.mxu1 %v14831_v23 }
 0x9d5   : > { %v4820_v35 = vpack.c.bf16 %v4725_v44, %v4722_v59  ;;  %v12869_v48 = vpop.f32.mrb[68].mxu0  ;;  %v15124_v59 = vld [vmem:[%s16012_s0 + $0x94] ss:$12 sps:$4 sm:$0xff]  }
 0x9d6   : > { %v12870_v32 = vpop.f32.mrb[69].mxu0 }
 0x9d7   : > { %v12871_v36 = vadd.f32 %v12870_v32, %v12869_v48  ;;  %v12872_v9 = vpop.f32.mrb[70].mxu0  ;;  %5082 = vmatmul.mubr.bf16.gmra.mrb[96].mxu1 %v4820_v35 }
 0x9d8   : > { %v12873_v34 = vpop.f32.mrb[71].mxu0  ;;  %5089 = vmatprep.mubr.bf16.mxu1 %v15123_v40 }
 0x9d9   : > { %v12874_v45 = vadd.f32 %v12873_v34, %v12872_v9  ;;  %v4730_v5 = vadd.f32 %v12871_v36, %v16958_v43 }
 0x9db   : > { %v4733_v24 = vadd.f32 %v12874_v45, %v16958_v43 }
 0x9dd   : > { %v4821_v29 = vpack.c.bf16 %v4733_v24, %v4730_v5  ;;  %v12875_v54 = vpop.f32.mrb[72].mxu0  ;;  %v15125_v5 = vld [vmem:[%s16012_s0 + $0xac] ss:$12 sps:$4 sm:$0xff]  }
 0x9de   : > { %v12876_v28 = vpop.f32.mrb[73].mxu0 }
 0x9df   : > { %v12877_v16 = vadd.f32 %v12876_v28, %v12875_v54  ;;  %v12878_v23 = vpop.f32.mrb[74].mxu0  ;;  %5090 = vmatmul.mubr.bf16.gmra.mrb[100].mxu1 %v4821_v29 }
 0x9e0   : > { %v12879_v60 = vpop.f32.mrb[75].mxu0  ;;  %5097 = vmatprep.mubr.bf16.mxu1 %v15124_v59 }
 0x9e1   : > { %v12880_v44 = vadd.f32 %v12879_v60, %v12878_v23  ;;  %v4738_v35 = vadd.f32 %v12877_v16, %v16958_v43 }
 0x9e3   : > { %v4741_v48 = vadd.f32 %v12880_v44, %v16958_v43 }
 0x9e5   : > { %v4822_v32 = vpack.c.bf16 %v4741_v48, %v4738_v35  ;;  %v12881_v9 = vpop.f32.mrb[76].mxu0  ;;  %v15126_v35 = vld [vmem:[%s16012_s0 + $0xc4] ss:$12 sps:$4 sm:$0xff]  }
 0x9e6   : > { %v12882_v36 = vpop.f32.mrb[77].mxu0 }
 0x9e7   : > { %v12883_v34 = vadd.f32 %v12882_v36, %v12881_v9  ;;  %v12884_v40 = vpop.f32.mrb[78].mxu0  ;;  %5098 = vmatmul.mubr.bf16.gmra.mrb[104].mxu1 %v4822_v32 }
 0x9e8   : > { %v12885_v45 = vpop.f32.mrb[79].mxu0  ;;  %5105 = vmatprep.mubr.bf16.mxu1 %v15125_v5 }
 0x9e9   : > { %v12886_v24 = vadd.f32 %v12885_v45, %v12884_v40  ;;  %v4746_v29 = vadd.f32 %v12883_v34, %v16958_v43 }
 0x9eb   : > { %v4749_v54 = vadd.f32 %v12886_v24, %v16958_v43 }
 0x9ed   : > { %v4823_v28 = vpack.c.bf16 %v4749_v54, %v4746_v29  ;;  %v12887_v23 = vpop.f32.mrb[80].mxu0  ;;  %v15127_v29 = vld [vmem:[%s16012_s0 + $0xdc] ss:$12 sps:$4 sm:$0xff]  }
 0x9ee   : > { %v12888_v16 = vpop.f32.mrb[81].mxu0 }
 0x9ef   : > { %v12889_v60 = vadd.f32 %v12888_v16, %v12887_v23  ;;  %v12890_v59 = vpop.f32.mrb[82].mxu0  ;;  %5106 = vmatmul.mubr.bf16.gmra.mrb[108].mxu1 %v4823_v28 }
 0x9f0   : > { %v12891_v44 = vpop.f32.mrb[83].mxu0  ;;  %5113 = vmatprep.mubr.bf16.mxu1 %v15126_v35 }
 0x9f1   : > { %v12892_v48 = vadd.f32 %v12891_v44, %v12890_v59  ;;  %v4754_v32 = vadd.f32 %v12889_v60, %v16958_v43 }
 0x9f3   : > { %v4757_v9 = vadd.f32 %v12892_v48, %v16958_v43 }
 0x9f5   : > { %v4824_v36 = vpack.c.bf16 %v4757_v9, %v4754_v32  ;;  %v12893_v40 = vpop.f32.mrb[84].mxu0  ;;  %v15128_v32 = vld [vmem:[%s16012_s0 + $0xf4] ss:$12 sps:$4 sm:$0xff]  }
 0x9f6   : > { %v12894_v34 = vpop.f32.mrb[85].mxu0 }
 0x9f7   : > { %v12895_v45 = vadd.f32 %v12894_v34, %v12893_v40  ;;  %v12896_v5 = vpop.f32.mrb[86].mxu0  ;;  %5114 = vmatmul.mubr.bf16.gmra.mrb[112].mxu1 %v4824_v36 }
 0x9f8   : > { %v12897_v24 = vpop.f32.mrb[87].mxu0  ;;  %5121 = vmatprep.mubr.bf16.mxu1 %v15127_v29 }
 0x9f9   : > { %v12898_v54 = vadd.f32 %v12897_v24, %v12896_v5  ;;  %v4762_v28 = vadd.f32 %v12895_v45, %v16958_v43 }
 0x9fb   : > { %v4765_v23 = vadd.f32 %v12898_v54, %v16958_v43 }
 0x9fd   : > { %v4825_v16 = vpack.c.bf16 %v4765_v23, %v4762_v28  ;;  %v12899_v59 = vpop.f32.mrb[88].mxu0  ;;  %v15129_v28 = vld [vmem:[%s16012_s0 + $0x10c] ss:$12 sps:$4 sm:$0xff]  }
 0x9fe   : > { %v12900_v60 = vpop.f32.mrb[89].mxu0 }
 0x9ff   : > { %v12901_v44 = vadd.f32 %v12900_v60, %v12899_v59  ;;  %v12902_v35 = vpop.f32.mrb[90].mxu0  ;;  %5122 = vmatmul.mubr.bf16.gmra.mrb[116].mxu1 %v4825_v16 }
 0xa00   : > { %v12903_v48 = vpop.f32.mrb[91].mxu0  ;;  %5129 = vmatprep.mubr.bf16.mxu1 %v15128_v32 }
 0xa01   : > { %v12904_v9 = vadd.f32 %v12903_v48, %v12902_v35  ;;  %v4770_v36 = vadd.f32 %v12901_v44, %v16958_v43 }
 0xa03   : > { %v4773_v40 = vadd.f32 %v12904_v9, %v16958_v43 }
 0xa05   : > { %v4826_v34 = vpack.c.bf16 %v4773_v40, %v4770_v36  ;;  %v12905_v5 = vpop.f32.mrb[92].mxu0  ;;  %v15130_v36 = vld [vmem:[%s16012_s0 + $0x124] ss:$12 sps:$4 sm:$0xff]  }
 0xa06   : > { %v12906_v45 = vpop.f32.mrb[93].mxu0 }
 0xa07   : > { %v12907_v24 = vadd.f32 %v12906_v45, %v12905_v5  ;;  %v12908_v29 = vpop.f32.mrb[94].mxu0  ;;  %5130 = vmatmul.mubr.bf16.gmra.mrb[120].mxu1 %v4826_v34 }
 0xa08   : > { %v12909_v54 = vpop.f32.mrb[95].mxu0  ;;  %5137 = vmatprep.mubr.bf16.mxu1 %v15129_v28  ;;  %v14833_v28 = vld [vmem:[#allocation7 + $0x700] sm:$0xff]  }
 0xa09   : > { %v12910_v23 = vadd.f32 %v12909_v54, %v12908_v29  ;;  %v4778_v16 = vadd.f32 %v12907_v24, %v16958_v43  ;;  %v14832_v54 = vld [vmem:[#allocation7 + $0x740] sm:$0xff]  }
 0xa0a   : > { %13271 = vmatprep.subr.bf16.mxu0 %v14832_v54 }
 0xa0b   : > { %v4781_v59 = vadd.f32 %v12910_v23, %v16958_v43  ;;  %13272 = vmatpush3.bf16.msra.mxu0 %v14833_v28 }
 0xa0d   : > { %v4827_v60 = vpack.c.bf16 %v4781_v59, %v4778_v16  ;;  %v12911_v35 = vpop.f32.mrb[96].mxu0 }
 0xa0e   : > { %v12912_v44 = vpop.f32.mrb[97].mxu0 }
 0xa0f   : > { %v12913_v48 = vadd.f32 %v12912_v44, %v12911_v35  ;;  %v12914_v32 = vpop.f32.mrb[98].mxu0  ;;  %5138 = vmatmul.mubr.bf16.gmra.mrb[124].mxu1 %v4827_v60  ;;  %v15131_v60 = vld [vmem:[%s16012_s0 + $0x13c] ss:$12 sps:$4 sm:$0xff]  }
 0xa10   : > { %v12915_v9 = vpop.f32.mrb[99].mxu0  ;;  %5145 = vmatprep.mubr.bf16.mxu1 %v15130_v36 }
 0xa11   : > { %v12916_v40 = vadd.f32 %v12915_v9, %v12914_v32  ;;  %v4786_v34 = vadd.f32 %v12913_v48, %v16958_v43 }
 0xa13   : > { %v4789_v5 = vadd.f32 %v12916_v40, %v16958_v43 }
 0xa15   : > { %v4828_v45 = vpack.c.bf16 %v4789_v5, %v4786_v34  ;;  %v12917_v29 = vpop.f32.mrb[100].mxu0 }
 0xa16   : > { %v12918_v24 = vpop.f32.mrb[101].mxu0 }
 0xa17   : > { %v12919_v23 = vadd.f32 %v12918_v24, %v12917_v29  ;;  %v12920_v16 = vpop.f32.mrb[102].mxu0  ;;  %5146 = vmatmul.mubr.bf16.gmra.mrb[128].mxu1 %v4828_v45  ;;  %v15132_v45 = vld [vmem:[%s16012_s0 + $0x154] ss:$12 sps:$4 sm:$0xff]  }
 0xa18   : > { %v12921_v59 = vpop.f32.mrb[103].mxu0  ;;  %5153 = vmatprep.mubr.bf16.mxu1 %v15131_v60  ;;  %v14835_v60 = vld [vmem:[#allocation7 + $0x708] sm:$0xff]  }
 0xa19   : > { %v12922_v35 = vadd.f32 %v12921_v59, %v12920_v16  ;;  %v4794_v44 = vadd.f32 %v12919_v23, %v16958_v43  ;;  %v14834_v59 = vld [vmem:[#allocation7 + $0x748] sm:$0xff]  }
 0xa1a   : > { %13273 = vmatprep.subr.bf16.mxu0 %v14834_v59 }
 0xa1b   : > { %v4797_v48 = vadd.f32 %v12922_v35, %v16958_v43  ;;  %13274 = vmatpush3.bf16.msra.mxu0 %v14835_v60 }
 0xa1d   : > { %v4829_v32 = vpack.c.bf16 %v4797_v48, %v4794_v44  ;;  %v12923_v9 = vpop.f32.mrb[104].mxu0 }
 0xa1e   : > { %v12924_v36 = vpop.f32.mrb[105].mxu0 }
 0xa1f   : > { %v12925_v40 = vadd.f32 %v12924_v36, %v12923_v9  ;;  %v12926_v34 = vpop.f32.mrb[106].mxu0  ;;  %5154 = vmatmul.mubr.bf16.gmra.mrb[132].mxu1 %v4829_v32  ;;  %v15133_v9 = vld [vmem:[%s16012_s0 + $0x16c] ss:$12 sps:$4 sm:$0xff]  }
 0xa20   : > { %v12927_v5 = vpop.f32.mrb[107].mxu0  ;;  %5161 = vmatprep.mubr.bf16.mxu1 %v15132_v45 }
 0xa21   : > { %v12928_v29 = vadd.f32 %v12927_v5, %v12926_v34  ;;  %v4802_v24 = vadd.f32 %v12925_v40, %v16958_v43 }
 0xa23   : > { %v4805_v54 = vadd.f32 %v12928_v29, %v16958_v43 }
 0xa25   : > { %v4830_v28 = vpack.c.bf16 %v4805_v54, %v4802_v24  ;;  %v12929_v16 = vpop.f32.mrb[108].mxu0  ;;  %v17026_v54 = vld [vmem:[#allocation9 + $0xc] ss:$0 sm:$0xff] }
 0xa26   : > { %v12930_v23 = vpop.f32.mrb[109].mxu0 }
 0xa27   : > { %v12931_v35 = vadd.f32 %v12930_v23, %v12929_v16  ;;  %v12932_v44 = vpop.f32.mrb[110].mxu0  ;;  %5162 = vmatmul.mubr.bf16.gmra.mrb[136].mxu1 %v4830_v28 }
 0xa28   : > { %v12933_v48 = vpop.f32.mrb[111].mxu0  ;;  %5169 = vmatprep.mubr.bf16.mxu1 %v15133_v9 }
 0xa29   : > { %v12934_v32 = vadd.f32 %v12933_v48, %v12932_v44  ;;  %v4810_v36 = vadd.f32 %v12931_v35, %v16958_v43  ;;  %v14837_v48 = vld [vmem:[#allocation7 + $0x710] sm:$0xff]  }
 0xa2b   : > { %v4813_v40 = vadd.f32 %v12934_v32, %v16958_v43  ;;  %v14836_v43 = vld [vmem:[#allocation7 + $0x750] sm:$0xff]  }
 0xa2c   : > { %13275 = vmatprep.subr.bf16.mxu0 %v14836_v43 }
 0xa2d   : > { %v4831_v34 = vpack.c.bf16 %v4813_v40, %v4810_v36  ;;  %v13063_v5 = vpop.f32.mrb[112].mxu0  ;;  %13276 = vmatpush3.bf16.msra.mxu0 %v14837_v48  ;;  %v14838_v48 = vld [vmem:[#allocation7 + $0x758] sm:$0xff]  }
 0xa2e   : > { %v13064_v45 = vpop.f32.mrb[113].mxu0  ;;  %13277 = vmatprep.subr.bf16.mxu0 %v14838_v48  ;;  %v14841_v48 = vld [vmem:[#allocation7 + $0x720] sm:$0xff]  }
 0xa2f   : > { %v13065_v29 = vadd.f32 %v13064_v45, %v13063_v5  ;;  %5170 = vmatmul.mubr.bf16.gmra.mrb[140].mxu1 %v4831_v34  ;;  %v13066_v24 = vpop.f32.mrb[114].mxu0 }
 0xa30   : > { %v13067_v16 = vpop.f32.mrb[115].mxu0  ;;  %5933 = vmatprep.mubr.bf16.mxu1 %v16897_v42 }
 0xa31   : > { %v13068_v28 = vadd.f32 %v13067_v16, %v13066_v24  ;;  %v5574_v23 = vadd.f32 %v13065_v29, %v17026_v54 }
 0xa33   : > { %v5577_v59 = vadd.f32 %v13068_v28, %v17026_v54 }
 0xa35   : > { %v5700_v60 = vpack.c.bf16 %v5577_v59, %v5574_v23  ;;  %v13069_v35 = vpop.f32.mrb[116].mxu0 }
 0xa36   : > { %v13070_v44 = vpop.f32.mrb[117].mxu0 }
 0xa37   : > { %v13071_v9 = vadd.f32 %v13070_v44, %v13069_v35  ;;  %v13072_v32 = vpop.f32.mrb[118].mxu0  ;;  %5934 = vmatmul.mubr.bf16.vlgmr.msra.gmra.mrb[144].mxu1 %v5700_v60 }
 0xa38   : > { %v13073_v36 = vpop.f32.mrb[119].mxu0  ;;  %5941 = vmatprep.mubr.bf16.mxu1 %v16901_v12 }
 0xa39   : > { %v13074_v40 = vadd.f32 %v13073_v36, %v13072_v32  ;;  %v5582_v34 = vadd.f32 %v13071_v9, %v17026_v54  ;;  %v14839_v9 = vld [vmem:[#allocation7 + $0x718] sm:$0xff]  }
 0xa3a   : > { %13278 = vmatpush3.bf16.msra.mxu0 %v14839_v9 }
 0xa3b   : > { %v5585_v5 = vadd.f32 %v13074_v40, %v17026_v54 }
 0xa3d   : > { %v5701_v45 = vpack.c.bf16 %v5585_v5, %v5582_v34  ;;  %v13075_v29 = vpop.f32.mrb[120].mxu0 }
 0xa3e   : > { %v13076_v24 = vpop.f32.mrb[121].mxu0 }
 0xa3f   : > { %v13077_v16 = vadd.f32 %v13076_v24, %v13075_v29  ;;  %v13078_v28 = vpop.f32.mrb[122].mxu0  ;;  %5942 = vmatmul.mubr.bf16.gmra.mrb[148].mxu1 %v5701_v45 }
 0xa40   : > { %v13079_v23 = vpop.f32.mrb[123].mxu0  ;;  %5949 = vmatprep.mubr.bf16.mxu1 %v16906_v63 }
 0xa41   : > { %v13080_v59 = vadd.f32 %v13079_v23, %v13078_v28  ;;  %v5590_v60 = vadd.f32 %v13077_v16, %v17026_v54 }
 0xa43   : > { %v5593_v12 = vadd.f32 %v13080_v59, %v17026_v54 }
 0xa45   : > { %v5702_v35 = vpack.c.bf16 %v5593_v12, %v5590_v60  ;;  %v13081_v44 = vpop.f32.mrb[124].mxu0 }
 0xa46   : > { %v13082_v43 = vpop.f32.mrb[125].mxu0 }
 0xa47   : > { %v13083_v32 = vadd.f32 %v13082_v43, %v13081_v44  ;;  %v13084_v36 = vpop.f32.mrb[126].mxu0  ;;  %5950 = vmatmul.mubr.bf16.gmra.mrb[152].mxu1 %v5702_v35  ;;  %v14840_v43 = vld [vmem:[#allocation7 + $0x760] sm:$0xff]  }
 0xa48   : > { %v13085_v40 = vpop.f32.mrb[127].mxu0  ;;  %5957 = vmatprep.mubr.bf16.mxu1 %v16911_v25  ;;  %13279 = vmatprep.subr.bf16.mxu0 %v14840_v43 }
 0xa49   : > { %v13086_v34 = vadd.f32 %v13085_v40, %v13084_v36  ;;  %v5598_v63 = vadd.f32 %v13083_v32, %v17026_v54  ;;  %13280 = vmatpush3.bf16.msra.mxu0 %v14841_v48 }
 0xa4b   : > { %v5601_v5 = vadd.f32 %v13086_v34, %v17026_v54 }
 0xa4d   : > { %v5703_v45 = vpack.c.bf16 %v5601_v5, %v5598_v63  ;;  %v13087_v29 = vpop.f32.mrb[128].mxu0 }
 0xa4e   : > { %v13088_v24 = vpop.f32.mrb[129].mxu0 }
 0xa4f   : > { %v13089_v16 = vadd.f32 %v13088_v24, %v13087_v29  ;;  %v13090_v28 = vpop.f32.mrb[130].mxu0  ;;  %5958 = vmatmul.mubr.bf16.gmra.mrb[156].mxu1 %v5703_v45 }
 0xa50   : > { %v13091_v23 = vpop.f32.mrb[131].mxu0  ;;  %5965 = vmatprep.mubr.bf16.mxu1 %v16916_v7 }
 0xa51   : > { %v13092_v59 = vadd.f32 %v13091_v23, %v13090_v28  ;;  %v5606_v60 = vadd.f32 %v13089_v16, %v17026_v54 }
 0xa53   : > { %v5609_v25 = vadd.f32 %v13092_v59, %v17026_v54 }
 0xa55   : > { %v5704_v12 = vpack.c.bf16 %v5609_v25, %v5606_v60  ;;  %v13093_v35 = vpop.f32.mrb[132].mxu0 }
 0xa56   : > { %v13094_v44 = vpop.f32.mrb[133].mxu0 }
 0xa57   : > { %v13095_v9 = vadd.f32 %v13094_v44, %v13093_v35  ;;  %v13096_v32 = vpop.f32.mrb[134].mxu0  ;;  %5966 = vmatmul.mubr.bf16.gmra.mrb[160].mxu1 %v5704_v12  ;;  %v14842_v12 = vld [vmem:[#allocation7 + $0x768] sm:$0xff]  }
 0xa58   : > { %v13097_v36 = vpop.f32.mrb[135].mxu0  ;;  %5973 = vmatprep.mubr.bf16.mxu1 %v16921_v10  ;;  %v14843_v35 = vld [vmem:[#allocation7 + $0x728] sm:$0xff]   ;;  %13281 = vmatprep.subr.bf16.mxu0 %v14842_v12 }
 0xa59   : > { %v13098_v40 = vadd.f32 %v13097_v36, %v13096_v32  ;;  %v5614_v7 = vadd.f32 %v13095_v9, %v17026_v54  ;;  %13282 = vmatpush3.bf16.msra.mxu0 %v14843_v35 }
 0xa5b   : > { %v5617_v34 = vadd.f32 %v13098_v40, %v17026_v54 }
 0xa5d   : > { %v5705_v63 = vpack.c.bf16 %v5617_v34, %v5614_v7  ;;  %v13099_v5 = vpop.f32.mrb[136].mxu0 }
 0xa5e   : > { %v13100_v45 = vpop.f32.mrb[137].mxu0 }
 0xa5f   : > { %v13101_v29 = vadd.f32 %v13100_v45, %v13099_v5  ;;  %v13102_v24 = vpop.f32.mrb[138].mxu0  ;;  %5974 = vmatmul.mubr.bf16.gmra.mrb[164].mxu1 %v5705_v63 }
 0xa60   : > { %v13103_v16 = vpop.f32.mrb[139].mxu0  ;;  %5981 = vmatprep.mubr.bf16.mxu1 %v16926_v19 }
 0xa61   : > { %v13104_v28 = vadd.f32 %v13103_v16, %v13102_v24  ;;  %v5622_v23 = vadd.f32 %v13101_v29, %v17026_v54 }
 0xa63   : > { %v5625_v10 = vadd.f32 %v13104_v28, %v17026_v54 }
 0xa65   : > { %v5706_v59 = vpack.c.bf16 %v5625_v10, %v5622_v23  ;;  %v13105_v60 = vpop.f32.mrb[140].mxu0  ;;  %v14844_v23 = vld [vmem:[#allocation7 + $0x770] sm:$0xff]  }
 0xa66   : > { %v13106_v25 = vpop.f32.mrb[141].mxu0  ;;  %v14845_v10 = vld [vmem:[#allocation7 + $0x730] sm:$0xff]   ;;  %13283 = vmatprep.subr.bf16.mxu0 %v14844_v23 }
 0xa67   : > { %v13107_v44 = vadd.f32 %v13106_v25, %v13105_v60  ;;  %v13108_v43 = vpop.f32.mrb[142].mxu0  ;;  %5982 = vmatmul.mubr.bf16.gmra.mrb[168].mxu1 %v5706_v59  ;;  %13284 = vmatpush3.bf16.msra.mxu0 %v14845_v10 }
 0xa68   : > { %v13109_v48 = vpop.f32.mrb[143].mxu0  ;;  %5989 = vmatprep.mubr.bf16.mxu1 %v16931_v52 }
 0xa69   : > { %v13110_v9 = vadd.f32 %v13109_v48, %v13108_v43  ;;  %v5630_v19 = vadd.f32 %v13107_v44, %v17026_v54 }
 0xa6b   : > { %v5633_v32 = vadd.f32 %v13110_v9, %v17026_v54 }
 0xa6d   : > { %v5707_v36 = vpack.c.bf16 %v5633_v32, %v5630_v19  ;;  %v13111_v40 = vpop.f32.mrb[144].mxu0 }
 0xa6e   : > { %v13112_v7 = vpop.f32.mrb[145].mxu0 }
 0xa6f   : > { %v13113_v34 = vadd.f32 %v13112_v7, %v13111_v40  ;;  %v13114_v63 = vpop.f32.mrb[146].mxu0  ;;  %5990 = vmatmul.mubr.bf16.gmra.mrb[172].mxu1 %v5707_v36 }
 0xa70   : > { %v13115_v5 = vpop.f32.mrb[147].mxu0  ;;  %5997 = vmatprep.mubr.bf16.mxu1 %v16936_v30 }
 0xa71   : > { %v13116_v45 = vadd.f32 %v13115_v5, %v13114_v63  ;;  %v5638_v29 = vadd.f32 %v13113_v34, %v17026_v54  ;;  %v14846_v5 = vld [vmem:[#allocation7 + $0x778] sm:$0xff]  }
 0xa72   : > { %13285 = vmatprep.subr.bf16.mxu0 %v14846_v5 }
 0xa73   : > { %v5641_v52 = vadd.f32 %v13116_v45, %v17026_v54  ;;  %v14847_v45 = vld [vmem:[#allocation7 + $0x738] sm:$0xff]  }
 0xa74   : > { %13286 = vmatpush3.bf16.msra.mxu0 %v14847_v45 }
 0xa75   : > { %v5708_v24 = vpack.c.bf16 %v5641_v52, %v5638_v29  ;;  %v13117_v16 = vpop.f32.mrb[148].mxu0 }
 0xa76   : > { %v13118_v28 = vpop.f32.mrb[149].mxu0 }
 0xa77   : > { %v13119_v59 = vadd.f32 %v13118_v28, %v13117_v16  ;;  %v13120_v60 = vpop.f32.mrb[150].mxu0  ;;  %5998 = vmatmul.mubr.bf16.gmra.mrb[176].mxu1 %v5708_v24 }
 0xa78   : > { %v13121_v25 = vpop.f32.mrb[151].mxu0  ;;  %6005 = vmatprep.mubr.bf16.mxu1 %v16941_v38 }
 0xa79   : > { %v13122_v12 = vadd.f32 %v13121_v25, %v13120_v60  ;;  %v5646_v30 = vadd.f32 %v13119_v59, %v17026_v54 }
 0xa7b   : > { %v5649_v35 = vadd.f32 %v13122_v12, %v17026_v54  ;;  %v17064_v12 = vld [vmem:[#allocation9 + $0xb] ss:$0 sm:$0xff] }
 0xa7d   : > { %v5709_v44 = vpack.c.bf16 %v5649_v35, %v5646_v30  ;;  %v13123_v43 = vpop.f32.mrb[152].mxu0 }
 0xa7e   : > { %v13124_v48 = vpop.f32.mrb[153].mxu0 }
 0xa7f   : > { %v13125_v9 = vadd.f32 %v13124_v48, %v13123_v43  ;;  %v13126_v19 = vpop.f32.mrb[154].mxu0  ;;  %6006 = vmatmul.mubr.bf16.gmra.mrb[180].mxu1 %v5709_v44 }
 0xa80   : > { %v13127_v32 = vpop.f32.mrb[155].mxu0  ;;  %6013 = vmatprep.mubr.bf16.mxu1 %v16946_v37 }
 0xa81   : > { %v13128_v36 = vadd.f32 %v13127_v32, %v13126_v19  ;;  %v5654_v40 = vadd.f32 %v13125_v9, %v17026_v54 }
 0xa83   : > { %v5657_v38 = vadd.f32 %v13128_v36, %v17026_v54 }
 0xa85   : > { %v5710_v7 = vpack.c.bf16 %v5657_v38, %v5654_v40  ;;  %v13129_v34 = vpop.f32.mrb[156].mxu0 }
 0xa86   : > { %v13130_v63 = vpop.f32.mrb[157].mxu0 }
 0xa87   : > { %v13131_v29 = vadd.f32 %v13130_v63, %v13129_v34  ;;  %v13132_v52 = vpop.f32.mrb[158].mxu0  ;;  %6014 = vmatmul.mubr.bf16.gmra.mrb[184].mxu1 %v5710_v7 }
 0xa88   : > { %v13133_v24 = vpop.f32.mrb[159].mxu0  ;;  %6021 = vmatprep.mubr.bf16.mxu1 %v16951_v46 }
 0xa89   : > { %v13134_v16 = vadd.f32 %v13133_v24, %v13132_v52  ;;  %v5662_v28 = vadd.f32 %v13131_v29, %v17026_v54 }
 0xa8a   : > { %v12951_v37 = vpop.f32.mrb[80].mxu1 }
 0xa8b   : > { %v5665_v23 = vadd.f32 %v13134_v16, %v17026_v54  ;;  %v12952_v10 = vpop.f32.mrb[81].mxu1 }
 0xa8c   : > { %v12953_v59 = vadd.f32 %v12952_v10, %v12951_v37  ;;  %v12954_v60 = vpop.f32.mrb[82].mxu1 }
 0xa8d   : > { %v5711_v25 = vpack.c.bf16 %v5665_v23, %v5662_v28  ;;  %v12955_v30 = vpop.f32.mrb[83].mxu1  ;;  %v13135_v35 = vpop.f32.mrb[160].mxu0 }
 0xa8e   : > { %v12956_v44 = vadd.f32 %v12955_v30, %v12954_v60  ;;  %v13136_v43 = vpop.f32.mrb[161].mxu0  ;;  %v17067_v9 = vadd.f32 %v12953_v59, %v17064_v12 }
 0xa8f   : > { %v13137_v48 = vadd.f32 %v13136_v43, %v13135_v35  ;;  %v13138_v46 = vpop.f32.mrb[162].mxu0  ;;  %6022 = vmatmul.mubr.bf16.gmra.mrb[188].mxu1 %v5711_v25 }
 0xa90   : > { %v17070_v19 = vadd.f32 %v12956_v44, %v17064_v12  ;;  %v13139_v32 = vpop.f32.mrb[163].mxu0  ;;  %6029 = vmatprep.mubr.bf16.mxu1 %v16956_v53 }
 0xa91   : > { %v13140_v36 = vadd.f32 %v13139_v32, %v13138_v46  ;;  %v5670_v7 = vadd.f32 %v13137_v48, %v17026_v54 }
 0xa92   : > { %v12957_v40 = vpop.f32.mrb[84].mxu1 }
 0xa93   : > { %v5673_v34 = vadd.f32 %v13140_v36, %v17026_v54  ;;  %v12958_v63 = vpop.f32.mrb[85].mxu1 }
 0xa94   : > { %v12959_v5 = vadd.f32 %v12958_v63, %v12957_v40  ;;  %v12960_v45 = vpop.f32.mrb[86].mxu1 }
 0xa95   : > { %v5712_v29 = vpack.c.bf16 %v5673_v34, %v5670_v7  ;;  %v12961_v52 = vpop.f32.mrb[87].mxu1  ;;  %v13141_v24 = vpop.f32.mrb[164].mxu0 }
 0xa96   : > { %v12962_v16 = vadd.f32 %v12961_v52, %v12960_v45  ;;  %v13142_v37 = vpop.f32.mrb[165].mxu0  ;;  %v17078_v53 = vadd.f32 %v12959_v5, %v17064_v12 }
 0xa97   : > { %v13143_v28 = vadd.f32 %v13142_v37, %v13141_v24  ;;  %v13144_v23 = vpop.f32.mrb[166].mxu0  ;;  %6030 = vmatmul.mubr.bf16.gmra.mrb[192].mxu1 %v5712_v29 }
 0xa98   : > { %v17081_v10 = vadd.f32 %v12962_v16, %v17064_v12  ;;  %v13145_v59 = vpop.f32.mrb[167].mxu0  ;;  %6037 = vmatprep.mubr.bf16.mxu1 %v16965_v49 }
 0xa99   : > { %v13146_v60 = vadd.f32 %v13145_v59, %v13144_v23  ;;  %v5678_v35 = vadd.f32 %v13143_v28, %v17026_v54 }
 0xa9a   : > { %v12963_v25 = vpop.f32.mrb[88].mxu1 }
 0xa9b   : > { %v5681_v44 = vadd.f32 %v13146_v60, %v17026_v54  ;;  %v12964_v43 = vpop.f32.mrb[89].mxu1 }
 0xa9c   : > { %v12965_v48 = vadd.f32 %v12964_v43, %v12963_v25  ;;  %v12966_v46 = vpop.f32.mrb[90].mxu1 }
 0xa9d   : > { %v5713_v32 = vpack.c.bf16 %v5681_v44, %v5678_v35  ;;  %v12967_v36 = vpop.f32.mrb[91].mxu1  ;;  %v13147_v40 = vpop.f32.mrb[168].mxu0 }
 0xa9e   : > { %v12968_v7 = vadd.f32 %v12967_v36, %v12966_v46  ;;  %v13148_v34 = vpop.f32.mrb[169].mxu0  ;;  %v17089_v49 = vadd.f32 %v12965_v48, %v17064_v12 }
 0xa9f   : > { %v13149_v63 = vadd.f32 %v13148_v34, %v13147_v40  ;;  %v13150_v5 = vpop.f32.mrb[170].mxu0  ;;  %6038 = vmatmul.mubr.bf16.gmra.mrb[196].mxu1 %v5713_v32 }
 0xaa0   : > { %v17092_v45 = vadd.f32 %v12968_v7, %v17064_v12  ;;  %v13151_v29 = vpop.f32.mrb[171].mxu0  ;;  %6045 = vmatprep.mubr.bf16.mxu1 %v16973_v0 }
 0xaa1   : > { %v13152_v52 = vadd.f32 %v13151_v29, %v13150_v5  ;;  %v5686_v37 = vadd.f32 %v13149_v63, %v17026_v54 }
 0xaa2   : > { %v12969_v24 = vpop.f32.mrb[92].mxu1 }
 0xaa3   : > { %v5689_v28 = vadd.f32 %v13152_v52, %v17026_v54  ;;  %v12970_v23 = vpop.f32.mrb[93].mxu1 }
 0xaa4   : > { %v12971_v59 = vadd.f32 %v12970_v23, %v12969_v24  ;;  %v12972_v60 = vpop.f32.mrb[94].mxu1 }
 0xaa5   : > { %v5714_v25 = vpack.c.bf16 %v5689_v28, %v5686_v37  ;;  %v12973_v35 = vpop.f32.mrb[95].mxu1  ;;  %v13153_v44 = vpop.f32.mrb[172].mxu0 }
 0xaa6   : > { %v12974_v43 = vadd.f32 %v12973_v35, %v12972_v60  ;;  %v13154_v48 = vpop.f32.mrb[173].mxu0  ;;  %v17100_v0 = vadd.f32 %v12971_v59, %v17064_v12 }
 0xaa7   : > { %v13155_v46 = vadd.f32 %v13154_v48, %v13153_v44  ;;  %v13156_v32 = vpop.f32.mrb[174].mxu0  ;;  %6046 = vmatmul.mubr.bf16.gmra.mrb[200].mxu1 %v5714_v25 }
 0xaa8   : > { %v17103_v36 = vadd.f32 %v12974_v43, %v17064_v12  ;;  %v13157_v40 = vpop.f32.mrb[175].mxu0  ;;  %6053 = vmatprep.mubr.bf16.mxu1 %v16981_v33 }
 0xaa9   : > { %v13158_v7 = vadd.f32 %v13157_v40, %v13156_v32  ;;  %v5694_v5 = vadd.f32 %v13155_v46, %v17026_v54 }
 0xaaa   : > { %v12975_v34 = vpop.f32.mrb[96].mxu1 }
 0xaab   : > { %v5697_v29 = vadd.f32 %v13158_v7, %v17026_v54  ;;  %v12976_v52 = vpop.f32.mrb[97].mxu1 }
 0xaac   : > { %v12977_v24 = vadd.f32 %v12976_v52, %v12975_v34  ;;  %v12978_v37 = vpop.f32.mrb[98].mxu1 }
 0xaad   : > { %v5715_v28 = vpack.c.bf16 %v5697_v29, %v5694_v5  ;;  %v12979_v23 = vpop.f32.mrb[99].mxu1 }
 0xaae   : > { %v12980_v59 = vadd.f32 %v12979_v23, %v12978_v37  ;;  %v17111_v60 = vadd.f32 %v12977_v24, %v17064_v12 }
 0xaaf   : > { %6054 = vmatmul.mubr.bf16.gmra.mrb[204].mxu1 %v5715_v28 }
 0xab0   : > { %v17114_v33 = vadd.f32 %v12980_v59, %v17064_v12  ;;  %6657 = vmatprep.mubr.bf16.mxu1 %v16897_v42 }
 0xab2   : > { %v12981_v25 = vpop.f32.mrb[100].mxu1 }
 0xab3   : > { %v12982_v54 = vpop.f32.mrb[101].mxu1 }
 0xab4   : > { %v12983_v44 = vadd.f32 %v12982_v54, %v12981_v25  ;;  %v12984_v43 = vpop.f32.mrb[102].mxu1 }
 0xab5   : > { %v12985_v48 = vpop.f32.mrb[103].mxu1 }
 0xab6   : > { %v12986_v46 = vadd.f32 %v12985_v48, %v12984_v43  ;;  %v17120_v32 = vadd.f32 %v12983_v44, %v17064_v12 }
 0xab8   : > { %v17123_v40 = vadd.f32 %v12986_v46, %v17064_v12 }
 0xaba   : > { %v12987_v7 = vpop.f32.mrb[104].mxu1 }
 0xabb   : > { %v12988_v42 = vpop.f32.mrb[105].mxu1 }
 0xabc   : > { %v12989_v5 = vadd.f32 %v12988_v42, %v12987_v7  ;;  %v12990_v29 = vpop.f32.mrb[106].mxu1 }
 0xabd   : > { %v12991_v52 = vpop.f32.mrb[107].mxu1 }
 0xabe   : > { %v12992_v24 = vadd.f32 %v12991_v52, %v12990_v29  ;;  %v17128_v37 = vadd.f32 %v12989_v5, %v17064_v12 }
 0xac0   : > { %v17131_v28 = vadd.f32 %v12992_v24, %v17064_v12 }
 0xac2   : > { %v12993_v23 = vpop.f32.mrb[108].mxu1 }
 0xac3   : > { %v12994_v25 = vpop.f32.mrb[109].mxu1 }
 0xac4   : > { %v12995_v54 = vadd.f32 %v12994_v25, %v12993_v23  ;;  %v12996_v44 = vpop.f32.mrb[110].mxu1 }
 0xac5   : > { %v12997_v43 = vpop.f32.mrb[111].mxu1 }
 0xac6   : > { %v12998_v48 = vadd.f32 %v12997_v43, %v12996_v44  ;;  %v17136_v46 = vadd.f32 %v12995_v54, %v17064_v12 }
 0xac8   : > { %18252 = vst [vmem:[#allocation49_spill] sm:$0xff] %v17136_v46  ;;  %v17139_v7 = vadd.f32 %v12998_v48, %v17064_v12  ;;  %v14874_v46 = vld [vmem:[#allocation7 + $0x868] sm:$0xff]  }
 0xaca   : > { %v12999_v42 = vpop.f32.mrb[112].mxu1 }
 0xacb   : > { %v13000_v29 = vpop.f32.mrb[113].mxu1 }
 0xacc   : > { %v13001_v52 = vadd.f32 %v13000_v29, %v12999_v42  ;;  %v13002_v24 = vpop.f32.mrb[114].mxu1 }
 0xacd   : > { %v13003_v34 = vpop.f32.mrb[115].mxu1 }
 0xace   : > { %v13004_v59 = vadd.f32 %v13003_v34, %v13002_v24  ;;  %v17144_v23 = vadd.f32 %v13001_v52, %v17064_v12 }
 0xad0   : > { %18253 = vst [vmem:[#allocation50_spill] sm:$0xff] %v17144_v23  ;;  %v17147_v25 = vadd.f32 %v13004_v59, %v17064_v12  ;;  %v14871_v23 = vld [vmem:[#allocation7 + $0x818] sm:$0xff]  }
 0xad2   : > { %18254 = vst [vmem:[#allocation51_spill] sm:$0xff] %v17147_v25  ;;  %v13005_v54 = vpop.f32.mrb[116].mxu1 }
 0xad3   : > { %v13006_v43 = vpop.f32.mrb[117].mxu1 }
 0xad4   : > { %v13007_v48 = vadd.f32 %v13006_v43, %v13005_v54  ;;  %v13008_v35 = vpop.f32.mrb[118].mxu1 }
 0xad5   : > { %v13009_v63 = vpop.f32.mrb[119].mxu1 }
 0xad6   : > { %v13010_v5 = vadd.f32 %v13009_v63, %v13008_v35  ;;  %v17152_v42 = vadd.f32 %v13007_v48, %v17064_v12 }
 0xad8   : > { %18255 = vst [vmem:[#allocation52_spill] sm:$0xff] %v17152_v42  ;;  %v17155_v34 = vadd.f32 %v13010_v5, %v17064_v12 }
 0xada   : > { %18256 = vst [vmem:[#allocation53_spill] sm:$0xff] %v17155_v34  ;;  %v13011_v29 = vpop.f32.mrb[120].mxu1 }
 0xadb   : > { %v13012_v52 = vpop.f32.mrb[121].mxu1 }
 0xadc   : > { %v13013_v24 = vadd.f32 %v13012_v52, %v13011_v29  ;;  %v13014_v16 = vpop.f32.mrb[122].mxu1 }
 0xadd   : > { %v13015_v30 = vpop.f32.mrb[123].mxu1 }
 0xade   : > { %v13016_v44 = vadd.f32 %v13015_v30, %v13014_v16  ;;  %v17160_v54 = vadd.f32 %v13013_v24, %v17064_v12 }
 0xae0   : > { %18257 = vst [vmem:[#allocation54_spill] sm:$0xff] %v17160_v54  ;;  %v17163_v63 = vadd.f32 %v13016_v44, %v17064_v12 }
 0xae2   : > { %18258 = vst [vmem:[#allocation55_spill] sm:$0xff] %v17163_v63  ;;  %v13017_v35 = vpop.f32.mrb[124].mxu1 }
 0xae3   : > { %v13018_v43 = vpop.f32.mrb[125].mxu1 }
 0xae4   : > { %v13019_v48 = vadd.f32 %v13018_v43, %v13017_v35  ;;  %v13020_v38 = vpop.f32.mrb[126].mxu1  ;;  %v14848_v43 = vld [vmem:[#allocation7 + $0x7c0] sm:$0xff]  }
 0xae5   : > { %v13021_v41 = vpop.f32.mrb[127].mxu1  ;;  %13383 = vmatprep.subr.bf16.mxu1 %v14848_v43  ;;  %v14850_v43 = vld [vmem:[#allocation7 + $0x7c8] sm:$0xff]  }
 0xae6   : > { %v13022_v59 = vadd.f32 %v13021_v41, %v13020_v38  ;;  %v17168_v29 = vadd.f32 %v13019_v48, %v17064_v12  ;;  %v14849_v48 = vld [vmem:[#allocation7 + $0x780] sm:$0xff]  }
 0xae7   : > { %13384 = vmatpush3.bf16.msra.mxu1 %v14849_v48  ;;  %v14851_v48 = vld [vmem:[#allocation7 + $0x788] sm:$0xff]  }
 0xae8   : > { %18259 = vst [vmem:[#allocation56_spill] sm:$0xff] %v17168_v29  ;;  %v17171_v30 = vadd.f32 %v13022_v59, %v17064_v12  ;;  %13385 = vmatprep.subr.bf16.mxu1 %v14850_v43  ;;  %v17207_v43 = vld [vmem:[#allocation9 + $0xd] ss:$0 sm:$0xff]  ;;  %v14862_v29 = vld [vmem:[#allocation7 + $0x7f8] sm:$0xff]  }
 0xaea   : > { %18260 = vst [vmem:[#allocation57_spill] sm:$0xff] %v17171_v30  ;;  %v13023_v16 = vpop.f32.mrb[128].mxu1 }
 0xaeb   : > { %v13024_v52 = vpop.f32.mrb[129].mxu1  ;;  %13386 = vmatpush3.bf16.msra.mxu1 %v14851_v48 }
 0xaec   : > { %v13025_v24 = vadd.f32 %v13024_v52, %v13023_v16  ;;  %v13026_v22 = vpop.f32.mrb[130].mxu1 }
 0xaed   : > { %v13027_v56 = vpop.f32.mrb[131].mxu1 }
 0xaee   : > { %v13028_v5 = vadd.f32 %v13027_v56, %v13026_v22  ;;  %v17176_v35 = vadd.f32 %v13025_v24, %v17064_v12 }
 0xaf0   : > { %18261 = vst [vmem:[#allocation58_spill] sm:$0xff] %v17176_v35  ;;  %v17179_v41 = vadd.f32 %v13028_v5, %v17064_v12 }
 0xaf2   : > { %18262 = vst [vmem:[#allocation59_spill] sm:$0xff] %v17179_v41  ;;  %v13029_v38 = vpop.f32.mrb[132].mxu1 }
 0xaf3   : > { %v13030_v51 = vpop.f32.mrb[133].mxu1 }
 0xaf4   : > { %v13031_v55 = vadd.f32 %v13030_v51, %v13029_v38  ;;  %v13032_v44 = vpop.f32.mrb[134].mxu1 }
 0xaf5   : > { %v13033_v16 = vpop.f32.mrb[135].mxu1 }
 0xaf6   : > { %v13034_v52 = vadd.f32 %v13033_v16, %v13032_v44  ;;  %v17184_v22 = vadd.f32 %v13031_v55, %v17064_v12 }
 0xaf8   : > { %18263 = vst [vmem:[#allocation60_spill] sm:$0xff] %v17184_v22  ;;  %v17187_v56 = vadd.f32 %v13034_v52, %v17064_v12 }
 0xafa   : > { %18264 = vst [vmem:[#allocation61_spill] sm:$0xff] %v17187_v56  ;;  %v13035_v5 = vpop.f32.mrb[136].mxu1 }
 0xafb   : > { %v13036_v47 = vpop.f32.mrb[137].mxu1 }
 0xafc   : > { %v13037_v57 = vadd.f32 %v13036_v47, %v13035_v5  ;;  %v13038_v59 = vpop.f32.mrb[138].mxu1 }
 0xafd   : > { %v13039_v35 = vpop.f32.mrb[139].mxu1 }
 0xafe   : > { %v13040_v51 = vadd.f32 %v13039_v35, %v13038_v59  ;;  %v17192_v38 = vadd.f32 %v13037_v57, %v17064_v12 }
 0xb00   : > { %18265 = vst [vmem:[#allocation62_spill] sm:$0xff] %v17192_v38  ;;  %v17195_v44 = vadd.f32 %v13040_v51, %v17064_v12  ;;  %v14852_v38 = vld [vmem:[#allocation7 + $0x7d0] sm:$0xff]  }
 0xb01   : > { %13387 = vmatprep.subr.bf16.mxu1 %v14852_v38 }
 0xb02   : > { %18266 = vst [vmem:[#allocation63_spill] sm:$0xff] %v17195_v44  ;;  %v13041_v55 = vpop.f32.mrb[140].mxu1 }
 0xb03   : > { %v13042_v52 = vpop.f32.mrb[141].mxu1 }
 0xb04   : > { %v13043_v41 = vadd.f32 %v13042_v52, %v13041_v55  ;;  %v13044_v24 = vpop.f32.mrb[142].mxu1  ;;  %v14853_v55 = vld [vmem:[#allocation7 + $0x790] sm:$0xff]   ;;  %v14854_v52 = vld [vmem:[#allocation7 + $0x7d8] sm:$0xff]  }
 0xb05   : > { %v13045_v47 = vpop.f32.mrb[143].mxu1  ;;  %13388 = vmatpush3.bf16.msra.mxu1 %v14853_v55  ;;  %v17212_v55 = vld [vmem:[%s16012_s0 + $0x20] ss:$12 sps:$4 sm:$0xff]  }
 0xb06   : > { %v13046_v5 = vadd.f32 %v13045_v47, %v13044_v24  ;;  %v17200_v35 = vadd.f32 %v13043_v41, %v17064_v12  ;;  %v14855_v41 = vld [vmem:[#allocation7 + $0x798] sm:$0xff]   ;;  %13389 = vmatprep.subr.bf16.mxu1 %v14854_v52 }
 0xb08   : > { %18267 = vst [vmem:[#allocation64_spill] sm:$0xff] %v17200_v35  ;;  %v17203_v57 = vadd.f32 %v13046_v5, %v17064_v12  ;;  %v14856_v5 = vld [vmem:[#allocation7 + $0x7e0] sm:$0xff]  }
 0xb09   : > { %13390 = vmatpush3.bf16.msra.mxu1 %v14855_v41  ;;  %v14857_v35 = vld [vmem:[#allocation7 + $0x7a0] sm:$0xff]   ;;  %v14860_v41 = vld [vmem:[#allocation7 + $0x7f0] sm:$0xff]  }
 0xb0a   : > { %18268 = vst [vmem:[#allocation65_spill] sm:$0xff] %v17203_v57  ;;  %v13175_v59 = vpop.f32.mrb[144].mxu1  ;;  %13391 = vmatprep.subr.bf16.mxu1 %v14856_v5  ;;  %v14861_v5 = vld [vmem:[#allocation7 + $0x7b0] sm:$0xff]  }
 0xb0b   : > { %v13176_v22 = vpop.f32.mrb[145].mxu1 }
 0xb0c   : > { %v13177_v56 = vadd.f32 %v13176_v22, %v13175_v59  ;;  %v13178_v16 = vpop.f32.mrb[146].mxu1 }
 0xb0d   : > { %v13179_v48 = vpop.f32.mrb[147].mxu1  ;;  %13392 = vmatpush3.bf16.msra.mxu1 %v14857_v35  ;;  %v17218_v35 = vld [vmem:[%s16012_s0 + $0x38] ss:$12 sps:$4 sm:$0xff]  }
 0xb0e   : > { %v13180_v24 = vadd.f32 %v13179_v48, %v13178_v16  ;;  %v5936_v12 = vadd.f32 %v13177_v56, %v17207_v43  ;;  %v14858_v16 = vld [vmem:[#allocation7 + $0x7e8] sm:$0xff]  }
 0xb0f   : > { %v14859_v48 = vld [vmem:[#allocation7 + $0x7a8] sm:$0xff]   ;;  %13393 = vmatprep.subr.bf16.mxu1 %v14858_v16  ;;  %v14863_v16 = vld [vmem:[#allocation7 + $0x7b8] sm:$0xff]  }
 0xb10   : > { %v5939_v47 = vadd.f32 %v13180_v24, %v17207_v43 }
 0xb11   : > { %13394 = vmatpush3.bf16.msra.mxu1 %v14859_v48 }
 0xb12   : > { %v6062_v51 = vpack.c.bf16 %v5939_v47, %v5936_v12  ;;  %v13181_v22 = vpop.f32.mrb[148].mxu1  ;;  %13395 = vmatprep.subr.bf16.mxu1 %v14860_v41 }
 0xb13   : > { %v13182_v59 = vpop.f32.mrb[149].mxu1 }
 0xb14   : > { %v13183_v57 = vadd.f32 %v13182_v59, %v13181_v22  ;;  %v13184_v44 = vpop.f32.mrb[150].mxu1  ;;  %6296 = vmatmul.mubr.bf16.vlgmr.msra.gmra.mrb[176].mxu0 %v6062_v51 }
 0xb15   : > { %v13185_v38 = vpop.f32.mrb[151].mxu1  ;;  %6303 = vmatprep.mubr.bf16.mxu0 %v17212_v55  ;;  %13396 = vmatpush3.bf16.msra.mxu1 %v14861_v5 }
 0xb16   : > { %v13186_v56 = vadd.f32 %v13185_v38, %v13184_v44  ;;  %v5944_v52 = vadd.f32 %v13183_v57, %v17207_v43  ;;  %13397 = vmatprep.subr.bf16.mxu1 %v14862_v29 }
 0xb18   : > { %v5947_v24 = vadd.f32 %v13186_v56, %v17207_v43 }
 0xb19   : > { %13398 = vmatpush3.bf16.msra.mxu1 %v14863_v16 }
 0xb1a   : > { %v6063_v12 = vpack.c.bf16 %v5947_v24, %v5944_v52  ;;  %v13187_v47 = vpop.f32.mrb[152].mxu1 }
 0xb1b   : > { %v13188_v51 = vpop.f32.mrb[153].mxu1 }
 0xb1c   : > { %v13189_v22 = vadd.f32 %v13188_v51, %v13187_v47  ;;  %v13190_v59 = vpop.f32.mrb[154].mxu1  ;;  %6304 = vmatmul.mubr.bf16.gmra.mrb[180].mxu0 %v6063_v12  ;;  %v17224_v51 = vld [vmem:[%s16012_s0 + $0x50] ss:$12 sps:$4 sm:$0xff]  }
 0xb1d   : > { %v13191_v44 = vpop.f32.mrb[155].mxu1  ;;  %6311 = vmatprep.mubr.bf16.mxu0 %v17218_v35 }
 0xb1e   : > { %v13192_v57 = vadd.f32 %v13191_v44, %v13190_v59  ;;  %v5952_v38 = vadd.f32 %v13189_v22, %v17207_v43 }
 0xb20   : > { %v5955_v56 = vadd.f32 %v13192_v57, %v17207_v43 }
 0xb22   : > { %v6064_v48 = vpack.c.bf16 %v5955_v56, %v5952_v38  ;;  %v13193_v52 = vpop.f32.mrb[156].mxu1 }
 0xb23   : > { %v13194_v24 = vpop.f32.mrb[157].mxu1 }
 0xb24   : > { %v13195_v41 = vadd.f32 %v13194_v24, %v13193_v52  ;;  %v13196_v12 = vpop.f32.mrb[158].mxu1  ;;  %6312 = vmatmul.mubr.bf16.gmra.mrb[184].mxu0 %v6064_v48  ;;  %v17230_v52 = vld [vmem:[%s16012_s0 + $0x68] ss:$12 sps:$4 sm:$0xff]  }
 0xb25   : > { %v13197_v47 = vpop.f32.mrb[159].mxu1  ;;  %6319 = vmatprep.mubr.bf16.mxu0 %v17224_v51 }
 0xb26   : > { %v13198_v5 = vadd.f32 %v13197_v47, %v13196_v12  ;;  %v5960_v59 = vadd.f32 %v13195_v41, %v17207_v43 }
 0xb28   : > { %v5963_v22 = vadd.f32 %v13198_v5, %v17207_v43 }
 0xb2a   : > { %v6065_v44 = vpack.c.bf16 %v5963_v22, %v5960_v59  ;;  %v13199_v29 = vpop.f32.mrb[160].mxu1 }
 0xb2b   : > { %v13200_v57 = vpop.f32.mrb[161].mxu1 }
 0xb2c   : > { %v13201_v38 = vadd.f32 %v13200_v57, %v13199_v29  ;;  %v13202_v16 = vpop.f32.mrb[162].mxu1  ;;  %6320 = vmatmul.mubr.bf16.gmra.mrb[188].mxu0 %v6065_v44  ;;  %v17236_v57 = vld [vmem:[%s16012_s0 + $0x80] ss:$12 sps:$4 sm:$0xff]  }
 0xb2d   : > { %v13203_v56 = vpop.f32.mrb[163].mxu1  ;;  %6327 = vmatprep.mubr.bf16.mxu0 %v17230_v52 }
 0xb2e   : > { %v13204_v48 = vadd.f32 %v13203_v56, %v13202_v16  ;;  %v5968_v24 = vadd.f32 %v13201_v38, %v17207_v43 }
 0xb30   : > { %v5971_v12 = vadd.f32 %v13204_v48, %v17207_v43 }
 0xb32   : > { %v6066_v41 = vpack.c.bf16 %v5971_v12, %v5968_v24  ;;  %v13205_v47 = vpop.f32.mrb[164].mxu1 }
 0xb33   : > { %v13206_v5 = vpop.f32.mrb[165].mxu1 }
 0xb34   : > { %v13207_v59 = vadd.f32 %v13206_v5, %v13205_v47  ;;  %v13208_v22 = vpop.f32.mrb[166].mxu1  ;;  %6328 = vmatmul.mubr.bf16.gmra.mrb[192].mxu0 %v6066_v41  ;;  %v17242_v5 = vld [vmem:[%s16012_s0 + $0x98] ss:$12 sps:$4 sm:$0xff]  }
 0xb35   : > { %v13209_v29 = vpop.f32.mrb[167].mxu1  ;;  %6335 = vmatprep.mubr.bf16.mxu0 %v17236_v57 }
 0xb36   : > { %v13210_v44 = vadd.f32 %v13209_v29, %v13208_v22  ;;  %v5976_v30 = vadd.f32 %v13207_v59, %v17207_v43 }
 0xb38   : > { %v5979_v16 = vadd.f32 %v13210_v44, %v17207_v43 }
 0xb3a   : > { %v6067_v38 = vpack.c.bf16 %v5979_v16, %v5976_v30  ;;  %v13211_v56 = vpop.f32.mrb[168].mxu1 }
 0xb3b   : > { %v13212_v48 = vpop.f32.mrb[169].mxu1 }
 0xb3c   : > { %v13213_v24 = vadd.f32 %v13212_v48, %v13211_v56  ;;  %v13214_v12 = vpop.f32.mrb[170].mxu1  ;;  %6336 = vmatmul.mubr.bf16.gmra.mrb[196].mxu0 %v6067_v38  ;;  %v17248_v48 = vld [vmem:[%s16012_s0 + $0xb0] ss:$12 sps:$4 sm:$0xff]  }
 0xb3d   : > { %v13215_v47 = vpop.f32.mrb[171].mxu1  ;;  %6343 = vmatprep.mubr.bf16.mxu0 %v17242_v5 }
 0xb3e   : > { %v13216_v41 = vadd.f32 %v13215_v47, %v13214_v12  ;;  %v5984_v13 = vadd.f32 %v13213_v24, %v17207_v43 }
 0xb40   : > { %v5987_v22 = vadd.f32 %v13216_v41, %v17207_v43 }
 0xb42   : > { %v6068_v59 = vpack.c.bf16 %v5987_v22, %v5984_v13  ;;  %v13217_v29 = vpop.f32.mrb[172].mxu1 }
 0xb43   : > { %v13218_v44 = vpop.f32.mrb[173].mxu1 }
 0xb44   : > { %v13219_v30 = vadd.f32 %v13218_v44, %v13217_v29  ;;  %v13220_v16 = vpop.f32.mrb[174].mxu1  ;;  %6344 = vmatmul.mubr.bf16.gmra.mrb[200].mxu0 %v6068_v59  ;;  %v17254_v44 = vld [vmem:[%s16012_s0 + $0xc8] ss:$12 sps:$4 sm:$0xff]  }
 0xb45   : > { %v13221_v56 = vpop.f32.mrb[175].mxu1  ;;  %6351 = vmatprep.mubr.bf16.mxu0 %v17248_v48 }
 0xb46   : > { %v13222_v38 = vadd.f32 %v13221_v56, %v13220_v16  ;;  %v5992_v62 = vadd.f32 %v13219_v30, %v17207_v43 }
 0xb48   : > { %v5995_v12 = vadd.f32 %v13222_v38, %v17207_v43 }
 0xb4a   : > { %v6069_v24 = vpack.c.bf16 %v5995_v12, %v5992_v62  ;;  %v13223_v47 = vpop.f32.mrb[176].mxu1 }
 0xb4b   : > { %v13224_v41 = vpop.f32.mrb[177].mxu1 }
 0xb4c   : > { %v13225_v13 = vadd.f32 %v13224_v41, %v13223_v47  ;;  %v13226_v22 = vpop.f32.mrb[178].mxu1  ;;  %6352 = vmatmul.mubr.bf16.gmra.mrb[204].mxu0 %v6069_v24  ;;  %v17260_v41 = vld [vmem:[%s16012_s0 + $0xe0] ss:$12 sps:$4 sm:$0xff]  }
 0xb4d   : > { %v13227_v29 = vpop.f32.mrb[179].mxu1  ;;  %6359 = vmatprep.mubr.bf16.mxu0 %v17254_v44 }
 0xb4e   : > { %v13228_v59 = vadd.f32 %v13227_v29, %v13226_v22  ;;  %v6000_v54 = vadd.f32 %v13225_v13, %v17207_v43 }
 0xb50   : > { %v6003_v16 = vadd.f32 %v13228_v59, %v17207_v43 }
 0xb52   : > { %v6070_v30 = vpack.c.bf16 %v6003_v16, %v6000_v54  ;;  %v13229_v56 = vpop.f32.mrb[180].mxu1 }
 0xb53   : > { %v13230_v38 = vpop.f32.mrb[181].mxu1 }
 0xb54   : > { %v13231_v62 = vadd.f32 %v13230_v38, %v13229_v56  ;;  %v13232_v12 = vpop.f32.mrb[182].mxu1  ;;  %6360 = vmatmul.mubr.bf16.gmra.mrb[208].mxu0 %v6070_v30  ;;  %v17266_v38 = vld [vmem:[%s16012_s0 + $0xf8] ss:$12 sps:$4 sm:$0xff]  }
 0xb55   : > { %v13233_v47 = vpop.f32.mrb[183].mxu1  ;;  %6367 = vmatprep.mubr.bf16.mxu0 %v17260_v41 }
 0xb56   : > { %v13234_v24 = vadd.f32 %v13233_v47, %v13232_v12  ;;  %v6008_v63 = vadd.f32 %v13231_v62, %v17207_v43 }
 0xb58   : > { %v6011_v22 = vadd.f32 %v13234_v24, %v17207_v43 }
 0xb5a   : > { %v6071_v13 = vpack.c.bf16 %v6011_v22, %v6008_v63  ;;  %v13235_v29 = vpop.f32.mrb[184].mxu1 }
 0xb5b   : > { %v13236_v59 = vpop.f32.mrb[185].mxu1 }
 0xb5c   : > { %v13237_v54 = vadd.f32 %v13236_v59, %v13235_v29  ;;  %v13238_v16 = vpop.f32.mrb[186].mxu1  ;;  %6368 = vmatmul.mubr.bf16.gmra.mrb[212].mxu0 %v6071_v13  ;;  %v17272_v59 = vld [vmem:[%s16012_s0 + $0x110] ss:$12 sps:$4 sm:$0xff]  }
 0xb5d   : > { %v13239_v56 = vpop.f32.mrb[187].mxu1  ;;  %6375 = vmatprep.mubr.bf16.mxu0 %v17266_v38 }
 0xb5e   : > { %v13240_v30 = vadd.f32 %v13239_v56, %v13238_v16  ;;  %v6016_v14 = vadd.f32 %v13237_v54, %v17207_v43 }
 0xb60   : > { %v6019_v12 = vadd.f32 %v13240_v30, %v17207_v43 }
 0xb62   : > { %v6072_v62 = vpack.c.bf16 %v6019_v12, %v6016_v14  ;;  %v13241_v47 = vpop.f32.mrb[188].mxu1 }
 0xb63   : > { %v13242_v24 = vpop.f32.mrb[189].mxu1 }
 0xb64   : > { %v13243_v63 = vadd.f32 %v13242_v24, %v13241_v47  ;;  %v13244_v22 = vpop.f32.mrb[190].mxu1  ;;  %6376 = vmatmul.mubr.bf16.gmra.mrb[216].mxu0 %v6072_v62  ;;  %v17278_v24 = vld [vmem:[%s16012_s0 + $0x128] ss:$12 sps:$4 sm:$0xff]  }
 0xb65   : > { %v13245_v29 = vpop.f32.mrb[191].mxu1  ;;  %6383 = vmatprep.mubr.bf16.mxu0 %v17272_v59 }
 0xb66   : > { %v13246_v13 = vadd.f32 %v13245_v29, %v13244_v22  ;;  %v6024_v15 = vadd.f32 %v13243_v63, %v17207_v43 }
 0xb68   : > { %v6027_v16 = vadd.f32 %v13246_v13, %v17207_v43 }
 0xb6a   : > { %v6073_v54 = vpack.c.bf16 %v6027_v16, %v6024_v15  ;;  %v13247_v56 = vpop.f32.mrb[192].mxu1 }
 0xb6b   : > { %v13248_v30 = vpop.f32.mrb[193].mxu1 }
 0xb6c   : > { %v13249_v14 = vadd.f32 %v13248_v30, %v13247_v56  ;;  %v13250_v12 = vpop.f32.mrb[194].mxu1  ;;  %6384 = vmatmul.mubr.bf16.gmra.mrb[220].mxu0 %v6073_v54  ;;  %v17284_v30 = vld [vmem:[%s16012_s0 + $0x140] ss:$12 sps:$4 sm:$0xff]  }
 0xb6d   : > { %v13251_v47 = vpop.f32.mrb[195].mxu1  ;;  %6391 = vmatprep.mubr.bf16.mxu0 %v17278_v24 }
 0xb6e   : > { %v13252_v62 = vadd.f32 %v13251_v47, %v13250_v12  ;;  %v6032_v42 = vadd.f32 %v13249_v14, %v17207_v43 }
 0xb70   : > { %v6035_v22 = vadd.f32 %v13252_v62, %v17207_v43 }
 0xb72   : > { %v6074_v63 = vpack.c.bf16 %v6035_v22, %v6032_v42  ;;  %v13253_v29 = vpop.f32.mrb[196].mxu1 }
 0xb73   : > { %v13254_v13 = vpop.f32.mrb[197].mxu1 }
 0xb74   : > { %v13255_v15 = vadd.f32 %v13254_v13, %v13253_v29  ;;  %v13256_v16 = vpop.f32.mrb[198].mxu1  ;;  %6392 = vmatmul.mubr.bf16.gmra.mrb[224].mxu0 %v6074_v63  ;;  %v17290_v13 = vld [vmem:[%s16012_s0 + $0x158] ss:$12 sps:$4 sm:$0xff]  }
 0xb75   : > { %v13257_v56 = vpop.f32.mrb[199].mxu1  ;;  %6399 = vmatprep.mubr.bf16.mxu0 %v17284_v30 }
 0xb76   : > { %v13258_v54 = vadd.f32 %v13257_v56, %v13256_v16  ;;  %v6040_v34 = vadd.f32 %v13255_v15, %v17207_v43 }
 0xb78   : > { %v6043_v12 = vadd.f32 %v13258_v54, %v17207_v43 }
 0xb7a   : > { %v6075_v14 = vpack.c.bf16 %v6043_v12, %v6040_v34  ;;  %v13259_v47 = vpop.f32.mrb[200].mxu1 }
 0xb7b   : > { %v13260_v62 = vpop.f32.mrb[201].mxu1 }
 0xb7c   : > { %v13261_v42 = vadd.f32 %v13260_v62, %v13259_v47  ;;  %v13262_v22 = vpop.f32.mrb[202].mxu1  ;;  %6400 = vmatmul.mubr.bf16.gmra.mrb[228].mxu0 %v6075_v14  ;;  %v17296_v62 = vld [vmem:[%s16012_s0 + $0x170] ss:$12 sps:$4 sm:$0xff]  }
 0xb7d   : > { %v13263_v29 = vpop.f32.mrb[203].mxu1  ;;  %6407 = vmatprep.mubr.bf16.mxu0 %v17290_v13 }
 0xb7e   : > { %v13264_v63 = vadd.f32 %v13263_v29, %v13262_v22  ;;  %v6048_v2 = vadd.f32 %v13261_v42, %v17207_v43  ;;  %v17302_v29 = vld [vmem:[%s16012_s0 + $0x8] ss:$12 sps:$4 sm:$0xff]  }
 0xb80   : > { %v6051_v15 = vadd.f32 %v13264_v63, %v17207_v43  ;;  %v14865_v63 = vld [vmem:[#allocation7 + $0x800] sm:$0xff]  }
 0xb82   : > { %v6076_v16 = vpack.c.bf16 %v6051_v15, %v6048_v2  ;;  %v13265_v56 = vpop.f32.mrb[204].mxu1  ;;  %v14864_v2 = vld [vmem:[#allocation7 + $0x840] sm:$0xff]   ;;  %v14866_v15 = vld [vmem:[#allocation7 + $0x848] sm:$0xff]  }
 0xb83   : > { %v13266_v34 = vpop.f32.mrb[205].mxu1  ;;  %13495 = vmatprep.subr.bf16.mxu0 %v14864_v2 }
 0xb84   : > { %v13267_v54 = vadd.f32 %v13266_v34, %v13265_v56  ;;  %v13268_v12 = vpop.f32.mrb[206].mxu1  ;;  %6408 = vmatmul.mubr.bf16.gmra.mrb[232].mxu0 %v6076_v16  ;;  %v14867_v16 = vld [vmem:[#allocation7 + $0x808] sm:$0xff]  }
 0xb85   : > { %v13269_v47 = vpop.f32.mrb[207].mxu1  ;;  %6415 = vmatprep.mubr.bf16.mxu0 %v17296_v62  ;;  %13496 = vmatpush3.bf16.msra.mxu0 %v14865_v63 }
 0xb86   : > { %v13270_v14 = vadd.f32 %v13269_v47, %v13268_v12  ;;  %v6056_v8 = vadd.f32 %v13267_v54, %v17207_v43  ;;  %13497 = vmatprep.subr.bf16.mxu0 %v14866_v15  ;;  %v14868_v47 = vld [vmem:[#allocation7 + $0x850] sm:$0xff]   ;;  %v14872_v15 = vld [vmem:[#allocation7 + $0x860] sm:$0xff]  }
 0xb88   : > { %v6059_v22 = vadd.f32 %v13270_v14, %v17207_v43  ;;  %v14869_v43 = vld [vmem:[#allocation7 + $0x810] sm:$0xff]   ;;  %v17305_v14 = vld [vmem:[#allocation9 + $0xe] ss:$0 sm:$0xff] }
 0xb89   : > { %13498 = vmatpush3.bf16.msra.mxu0 %v14867_v16 }
 0xb8a   : > { %v6077_v42 = vpack.c.bf16 %v6059_v22, %v6056_v8  ;;  %v14870_v8 = vld [vmem:[#allocation7 + $0x858] sm:$0xff]   ;;  %13499 = vmatprep.subr.bf16.mxu0 %v14868_v47 }
 0xb8c   : > { %6416 = vmatmul.mubr.bf16.gmra.mrb[236].mxu0 %v6077_v42 }
 0xb8d   : > { %7019 = vmatprep.mubr.bf16.mxu0 %v17302_v29  ;;  %13500 = vmatpush3.bf16.msra.mxu0 %v14869_v43 }
 0xb8e   : > { %13501 = vmatprep.subr.bf16.mxu0 %v14870_v8 }
 0xb91   : > { %13502 = vmatpush3.bf16.msra.mxu0 %v14871_v23 }
 0xb92   : > { %13503 = vmatprep.subr.bf16.mxu0 %v14872_v15 }
 0xbe7   : > { %v13287_v56 = vpop.f32.mrb[176].mxu0 }
 0xbe8   : > { %v13288_v34 = vpop.f32.mrb[177].mxu0 }
 0xbe9   : > { %v13289_v12 = vadd.f32 %v13288_v34, %v13287_v56  ;;  %v13290_v54 = vpop.f32.mrb[178].mxu0  ;;  %v14873_v34 = vld [vmem:[#allocation7 + $0x820] sm:$0xff]  }
 0xbea   : > { %v13291_v22 = vpop.f32.mrb[179].mxu0  ;;  %13504 = vmatpush3.bf16.msra.mxu0 %v14873_v34 }
 0xbeb   : > { %v13292_v42 = vadd.f32 %v13291_v22, %v13290_v54  ;;  %v6298_v2 = vadd.f32 %v13289_v12, %v17305_v14  ;;  %v14875_v12 = vld [vmem:[#allocation7 + $0x828] sm:$0xff]   ;;  %13505 = vmatprep.subr.bf16.mxu0 %v14874_v46  ;;  %v14876_v22 = vld [vmem:[#allocation7 + $0x870] sm:$0xff]  }
 0xbed   : > { %v6301_v63 = vadd.f32 %v13292_v42, %v17305_v14 }
 0xbee   : > { %13506 = vmatpush3.bf16.msra.mxu0 %v14875_v12 }
 0xbef   : > { %v6424_v16 = vpack.c.bf16 %v6301_v63, %v6298_v2  ;;  %v13293_v25 = vpop.f32.mrb[180].mxu0  ;;  %13507 = vmatprep.subr.bf16.mxu0 %v14876_v22 }
 0xbf0   : > { %v13294_v56 = vpop.f32.mrb[181].mxu0 }
 0xbf1   : > { %v13295_v20 = vadd.f32 %v13294_v56, %v13293_v25  ;;  %v13296_v39 = vpop.f32.mrb[182].mxu0  ;;  %6658 = vmatmul.mubr.bf16.vlgmr.msra.gmra.mrb[208].mxu1 %v6424_v16  ;;  %v14877_v25 = vld [vmem:[#allocation7 + $0x830] sm:$0xff]   ;;  %v14878_v16 = vld [vmem:[#allocation7 + $0x878] sm:$0xff]  }
 0xbf2   : > { %v13297_v54 = vpop.f32.mrb[183].mxu0  ;;  %6665 = vmatprep.mubr.bf16.mxu1 %v17212_v55  ;;  %13508 = vmatpush3.bf16.msra.mxu0 %v14877_v25 }
 0xbf3   : > { %v13298_v47 = vadd.f32 %v13297_v54, %v13296_v39  ;;  %v6306_v43 = vadd.f32 %v13295_v20, %v17305_v14  ;;  %v14879_v20 = vld [vmem:[#allocation7 + $0x838] sm:$0xff]   ;;  %13509 = vmatprep.subr.bf16.mxu0 %v14878_v16 }
 0xbf5   : > { %v6309_v8 = vadd.f32 %v13298_v47, %v17305_v14 }
 0xbf6   : > { %13510 = vmatpush3.bf16.msra.mxu0 %v14879_v20 }
 0xbf7   : > { %v6425_v42 = vpack.c.bf16 %v6309_v8, %v6306_v43  ;;  %v13299_v23 = vpop.f32.mrb[184].mxu0 }
 0xbf8   : > { %v13300_v2 = vpop.f32.mrb[185].mxu0 }
 0xbf9   : > { %v13301_v63 = vadd.f32 %v13300_v2, %v13299_v23  ;;  %v13302_v15 = vpop.f32.mrb[186].mxu0  ;;  %6666 = vmatmul.mubr.bf16.gmra.mrb[212].mxu1 %v6425_v42 }
 0xbfa   : > { %v13303_v56 = vpop.f32.mrb[187].mxu0  ;;  %6673 = vmatprep.mubr.bf16.mxu1 %v17218_v35 }
 0xbfb   : > { %v13304_v39 = vadd.f32 %v13303_v56, %v13302_v15  ;;  %v6314_v34 = vadd.f32 %v13301_v63, %v17305_v14 }
 0xbfd   : > { %v6317_v46 = vadd.f32 %v13304_v39, %v17305_v14 }
 0xbff   : > { %v6426_v54 = vpack.c.bf16 %v6317_v46, %v6314_v34  ;;  %v13305_v47 = vpop.f32.mrb[188].mxu0 }
 0xc00   : > { %v13306_v12 = vpop.f32.mrb[189].mxu0 }
 0xc01   : > { %v13307_v43 = vadd.f32 %v13306_v12, %v13305_v47  ;;  %v13308_v8 = vpop.f32.mrb[190].mxu0  ;;  %6674 = vmatmul.mubr.bf16.gmra.mrb[216].mxu1 %v6426_v54 }
 0xc02   : > { %v13309_v22 = vpop.f32.mrb[191].mxu0  ;;  %6681 = vmatprep.mubr.bf16.mxu1 %v17224_v51 }
 0xc03   : > { %v13310_v42 = vadd.f32 %v13309_v22, %v13308_v8  ;;  %v6322_v23 = vadd.f32 %v13307_v43, %v17305_v14 }
 0xc05   : > { %v6325_v2 = vadd.f32 %v13310_v42, %v17305_v14 }
 0xc07   : > { %v6427_v25 = vpack.c.bf16 %v6325_v2, %v6322_v23  ;;  %v13311_v63 = vpop.f32.mrb[192].mxu0 }
 0xc08   : > { %v13312_v15 = vpop.f32.mrb[193].mxu0 }
 0xc09   : > { %v13313_v56 = vadd.f32 %v13312_v15, %v13311_v63  ;;  %v13314_v16 = vpop.f32.mrb[194].mxu0  ;;  %6682 = vmatmul.mubr.bf16.gmra.mrb[220].mxu1 %v6427_v25 }
 0xc0a   : > { %v13315_v39 = vpop.f32.mrb[195].mxu0  ;;  %6689 = vmatprep.mubr.bf16.mxu1 %v17230_v52 }
 0xc0b   : > { %v13316_v20 = vadd.f32 %v13315_v39, %v13314_v16  ;;  %v6330_v34 = vadd.f32 %v13313_v56, %v17305_v14 }
 0xc0d   : > { %v6333_v46 = vadd.f32 %v13316_v20, %v17305_v14 }
 0xc0f   : > { %v6428_v54 = vpack.c.bf16 %v6333_v46, %v6330_v34  ;;  %v13317_v47 = vpop.f32.mrb[196].mxu0 }
 0xc10   : > { %v13318_v12 = vpop.f32.mrb[197].mxu0 }
 0xc11   : > { %v13319_v43 = vadd.f32 %v13318_v12, %v13317_v47  ;;  %v13320_v8 = vpop.f32.mrb[198].mxu0  ;;  %6690 = vmatmul.mubr.bf16.gmra.mrb[224].mxu1 %v6428_v54 }
 0xc12   : > { %v13321_v22 = vpop.f32.mrb[199].mxu0  ;;  %6697 = vmatprep.mubr.bf16.mxu1 %v17236_v57 }
 0xc13   : > { %v13322_v42 = vadd.f32 %v13321_v22, %v13320_v8  ;;  %v6338_v23 = vadd.f32 %v13319_v43, %v17305_v14 }
 0xc15   : > { %v6341_v2 = vadd.f32 %v13322_v42, %v17305_v14 }
 0xc17   : > { %v6429_v25 = vpack.c.bf16 %v6341_v2, %v6338_v23  ;;  %v13323_v63 = vpop.f32.mrb[200].mxu0 }
 0xc18   : > { %v13324_v15 = vpop.f32.mrb[201].mxu0 }
 0xc19   : > { %v13325_v56 = vadd.f32 %v13324_v15, %v13323_v63  ;;  %v13326_v16 = vpop.f32.mrb[202].mxu0  ;;  %6698 = vmatmul.mubr.bf16.gmra.mrb[228].mxu1 %v6429_v25 }
 0xc1a   : > { %v13327_v39 = vpop.f32.mrb[203].mxu0  ;;  %6705 = vmatprep.mubr.bf16.mxu1 %v17242_v5 }
 0xc1b   : > { %v13328_v20 = vadd.f32 %v13327_v39, %v13326_v16  ;;  %v6346_v34 = vadd.f32 %v13325_v56, %v17305_v14 }
 0xc1d   : > { %v6349_v46 = vadd.f32 %v13328_v20, %v17305_v14 }
 0xc1f   : > { %v6430_v54 = vpack.c.bf16 %v6349_v46, %v6346_v34  ;;  %v13329_v47 = vpop.f32.mrb[204].mxu0 }
 0xc20   : > { %v13330_v12 = vpop.f32.mrb[205].mxu0 }
 0xc21   : > { %v13331_v43 = vadd.f32 %v13330_v12, %v13329_v47  ;;  %v13332_v8 = vpop.f32.mrb[206].mxu0  ;;  %6706 = vmatmul.mubr.bf16.gmra.mrb[232].mxu1 %v6430_v54 }
 0xc22   : > { %v13333_v22 = vpop.f32.mrb[207].mxu0  ;;  %6713 = vmatprep.mubr.bf16.mxu1 %v17248_v48 }
 0xc23   : > { %v13334_v42 = vadd.f32 %v13333_v22, %v13332_v8  ;;  %v6354_v23 = vadd.f32 %v13331_v43, %v17305_v14 }
 0xc25   : > { %v6357_v2 = vadd.f32 %v13334_v42, %v17305_v14 }
 0xc27   : > { %v6431_v25 = vpack.c.bf16 %v6357_v2, %v6354_v23  ;;  %v13335_v63 = vpop.f32.mrb[208].mxu0 }
 0xc28   : > { %v13336_v15 = vpop.f32.mrb[209].mxu0 }
 0xc29   : > { %v13337_v56 = vadd.f32 %v13336_v15, %v13335_v63  ;;  %v13338_v16 = vpop.f32.mrb[210].mxu0  ;;  %6714 = vmatmul.mubr.bf16.gmra.mrb[236].mxu1 %v6431_v25 }
 0xc2a   : > { %v13339_v39 = vpop.f32.mrb[211].mxu0  ;;  %6721 = vmatprep.mubr.bf16.mxu1 %v17254_v44 }
 0xc2b   : > { %v13340_v20 = vadd.f32 %v13339_v39, %v13338_v16  ;;  %v6362_v34 = vadd.f32 %v13337_v56, %v17305_v14 }
 0xc2d   : > { %v6365_v46 = vadd.f32 %v13340_v20, %v17305_v14 }
 0xc2f   : > { %v6432_v54 = vpack.c.bf16 %v6365_v46, %v6362_v34  ;;  %v13341_v47 = vpop.f32.mrb[212].mxu0 }
 0xc30   : > { %v13342_v12 = vpop.f32.mrb[213].mxu0 }
 0xc31   : > { %v13343_v43 = vadd.f32 %v13342_v12, %v13341_v47  ;;  %v13344_v8 = vpop.f32.mrb[214].mxu0  ;;  %6722 = vmatmul.mubr.bf16.gmra.mrb[240].mxu1 %v6432_v54 }
 0xc32   : > { %v13345_v22 = vpop.f32.mrb[215].mxu0  ;;  %6729 = vmatprep.mubr.bf16.mxu1 %v17260_v41 }
 0xc33   : > { %v13346_v42 = vadd.f32 %v13345_v22, %v13344_v8  ;;  %v6370_v23 = vadd.f32 %v13343_v43, %v17305_v14 }
 0xc35   : > { %v6373_v2 = vadd.f32 %v13346_v42, %v17305_v14 }
 0xc37   : > { %v6433_v25 = vpack.c.bf16 %v6373_v2, %v6370_v23  ;;  %v13347_v63 = vpop.f32.mrb[216].mxu0 }
 0xc38   : > { %v13348_v15 = vpop.f32.mrb[217].mxu0 }
 0xc39   : > { %v13349_v56 = vadd.f32 %v13348_v15, %v13347_v63  ;;  %v13350_v16 = vpop.f32.mrb[218].mxu0  ;;  %6730 = vmatmul.mubr.bf16.gmra.mrb[244].mxu1 %v6433_v25 }
 0xc3a   : > { %v13351_v39 = vpop.f32.mrb[219].mxu0  ;;  %6737 = vmatprep.mubr.bf16.mxu1 %v17266_v38 }
 0xc3b   : > { %v13352_v20 = vadd.f32 %v13351_v39, %v13350_v16  ;;  %v6378_v34 = vadd.f32 %v13349_v56, %v17305_v14 }
 0xc3d   : > { %v6381_v46 = vadd.f32 %v13352_v20, %v17305_v14 }
 0xc3f   : > { %v6434_v54 = vpack.c.bf16 %v6381_v46, %v6378_v34  ;;  %v13353_v47 = vpop.f32.mrb[220].mxu0 }
 0xc40   : > { %v13354_v12 = vpop.f32.mrb[221].mxu0 }
 0xc41   : > { %v13355_v43 = vadd.f32 %v13354_v12, %v13353_v47  ;;  %v13356_v8 = vpop.f32.mrb[222].mxu0  ;;  %6738 = vmatmul.mubr.bf16.gmra.mrb[248].mxu1 %v6434_v54 }
 0xc42   : > { %v13357_v22 = vpop.f32.mrb[223].mxu0  ;;  %6745 = vmatprep.mubr.bf16.mxu1 %v17272_v59 }
 0xc43   : > { %v13358_v42 = vadd.f32 %v13357_v22, %v13356_v8  ;;  %v6386_v23 = vadd.f32 %v13355_v43, %v17305_v14 }
 0xc45   : > { %v6389_v2 = vadd.f32 %v13358_v42, %v17305_v14 }
 0xc47   : > { %v6435_v25 = vpack.c.bf16 %v6389_v2, %v6386_v23  ;;  %v13359_v63 = vpop.f32.mrb[224].mxu0 }
 0xc48   : > { %v13360_v15 = vpop.f32.mrb[225].mxu0 }
 0xc49   : > { %v13361_v56 = vadd.f32 %v13360_v15, %v13359_v63  ;;  %v13362_v16 = vpop.f32.mrb[226].mxu0  ;;  %6746 = vmatmul.mubr.bf16.gmra.mrb[252].mxu1 %v6435_v25 }
 0xc4a   : > { %v13363_v39 = vpop.f32.mrb[227].mxu0  ;;  %6753 = vmatprep.mubr.bf16.mxu1 %v17278_v24 }
 0xc4b   : > { %v13364_v20 = vadd.f32 %v13363_v39, %v13362_v16  ;;  %v6394_v34 = vadd.f32 %v13361_v56, %v17305_v14 }
 0xc4d   : > { %v6397_v46 = vadd.f32 %v13364_v20, %v17305_v14 }
 0xc4f   : > { %v6436_v54 = vpack.c.bf16 %v6397_v46, %v6394_v34  ;;  %v13365_v47 = vpop.f32.mrb[228].mxu0 }
 0xc50   : > { %v13366_v12 = vpop.f32.mrb[229].mxu0 }
 0xc51   : > { %v13367_v43 = vadd.f32 %v13366_v12, %v13365_v47  ;;  %v13368_v8 = vpop.f32.mrb[230].mxu0  ;;  %6754 = vmatmul.mubr.bf16.gmra.mrb[0].mxu1 %v6436_v54 }
 0xc52   : > { %v13369_v22 = vpop.f32.mrb[231].mxu0  ;;  %6761 = vmatprep.mubr.bf16.mxu1 %v17284_v30 }
 0xc53   : > { %v13370_v42 = vadd.f32 %v13369_v22, %v13368_v8  ;;  %v6402_v23 = vadd.f32 %v13367_v43, %v17305_v14 }
 0xc55   : > { %v6405_v2 = vadd.f32 %v13370_v42, %v17305_v14 }
 0xc57   : > { %v6437_v25 = vpack.c.bf16 %v6405_v2, %v6402_v23  ;;  %v13371_v63 = vpop.f32.mrb[232].mxu0 }
 0xc58   : > { %v13372_v15 = vpop.f32.mrb[233].mxu0 }
 0xc59   : > { %v13373_v56 = vadd.f32 %v13372_v15, %v13371_v63  ;;  %v13374_v16 = vpop.f32.mrb[234].mxu0  ;;  %6762 = vmatmul.mubr.bf16.gmra.mrb[4].mxu1 %v6437_v25  ;;  %v14880_v63 = vld [vmem:[#allocation7 + $0x8c0] sm:$0xff]  }
 0xc5a   : > { %v13375_v39 = vpop.f32.mrb[235].mxu0  ;;  %6769 = vmatprep.mubr.bf16.mxu1 %v17290_v13  ;;  %v14881_v15 = vld [vmem:[#allocation7 + $0x880] sm:$0xff]   ;;  %13607 = vmatprep.subr.bf16.mxu1 %v14880_v63 }
 0xc5b   : > { %v13376_v20 = vadd.f32 %v13375_v39, %v13374_v16  ;;  %v6410_v34 = vadd.f32 %v13373_v56, %v17305_v14  ;;  %v14882_v56 = vld [vmem:[#allocation10 + $0x40] sm:$0xff]   ;;  %13608 = vmatpush3.bf16.msra.mxu1 %v14881_v15  ;;  %v14888_v16 = vld [vmem:[#allocation7 + $0x8c8] sm:$0xff]  }
 0xc5c   : > { %13719 = vmatprep.subr.bf16.mxu0 %v14882_v56  ;;  %v14890_v39 = vld [vmem:[#allocation7 + $0x888] sm:$0xff]   ;;  %13609 = vmatprep.subr.bf16.mxu1 %v14888_v16 }
 0xc5d   : > { %v6413_v46 = vadd.f32 %v13376_v20, %v17305_v14 }
 0xc5f   : > { %v6438_v54 = vpack.c.bf16 %v6413_v46, %v6410_v34  ;;  %v13377_v47 = vpop.f32.mrb[236].mxu0  ;;  %13610 = vmatpush3.bf16.msra.mxu1 %v14890_v39  ;;  %v14885_v39 = vld [vmem:[#allocation10 + $0x8] sm:$0xff]  }
 0xc60   : > { %v13378_v12 = vpop.f32.mrb[237].mxu0 }
 0xc61   : > { %v13379_v43 = vadd.f32 %v13378_v12, %v13377_v47  ;;  %v13380_v8 = vpop.f32.mrb[238].mxu0  ;;  %6770 = vmatmul.mubr.bf16.gmra.mrb[8].mxu1 %v6438_v54  ;;  %v17355_v47 = vld [vmem:[#allocation9 + $0xf] ss:$0 sm:$0xff]  ;;  %v14898_v12 = vld [vmem:[#allocation7 + $0x8d0] sm:$0xff]  }
 0xc62   : > { %v13381_v22 = vpop.f32.mrb[239].mxu0  ;;  %6777 = vmatprep.mubr.bf16.mxu1 %v17296_v62  ;;  %13611 = vmatprep.subr.bf16.mxu1 %v14898_v12 }
 0xc63   : > { %v13382_v42 = vadd.f32 %v13381_v22, %v13380_v8  ;;  %v6418_v23 = vadd.f32 %v13379_v43, %v17305_v14  ;;  %v14900_v43 = vld [vmem:[#allocation7 + $0x890] sm:$0xff]  }
 0xc64   : > { %13612 = vmatpush3.bf16.msra.mxu1 %v14900_v43 }
 0xc65   : > { %v6421_v2 = vadd.f32 %v13382_v42, %v17305_v14  ;;  %v14883_v42 = vld [vmem:[#allocation10] sm:$0xff]  }
 0xc67   : > { %v6439_v25 = vpack.c.bf16 %v6421_v2, %v6418_v23 }
 0xc69   : > { %6778 = vmatmul.mubr.bf16.gmra.mrb[12].mxu1 %v6439_v25  ;;  %v14884_v25 = vld [vmem:[#allocation10 + $0x48] sm:$0xff]  }
 0xc6a   : > { %7381 = vmatprep.mubr.bf16.mxu1 %v17302_v29 }
 0xcc4   : > { %v13399_v20 = vpop.f32.mrb[208].mxu1 }
 0xcc5   : > { %v13400_v34 = vpop.f32.mrb[209].mxu1 }
 0xcc6   : > { %v13401_v46 = vadd.f32 %v13400_v34, %v13399_v20  ;;  %v13402_v54 = vpop.f32.mrb[210].mxu1  ;;  %v14886_v34 = vld [vmem:[#allocation10 + $0x50] sm:$0xff]  }
 0xcc7   : > { %v13403_v14 = vpop.f32.mrb[211].mxu1 }
 0xcc8   : > { %v13404_v29 = vadd.f32 %v13403_v14, %v13402_v54  ;;  %v6660_v8 = vadd.f32 %v13401_v46, %v17355_v47  ;;  %v14887_v14 = vld [vmem:[#allocation10 + $0x10] sm:$0xff]  }
 0xcca   : > { %v6663_v22 = vadd.f32 %v13404_v29, %v17355_v47  ;;  %v14889_v29 = vld [vmem:[#allocation10 + $0x58] sm:$0xff]  }
 0xccc   : > { %v6786_v23 = vpack.c.bf16 %v6663_v22, %v6660_v8  ;;  %v13405_v2 = vpop.f32.mrb[212].mxu1 }
 0xccd   : > { %v13406_v63 = vpop.f32.mrb[213].mxu1 }
 0xcce   : > { %v13407_v15 = vadd.f32 %v13406_v63, %v13405_v2  ;;  %v13408_v56 = vpop.f32.mrb[214].mxu1  ;;  %7020 = vmatmul.mubr.bf16.vlgmr.msra.gmra.mrb[240].mxu0 %v6786_v23  ;;  %v14902_v2 = vld [vmem:[#allocation7 + $0x8d8] sm:$0xff]  }
 0xccf   : > { %v13409_v16 = vpop.f32.mrb[215].mxu1  ;;  %7027 = vmatprep.mubr.bf16.mxu0 %v17212_v55  ;;  %13720 = vmatpush3.bf16.msra.mxu0 %v14883_v42  ;;  %v14891_v42 = vld [vmem:[#allocation10 + $0x18] sm:$0xff]  }
 0xcd0   : > { %v13410_v20 = vadd.f32 %v13409_v16, %v13408_v56  ;;  %13721 = vmatprep.subr.bf16.mxu0 %v14884_v25  ;;  %v6668_v46 = vadd.f32 %v13407_v15, %v17355_v47  ;;  %v14903_v25 = vld [vmem:[#allocation7 + $0x898] sm:$0xff]   ;;  %13613 = vmatprep.subr.bf16.mxu1 %v14902_v2 }
 0xcd1   : > { %v14892_v15 = vld [vmem:[#allocation10 + $0x60] sm:$0xff]   ;;  %13614 = vmatpush3.bf16.msra.mxu1 %v14903_v25  ;;  %v14899_v25 = vld [vmem:[#allocation10 + $0x78] sm:$0xff]  }
 0xcd2   : > { %v6671_v54 = vadd.f32 %v13410_v20, %v17355_v47 }
 0xcd3   : > { %13722 = vmatpush3.bf16.msra.mxu0 %v14885_v39  ;;  %v14893_v39 = vld [vmem:[#allocation10 + $0x20] sm:$0xff]  }
 0xcd4   : > { %v6787_v12 = vpack.c.bf16 %v6671_v54, %v6668_v46  ;;  %v13411_v43 = vpop.f32.mrb[216].mxu1  ;;  %13723 = vmatprep.subr.bf16.mxu0 %v14886_v34  ;;  %v14894_v46 = vld [vmem:[#allocation10 + $0x68] sm:$0xff]  }
 0xcd5   : > { %v13412_v8 = vpop.f32.mrb[217].mxu1 }
 0xcd6   : > { %v13413_v22 = vadd.f32 %v13412_v8, %v13411_v43  ;;  %v13414_v23 = vpop.f32.mrb[218].mxu1  ;;  %7028 = vmatmul.mubr.bf16.gmra.mrb[244].mxu0 %v6787_v12  ;;  %v14895_v43 = vld [vmem:[#allocation10 + $0x28] sm:$0xff]   ;;  %v14896_v8 = vld [vmem:[#allocation10 + $0x70] sm:$0xff]  }
 0xcd7   : > { %v13415_v55 = vpop.f32.mrb[219].mxu1  ;;  %7035 = vmatprep.mubr.bf16.mxu0 %v17218_v35  ;;  %13724 = vmatpush3.bf16.msra.mxu0 %v14887_v14 }
 0xcd8   : > { %v13416_v63 = vadd.f32 %v13415_v55, %v13414_v23  ;;  %13725 = vmatprep.subr.bf16.mxu0 %v14889_v29  ;;  %v6676_v56 = vadd.f32 %v13413_v22, %v17355_v47  ;;  %v14897_v55 = vld [vmem:[#allocation10 + $0x30] sm:$0xff]  }
 0xcda   : > { %v6679_v16 = vadd.f32 %v13416_v63, %v17355_v47 }
 0xcdb   : > { %13726 = vmatpush3.bf16.msra.mxu0 %v14891_v42 }
 0xcdc   : > { %v6788_v20 = vpack.c.bf16 %v6679_v16, %v6676_v56  ;;  %v13417_v34 = vpop.f32.mrb[220].mxu1  ;;  %13727 = vmatprep.subr.bf16.mxu0 %v14892_v15  ;;  %v14901_v16 = vld [vmem:[#allocation10 + $0x38] sm:$0xff]  }
 0xcdd   : > { %v13418_v35 = vpop.f32.mrb[221].mxu1 }
 0xcde   : > { %v13419_v54 = vadd.f32 %v13418_v35, %v13417_v34  ;;  %v13420_v14 = vpop.f32.mrb[222].mxu1  ;;  %7036 = vmatmul.mubr.bf16.gmra.mrb[248].mxu0 %v6788_v20  ;;  %v14905_v20 = vld [vmem:[#allocation7 + $0x8a0] sm:$0xff]  }
 0xcdf   : > { %v13421_v12 = vpop.f32.mrb[223].mxu1  ;;  %7043 = vmatprep.mubr.bf16.mxu0 %v17224_v51  ;;  %13728 = vmatpush3.bf16.msra.mxu0 %v14893_v39  ;;  %v14904_v39 = vld [vmem:[#allocation7 + $0x8e0] sm:$0xff]  }
 0xce0   : > { %v13422_v29 = vadd.f32 %v13421_v12, %v13420_v14  ;;  %13729 = vmatprep.subr.bf16.mxu0 %v14894_v46  ;;  %v6684_v22 = vadd.f32 %v13419_v54, %v17355_v47  ;;  %13615 = vmatprep.subr.bf16.mxu1 %v14904_v39 }
 0xce1   : > { %13616 = vmatpush3.bf16.msra.mxu1 %v14905_v20 }
 0xce2   : > { %v6687_v23 = vadd.f32 %v13422_v29, %v17355_v47 }
 0xce3   : > { %13730 = vmatpush3.bf16.msra.mxu0 %v14895_v43 }
 0xce4   : > { %v6789_v42 = vpack.c.bf16 %v6687_v23, %v6684_v22  ;;  %v13423_v2 = vpop.f32.mrb[224].mxu1  ;;  %13731 = vmatprep.subr.bf16.mxu0 %v14896_v8 }
 0xce5   : > { %v13424_v63 = vpop.f32.mrb[225].mxu1 }
 0xce6   : > { %v13425_v15 = vadd.f32 %v13424_v63, %v13423_v2  ;;  %v13426_v56 = vpop.f32.mrb[226].mxu1  ;;  %7044 = vmatmul.mubr.bf16.gmra.mrb[252].mxu0 %v6789_v42 }
 0xce7   : > { %v13427_v51 = vpop.f32.mrb[227].mxu1  ;;  %7051 = vmatprep.mubr.bf16.mxu0 %v17230_v52  ;;  %13732 = vmatpush3.bf16.msra.mxu0 %v14897_v55 }
 0xce8   : > { %v13428_v34 = vadd.f32 %v13427_v51, %v13426_v56  ;;  %13733 = vmatprep.subr.bf16.mxu0 %v14899_v25  ;;  %v6692_v46 = vadd.f32 %v13425_v15, %v17355_v47  ;;  %v14906_v56 = vld [vmem:[#allocation7 + $0x8e8] sm:$0xff]  }
 0xce9   : > { %v14907_v51 = vld [vmem:[#allocation7 + $0x8a8] sm:$0xff]   ;;  %13617 = vmatprep.subr.bf16.mxu1 %v14906_v56 }
 0xcea   : > { %v6695_v35 = vadd.f32 %v13428_v34, %v17355_v47  ;;  %13618 = vmatpush3.bf16.msra.mxu1 %v14907_v51 }
 0xceb   : > { %13734 = vmatpush3.bf16.msra.mxu0 %v14901_v16 }
 0xcec   : > { %v6790_v54 = vpack.c.bf16 %v6695_v35, %v6692_v46  ;;  %v13429_v14 = vpop.f32.mrb[228].mxu1 }
 0xced   : > { %v13430_v12 = vpop.f32.mrb[229].mxu1 }
 0xcee   : > { %v13431_v43 = vadd.f32 %v13430_v12, %v13429_v14  ;;  %v13432_v29 = vpop.f32.mrb[230].mxu1  ;;  %7052 = vmatmul.mubr.bf16.gmra.mrb[0].mxu0 %v6790_v54 }
 0xcef   : > { %v13433_v52 = vpop.f32.mrb[231].mxu1  ;;  %7059 = vmatprep.mubr.bf16.mxu0 %v17236_v57 }
 0xcf0   : > { %v13434_v8 = vadd.f32 %v13433_v52, %v13432_v29  ;;  %v6700_v22 = vadd.f32 %v13431_v43, %v17355_v47 }
 0xcf2   : > { %v6703_v23 = vadd.f32 %v13434_v8, %v17355_v47 }
 0xcf4   : > { %v6791_v55 = vpack.c.bf16 %v6703_v23, %v6700_v22  ;;  %v13435_v42 = vpop.f32.mrb[232].mxu1 }
 0xcf5   : > { %v13436_v2 = vpop.f32.mrb[233].mxu1 }
 0xcf6   : > { %v13437_v25 = vadd.f32 %v13436_v2, %v13435_v42  ;;  %v13438_v63 = vpop.f32.mrb[234].mxu1  ;;  %7060 = vmatmul.mubr.bf16.gmra.mrb[4].mxu0 %v6791_v55  ;;  %v14908_v42 = vld [vmem:[#allocation7 + $0x8f0] sm:$0xff]  }
 0xcf7   : > { %v13439_v15 = vpop.f32.mrb[235].mxu1  ;;  %7067 = vmatprep.mubr.bf16.mxu0 %v17242_v5  ;;  %v14909_v2 = vld [vmem:[#allocation7 + $0x8b0] sm:$0xff]   ;;  %13619 = vmatprep.subr.bf16.mxu1 %v14908_v42 }
 0xcf8   : > { %v13440_v16 = vadd.f32 %v13439_v15, %v13438_v63  ;;  %v6708_v57 = vadd.f32 %v13437_v25, %v17355_v47  ;;  %13620 = vmatpush3.bf16.msra.mxu1 %v14909_v2 }
 0xcfa   : > { %v6711_v39 = vadd.f32 %v13440_v16, %v17355_v47 }
 0xcfc   : > { %v6792_v20 = vpack.c.bf16 %v6711_v39, %v6708_v57  ;;  %v13441_v34 = vpop.f32.mrb[236].mxu1 }
 0xcfd   : > { %v13442_v46 = vpop.f32.mrb[237].mxu1 }
 0xcfe   : > { %v13443_v35 = vadd.f32 %v13442_v46, %v13441_v34  ;;  %v13444_v54 = vpop.f32.mrb[238].mxu1  ;;  %7068 = vmatmul.mubr.bf16.gmra.mrb[8].mxu0 %v6792_v20 }
 0xcff   : > { %v13445_v14 = vpop.f32.mrb[239].mxu1  ;;  %7075 = vmatprep.mubr.bf16.mxu0 %v17248_v48 }
 0xd00   : > { %v13446_v12 = vadd.f32 %v13445_v14, %v13444_v54  ;;  %v6716_v5 = vadd.f32 %v13443_v35, %v17355_v47 }
 0xd02   : > { %v6719_v43 = vadd.f32 %v13446_v12, %v17355_v47 }
 0xd04   : > { %v6793_v29 = vpack.c.bf16 %v6719_v43, %v6716_v5  ;;  %v13447_v52 = vpop.f32.mrb[240].mxu1  ;;  %v14910_v43 = vld [vmem:[#allocation7 + $0x8f8] sm:$0xff]  }
 0xd05   : > { %v13448_v8 = vpop.f32.mrb[241].mxu1  ;;  %13621 = vmatprep.subr.bf16.mxu1 %v14910_v43 }
 0xd06   : > { %v13449_v22 = vadd.f32 %v13448_v8, %v13447_v52  ;;  %v13450_v23 = vpop.f32.mrb[242].mxu1  ;;  %7076 = vmatmul.mubr.bf16.gmra.mrb[12].mxu0 %v6793_v29  ;;  %v14911_v29 = vld [vmem:[#allocation7 + $0x8b8] sm:$0xff]  }
 0xd07   : > { %v13451_v55 = vpop.f32.mrb[243].mxu1  ;;  %7083 = vmatprep.mubr.bf16.mxu0 %v17254_v44  ;;  %13622 = vmatpush3.bf16.msra.mxu1 %v14911_v29 }
 0xd08   : > { %v13452_v25 = vadd.f32 %v13451_v55, %v13450_v23  ;;  %v6724_v48 = vadd.f32 %v13449_v22, %v17355_v47 }
 0xd0a   : > { %v6727_v63 = vadd.f32 %v13452_v25, %v17355_v47 }
 0xd0c   : > { %v6794_v15 = vpack.c.bf16 %v6727_v63, %v6724_v48  ;;  %v13453_v56 = vpop.f32.mrb[244].mxu1 }
 0xd0d   : > { %v13454_v51 = vpop.f32.mrb[245].mxu1 }
 0xd0e   : > { %v13455_v16 = vadd.f32 %v13454_v51, %v13453_v56  ;;  %v13456_v57 = vpop.f32.mrb[246].mxu1  ;;  %7084 = vmatmul.mubr.bf16.gmra.mrb[16].mxu0 %v6794_v15 }
 0xd0f   : > { %v13457_v39 = vpop.f32.mrb[247].mxu1  ;;  %7091 = vmatprep.mubr.bf16.mxu0 %v17260_v41 }
 0xd10   : > { %v13458_v20 = vadd.f32 %v13457_v39, %v13456_v57  ;;  %v6732_v44 = vadd.f32 %v13455_v16, %v17355_v47 }
 0xd12   : > { %v6735_v34 = vadd.f32 %v13458_v20, %v17355_v47 }
 0xd14   : > { %v6795_v46 = vpack.c.bf16 %v6735_v34, %v6732_v44  ;;  %v13459_v35 = vpop.f32.mrb[248].mxu1 }
 0xd15   : > { %v13460_v54 = vpop.f32.mrb[249].mxu1 }
 0xd16   : > { %v13461_v14 = vadd.f32 %v13460_v54, %v13459_v35  ;;  %v13462_v12 = vpop.f32.mrb[250].mxu1  ;;  %7092 = vmatmul.mubr.bf16.gmra.mrb[20].mxu0 %v6795_v46 }
 0xd17   : > { %v13463_v5 = vpop.f32.mrb[251].mxu1  ;;  %7099 = vmatprep.mubr.bf16.mxu0 %v17266_v38 }
 0xd18   : > { %v13464_v52 = vadd.f32 %v13463_v5, %v13462_v12  ;;  %v6740_v41 = vadd.f32 %v13461_v14, %v17355_v47 }
 0xd1a   : > { %v6743_v8 = vadd.f32 %v13464_v52, %v17355_v47 }
 0xd1c   : > { %v6796_v22 = vpack.c.bf16 %v6743_v8, %v6740_v41  ;;  %v13465_v23 = vpop.f32.mrb[252].mxu1 }
 0xd1d   : > { %v13466_v55 = vpop.f32.mrb[253].mxu1 }
 0xd1e   : > { %v13467_v42 = vadd.f32 %v13466_v55, %v13465_v23  ;;  %v13468_v2 = vpop.f32.mrb[254].mxu1  ;;  %7100 = vmatmul.mubr.bf16.gmra.mrb[24].mxu0 %v6796_v22 }
 0xd1f   : > { %v13469_v25 = vpop.f32.mrb[255].mxu1  ;;  %7107 = vmatprep.mubr.bf16.mxu0 %v17272_v59 }
 0xd20   : > { %v13470_v48 = vadd.f32 %v13469_v25, %v13468_v2  ;;  %v6748_v38 = vadd.f32 %v13467_v42, %v17355_v47 }
 0xd22   : > { %v6751_v63 = vadd.f32 %v13470_v48, %v17355_v47 }
 0xd24   : > { %v6797_v15 = vpack.c.bf16 %v6751_v63, %v6748_v38  ;;  %v13471_v56 = vpop.f32.mrb[0].mxu1 }
 0xd25   : > { %v13472_v51 = vpop.f32.mrb[1].mxu1 }
 0xd26   : > { %v13473_v16 = vadd.f32 %v13472_v51, %v13471_v56  ;;  %v13474_v57 = vpop.f32.mrb[2].mxu1  ;;  %7108 = vmatmul.mubr.bf16.gmra.mrb[28].mxu0 %v6797_v15 }
 0xd27   : > { %v13475_v39 = vpop.f32.mrb[3].mxu1  ;;  %7115 = vmatprep.mubr.bf16.mxu0 %v17278_v24 }
 0xd28   : > { %v13476_v20 = vadd.f32 %v13475_v39, %v13474_v57  ;;  %v6756_v44 = vadd.f32 %v13473_v16, %v17355_v47  ;;  %v18269_v57 = vpack.c.bf16 %v17070_v19, %v17067_v9  ;;  %v18270_v39 = vpack.c.bf16 %v16562_v61, %v16559_v6  ;;  %v18283_v19 = vld [vmem:[#allocation49_spill] sm:$0xff] }
 0xd29   : > { %v18274_v9 = vpack.c.bf16 %v16584_v4, %v16581_v1  ;;  %v18275_v6 = vpack.c.bf16 %v17103_v36, %v17100_v0  ;;  %v18276_v61 = vpack.c.bf16 %v16595_v3, %v16592_v17  ;;  %v18279_v1 = vpack.c.bf16 %v17123_v40, %v17120_v32  ;;  %v14914_v0 = vld [vmem:[#allocation10 + $0x140] sm:$0xff]   ;;  %v18295_v32 = vld [vmem:[#allocation52_spill] sm:$0xff] }
 0xd2a   : > { %v6759_v34 = vadd.f32 %v13476_v20, %v17355_v47  ;;  %v18271_v20 = vpack.c.bf16 %v17081_v10, %v17078_v53  ;;  %v18280_v4 = vpack.c.bf16 %v16615_v27, %v16612_v21  ;;  %v18281_v17 = vpack.c.bf16 %v17131_v28, %v17128_v37  ;;  %v18286_v53 = vld [vmem:[#allocation31_spill] sm:$0xff]  ;;  %v14912_v27 = vld [vmem:[#allocation10 + $0xc0] sm:$0xff]   ;;  %13943 = vmatprep.subr.bf16.mxu0 %v14914_v0  ;;  %v18297_v37 = vld [vmem:[#allocation36_spill] sm:$0xff] }
 0xd2b   : > { %v18282_v3 = vpack.c.bf16 %v16623_v26, %v16620_v11  ;;  %13831 = vmatprep.subr.bf16.mxu1 %v14912_v27  ;;  %v14915_v36 = vld [vmem:[#allocation10 + $0x100] sm:$0xff]   ;;  %v18298_v28 = vld [vmem:[#allocation35_spill] sm:$0xff] }
 0xd2c   : > { %v6798_v59 = vpack.c.bf16 %v6759_v34, %v6756_v44  ;;  %v13477_v46 = vpop.f32.mrb[4].mxu1  ;;  %v18292_v11 = vld [vmem:[#allocation33_spill] sm:$0xff]  ;;  %v18300_v44 = vld [vmem:[#allocation55_spill] sm:$0xff]  ;;  %v18301_v34 = vld [vmem:[#allocation54_spill] sm:$0xff] }
 0xd2d   : > { %v13478_v35 = vpop.f32.mrb[5].mxu1 }
 0xd2e   : > { %v13479_v54 = vadd.f32 %v13478_v35, %v13477_v46  ;;  %v13480_v14 = vpop.f32.mrb[6].mxu1  ;;  %7116 = vmatmul.mubr.bf16.gmra.mrb[32].mxu0 %v6798_v59  ;;  %v18302_v59 = vpack.c.bf16 %v18300_v44, %v18301_v34  ;;  %v14918_v46 = vld [vmem:[#allocation10 + $0x148] sm:$0xff]   ;;  %v14924_v34 = vld [vmem:[#allocation10 + $0xd8] sm:$0xff]  }
 0xd2f   : > { %v13481_v12 = vpop.f32.mrb[7].mxu1  ;;  %7123 = vmatprep.mubr.bf16.mxu0 %v17284_v30  ;;  %v14919_v35 = vld [vmem:[#allocation10 + $0x108] sm:$0xff]  }
 0xd30   : > { %v13482_v5 = vadd.f32 %v13481_v12, %v13480_v14  ;;  %v6764_v43 = vadd.f32 %v13479_v54, %v17355_v47  ;;  %v18303_v54 = vld [vmem:[#allocation38_spill] sm:$0xff]  ;;  %v18304_v14 = vld [vmem:[#allocation37_spill] sm:$0xff] }
 0xd31   : > { %v18305_v12 = vpack.c.bf16 %v18303_v54, %v18304_v14  ;;  %v14926_v54 = vld [vmem:[#allocation10 + $0x158] sm:$0xff]  }
 0xd32   : > { %v6767_v29 = vadd.f32 %v13482_v5, %v17355_v47  ;;  %v18306_v5 = vld [vmem:[#allocation57_spill] sm:$0xff] }
 0xd34   : > { %v6799_v24 = vpack.c.bf16 %v6767_v29, %v6764_v43  ;;  %v13483_v52 = vpop.f32.mrb[8].mxu1  ;;  %v18307_v43 = vld [vmem:[#allocation56_spill] sm:$0xff] }
 0xd35   : > { %v13484_v41 = vpop.f32.mrb[9].mxu1  ;;  %v18308_v29 = vpack.c.bf16 %v18306_v5, %v18307_v43 }
 0xd36   : > { %v13485_v8 = vadd.f32 %v13484_v41, %v13483_v52  ;;  %v13486_v22 = vpop.f32.mrb[10].mxu1  ;;  %7124 = vmatmul.mubr.bf16.gmra.mrb[36].mxu0 %v6799_v24 }
 0xd37   : > { %v13487_v23 = vpop.f32.mrb[11].mxu1  ;;  %7131 = vmatprep.mubr.bf16.mxu0 %v17290_v13 }
 0xd38   : > { %v13488_v55 = vadd.f32 %v13487_v23, %v13486_v22  ;;  %v6772_v42 = vadd.f32 %v13485_v8, %v17355_v47  ;;  %v17473_v22 = vld [vmem:[#allocation9 + $0x10] ss:$0 sm:$0xff] }
 0xd3a   : > { %v6775_v2 = vadd.f32 %v13488_v55, %v17355_v47 }
 0xd3c   : > { %v6800_v30 = vpack.c.bf16 %v6775_v2, %v6772_v42  ;;  %v13489_v25 = vpop.f32.mrb[12].mxu1  ;;  %v18309_v42 = vld [vmem:[#allocation40_spill] sm:$0xff]  ;;  %v18310_v2 = vld [vmem:[#allocation39_spill] sm:$0xff] }
 0xd3d   : > { %v13490_v48 = vpop.f32.mrb[13].mxu1 }
 0xd3e   : > { %v13491_v38 = vadd.f32 %v13490_v48, %v13489_v25  ;;  %v13492_v63 = vpop.f32.mrb[14].mxu1  ;;  %7132 = vmatmul.mubr.bf16.gmra.mrb[40].mxu0 %v6800_v30  ;;  %v18311_v30 = vpack.c.bf16 %v18309_v42, %v18310_v2  ;;  %v18330_v2 = vld [vmem:[#allocation65_spill] sm:$0xff] }
 0xd3f   : > { %v13493_v15 = vpop.f32.mrb[15].mxu1  ;;  %7139 = vmatprep.mubr.bf16.mxu0 %v17296_v62  ;;  %v18272_v62 = vpack.c.bf16 %v16573_v31, %v16570_v50  ;;  %v18277_v50 = vpack.c.bf16 %v17114_v33, %v17111_v60  ;;  %v18278_v31 = vpack.c.bf16 %v16606_v58, %v16603_v18  ;;  %v18284_v18 = vpack.c.bf16 %v17139_v7, %v18283_v19  ;;  %v18285_v58 = vld [vmem:[#allocation32_spill] sm:$0xff]  ;;  %v18291_v60 = vld [vmem:[#allocation34_spill] sm:$0xff]  ;;  %v18294_v33 = vld [vmem:[#allocation53_spill] sm:$0xff] }
 0xd40   : > { %v13494_v56 = vadd.f32 %v13493_v15, %v13492_v63  ;;  %v6780_v51 = vadd.f32 %v13491_v38, %v17355_v47  ;;  %v18287_v10 = vpack.c.bf16 %v18285_v58, %v18286_v53  ;;  %v18293_v26 = vpack.c.bf16 %v18291_v60, %v18292_v11  ;;  %v18312_v38 = vld [vmem:[#allocation59_spill] sm:$0xff]  ;;  %v18313_v63 = vld [vmem:[#allocation58_spill] sm:$0xff]  ;;  %v18319_v58 = vld [vmem:[#allocation60_spill] sm:$0xff] }
 0xd41   : > { %v18296_v40 = vpack.c.bf16 %v18294_v33, %v18295_v32  ;;  %v18299_v7 = vpack.c.bf16 %v18297_v37, %v18298_v28  ;;  %v18314_v15 = vpack.c.bf16 %v18312_v38, %v18313_v63  ;;  %v15151_v60 = vld [vmem:[%s16012_s0 + $0x38] ss:$12 sps:$4 sm:$0xff]   ;;  %v18322_v33 = vld [vmem:[#allocation43_spill] sm:$0xff] }
 0xd42   : > { %v6783_v16 = vadd.f32 %v13494_v56, %v17355_v47  ;;  %v18273_v47 = vpack.c.bf16 %v17092_v45, %v17089_v49  ;;  %v18288_v49 = vld [vmem:[#allocation51_spill] sm:$0xff]  ;;  %v18289_v45 = vld [vmem:[#allocation50_spill] sm:$0xff] }
 0xd43   : > { %v18290_v21 = vpack.c.bf16 %v18288_v49, %v18289_v45  ;;  %v14913_v56 = vld [vmem:[#allocation10 + $0x80] sm:$0xff]   ;;  %v18324_v28 = vld [vmem:[#allocation63_spill] sm:$0xff] }
 0xd44   : > { %v6801_v13 = vpack.c.bf16 %v6783_v16, %v6780_v51 }
 0xd46   : > { %7140 = vmatmul.mubr.bf16.gmra.mrb[44].mxu0 %v6801_v13  ;;  %v14916_v13 = vld [vmem:[#allocation10 + $0xc8] sm:$0xff]  }
 0xd47   : > { %8429 = vmatprep.mubr.bf16.mxu0 %v18269_v57  ;;  %v14922_v57 = vld [vmem:[#allocation10 + $0x150] sm:$0xff]  }
 0xd4e   : > { %8430 = vmatmul.mubr.bf16.vlgmr.msra.gmra.mrb[48].mxu0 %v18270_v39 }
 0xd4f   : > { %8437 = vmatprep.mubr.bf16.mxu0 %v18271_v20  ;;  %13944 = vmatpush3.bf16.msra.mxu0 %v14915_v36 }
 0xd50   : > { %13945 = vmatprep.subr.bf16.mxu0 %v14918_v46 }
 0xd53   : > { %13946 = vmatpush3.bf16.msra.mxu0 %v14919_v35 }
 0xd54   : > { %13947 = vmatprep.subr.bf16.mxu0 %v14922_v57  ;;  %v18333_v57 = vld [vmem:[#allocation48_spill] sm:$0xff] }
 0xd56   : > { %8438 = vmatmul.mubr.bf16.gmra.mrb[52].mxu0 %v18272_v62 }
 0xd57   : > { %8445 = vmatprep.mubr.bf16.mxu0 %v18273_v47 }
 0xd5e   : > { %8446 = vmatmul.mubr.bf16.gmra.mrb[56].mxu0 %v18274_v9  ;;  %v15150_v9 = vld [vmem:[%s16012_s0 + $0x20] ss:$12 sps:$4 sm:$0xff]  }
 0xd5f   : > { %8453 = vmatprep.mubr.bf16.mxu0 %v18275_v6  ;;  %v14917_v6 = vld [vmem:[#allocation10 + $0x88] sm:$0xff]  }
 0xd66   : > { %8454 = vmatmul.mubr.bf16.gmra.mrb[60].mxu0 %v18276_v61 }
 0xd67   : > { %8461 = vmatprep.mubr.bf16.mxu0 %v18277_v50  ;;  %v14920_v50 = vld [vmem:[#allocation10 + $0xd0] sm:$0xff]  }
 0xd6e   : > { %8462 = vmatmul.mubr.bf16.gmra.mrb[64].mxu0 %v18278_v31  ;;  %v14923_v31 = vld [vmem:[#allocation10 + $0x110] sm:$0xff]  }
 0xd6f   : > { %8469 = vmatprep.mubr.bf16.mxu0 %v18279_v1  ;;  %v18315_v1 = vld [vmem:[#allocation42_spill] sm:$0xff]  ;;  %13948 = vmatpush3.bf16.msra.mxu0 %v14923_v31 }
 0xd70   : > { %13949 = vmatprep.subr.bf16.mxu0 %v14926_v54  ;;  %v14930_v31 = vld [vmem:[#allocation10 + $0x160] sm:$0xff]  }
 0xd76   : > { %8470 = vmatmul.mubr.bf16.gmra.mrb[68].mxu0 %v18280_v4  ;;  %v18316_v4 = vld [vmem:[#allocation41_spill] sm:$0xff] }
 0xd77   : > { %8477 = vmatprep.mubr.bf16.mxu0 %v18281_v17  ;;  %v18317_v17 = vpack.c.bf16 %v18315_v1, %v18316_v4 }
 0xd7e   : > { %8478 = vmatmul.mubr.bf16.gmra.mrb[72].mxu0 %v18282_v3 }
 0xd7f   : > { %8485 = vmatprep.mubr.bf16.mxu0 %v18284_v18  ;;  %v18318_v18 = vld [vmem:[#allocation61_spill] sm:$0xff] }
 0xd80   : > { %v18320_v53 = vpack.c.bf16 %v18318_v18, %v18319_v58  ;;  %v14931_v58 = vld [vmem:[#allocation10 + $0x120] sm:$0xff]  }
 0xd86   : > { %8486 = vmatmul.mubr.bf16.gmra.mrb[76].mxu0 %v18287_v10  ;;  %v14921_v10 = vld [vmem:[#allocation10 + $0x90] sm:$0xff]  }
 0xd87   : > { %8493 = vmatprep.mubr.bf16.mxu0 %v18290_v21 }
 0xd8e   : > { %8494 = vmatmul.mubr.bf16.gmra.mrb[80].mxu0 %v18293_v26  ;;  %v18321_v26 = vld [vmem:[#allocation44_spill] sm:$0xff] }
 0xd8f   : > { %8501 = vmatprep.mubr.bf16.mxu0 %v18296_v40  ;;  %v18323_v32 = vpack.c.bf16 %v18321_v26, %v18322_v33 }
 0xd96   : > { %8502 = vmatmul.mubr.bf16.gmra.mrb[84].mxu0 %v18299_v7  ;;  %v18325_v7 = vld [vmem:[#allocation62_spill] sm:$0xff] }
 0xd97   : > { %8509 = vmatprep.mubr.bf16.mxu0 %v18302_v59  ;;  %v18326_v44 = vpack.c.bf16 %v18324_v28, %v18325_v7  ;;  %v14925_v59 = vld [vmem:[#allocation10 + $0x98] sm:$0xff]   ;;  %v14934_v7 = vld [vmem:[#allocation10 + $0x168] sm:$0xff]  }
 0xd9e   : > { %8510 = vmatmul.mubr.bf16.gmra.mrb[88].mxu0 %v18305_v12 }
 0xd9f   : > { %8517 = vmatprep.mubr.bf16.mxu0 %v18308_v29  ;;  %v15152_v29 = vld [vmem:[%s16012_s0 + $0x50] ss:$12 sps:$4 sm:$0xff]  }
 0xda1   : > { %v13511_v24 = vpop.f32.mrb[240].mxu0 }
 0xda2   : > { %v13512_v52 = vpop.f32.mrb[241].mxu0 }
 0xda3   : > { %v13513_v41 = vadd.f32 %v13512_v52, %v13511_v24  ;;  %v13514_v8 = vpop.f32.mrb[242].mxu0  ;;  %v14927_v52 = vld [vmem:[#allocation10 + $0x118] sm:$0xff]  }
 0xda4   : > { %v13515_v23 = vpop.f32.mrb[243].mxu0  ;;  %13950 = vmatpush3.bf16.msra.mxu0 %v14927_v52 }
 0xda5   : > { %v13516_v55 = vadd.f32 %v13515_v23, %v13514_v8  ;;  %v7022_v25 = vadd.f32 %v13513_v41, %v17473_v22  ;;  %v18327_v41 = vld [vmem:[#allocation46_spill] sm:$0xff]  ;;  %v18328_v8 = vld [vmem:[#allocation45_spill] sm:$0xff]  ;;  %13951 = vmatprep.subr.bf16.mxu0 %v14930_v31 }
 0xda6   : > { %8518 = vmatmul.mubr.bf16.gmra.mrb[92].mxu0 %v18311_v30  ;;  %v18329_v23 = vpack.c.bf16 %v18327_v41, %v18328_v8  ;;  %v18331_v30 = vld [vmem:[#allocation64_spill] sm:$0xff] }
 0xda7   : > { %v7025_v48 = vadd.f32 %v13516_v55, %v17473_v22  ;;  %8525 = vmatprep.mubr.bf16.mxu0 %v18314_v15 }
 0xda8   : > { %13952 = vmatpush3.bf16.msra.mxu0 %v14931_v58 }
 0xda9   : > { %v7148_v51 = vpack.c.bf16 %v7025_v48, %v7022_v25  ;;  %v13517_v16 = vpop.f32.mrb[244].mxu0  ;;  %v18332_v25 = vpack.c.bf16 %v18330_v2, %v18331_v30  ;;  %13953 = vmatprep.subr.bf16.mxu0 %v14934_v7  ;;  %v14936_v30 = vld [vmem:[#allocation10 + $0xf0] sm:$0xff]  }
 0xdaa   : > { %v13518_v39 = vpop.f32.mrb[245].mxu0 }
 0xdab   : > { %v13519_v20 = vadd.f32 %v13518_v39, %v13517_v16  ;;  %v13520_v62 = vpop.f32.mrb[246].mxu0  ;;  %7382 = vmatmul.mubr.bf16.vlgmr.msra.gmra.mrb[16].mxu1 %v7148_v51  ;;  %v15153_v16 = vld [vmem:[%s16012_s0 + $0x68] ss:$12 sps:$4 sm:$0xff]   ;;  %v18334_v39 = vld [vmem:[#allocation47_spill] sm:$0xff] }
 0xdac   : > { %v13521_v47 = vpop.f32.mrb[247].mxu0  ;;  %7389 = vmatprep.mubr.bf16.mxu1 %v15150_v9  ;;  %13832 = vmatpush3.bf16.msra.mxu1 %v14913_v56  ;;  %v14928_v9 = vld [vmem:[#allocation10 + $0xe0] sm:$0xff]  }
 0xdad   : > { %v13522_v61 = vadd.f32 %v13521_v47, %v13520_v62  ;;  %13833 = vmatprep.subr.bf16.mxu1 %v14916_v13  ;;  %v7030_v3 = vadd.f32 %v13519_v20, %v17473_v22  ;;  %v18335_v20 = vpack.c.bf16 %v18333_v57, %v18334_v39  ;;  %v14939_v39 = vld [vmem:[#allocation10 + $0x130] sm:$0xff]  }
 0xdae   : > { %8526 = vmatmul.mubr.bf16.gmra.mrb[96].mxu0 %v18317_v17 }
 0xdaf   : > { %v7033_v19 = vadd.f32 %v13522_v61, %v17473_v22  ;;  %8533 = vmatprep.mubr.bf16.mxu0 %v18320_v53 }
 0xdb0   : > { %13834 = vmatpush3.bf16.msra.mxu1 %v14917_v6  ;;  %v14929_v6 = vld [vmem:[#allocation10 + $0xa0] sm:$0xff]  }
 0xdb1   : > { %v7149_v49 = vpack.c.bf16 %v7033_v19, %v7030_v3  ;;  %v13523_v45 = vpop.f32.mrb[248].mxu0  ;;  %13835 = vmatprep.subr.bf16.mxu1 %v14920_v50  ;;  %v15154_v19 = vld [vmem:[%s16012_s0 + $0x80] ss:$12 sps:$4 sm:$0xff]  }
 0xdb2   : > { %v13524_v21 = vpop.f32.mrb[249].mxu0 }
 0xdb3   : > { %v13525_v27 = vadd.f32 %v13524_v21, %v13523_v45  ;;  %v13526_v0 = vpop.f32.mrb[250].mxu0  ;;  %7390 = vmatmul.mubr.bf16.gmra.mrb[20].mxu1 %v7149_v49 }
 0xdb4   : > { %v13527_v36 = vpop.f32.mrb[251].mxu0  ;;  %7397 = vmatprep.mubr.bf16.mxu1 %v15151_v60  ;;  %13836 = vmatpush3.bf16.msra.mxu1 %v14921_v10  ;;  %v15155_v60 = vld [vmem:[%s16012_s0 + $0x98] ss:$12 sps:$4 sm:$0xff]  }
 0xdb5   : > { %v13528_v11 = vadd.f32 %v13527_v36, %v13526_v0  ;;  %v7038_v40 = vadd.f32 %v13525_v27, %v17473_v22  ;;  %13837 = vmatprep.subr.bf16.mxu1 %v14924_v34 }
 0xdb6   : > { %8534 = vmatmul.mubr.bf16.gmra.mrb[100].mxu0 %v18323_v32  ;;  %v14932_v32 = vld [vmem:[#allocation10 + $0xe8] sm:$0xff]  }
 0xdb7   : > { %v7041_v37 = vadd.f32 %v13528_v11, %v17473_v22  ;;  %8541 = vmatprep.mubr.bf16.mxu0 %v18326_v44 }
 0xdb8   : > { %13838 = vmatpush3.bf16.msra.mxu1 %v14925_v59 }
 0xdb9   : > { %v7150_v46 = vpack.c.bf16 %v7041_v37, %v7038_v40  ;;  %v13529_v35 = vpop.f32.mrb[252].mxu0  ;;  %13839 = vmatprep.subr.bf16.mxu1 %v14928_v9  ;;  %v14933_v40 = vld [vmem:[#allocation10 + $0xa8] sm:$0xff]  }
 0xdba   : > { %v13530_v14 = vpop.f32.mrb[253].mxu0 }
 0xdbb   : > { %v13531_v12 = vadd.f32 %v13530_v14, %v13529_v35  ;;  %v13532_v5 = vpop.f32.mrb[254].mxu0  ;;  %7398 = vmatmul.mubr.bf16.gmra.mrb[24].mxu1 %v7150_v46  ;;  %v15156_v35 = vld [vmem:[%s16012_s0 + $0xb0] ss:$12 sps:$4 sm:$0xff]  }
 0xdbc   : > { %v13533_v43 = vpop.f32.mrb[255].mxu0  ;;  %7405 = vmatprep.mubr.bf16.mxu1 %v15152_v29  ;;  %13840 = vmatpush3.bf16.msra.mxu1 %v14929_v6  ;;  %v14935_v14 = vld [vmem:[#allocation10 + $0x128] sm:$0xff]  }
 0xdbd   : > { %v13534_v24 = vadd.f32 %v13533_v43, %v13532_v5  ;;  %v7046_v55 = vadd.f32 %v13531_v12, %v17473_v22  ;;  %13841 = vmatprep.subr.bf16.mxu1 %v14932_v32  ;;  %13954 = vmatpush3.bf16.msra.mxu0 %v14935_v14 }
 0xdbe   : > { %8542 = vmatmul.mubr.bf16.gmra.mrb[104].mxu0 %v18329_v23  ;;  %v15157_v23 = vld [vmem:[%s16012_s0 + $0xc8] ss:$12 sps:$4 sm:$0xff]  }
 0xdbf   : > { %v7049_v42 = vadd.f32 %v13534_v24, %v17473_v22  ;;  %8549 = vmatprep.mubr.bf16.mxu0 %v18332_v25  ;;  %v14937_v25 = vld [vmem:[#allocation10 + $0xb0] sm:$0xff]  }
 0xdc0   : > { %13842 = vmatpush3.bf16.msra.mxu1 %v14933_v40 }
 0xdc1   : > { %v7151_v48 = vpack.c.bf16 %v7049_v42, %v7046_v55  ;;  %v13535_v38 = vpop.f32.mrb[0].mxu0  ;;  %13843 = vmatprep.subr.bf16.mxu1 %v14936_v30 }
 0xdc2   : > { %v13536_v63 = vpop.f32.mrb[1].mxu0 }
 0xdc3   : > { %v13537_v15 = vadd.f32 %v13536_v63, %v13535_v38  ;;  %v13538_v56 = vpop.f32.mrb[2].mxu0  ;;  %7406 = vmatmul.mubr.bf16.gmra.mrb[28].mxu1 %v7151_v48  ;;  %v14938_v63 = vld [vmem:[#allocation10 + $0x170] sm:$0xff]  }
 0xdc4   : > { %v13539_v51 = vpop.f32.mrb[3].mxu0  ;;  %7413 = vmatprep.mubr.bf16.mxu1 %v15153_v16  ;;  %13844 = vmatpush3.bf16.msra.mxu1 %v14937_v25 }
 0xdc5   : > { %v13540_v13 = vadd.f32 %v13539_v51, %v13538_v56  ;;  %v7054_v62 = vadd.f32 %v13537_v15, %v17473_v22  ;;  %13955 = vmatprep.subr.bf16.mxu0 %v14938_v63 }
 0xdc6   : > { %8550 = vmatmul.mubr.bf16.gmra.mrb[108].mxu0 %v18335_v20 }
 0xdc7   : > { %v7057_v47 = vadd.f32 %v13540_v13, %v17473_v22  ;;  %v15158_v13 = vld [vmem:[%s16012_s0 + $0xe0] ss:$12 sps:$4 sm:$0xff]   ;;  %13956 = vmatpush3.bf16.msra.mxu0 %v14939_v39 }
 0xdc9   : > { %v7152_v61 = vpack.c.bf16 %v7057_v47, %v7054_v62  ;;  %v13541_v50 = vpop.f32.mrb[4].mxu0 }
 0xdca   : > { %v13542_v1 = vpop.f32.mrb[5].mxu0 }
 0xdcb   : > { %v13543_v4 = vadd.f32 %v13542_v1, %v13541_v50  ;;  %v13544_v17 = vpop.f32.mrb[6].mxu0  ;;  %7414 = vmatmul.mubr.bf16.gmra.mrb[32].mxu1 %v7152_v61  ;;  %v15159_v1 = vld [vmem:[%s16012_s0 + $0xf8] ss:$12 sps:$4 sm:$0xff]  }
 0xdcc   : > { %v13545_v3 = vpop.f32.mrb[7].mxu0  ;;  %7421 = vmatprep.mubr.bf16.mxu1 %v15154_v19  ;;  %v14940_v19 = vld [vmem:[#allocation10 + $0xf8] sm:$0xff]  }
 0xdcd   : > { %v13546_v18 = vadd.f32 %v13545_v3, %v13544_v17  ;;  %v7062_v53 = vadd.f32 %v13543_v4, %v17473_v22  ;;  %13845 = vmatprep.subr.bf16.mxu1 %v14940_v19 }
 0xdcf   : > { %v7065_v10 = vadd.f32 %v13546_v18, %v17473_v22  ;;  %v14941_v18 = vld [vmem:[#allocation10 + $0xb8] sm:$0xff]  }
 0xdd0   : > { %13846 = vmatpush3.bf16.msra.mxu1 %v14941_v18 }
 0xdd1   : > { %v7153_v49 = vpack.c.bf16 %v7065_v10, %v7062_v53  ;;  %v13547_v45 = vpop.f32.mrb[8].mxu0  ;;  %v14942_v10 = vld [vmem:[#allocation10 + $0x178] sm:$0xff]  }
 0xdd2   : > { %v13548_v21 = vpop.f32.mrb[9].mxu0  ;;  %13957 = vmatprep.subr.bf16.mxu0 %v14942_v10 }
 0xdd3   : > { %v13549_v27 = vadd.f32 %v13548_v21, %v13547_v45  ;;  %v13550_v0 = vpop.f32.mrb[10].mxu0  ;;  %7422 = vmatmul.mubr.bf16.gmra.mrb[36].mxu1 %v7153_v49 }
 0xdd4   : > { %v13551_v36 = vpop.f32.mrb[11].mxu0  ;;  %7429 = vmatprep.mubr.bf16.mxu1 %v15155_v60  ;;  %v14943_v60 = vld [vmem:[#allocation10 + $0x138] sm:$0xff]  }
 0xdd5   : > { %v13552_v11 = vadd.f32 %v13551_v36, %v13550_v0  ;;  %v7070_v26 = vadd.f32 %v13549_v27, %v17473_v22  ;;  %v15160_v0 = vld [vmem:[%s16012_s0 + $0x110] ss:$12 sps:$4 sm:$0xff]   ;;  %13958 = vmatpush3.bf16.msra.mxu0 %v14943_v60 }
 0xdd7   : > { %v7073_v33 = vadd.f32 %v13552_v11, %v17473_v22 }
 0xdd9   : > { %v7154_v37 = vpack.c.bf16 %v7073_v33, %v7070_v26  ;;  %v13553_v28 = vpop.f32.mrb[12].mxu0 }
 0xdda   : > { %v13554_v44 = vpop.f32.mrb[13].mxu0 }
 0xddb   : > { %v13555_v34 = vadd.f32 %v13554_v44, %v13553_v28  ;;  %v13556_v59 = vpop.f32.mrb[14].mxu0  ;;  %7430 = vmatmul.mubr.bf16.gmra.mrb[40].mxu1 %v7154_v37  ;;  %v15161_v44 = vld [vmem:[%s16012_s0 + $0x128] ss:$12 sps:$4 sm:$0xff]  }
 0xddc   : > { %v13557_v46 = vpop.f32.mrb[15].mxu0  ;;  %7437 = vmatprep.mubr.bf16.mxu1 %v15156_v35 }
 0xddd   : > { %v13558_v54 = vadd.f32 %v13557_v46, %v13556_v59  ;;  %v7078_v12 = vadd.f32 %v13555_v34, %v17473_v22  ;;  %v14944_v34 = vld [vmem:[%s16012_s0 + $0x8] ss:$12 sps:$4 sm:$0xff]   ;;  %v14947_v46 = vld [vmem:[%s16012_s0 + $0x4] ss:$12 sps:$4 sm:$0xff]  }
 0xdde   : > { %8751 = vmatprep.mubr.bf16.mxu0 %v14944_v34  ;;  %v14968_v34 = vld [vmem:[%s16012_s0 + $0x98] ss:$12 sps:$4 sm:$0xff]  }
 0xddf   : > { %v7081_v5 = vadd.f32 %v13558_v54, %v17473_v22  ;;  %8752 = vmatmul.mubr.bf16.vlgmr.msra.gmra.mrb[112].mxu0 %v14947_v46  ;;  %v14971_v46 = vld [vmem:[%s16012_s0 + $0x94] ss:$12 sps:$4 sm:$0xff]  }
 0xde1   : > { %v7155_v43 = vpack.c.bf16 %v7081_v5, %v7078_v12  ;;  %v13559_v29 = vpop.f32.mrb[16].mxu0 }
 0xde2   : > { %v13560_v24 = vpop.f32.mrb[17].mxu0 }
 0xde3   : > { %v13561_v52 = vadd.f32 %v13560_v24, %v13559_v29  ;;  %v13562_v41 = vpop.f32.mrb[18].mxu0  ;;  %7438 = vmatmul.mubr.bf16.gmra.mrb[44].mxu1 %v7155_v43 }
 0xde4   : > { %v13563_v8 = vpop.f32.mrb[19].mxu0  ;;  %7445 = vmatprep.mubr.bf16.mxu1 %v15157_v23  ;;  %v14951_v23 = vld [vmem:[%s16012_s0 + $0x1c] ss:$12 sps:$4 sm:$0xff]  }
 0xde5   : > { %v13564_v55 = vadd.f32 %v13563_v8, %v13562_v41  ;;  %v7086_v42 = vadd.f32 %v13561_v52, %v17473_v22  ;;  %v15162_v52 = vld [vmem:[%s16012_s0 + $0x140] ss:$12 sps:$4 sm:$0xff]  }
 0xde6   : > { %v14948_v41 = vld [vmem:[%s16012_s0 + $0x20] ss:$12 sps:$4 sm:$0xff]  }
 0xde7   : > { %v7089_v2 = vadd.f32 %v13564_v55, %v17473_v22  ;;  %8759 = vmatprep.mubr.bf16.mxu0 %v14948_v41 }
 0xde8   : > { %8760 = vmatmul.mubr.bf16.gmra.mrb[116].mxu0 %v14951_v23 }
 0xde9   : > { %v7156_v48 = vpack.c.bf16 %v7089_v2, %v7086_v42  ;;  %v13565_v38 = vpop.f32.mrb[20].mxu0 }
 0xdea   : > { %v13566_v15 = vpop.f32.mrb[21].mxu0 }
 0xdeb   : > { %v13567_v56 = vadd.f32 %v13566_v15, %v13565_v38  ;;  %v13568_v51 = vpop.f32.mrb[22].mxu0  ;;  %7446 = vmatmul.mubr.bf16.gmra.mrb[48].mxu1 %v7156_v48  ;;  %v15163_v15 = vld [vmem:[%s16012_s0 + $0x158] ss:$12 sps:$4 sm:$0xff]  }
 0xdec   : > { %v13569_v16 = vpop.f32.mrb[23].mxu0  ;;  %7453 = vmatprep.mubr.bf16.mxu1 %v15158_v13 }
 0xded   : > { %v13570_v57 = vadd.f32 %v13569_v16, %v13568_v51  ;;  %v7094_v20 = vadd.f32 %v13567_v56, %v17473_v22  ;;  %v14952_v56 = vld [vmem:[%s16012_s0 + $0x38] ss:$12 sps:$4 sm:$0xff]   ;;  %v14955_v16 = vld [vmem:[%s16012_s0 + $0x34] ss:$12 sps:$4 sm:$0xff]  }
 0xdee   : > { %8767 = vmatprep.mubr.bf16.mxu0 %v14952_v56  ;;  %v14980_v56 = vld [vmem:[%s16012_s0 + $0xe0] ss:$12 sps:$4 sm:$0xff]  }
 0xdef   : > { %v7097_v62 = vadd.f32 %v13570_v57, %v17473_v22 }
 0xdf0   : > { %8768 = vmatmul.mubr.bf16.gmra.mrb[120].mxu0 %v14955_v16  ;;  %v14983_v16 = vld [vmem:[%s16012_s0 + $0xdc] ss:$12 sps:$4 sm:$0xff]  }
 0xdf1   : > { %v7157_v47 = vpack.c.bf16 %v7097_v62, %v7094_v20  ;;  %v13571_v9 = vpop.f32.mrb[24].mxu0 }
 0xdf2   : > { %v13572_v6 = vpop.f32.mrb[25].mxu0 }
 0xdf3   : > { %v13573_v61 = vadd.f32 %v13572_v6, %v13571_v9  ;;  %v13574_v50 = vpop.f32.mrb[26].mxu0  ;;  %7454 = vmatmul.mubr.bf16.gmra.mrb[52].mxu1 %v7157_v47 }
 0xdf4   : > { %v13575_v31 = vpop.f32.mrb[27].mxu0  ;;  %7461 = vmatprep.mubr.bf16.mxu1 %v15159_v1  ;;  %v14959_v1 = vld [vmem:[%s16012_s0 + $0x4c] ss:$12 sps:$4 sm:$0xff]  }
 0xdf5   : > { %v13576_v4 = vadd.f32 %v13575_v31, %v13574_v50  ;;  %v7102_v17 = vadd.f32 %v13573_v61, %v17473_v22  ;;  %v15164_v61 = vld [vmem:[%s16012_s0 + $0x170] ss:$12 sps:$4 sm:$0xff]  }
 0xdf6   : > { %v14956_v50 = vld [vmem:[%s16012_s0 + $0x50] ss:$12 sps:$4 sm:$0xff]  }
 0xdf7   : > { %v7105_v3 = vadd.f32 %v13576_v4, %v17473_v22  ;;  %8775 = vmatprep.mubr.bf16.mxu0 %v14956_v50 }
 0xdf8   : > { %8776 = vmatmul.mubr.bf16.gmra.mrb[124].mxu0 %v14959_v1 }
 0xdf9   : > { %v7158_v58 = vpack.c.bf16 %v7105_v3, %v7102_v17  ;;  %v13577_v53 = vpop.f32.mrb[28].mxu0  ;;  %v14945_v3 = vld [vmem:[%s16012_s0] ss:$12 sps:$4 sm:$0xff]  }
 0xdfa   : > { %v13578_v49 = vpop.f32.mrb[29].mxu0 }
 0xdfb   : > { %v13579_v45 = vadd.f32 %v13578_v49, %v13577_v53  ;;  %v13580_v21 = vpop.f32.mrb[30].mxu0  ;;  %7462 = vmatmul.mubr.bf16.gmra.mrb[56].mxu1 %v7158_v58 }
 0xdfc   : > { %v13581_v27 = vpop.f32.mrb[31].mxu0  ;;  %7469 = vmatprep.mubr.bf16.mxu1 %v15160_v0 }
 0xdfd   : > { %v13582_v36 = vadd.f32 %v13581_v27, %v13580_v21  ;;  %v7110_v11 = vadd.f32 %v13579_v45, %v17473_v22  ;;  %v14960_v45 = vld [vmem:[%s16012_s0 + $0x68] ss:$12 sps:$4 sm:$0xff]   ;;  %v14963_v27 = vld [vmem:[%s16012_s0 + $0x64] ss:$12 sps:$4 sm:$0xff]  }
 0xdfe   : > { %8783 = vmatprep.mubr.bf16.mxu0 %v14960_v45 }
 0xdff   : > { %v7113_v26 = vadd.f32 %v13582_v36, %v17473_v22 }
 0xe00   : > { %8784 = vmatmul.mubr.bf16.gmra.mrb[128].mxu0 %v14963_v27  ;;  %v14992_v27 = vld [vmem:[%s16012_s0 + $0x128] ss:$12 sps:$4 sm:$0xff]  }
 0xe01   : > { %v7159_v33 = vpack.c.bf16 %v7113_v26, %v7110_v11  ;;  %v13583_v32 = vpop.f32.mrb[32].mxu0  ;;  %v14964_v26 = vld [vmem:[%s16012_s0 + $0x80] ss:$12 sps:$4 sm:$0xff]  }
 0xe02   : > { %v13584_v40 = vpop.f32.mrb[33].mxu0  ;;  %8791 = vmatprep.mubr.bf16.mxu0 %v14964_v26 }
 0xe03   : > { %v13585_v37 = vadd.f32 %v13584_v40, %v13583_v32  ;;  %v13586_v28 = vpop.f32.mrb[34].mxu0  ;;  %7470 = vmatmul.mubr.bf16.gmra.mrb[60].mxu1 %v7159_v33  ;;  %v14967_v32 = vld [vmem:[%s16012_s0 + $0x7c] ss:$12 sps:$4 sm:$0xff]  }
 0xe04   : > { %v13587_v7 = vpop.f32.mrb[35].mxu0  ;;  %7477 = vmatprep.mubr.bf16.mxu1 %v15161_v44 }
 0xe05   : > { %v13588_v59 = vadd.f32 %v13587_v7, %v13586_v28  ;;  %v7118_v35 = vadd.f32 %v13585_v37, %v17473_v22 }
 0xe07   : > { %v7121_v54 = vadd.f32 %v13588_v59, %v17473_v22 }
 0xe08   : > { %8792 = vmatmul.mubr.bf16.gmra.mrb[132].mxu0 %v14967_v32 }
 0xe09   : > { %v7160_v14 = vpack.c.bf16 %v7121_v54, %v7118_v35  ;;  %v13589_v12 = vpop.f32.mrb[36].mxu0  ;;  %8799 = vmatprep.mubr.bf16.mxu0 %v14968_v34 }
 0xe0a   : > { %v13590_v5 = vpop.f32.mrb[37].mxu0 }
 0xe0b   : > { %v13591_v43 = vadd.f32 %v13590_v5, %v13589_v12  ;;  %v13592_v29 = vpop.f32.mrb[38].mxu0  ;;  %7478 = vmatmul.mubr.bf16.gmra.mrb[64].mxu1 %v7160_v14 }
 0xe0c   : > { %v13593_v24 = vpop.f32.mrb[39].mxu0  ;;  %7485 = vmatprep.mubr.bf16.mxu1 %v15162_v52 }
 0xe0d   : > { %v13594_v8 = vadd.f32 %v13593_v24, %v13592_v29  ;;  %v7126_v55 = vadd.f32 %v13591_v43, %v17473_v22  ;;  %v14972_v43 = vld [vmem:[%s16012_s0 + $0xb0] ss:$12 sps:$4 sm:$0xff]   ;;  %v14975_v24 = vld [vmem:[%s16012_s0 + $0xac] ss:$12 sps:$4 sm:$0xff]  }
 0xe0f   : > { %v7129_v42 = vadd.f32 %v13594_v8, %v17473_v22 }
 0xe10   : > { %8800 = vmatmul.mubr.bf16.gmra.mrb[136].mxu0 %v14971_v46 }
 0xe11   : > { %v7161_v2 = vpack.c.bf16 %v7129_v42, %v7126_v55  ;;  %v13595_v30 = vpop.f32.mrb[40].mxu0  ;;  %8807 = vmatprep.mubr.bf16.mxu0 %v14972_v43  ;;  %v14976_v42 = vld [vmem:[%s16012_s0 + $0xc8] ss:$12 sps:$4 sm:$0xff]  }
 0xe12   : > { %v13596_v25 = vpop.f32.mrb[41].mxu0 }
 0xe13   : > { %v13597_v48 = vadd.f32 %v13596_v25, %v13595_v30  ;;  %v13598_v38 = vpop.f32.mrb[42].mxu0  ;;  %7486 = vmatmul.mubr.bf16.gmra.mrb[68].mxu1 %v7161_v2  ;;  %v14979_v30 = vld [vmem:[%s16012_s0 + $0xc4] ss:$12 sps:$4 sm:$0xff]  }
 0xe14   : > { %v13599_v63 = vpop.f32.mrb[43].mxu0  ;;  %7493 = vmatprep.mubr.bf16.mxu1 %v15163_v15 }
 0xe15   : > { %v13600_v51 = vadd.f32 %v13599_v63, %v13598_v38  ;;  %v7134_v13 = vadd.f32 %v13597_v48, %v17473_v22 }
 0xe17   : > { %v7137_v57 = vadd.f32 %v13600_v51, %v17473_v22 }
 0xe18   : > { %8808 = vmatmul.mubr.bf16.gmra.mrb[140].mxu0 %v14975_v24  ;;  %v15004_v24 = vld [vmem:[%s16012_s0 + $0x154] ss:$12 sps:$4 sm:$0xff]  }
 0xe19   : > { %v7162_v39 = vpack.c.bf16 %v7137_v57, %v7134_v13  ;;  %v13601_v20 = vpop.f32.mrb[44].mxu0  ;;  %8815 = vmatprep.mubr.bf16.mxu0 %v14976_v42 }
 0xe1a   : > { %v13602_v62 = vpop.f32.mrb[45].mxu0 }
 0xe1b   : > { %v13603_v47 = vadd.f32 %v13602_v62, %v13601_v20  ;;  %v13604_v9 = vpop.f32.mrb[46].mxu0  ;;  %7494 = vmatmul.mubr.bf16.gmra.mrb[72].mxu1 %v7162_v39 }
 0xe1c   : > { %v13605_v6 = vpop.f32.mrb[47].mxu0  ;;  %7501 = vmatprep.mubr.bf16.mxu1 %v15164_v61 }
 0xe1d   : > { %v13606_v31 = vadd.f32 %v13605_v6, %v13604_v9  ;;  %v7142_v4 = vadd.f32 %v13603_v47, %v17473_v22  ;;  %v14984_v47 = vld [vmem:[%s16012_s0 + $0xf8] ss:$12 sps:$4 sm:$0xff]   ;;  %v14987_v6 = vld [vmem:[%s16012_s0 + $0xf4] ss:$12 sps:$4 sm:$0xff]  }
 0xe1f   : > { %v7145_v17 = vadd.f32 %v13606_v31, %v17473_v22 }
 0xe20   : > { %8816 = vmatmul.mubr.bf16.gmra.mrb[144].mxu0 %v14979_v30 }
 0xe21   : > { %v7163_v19 = vpack.c.bf16 %v7145_v17, %v7142_v4  ;;  %v13735_v18 = vpop.f32.mrb[48].mxu0  ;;  %8823 = vmatprep.mubr.bf16.mxu0 %v14980_v56  ;;  %v14988_v17 = vld [vmem:[%s16012_s0 + $0x110] ss:$12 sps:$4 sm:$0xff]  }
 0xe22   : > { %v13736_v58 = vpop.f32.mrb[49].mxu0 }
 0xe23   : > { %v17558_v53 = vadd.f32 %v13736_v58, %v13735_v18  ;;  %7502 = vmatmul.mubr.bf16.gmra.mrb[76].mxu1 %v7163_v19  ;;  %v13738_v10 = vpop.f32.mrb[50].mxu0  ;;  %v14991_v19 = vld [vmem:[%s16012_s0 + $0x10c] ss:$12 sps:$4 sm:$0xff]  }
 0xe24   : > { %v13739_v49 = vpop.f32.mrb[51].mxu0  ;;  %8590 = vmatprep.mubr.bf16.mxu1 %v14945_v3 }
 0xe25   : > { %v17561_v21 = vadd.f32 %v13739_v49, %v13738_v10 }
 0xe28   : > { %8824 = vmatmul.mubr.bf16.gmra.mrb[148].mxu0 %v14983_v16 }
 0xe29   : > { %v13741_v22 = vpop.f32.mrb[52].mxu0  ;;  %8831 = vmatprep.mubr.bf16.mxu0 %v14984_v47 }
 0xe2a   : > { %v13742_v0 = vpop.f32.mrb[53].mxu0 }
 0xe2b   : > { %v17564_v36 = vadd.f32 %v13742_v0, %v13741_v22  ;;  %v13744_v60 = vpop.f32.mrb[54].mxu0  ;;  %v14995_v0 = vld [vmem:[%s16012_s0 + $0x124] ss:$12 sps:$4 sm:$0xff]  }
 0xe2c   : > { %v13745_v11 = vpop.f32.mrb[55].mxu0 }
 0xe2d   : > { %v17567_v33 = vadd.f32 %v13745_v11, %v13744_v60 }
 0xe30   : > { %8832 = vmatmul.mubr.bf16.gmra.mrb[152].mxu0 %v14987_v6 }
 0xe31   : > { %v13747_v40 = vpop.f32.mrb[56].mxu0  ;;  %8839 = vmatprep.mubr.bf16.mxu0 %v14988_v17 }
 0xe32   : > { %v13748_v37 = vpop.f32.mrb[57].mxu0 }
 0xe33   : > { %v17570_v28 = vadd.f32 %v13748_v37, %v13747_v40  ;;  %v13750_v7 = vpop.f32.mrb[58].mxu0  ;;  %v14996_v37 = vld [vmem:[%s16012_s0 + $0x140] ss:$12 sps:$4 sm:$0xff]  }
 0xe34   : > { %v13751_v44 = vpop.f32.mrb[59].mxu0 }
 0xe35   : > { %v17573_v59 = vadd.f32 %v13751_v44, %v13750_v7  ;;  %v14999_v44 = vld [vmem:[%s16012_s0 + $0x13c] ss:$12 sps:$4 sm:$0xff]  }
 0xe38   : > { %8840 = vmatmul.mubr.bf16.gmra.mrb[156].mxu0 %v14991_v19 }
 0xe39   : > { %v13753_v35 = vpop.f32.mrb[60].mxu0  ;;  %8847 = vmatprep.mubr.bf16.mxu0 %v14992_v27 }
 0xe3a   : > { %v13754_v54 = vpop.f32.mrb[61].mxu0 }
 0xe3b   : > { %v17576_v14 = vadd.f32 %v13754_v54, %v13753_v35  ;;  %v13756_v12 = vpop.f32.mrb[62].mxu0 }
 0xe3c   : > { %v13757_v5 = vpop.f32.mrb[63].mxu0 }
 0xe3d   : > { %v17579_v29 = vadd.f32 %v13757_v5, %v13756_v12  ;;  %v15001_v5 = vld [vmem:[%s16012_s0 + $0x158] ss:$12 sps:$4 sm:$0xff]  }
 0xe40   : > { %8848 = vmatmul.mubr.bf16.gmra.mrb[160].mxu0 %v14995_v0 }
 0xe41   : > { %v13759_v52 = vpop.f32.mrb[64].mxu0  ;;  %8855 = vmatprep.mubr.bf16.mxu0 %v14996_v37 }
 0xe42   : > { %v13760_v41 = vpop.f32.mrb[65].mxu0 }
 0xe43   : > { %v17582_v8 = vadd.f32 %v13760_v41, %v13759_v52  ;;  %v13762_v23 = vpop.f32.mrb[66].mxu0  ;;  %v15000_v52 = vld [vmem:[#allocation13] sm:$0xff]  }
 0xe44   : > { %v13763_v55 = vpop.f32.mrb[67].mxu0  ;;  %14239 = vmatprep.subr.bf16.mxu1 %v15000_v52 }
 0xe45   : > { %v17585_v2 = vadd.f32 %v13763_v55, %v13762_v23 }
 0xe48   : > { %8856 = vmatmul.mubr.bf16.gmra.mrb[164].mxu0 %v14999_v44  ;;  %v15010_v44 = vld [vmem:[#allocation13 + $0x10] sm:$0xff]  }
 0xe49   : > { %v13765_v25 = vpop.f32.mrb[68].mxu0  ;;  %8863 = vmatprep.mubr.bf16.mxu0 %v15001_v5 }
 0xe4a   : > { %v13766_v48 = vpop.f32.mrb[69].mxu0 }
 0xe4b   : > { %v17588_v38 = vadd.f32 %v13766_v48, %v13765_v25  ;;  %v13768_v63 = vpop.f32.mrb[70].mxu0  ;;  %v15005_v25 = vld [vmem:[%s16012_s0 + $0x170] ss:$12 sps:$4 sm:$0xff]  }
 0xe4c   : > { %v13769_v15 = vpop.f32.mrb[71].mxu0 }
 0xe4d   : > { %v17591_v51 = vadd.f32 %v13769_v15, %v13768_v63  ;;  %v15008_v63 = vld [vmem:[%s16012_s0 + $0x16c] ss:$12 sps:$4 sm:$0xff]  }
 0xe50   : > { %8864 = vmatmul.mubr.bf16.gmra.mrb[168].mxu0 %v15004_v24 }
 0xe51   : > { %v13771_v13 = vpop.f32.mrb[72].mxu0  ;;  %8871 = vmatprep.mubr.bf16.mxu0 %v15005_v25 }
 0xe52   : > { %v13772_v57 = vpop.f32.mrb[73].mxu0 }
 0xe53   : > { %v17594_v39 = vadd.f32 %v13772_v57, %v13771_v13  ;;  %v13774_v20 = vpop.f32.mrb[74].mxu0  ;;  %v17630_v57 = vld [vmem:[#allocation9 + $0x11] ss:$0 sm:$0xff] }
 0xe54   : > { %v13775_v62 = vpop.f32.mrb[75].mxu0 }
 0xe55   : > { %v17597_v9 = vadd.f32 %v13775_v62, %v13774_v20 }
 0xe58   : > { %8872 = vmatmul.mubr.bf16.gmra.mrb[172].mxu0 %v15008_v63 }
 0xe59   : > { %v13777_v61 = vpop.f32.mrb[76].mxu0 }
 0xe5a   : > { %v13778_v50 = vpop.f32.mrb[77].mxu0 }
 0xe5b   : > { %v17600_v31 = vadd.f32 %v13778_v50, %v13777_v61  ;;  %v13780_v1 = vpop.f32.mrb[78].mxu0 }
 0xe5c   : > { %v13781_v4 = vpop.f32.mrb[79].mxu0 }
 0xe5d   : > { %v17603_v3 = vadd.f32 %v13781_v4, %v13780_v1 }
 0xe61   : > { %v13783_v18 = vpop.f32.mrb[80].mxu0 }
 0xe62   : > { %v13784_v58 = vpop.f32.mrb[81].mxu0 }
 0xe63   : > { %v17606_v10 = vadd.f32 %v13784_v58, %v13783_v18  ;;  %v13786_v49 = vpop.f32.mrb[82].mxu0  ;;  %v14949_v18 = vld [vmem:[%s16012_s0 + $0x18] ss:$12 sps:$4 sm:$0xff]  }
 0xe64   : > { %v13787_v45 = vpop.f32.mrb[83].mxu0 }
 0xe65   : > { %v17609_v22 = vadd.f32 %v13787_v45, %v13786_v49  ;;  %v15009_v45 = vld [vmem:[#allocation13 + $0x8] sm:$0xff]  }
 0xe69   : > { %v13789_v60 = vpop.f32.mrb[84].mxu0 }
 0xe6a   : > { %v13790_v11 = vpop.f32.mrb[85].mxu0 }
 0xe6b   : > { %v17612_v26 = vadd.f32 %v13790_v11, %v13789_v60  ;;  %v13792_v32 = vpop.f32.mrb[86].mxu0 }
 0xe6c   : > { %v13793_v40 = vpop.f32.mrb[87].mxu0 }
 0xe6d   : > { %v17615_v7 = vadd.f32 %v13793_v40, %v13792_v32 }
 0xe71   : > { %v13795_v34 = vpop.f32.mrb[88].mxu0 }
 0xe72   : > { %v13796_v46 = vpop.f32.mrb[89].mxu0 }
 0xe73   : > { %v17618_v35 = vadd.f32 %v13796_v46, %v13795_v34  ;;  %v13798_v54 = vpop.f32.mrb[90].mxu0 }
 0xe74   : > { %v13799_v12 = vpop.f32.mrb[91].mxu0 }
 0xe75   : > { %v17621_v43 = vadd.f32 %v13799_v12, %v13798_v54 }
 0xe79   : > { %v13801_v41 = vpop.f32.mrb[92].mxu0 }
 0xe7a   : > { %v13802_v23 = vpop.f32.mrb[93].mxu0 }
 0xe7b   : > { %v17624_v55 = vadd.f32 %v13802_v23, %v13801_v41  ;;  %v13804_v42 = vpop.f32.mrb[94].mxu0  ;;  %v14953_v41 = vld [vmem:[%s16012_s0 + $0x30] ss:$12 sps:$4 sm:$0xff]  }
 0xe7c   : > { %v13805_v30 = vpop.f32.mrb[95].mxu0 }
 0xe7d   : > { %18336 = vst [vmem:[#allocation49_spill] sm:$0xff] %v17624_v55  ;;  %v17627_v48 = vadd.f32 %v13805_v30, %v13804_v42 }
 0xe7e   : > { %v13623_v15 = vpop.f32.mrb[16].mxu1 }
 0xe7f   : > { %18337 = vst [vmem:[#allocation32_spill] sm:$0xff] %v17627_v48  ;;  %v13624_v56 = vpop.f32.mrb[17].mxu1 }
 0xe80   : > { %v13625_v16 = vadd.f32 %v13624_v56, %v13623_v15  ;;  %v13626_v13 = vpop.f32.mrb[18].mxu1 }
 0xe81   : > { %v13627_v20 = vpop.f32.mrb[19].mxu1  ;;  %v13807_v62 = vpop.f32.mrb[96].mxu0 }
 0xe82   : > { %v13628_v47 = vadd.f32 %v13627_v20, %v13626_v13  ;;  %v13808_v6 = vpop.f32.mrb[97].mxu0  ;;  %v7384_v1 = vadd.f32 %v13625_v16, %v17630_v57  ;;  %v15012_v20 = vld [vmem:[#allocation13 + $0x20] sm:$0xff]  }
 0xe83   : > { %v17632_v61 = vadd.f32 %v13808_v6, %v13807_v62  ;;  %v13810_v50 = vpop.f32.mrb[98].mxu0 }
 0xe84   : > { %v7387_v4 = vadd.f32 %v13628_v47, %v17630_v57  ;;  %v13811_v17 = vpop.f32.mrb[99].mxu0 }
 0xe85   : > { %18338 = vst [vmem:[#allocation31_spill] sm:$0xff] %v17632_v61  ;;  %v17636_v19 = vadd.f32 %v13811_v17, %v13810_v50  ;;  %v14957_v17 = vld [vmem:[%s16012_s0 + $0x48] ss:$12 sps:$4 sm:$0xff]  }
 0xe86   : > { %v7510_v58 = vpack.c.bf16 %v7387_v4, %v7384_v1  ;;  %v13629_v49 = vpop.f32.mrb[20].mxu1 }
 0xe87   : > { %18339 = vst [vmem:[#allocation51_spill] sm:$0xff] %v17636_v19  ;;  %v13630_v27 = vpop.f32.mrb[21].mxu1 }
 0xe88   : > { %v13631_v0 = vadd.f32 %v13630_v27, %v13629_v49  ;;  %v13632_v60 = vpop.f32.mrb[22].mxu1  ;;  %8591 = vmatmul.mubr.bf16.vlgmr.msra.gmra.mrb[80].mxu1 %v7510_v58  ;;  %v15013_v49 = vld [vmem:[#allocation13 + $0x28] sm:$0xff]  }
 0xe89   : > { %v13633_v11 = vpop.f32.mrb[23].mxu1  ;;  %v13813_v32 = vpop.f32.mrb[100].mxu0  ;;  %8598 = vmatprep.mubr.bf16.mxu1 %v14949_v18  ;;  %14240 = vmatpush3.bf16.msra.mxu1 %v15000_v52  ;;  %v15011_v52 = vld [vmem:[#allocation13 + $0x18] sm:$0xff]  }
 0xe8a   : > { %v13634_v40 = vadd.f32 %v13633_v11, %v13632_v60  ;;  %v13814_v37 = vpop.f32.mrb[101].mxu0  ;;  %14241 = vmatprep.subr.bf16.mxu1 %v15009_v45  ;;  %v7392_v54 = vadd.f32 %v13631_v0, %v17630_v57 }
 0xe8b   : > { %v17639_v34 = vadd.f32 %v13814_v37, %v13813_v32  ;;  %v13816_v46 = vpop.f32.mrb[102].mxu0  ;;  %v15014_v37 = vld [vmem:[#allocation13 + $0x30] sm:$0xff]  }
 0xe8c   : > { %v7395_v12 = vadd.f32 %v13634_v40, %v17630_v57  ;;  %v13817_v5 = vpop.f32.mrb[103].mxu0 }
 0xe8d   : > { %18340 = vst [vmem:[#allocation50_spill] sm:$0xff] %v17639_v34  ;;  %v17643_v24 = vadd.f32 %v13817_v5, %v13816_v46  ;;  %14242 = vmatpush3.bf16.msra.mxu1 %v15009_v45 }
 0xe8e   : > { %v7511_v23 = vpack.c.bf16 %v7395_v12, %v7392_v54  ;;  %v13635_v42 = vpop.f32.mrb[24].mxu1  ;;  %14243 = vmatprep.subr.bf16.mxu1 %v15010_v44 }
 0xe8f   : > { %18341 = vst [vmem:[#allocation34_spill] sm:$0xff] %v17643_v24  ;;  %v13636_v30 = vpop.f32.mrb[25].mxu1 }
 0xe90   : > { %v13637_v25 = vadd.f32 %v13636_v30, %v13635_v42  ;;  %v13638_v63 = vpop.f32.mrb[26].mxu1  ;;  %8599 = vmatmul.mubr.bf16.gmra.mrb[84].mxu1 %v7511_v23  ;;  %v14961_v23 = vld [vmem:[%s16012_s0 + $0x60] ss:$12 sps:$4 sm:$0xff]  }
 0xe91   : > { %v13639_v15 = vpop.f32.mrb[27].mxu1  ;;  %v13819_v56 = vpop.f32.mrb[104].mxu0  ;;  %8606 = vmatprep.mubr.bf16.mxu1 %v14953_v41  ;;  %14244 = vmatpush3.bf16.msra.mxu1 %v15010_v44 }
 0xe92   : > { %v13640_v16 = vadd.f32 %v13639_v15, %v13638_v63  ;;  %v13820_v13 = vpop.f32.mrb[105].mxu0  ;;  %14245 = vmatprep.subr.bf16.mxu1 %v15011_v52  ;;  %v7400_v6 = vadd.f32 %v13637_v25, %v17630_v57 }
 0xe93   : > { %v17646_v62 = vadd.f32 %v13820_v13, %v13819_v56  ;;  %v13822_v47 = vpop.f32.mrb[106].mxu0 }
 0xe94   : > { %v7403_v50 = vadd.f32 %v13640_v16, %v17630_v57  ;;  %v13823_v1 = vpop.f32.mrb[107].mxu0 }
 0xe95   : > { %18342 = vst [vmem:[#allocation33_spill] sm:$0xff] %v17646_v62  ;;  %v17650_v4 = vadd.f32 %v13823_v1, %v13822_v47  ;;  %14246 = vmatpush3.bf16.msra.mxu1 %v15011_v52 }
 0xe96   : > { %v7512_v18 = vpack.c.bf16 %v7403_v50, %v7400_v6  ;;  %v13641_v58 = vpop.f32.mrb[28].mxu1  ;;  %14247 = vmatprep.subr.bf16.mxu1 %v15012_v20 }
 0xe97   : > { %18343 = vst [vmem:[#allocation53_spill] sm:$0xff] %v17650_v4  ;;  %v13642_v45 = vpop.f32.mrb[29].mxu1 }
 0xe98   : > { %v13643_v27 = vadd.f32 %v13642_v45, %v13641_v58  ;;  %v13644_v0 = vpop.f32.mrb[30].mxu1  ;;  %8607 = vmatmul.mubr.bf16.gmra.mrb[88].mxu1 %v7512_v18 }
 0xe99   : > { %v13645_v60 = vpop.f32.mrb[31].mxu1  ;;  %v13825_v11 = vpop.f32.mrb[108].mxu0  ;;  %8614 = vmatprep.mubr.bf16.mxu1 %v14957_v17  ;;  %14248 = vmatpush3.bf16.msra.mxu1 %v15012_v20  ;;  %v14965_v20 = vld [vmem:[%s16012_s0 + $0x78] ss:$12 sps:$4 sm:$0xff]  }
 0xe9a   : > { %v13646_v32 = vadd.f32 %v13645_v60, %v13644_v0  ;;  %v13826_v40 = vpop.f32.mrb[109].mxu0  ;;  %14249 = vmatprep.subr.bf16.mxu1 %v15013_v49  ;;  %v7408_v54 = vadd.f32 %v13643_v27, %v17630_v57  ;;  %v14969_v27 = vld [vmem:[%s16012_s0 + $0x90] ss:$12 sps:$4 sm:$0xff]  }
 0xe9b   : > { %v17653_v44 = vadd.f32 %v13826_v40, %v13825_v11  ;;  %v13828_v46 = vpop.f32.mrb[110].mxu0 }
 0xe9c   : > { %v7411_v12 = vadd.f32 %v13646_v32, %v17630_v57  ;;  %v13829_v5 = vpop.f32.mrb[111].mxu0 }
 0xe9d   : > { %18344 = vst [vmem:[#allocation52_spill] sm:$0xff] %v17653_v44  ;;  %v17657_v41 = vadd.f32 %v13829_v5, %v13828_v46  ;;  %14250 = vmatpush3.bf16.msra.mxu1 %v15013_v49  ;;  %v14973_v5 = vld [vmem:[%s16012_s0 + $0xa8] ss:$12 sps:$4 sm:$0xff]  }
 0xe9e   : > { %v7513_v42 = vpack.c.bf16 %v7411_v12, %v7408_v54  ;;  %v13647_v52 = vpop.f32.mrb[32].mxu1  ;;  %14251 = vmatprep.subr.bf16.mxu1 %v15014_v37 }
 0xe9f   : > { %18345 = vst [vmem:[#allocation36_spill] sm:$0xff] %v17657_v41  ;;  %v13648_v30 = vpop.f32.mrb[33].mxu1 }
 0xea0   : > { %v13649_v25 = vadd.f32 %v13648_v30, %v13647_v52  ;;  %v13650_v63 = vpop.f32.mrb[34].mxu1  ;;  %8615 = vmatmul.mubr.bf16.gmra.mrb[92].mxu1 %v7513_v42 }
 0xea1   : > { %v13651_v15 = vpop.f32.mrb[35].mxu1  ;;  %8622 = vmatprep.mubr.bf16.mxu1 %v14961_v23  ;;  %14252 = vmatpush3.bf16.msra.mxu1 %v15014_v37 }
 0xea2   : > { %v13652_v56 = vadd.f32 %v13651_v15, %v13650_v63  ;;  %v7416_v16 = vadd.f32 %v13649_v25, %v17630_v57 }
 0xea4   : > { %v7419_v13 = vadd.f32 %v13652_v56, %v17630_v57 }
 0xea6   : > { %v7514_v47 = vpack.c.bf16 %v7419_v13, %v7416_v16  ;;  %v13653_v6 = vpop.f32.mrb[36].mxu1  ;;  %v14977_v13 = vld [vmem:[%s16012_s0 + $0xc0] ss:$12 sps:$4 sm:$0xff]  }
 0xea7   : > { %v13654_v50 = vpop.f32.mrb[37].mxu1 }
 0xea8   : > { %v13655_v1 = vadd.f32 %v13654_v50, %v13653_v6  ;;  %v13656_v17 = vpop.f32.mrb[38].mxu1  ;;  %8623 = vmatmul.mubr.bf16.gmra.mrb[96].mxu1 %v7514_v47 }
 0xea9   : > { %v13657_v18 = vpop.f32.mrb[39].mxu1  ;;  %8630 = vmatprep.mubr.bf16.mxu1 %v14965_v20 }
 0xeaa   : > { %v13658_v58 = vadd.f32 %v13657_v18, %v13656_v17  ;;  %v7424_v49 = vadd.f32 %v13655_v1, %v17630_v57 }
 0xeac   : > { %v7427_v45 = vadd.f32 %v13658_v58, %v17630_v57 }
 0xeae   : > { %v7515_v0 = vpack.c.bf16 %v7427_v45, %v7424_v49  ;;  %v13659_v60 = vpop.f32.mrb[40].mxu1  ;;  %v14981_v45 = vld [vmem:[%s16012_s0 + $0xd8] ss:$12 sps:$4 sm:$0xff]  }
 0xeaf   : > { %v13660_v11 = vpop.f32.mrb[41].mxu1 }
 0xeb0   : > { %v13661_v32 = vadd.f32 %v13660_v11, %v13659_v60  ;;  %v13662_v40 = vpop.f32.mrb[42].mxu1  ;;  %8631 = vmatmul.mubr.bf16.gmra.mrb[100].mxu1 %v7515_v0 }
 0xeb1   : > { %v13663_v37 = vpop.f32.mrb[43].mxu1  ;;  %8638 = vmatprep.mubr.bf16.mxu1 %v14969_v27 }
 0xeb2   : > { %v13664_v46 = vadd.f32 %v13663_v37, %v13662_v40  ;;  %v7432_v54 = vadd.f32 %v13661_v32, %v17630_v57 }
 0xeb4   : > { %v7435_v12 = vadd.f32 %v13664_v46, %v17630_v57 }
 0xeb6   : > { %v7516_v23 = vpack.c.bf16 %v7435_v12, %v7432_v54  ;;  %v13665_v42 = vpop.f32.mrb[44].mxu1  ;;  %v14985_v12 = vld [vmem:[%s16012_s0 + $0xf0] ss:$12 sps:$4 sm:$0xff]  }
 0xeb7   : > { %v13666_v52 = vpop.f32.mrb[45].mxu1 }
 0xeb8   : > { %v13667_v30 = vadd.f32 %v13666_v52, %v13665_v42  ;;  %v13668_v25 = vpop.f32.mrb[46].mxu1  ;;  %8639 = vmatmul.mubr.bf16.gmra.mrb[104].mxu1 %v7516_v23 }
 0xeb9   : > { %v13669_v63 = vpop.f32.mrb[47].mxu1  ;;  %8646 = vmatprep.mubr.bf16.mxu1 %v14973_v5 }
 0xeba   : > { %v13670_v15 = vadd.f32 %v13669_v63, %v13668_v25  ;;  %v7440_v56 = vadd.f32 %v13667_v30, %v17630_v57 }
 0xebc   : > { %v7443_v16 = vadd.f32 %v13670_v15, %v17630_v57 }
 0xebe   : > { %v7517_v20 = vpack.c.bf16 %v7443_v16, %v7440_v56  ;;  %v13671_v47 = vpop.f32.mrb[48].mxu1  ;;  %v14989_v16 = vld [vmem:[%s16012_s0 + $0x108] ss:$12 sps:$4 sm:$0xff]  }
 0xebf   : > { %v13672_v6 = vpop.f32.mrb[49].mxu1 }
 0xec0   : > { %v13673_v50 = vadd.f32 %v13672_v6, %v13671_v47  ;;  %v13674_v1 = vpop.f32.mrb[50].mxu1  ;;  %8647 = vmatmul.mubr.bf16.gmra.mrb[108].mxu1 %v7517_v20 }
 0xec1   : > { %v13675_v17 = vpop.f32.mrb[51].mxu1  ;;  %8654 = vmatprep.mubr.bf16.mxu1 %v14977_v13 }
 0xec2   : > { %v13676_v18 = vadd.f32 %v13675_v17, %v13674_v1  ;;  %v7448_v58 = vadd.f32 %v13673_v50, %v17630_v57 }
 0xec4   : > { %v7451_v49 = vadd.f32 %v13676_v18, %v17630_v57  ;;  %v13959_v18 = vpop.f32.mrb[112].mxu0 }
 0xec6   : > { %v7518_v27 = vpack.c.bf16 %v7451_v49, %v7448_v58  ;;  %v13677_v0 = vpop.f32.mrb[52].mxu1  ;;  %v13960_v58 = vpop.f32.mrb[113].mxu0 }
 0xec7   : > { %v13678_v60 = vpop.f32.mrb[53].mxu1 }
 0xec8   : > { %v13679_v11 = vadd.f32 %v13678_v60, %v13677_v0  ;;  %v13680_v32 = vpop.f32.mrb[54].mxu1  ;;  %8655 = vmatmul.mubr.bf16.gmra.mrb[112].mxu1 %v7518_v27  ;;  %v17683_v27 = vadd.f32 %v13960_v58, %v13959_v18  ;;  %v13962_v0 = vpop.f32.mrb[114].mxu0  ;;  %v14993_v60 = vld [vmem:[%s16012_s0 + $0x120] ss:$12 sps:$4 sm:$0xff]  }
 0xec9   : > { %v13681_v40 = vpop.f32.mrb[55].mxu1  ;;  %8662 = vmatprep.mubr.bf16.mxu1 %v14981_v45 }
 0xeca   : > { %v13682_v37 = vadd.f32 %v13681_v40, %v13680_v32  ;;  %v7456_v46 = vadd.f32 %v13679_v11, %v17630_v57  ;;  %v13963_v11 = vpop.f32.mrb[115].mxu0 }
 0xecc   : > { %v7459_v54 = vadd.f32 %v13682_v37, %v17630_v57  ;;  %v17686_v37 = vadd.f32 %v13963_v11, %v13962_v0 }
 0xece   : > { %v7519_v5 = vpack.c.bf16 %v7459_v54, %v7456_v46  ;;  %v13683_v23 = vpop.f32.mrb[56].mxu1 }
 0xecf   : > { %v13684_v42 = vpop.f32.mrb[57].mxu1 }
 0xed0   : > { %v13685_v52 = vadd.f32 %v13684_v42, %v13683_v23  ;;  %v13686_v30 = vpop.f32.mrb[58].mxu1  ;;  %8663 = vmatmul.mubr.bf16.gmra.mrb[116].mxu1 %v7519_v5  ;;  %v13965_v42 = vpop.f32.mrb[116].mxu0 }
 0xed1   : > { %v13687_v25 = vpop.f32.mrb[59].mxu1  ;;  %8670 = vmatprep.mubr.bf16.mxu1 %v14985_v12 }
 0xed2   : > { %v13688_v63 = vadd.f32 %v13687_v25, %v13686_v30  ;;  %v7464_v15 = vadd.f32 %v13685_v52, %v17630_v57  ;;  %v13966_v52 = vpop.f32.mrb[117].mxu0 }
 0xed4   : > { %v7467_v56 = vadd.f32 %v13688_v63, %v17630_v57  ;;  %v13968_v63 = vpop.f32.mrb[118].mxu0 }
 0xed6   : > { %v7520_v13 = vpack.c.bf16 %v7467_v56, %v7464_v15  ;;  %v13689_v20 = vpop.f32.mrb[60].mxu1  ;;  %v14997_v15 = vld [vmem:[%s16012_s0 + $0x138] ss:$12 sps:$4 sm:$0xff]   ;;  %v15015_v56 = vld [vmem:[#allocation13 + $0x38] sm:$0xff]  }
 0xed7   : > { %v13690_v47 = vpop.f32.mrb[61].mxu1  ;;  %14253 = vmatprep.subr.bf16.mxu1 %v15015_v56 }
 0xed8   : > { %v13691_v6 = vadd.f32 %v13690_v47, %v13689_v20  ;;  %v13692_v50 = vpop.f32.mrb[62].mxu1  ;;  %8671 = vmatmul.mubr.bf16.gmra.mrb[120].mxu1 %v7520_v13  ;;  %v13969_v13 = vpop.f32.mrb[119].mxu0 }
 0xed9   : > { %v13693_v1 = vpop.f32.mrb[63].mxu1  ;;  %8678 = vmatprep.mubr.bf16.mxu1 %v14989_v16  ;;  %v17691_v16 = vadd.f32 %v13966_v52, %v13965_v42  ;;  %14254 = vmatpush3.bf16.msra.mxu1 %v15015_v56 }
 0xeda   : > { %v13694_v17 = vadd.f32 %v13693_v1, %v13692_v50  ;;  %v7472_v49 = vadd.f32 %v13691_v6, %v17630_v57  ;;  %v17693_v6 = vadd.f32 %v13969_v13, %v13968_v63 }
 0xedc   : > { %v7475_v45 = vadd.f32 %v13694_v17, %v17630_v57 }
 0xede   : > { %v7521_v32 = vpack.c.bf16 %v7475_v45, %v7472_v49  ;;  %v13695_v40 = vpop.f32.mrb[64].mxu1  ;;  %v13971_v49 = vpop.f32.mrb[120].mxu0 }
 0xedf   : > { %v13696_v46 = vpop.f32.mrb[65].mxu1  ;;  %v13972_v45 = vpop.f32.mrb[121].mxu0 }
 0xee0   : > { %v13697_v54 = vadd.f32 %v13696_v46, %v13695_v40  ;;  %v13698_v12 = vpop.f32.mrb[66].mxu1  ;;  %8679 = vmatmul.mubr.bf16.gmra.mrb[124].mxu1 %v7521_v32  ;;  %v13974_v11 = vpop.f32.mrb[122].mxu0  ;;  %v15002_v32 = vld [vmem:[%s16012_s0 + $0x150] ss:$12 sps:$4 sm:$0xff]  }
 0xee1   : > { %v13699_v5 = vpop.f32.mrb[67].mxu1  ;;  %8686 = vmatprep.mubr.bf16.mxu1 %v14993_v60  ;;  %v13975_v40 = vpop.f32.mrb[123].mxu0 }
 0xee2   : > { %v13700_v23 = vadd.f32 %v13699_v5, %v13698_v12  ;;  %v7480_v30 = vadd.f32 %v13697_v54, %v17630_v57  ;;  %v17698_v12 = vadd.f32 %v13972_v45, %v13971_v49  ;;  %v17700_v5 = vadd.f32 %v13975_v40, %v13974_v11  ;;  %v13977_v63 = vpop.f32.mrb[124].mxu0 }
 0xee4   : > { %v7483_v25 = vadd.f32 %v13700_v23, %v17630_v57 }
 0xee6   : > { %v7522_v20 = vpack.c.bf16 %v7483_v25, %v7480_v30  ;;  %v13701_v47 = vpop.f32.mrb[68].mxu1 }
 0xee7   : > { %v13702_v50 = vpop.f32.mrb[69].mxu1 }
 0xee8   : > { %v13703_v1 = vadd.f32 %v13702_v50, %v13701_v47  ;;  %v13704_v17 = vpop.f32.mrb[70].mxu1  ;;  %8687 = vmatmul.mubr.bf16.gmra.mrb[128].mxu1 %v7522_v20  ;;  %v15006_v47 = vld [vmem:[%s16012_s0 + $0x168] ss:$12 sps:$4 sm:$0xff]  }
 0xee9   : > { %v13705_v18 = vpop.f32.mrb[71].mxu1  ;;  %8694 = vmatprep.mubr.bf16.mxu1 %v14997_v15  ;;  %v13978_v15 = vpop.f32.mrb[125].mxu0 }
 0xeea   : > { %v13706_v58 = vadd.f32 %v13705_v18, %v13704_v17  ;;  %v7488_v0 = vadd.f32 %v13703_v1, %v17630_v57  ;;  %v13980_v20 = vpop.f32.mrb[126].mxu0  ;;  %v17705_v50 = vadd.f32 %v13978_v15, %v13977_v63 }
 0xeeb   : > { %v13981_v1 = vpop.f32.mrb[127].mxu0 }
 0xeec   : > { %v7491_v60 = vadd.f32 %v13706_v58, %v17630_v57  ;;  %v17707_v58 = vadd.f32 %v13981_v1, %v13980_v20 }
 0xeee   : > { %v7523_v46 = vpack.c.bf16 %v7491_v60, %v7488_v0  ;;  %v13707_v54 = vpop.f32.mrb[72].mxu1 }
 0xeef   : > { %v13708_v23 = vpop.f32.mrb[73].mxu1 }
 0xef0   : > { %v13709_v42 = vadd.f32 %v13708_v23, %v13707_v54  ;;  %v13710_v52 = vpop.f32.mrb[74].mxu1  ;;  %8695 = vmatmul.mubr.bf16.gmra.mrb[132].mxu1 %v7523_v46 }
 0xef1   : > { %v13711_v30 = vpop.f32.mrb[75].mxu1  ;;  %8702 = vmatprep.mubr.bf16.mxu1 %v15002_v32  ;;  %v13983_v32 = vpop.f32.mrb[128].mxu0 }
 0xef2   : > { %v13712_v25 = vadd.f32 %v13711_v30, %v13710_v52  ;;  %v7496_v56 = vadd.f32 %v13709_v42, %v17630_v57  ;;  %v13984_v40 = vpop.f32.mrb[129].mxu0 }
 0xef3   : > { %v13986_v23 = vpop.f32.mrb[130].mxu0  ;;  %v17711_v30 = vadd.f32 %v13984_v40, %v13983_v32 }
 0xef4   : > { %v7499_v13 = vadd.f32 %v13712_v25, %v17630_v57  ;;  %v13987_v42 = vpop.f32.mrb[131].mxu0 }
 0xef5   : > { %v17713_v25 = vadd.f32 %v13987_v42, %v13986_v23  ;;  %v13989_v63 = vpop.f32.mrb[132].mxu0 }
 0xef6   : > { %v7524_v17 = vpack.c.bf16 %v7499_v13, %v7496_v56  ;;  %v13713_v18 = vpop.f32.mrb[76].mxu1  ;;  %v13990_v15 = vpop.f32.mrb[133].mxu0 }
 0xef7   : > { %v13714_v49 = vpop.f32.mrb[77].mxu1  ;;  %v13992_v56 = vpop.f32.mrb[134].mxu0  ;;  %v17715_v13 = vadd.f32 %v13990_v15, %v13989_v63 }
 0xef8   : > { %v13715_v45 = vadd.f32 %v13714_v49, %v13713_v18  ;;  %v13716_v0 = vpop.f32.mrb[78].mxu1  ;;  %8703 = vmatmul.mubr.bf16.gmra.mrb[136].mxu1 %v7524_v17  ;;  %v13993_v20 = vpop.f32.mrb[135].mxu0 }
 0xef9   : > { %v13717_v60 = vpop.f32.mrb[79].mxu1  ;;  %8710 = vmatprep.mubr.bf16.mxu1 %v15006_v47  ;;  %v17717_v47 = vadd.f32 %v13993_v20, %v13992_v56  ;;  %v13995_v1 = vpop.f32.mrb[136].mxu0 }
 0xefa   : > { %v13718_v11 = vadd.f32 %v13717_v60, %v13716_v0  ;;  %v7504_v46 = vadd.f32 %v13715_v45, %v17630_v57  ;;  %v13996_v17 = vpop.f32.mrb[137].mxu0 }
 0xefb   : > { %v13998_v18 = vpop.f32.mrb[138].mxu0  ;;  %v17719_v49 = vadd.f32 %v13996_v17, %v13995_v1 }
 0xefc   : > { %v7507_v54 = vadd.f32 %v13718_v11, %v17630_v57  ;;  %v13999_v57 = vpop.f32.mrb[139].mxu0 }
 0xefd   : > { %v17721_v45 = vadd.f32 %v13999_v57, %v13998_v18  ;;  %v14001_v0 = vpop.f32.mrb[140].mxu0 }
 0xefe   : > { %v7525_v52 = vpack.c.bf16 %v7507_v54, %v7504_v46  ;;  %v14002_v60 = vpop.f32.mrb[141].mxu0 }
 0xeff   : > { %v14004_v11 = vpop.f32.mrb[142].mxu0  ;;  %v17723_v32 = vadd.f32 %v14002_v60, %v14001_v0 }
 0xf00   : > { %8711 = vmatmul.mubr.bf16.gmra.mrb[140].mxu1 %v7525_v52  ;;  %v14005_v40 = vpop.f32.mrb[143].mxu0 }
 0xf01   : > { %v17725_v46 = vadd.f32 %v14005_v40, %v14004_v11  ;;  %v14007_v54 = vpop.f32.mrb[144].mxu0 }
 0xf02   : > { %v14008_v23 = vpop.f32.mrb[145].mxu0 }
 0xf03   : > { %v14010_v42 = vpop.f32.mrb[146].mxu0  ;;  %v17727_v63 = vadd.f32 %v14008_v23, %v14007_v54 }
 0xf04   : > { %v14011_v52 = vpop.f32.mrb[147].mxu0 }
 0xf05   : > { %v17729_v15 = vadd.f32 %v14011_v52, %v14010_v42  ;;  %v14013_v56 = vpop.f32.mrb[148].mxu0 }
 0xf06   : > { %v14014_v20 = vpop.f32.mrb[149].mxu0 }
 0xf07   : > { %v14016_v1 = vpop.f32.mrb[150].mxu0  ;;  %v17731_v17 = vadd.f32 %v14014_v20, %v14013_v56 }
 0xf08   : > { %v14017_v18 = vpop.f32.mrb[151].mxu0 }
 0xf09   : > { %v17733_v57 = vadd.f32 %v14017_v18, %v14016_v1  ;;  %v14019_v0 = vpop.f32.mrb[152].mxu0 }
 0xf0a   : > { %v14020_v60 = vpop.f32.mrb[153].mxu0 }
 0xf0b   : > { %v14022_v11 = vpop.f32.mrb[154].mxu0  ;;  %v17735_v41 = vadd.f32 %v14020_v60, %v14019_v0 }
 0xf0c   : > { %v14023_v40 = vpop.f32.mrb[155].mxu0 }
 0xf0d   : > { %v17737_v44 = vadd.f32 %v14023_v40, %v14022_v11  ;;  %v14025_v54 = vpop.f32.mrb[156].mxu0 }
 0xf0e   : > { %v14026_v23 = vpop.f32.mrb[157].mxu0 }
 0xf0f   : > { %v14028_v42 = vpop.f32.mrb[158].mxu0  ;;  %v17739_v52 = vadd.f32 %v14026_v23, %v14025_v54 }
 0xf10   : > { %v14029_v4 = vpop.f32.mrb[159].mxu0 }
 0xf11   : > { %18346 = vst [vmem:[#allocation35_spill] sm:$0xff] %v17739_v52  ;;  %v17741_v62 = vadd.f32 %v14029_v4, %v14028_v42 }
 0xf13   : > { %18347 = vst [vmem:[#allocation55_spill] sm:$0xff] %v17741_v62  ;;  %v14031_v56 = vpop.f32.mrb[160].mxu0 }
 0xf14   : > { %v14032_v20 = vpop.f32.mrb[161].mxu0 }
 0xf15   : > { %v14034_v1 = vpop.f32.mrb[162].mxu0  ;;  %v17743_v24 = vadd.f32 %v14032_v20, %v14031_v56 }
 0xf16   : > { %v14035_v18 = vpop.f32.mrb[163].mxu0 }
 0xf17   : > { %18348 = vst [vmem:[#allocation54_spill] sm:$0xff] %v17743_v24  ;;  %v17745_v34 = vadd.f32 %v14035_v18, %v14034_v1 }
 0xf19   : > { %18349 = vst [vmem:[#allocation38_spill] sm:$0xff] %v17745_v34 }
 0xf1b   : > { %v14037_v0 = vpop.f32.mrb[164].mxu0 }
 0xf1c   : > { %v14038_v60 = vpop.f32.mrb[165].mxu0 }
 0xf1d   : > { %v14040_v11 = vpop.f32.mrb[166].mxu0  ;;  %v17747_v40 = vadd.f32 %v14038_v60, %v14037_v0  ;;  %v17759_v0 = vld [vmem:[#allocation12] ss:$0 sm:$0xff] }
 0xf1e   : > { %v14041_v19 = vpop.f32.mrb[167].mxu0 }
 0xf1f   : > { %18350 = vst [vmem:[#allocation37_spill] sm:$0xff] %v17747_v40  ;;  %v17749_v61 = vadd.f32 %v14041_v19, %v14040_v11  ;;  %v8432_v11 = vadd.f32 %v17558_v53, %v17759_v0  ;;  %v8440_v53 = vadd.f32 %v17564_v36, %v17759_v0 }
 0xf21   : > { %18351 = vst [vmem:[#allocation57_spill] sm:$0xff] %v17749_v61 }
 0xf23   : > { %v14043_v54 = vpop.f32.mrb[168].mxu0 }
 0xf24   : > { %v14044_v23 = vpop.f32.mrb[169].mxu0 }
 0xf25   : > { %v14046_v4 = vpop.f32.mrb[170].mxu0  ;;  %v17751_v62 = vadd.f32 %v14044_v23, %v14043_v54 }
 0xf26   : > { %v14047_v42 = vpop.f32.mrb[171].mxu0 }
 0xf27   : > { %18352 = vst [vmem:[#allocation56_spill] sm:$0xff] %v17751_v62  ;;  %v17753_v52 = vadd.f32 %v14047_v42, %v14046_v4  ;;  %v8435_v4 = vadd.f32 %v17561_v21, %v17759_v0  ;;  %v8443_v21 = vadd.f32 %v17567_v33, %v17759_v0 }
 0xf29   : > { %18353 = vst [vmem:[#allocation40_spill] sm:$0xff] %v17753_v52 }
 0xf2b   : > { %v14049_v56 = vpop.f32.mrb[172].mxu0 }
 0xf2c   : > { %v14050_v20 = vpop.f32.mrb[173].mxu0 }
 0xf2d   : > { %v14052_v1 = vpop.f32.mrb[174].mxu0  ;;  %v17755_v18 = vadd.f32 %v14050_v20, %v14049_v56 }
 0xf2e   : > { %v14053_v34 = vpop.f32.mrb[175].mxu0 }
 0xf2f   : > { %18354 = vst [vmem:[#allocation39_spill] sm:$0xff] %v17755_v18  ;;  %v17757_v24 = vadd.f32 %v14053_v34, %v14052_v1  ;;  %v15016_v18 = vld [vmem:[#allocation13 + $0x40] sm:$0xff]  }
 0xf30   : > { %14287 = vmatprep.subr.bf16.mxu1 %v15016_v18 }
 0xf31   : > { %18355 = vst [vmem:[#allocation59_spill] sm:$0xff] %v17757_v24 }
 0xf5b   : > { %v13847_v19 = vpop.f32.mrb[80].mxu1 }
 0xf5c   : > { %v13848_v60 = vpop.f32.mrb[81].mxu1 }
 0xf5d   : > { %v13849_v61 = vadd.f32 %v13848_v60, %v13847_v19  ;;  %v13850_v54 = vpop.f32.mrb[82].mxu1 }
 0xf5e   : > { %v13851_v23 = vpop.f32.mrb[83].mxu1 }
 0xf5f   : > { %v8593_v42 = vadd.f32 %v13849_v61, %v8432_v11  ;;  %v13852_v52 = vadd.f32 %v13851_v23, %v13850_v54 }
 0xf61   : > { %v8754_v56 = vadd.f32 %v17683_v27, %v8593_v42  ;;  %v8596_v20 = vadd.f32 %v13852_v52, %v8435_v4 }
 0xf63   : > { %v8880_v34 = vmul.f32 0.01, %v8754_v56  ;;  %v8757_v1 = vadd.f32 %v17686_v37, %v8596_v20  ;;  %v13853_v24 = vpop.f32.mrb[84].mxu1 }
 0xf64   : > { %v13854_v62 = vpop.f32.mrb[85].mxu1 }
 0xf65   : > { %v8881_v19 = vmul.f32 0.01, %v8757_v1  ;;  %v13855_v60 = vadd.f32 %v13854_v62, %v13853_v24  ;;  %v13856_v40 = vpop.f32.mrb[86].mxu1  ;;  %v8912_v52 = vmax.f32 %v8754_v56, %v8880_v34  ;;  %v8448_v62 = vadd.f32 %v17570_v28, %v17759_v0 }
 0xf66   : > { %v13857_v61 = vpop.f32.mrb[87].mxu1 }
 0xf67   : > { %v8601_v11 = vadd.f32 %v13855_v60, %v8440_v53  ;;  %v13858_v27 = vadd.f32 %v13857_v61, %v13856_v40  ;;  %v8913_v54 = vmax.f32 %v8757_v1, %v8881_v19  ;;  %v8451_v40 = vadd.f32 %v17573_v59, %v17759_v0 }
 0xf68   : > { %v8456_v59 = vadd.f32 %v17576_v14, %v17759_v0  ;;  %v15019_v14 = vld [vmem:[#allocation13 + $0x58] sm:$0xff]  }
 0xf69   : > { %v8762_v37 = vadd.f32 %v17691_v16, %v8601_v11  ;;  %v8604_v23 = vadd.f32 %v13858_v27, %v8443_v21  ;;  %v8944_v4 = vpack.c.bf16 %v8913_v54, %v8912_v52  ;;  %v15017_v21 = vld [vmem:[#allocation13 + $0x48] sm:$0xff]  }
 0xf6b   : > { %v8882_v42 = vmul.f32 0.01, %v8762_v37  ;;  %v8765_v20 = vadd.f32 %v17693_v6, %v8604_v23  ;;  %v13859_v36 = vpop.f32.mrb[88].mxu1  ;;  %14255 = vmatprep.mubr.bf16.mxu1 %v8944_v4 }
 0xf6c   : > { %v13860_v24 = vpop.f32.mrb[89].mxu1 }
 0xf6d   : > { %v8883_v48 = vmul.f32 0.01, %v8765_v20  ;;  %v13861_v33 = vadd.f32 %v13860_v24, %v13859_v36  ;;  %v13862_v55 = vpop.f32.mrb[90].mxu1  ;;  %v8914_v34 = vmax.f32 %v8762_v37, %v8882_v42 }
 0xf6e   : > { %v13863_v56 = vpop.f32.mrb[91].mxu1 }
 0xf6f   : > { %v8915_v16 = vmax.f32 %v8765_v20, %v8883_v48  ;;  %v8609_v1 = vadd.f32 %v13861_v33, %v8448_v62  ;;  %v13864_v53 = vadd.f32 %v13863_v56, %v13862_v55  ;;  %v15018_v55 = vld [vmem:[#allocation13 + $0x50] sm:$0xff]  }
 0xf71   : > { %v8945_v19 = vpack.c.bf16 %v8915_v16, %v8914_v34  ;;  %v8770_v6 = vadd.f32 %v17698_v12, %v8609_v1  ;;  %v8612_v60 = vadd.f32 %v13864_v53, %v8451_v40  ;;  %v8459_v12 = vadd.f32 %v17579_v29, %v17759_v0  ;;  %v15020_v1 = vld [vmem:[#allocation13 + $0x60] sm:$0xff]  }
 0xf72   : > { %v8464_v29 = vadd.f32 %v17582_v8, %v17759_v0  ;;  %v15021_v8 = vld [vmem:[#allocation13 + $0x68] sm:$0xff]  }
 0xf73   : > { %v8884_v61 = vmul.f32 0.01, %v8770_v6  ;;  %v8773_v11 = vadd.f32 %v17700_v5, %v8612_v60  ;;  %v13865_v28 = vpop.f32.mrb[92].mxu1  ;;  %14256 = vmatmul.mubr.bf16.vlgmr.msra.gmra.mrb[144].mxu1 %v8945_v19 }
 0xf74   : > { %v13866_v27 = vpop.f32.mrb[93].mxu1  ;;  %14288 = vmatpush3.bf16.msra.mxu1 %v15016_v18 }
 0xf75   : > { %v8885_v52 = vmul.f32 0.01, %v8773_v11  ;;  %v13867_v54 = vadd.f32 %v13866_v27, %v13865_v28  ;;  %v13868_v48 = vpop.f32.mrb[94].mxu1  ;;  %14289 = vmatprep.subr.bf16.mxu1 %v15017_v21  ;;  %v8916_v42 = vmax.f32 %v8770_v6, %v8884_v61 }
 0xf76   : > { %v13869_v37 = vpop.f32.mrb[95].mxu1 }
 0xf77   : > { %v8617_v23 = vadd.f32 %v13867_v54, %v8456_v59  ;;  %v13870_v4 = vadd.f32 %v13869_v37, %v13868_v48  ;;  %v8917_v5 = vmax.f32 %v8773_v11, %v8885_v52 }
 0xf78   : > { %14290 = vmatpush3.bf16.msra.mxu1 %v15017_v21 }
 0xf79   : > { %v8778_v20 = vadd.f32 %v17705_v50, %v8617_v23  ;;  %v8620_v18 = vadd.f32 %v13870_v4, %v8459_v12  ;;  %v8946_v36 = vpack.c.bf16 %v8917_v5, %v8916_v42  ;;  %14291 = vmatprep.subr.bf16.mxu1 %v15018_v55  ;;  %v8467_v50 = vadd.f32 %v17585_v2, %v17759_v0  ;;  %v15022_v12 = vld [vmem:[#allocation13 + $0x70] sm:$0xff]  }
 0xf7a   : > { %v8472_v2 = vadd.f32 %v17588_v38, %v17759_v0 }
 0xf7b   : > { %v8886_v24 = vmul.f32 0.01, %v8778_v20  ;;  %v8781_v62 = vadd.f32 %v17707_v58, %v8620_v18  ;;  %v13871_v33 = vpop.f32.mrb[96].mxu1  ;;  %14259 = vmatprep.mubr.bf16.mxu1 %v8946_v36 }
 0xf7c   : > { %v13872_v40 = vpop.f32.mrb[97].mxu1  ;;  %14292 = vmatpush3.bf16.msra.mxu1 %v15018_v55 }
 0xf7d   : > { %v8887_v56 = vmul.f32 0.01, %v8781_v62  ;;  %v13873_v34 = vadd.f32 %v13872_v40, %v13871_v33  ;;  %v13874_v16 = vpop.f32.mrb[98].mxu1  ;;  %14293 = vmatprep.subr.bf16.mxu1 %v15019_v14  ;;  %v8918_v19 = vmax.f32 %v8778_v20, %v8886_v24 }
 0xf7e   : > { %v13875_v53 = vpop.f32.mrb[99].mxu1 }
 0xf7f   : > { %v8919_v6 = vmax.f32 %v8781_v62, %v8887_v56  ;;  %v8625_v60 = vadd.f32 %v13873_v34, %v8464_v29  ;;  %v13876_v58 = vadd.f32 %v13875_v53, %v13874_v16  ;;  %v8483_v29 = vadd.f32 %v17597_v9, %v17759_v0 }
 0xf80   : > { %14294 = vmatpush3.bf16.msra.mxu1 %v15019_v14 }
 0xf81   : > { %v8947_v21 = vpack.c.bf16 %v8919_v6, %v8918_v19  ;;  %v8786_v61 = vadd.f32 %v17711_v30, %v8625_v60  ;;  %v8628_v11 = vadd.f32 %v13876_v58, %v8467_v50  ;;  %14295 = vmatprep.subr.bf16.mxu1 %v15020_v1  ;;  %v8475_v30 = vadd.f32 %v17591_v51, %v17759_v0 }
 0xf82   : > { %v8480_v51 = vadd.f32 %v17594_v39, %v17759_v0  ;;  %v8488_v58 = vadd.f32 %v17600_v31, %v17759_v0 }
 0xf83   : > { %v8888_v28 = vmul.f32 0.01, %v8786_v61  ;;  %v8789_v27 = vadd.f32 %v17713_v25, %v8628_v11  ;;  %v13877_v59 = vpop.f32.mrb[100].mxu1  ;;  %14260 = vmatmul.mubr.bf16.gmra.mrb[148].mxu1 %v8947_v21  ;;  %v8491_v11 = vadd.f32 %v17603_v3, %v17759_v0 }
 0xf84   : > { %v13878_v52 = vpop.f32.mrb[101].mxu1  ;;  %14296 = vmatpush3.bf16.msra.mxu1 %v15020_v1 }
 0xf85   : > { %v8889_v54 = vmul.f32 0.01, %v8789_v27  ;;  %v13879_v48 = vadd.f32 %v13878_v52, %v13877_v59  ;;  %v13880_v55 = vpop.f32.mrb[102].mxu1  ;;  %14297 = vmatprep.subr.bf16.mxu1 %v15021_v8  ;;  %v8920_v42 = vmax.f32 %v8786_v61, %v8888_v28 }
 0xf86   : > { %v13881_v37 = vpop.f32.mrb[103].mxu1 }
 0xf87   : > { %v8633_v23 = vadd.f32 %v13879_v48, %v8472_v2  ;;  %v13882_v4 = vadd.f32 %v13881_v37, %v13880_v55  ;;  %v8921_v25 = vmax.f32 %v8789_v27, %v8889_v54 }
 0xf88   : > { %14298 = vmatpush3.bf16.msra.mxu1 %v15021_v8 }
 0xf89   : > { %v8794_v5 = vadd.f32 %v17715_v13, %v8633_v23  ;;  %v8636_v20 = vadd.f32 %v13882_v4, %v8475_v30  ;;  %v8948_v18 = vpack.c.bf16 %v8921_v25, %v8920_v42  ;;  %14299 = vmatprep.subr.bf16.mxu1 %v15022_v12  ;;  %v8499_v23 = vadd.f32 %v17609_v22, %v17759_v0 }
 0xf8b   : > { %v8890_v38 = vmul.f32 0.01, %v8794_v5  ;;  %v8797_v36 = vadd.f32 %v17717_v47, %v8636_v20  ;;  %v13883_v14 = vpop.f32.mrb[104].mxu1  ;;  %14263 = vmatprep.mubr.bf16.mxu1 %v8948_v18 }
 0xf8c   : > { %v13884_v24 = vpop.f32.mrb[105].mxu1  ;;  %14300 = vmatpush3.bf16.msra.mxu1 %v15022_v12  ;;  %v8496_v12 = vadd.f32 %v17606_v10, %v17759_v0 }
 0xf8d   : > { %v8891_v62 = vmul.f32 0.01, %v8797_v36  ;;  %v13885_v33 = vadd.f32 %v13884_v24, %v13883_v14  ;;  %v13886_v40 = vpop.f32.mrb[106].mxu1  ;;  %v8922_v56 = vmax.f32 %v8794_v5, %v8890_v38  ;;  %v8504_v24 = vadd.f32 %v17612_v26, %v17759_v0 }
 0xf8e   : > { %v13887_v13 = vpop.f32.mrb[107].mxu1 }
 0xf8f   : > { %v8923_v34 = vmax.f32 %v8797_v36, %v8891_v62  ;;  %v8641_v16 = vadd.f32 %v13885_v33, %v8480_v51  ;;  %v13888_v1 = vadd.f32 %v13887_v13, %v13886_v40  ;;  %v8507_v33 = vadd.f32 %v17615_v7, %v17759_v0 }
 0xf91   : > { %v8949_v50 = vpack.c.bf16 %v8923_v34, %v8922_v56  ;;  %v8802_v47 = vadd.f32 %v17719_v49, %v8641_v16  ;;  %v8644_v53 = vadd.f32 %v13888_v1, %v8483_v29 }
 0xf93   : > { %v8892_v19 = vmul.f32 0.01, %v8802_v47  ;;  %v8805_v6 = vadd.f32 %v17721_v45, %v8644_v53  ;;  %v13889_v60 = vpop.f32.mrb[108].mxu1  ;;  %14264 = vmatmul.mubr.bf16.gmra.mrb[152].mxu1 %v8949_v50  ;;  %v8512_v53 = vadd.f32 %v17618_v35, %v17759_v0 }
 0xf94   : > { %v13890_v39 = vpop.f32.mrb[109].mxu1 }
 0xf95   : > { %v8893_v21 = vmul.f32 0.01, %v8805_v6  ;;  %v13891_v9 = vadd.f32 %v13890_v39, %v13889_v60  ;;  %v13892_v61 = vpop.f32.mrb[110].mxu1  ;;  %v8924_v49 = vmax.f32 %v8802_v47, %v8892_v19  ;;  %v8515_v60 = vadd.f32 %v17621_v43, %v17759_v0 }
 0xf96   : > { %v13893_v8 = vpop.f32.mrb[111].mxu1 }
 0xf97   : > { %v8649_v28 = vadd.f32 %v13891_v9, %v8488_v58  ;;  %v13894_v27 = vadd.f32 %v13893_v8, %v13892_v61  ;;  %v8925_v59 = vmax.f32 %v8805_v6, %v8893_v21 }
 0xf99   : > { %v8810_v52 = vadd.f32 %v17723_v32, %v8649_v28  ;;  %v8652_v45 = vadd.f32 %v13894_v27, %v8491_v11  ;;  %v8950_v2 = vpack.c.bf16 %v8925_v59, %v8924_v49  ;;  %v18356_v49 = vld [vmem:[#allocation49_spill] sm:$0xff] }
 0xf9a   : > { %v8520_v59 = vadd.f32 %v18356_v49, %v17759_v0  ;;  %v18368_v49 = vld [vmem:[#allocation33_spill] sm:$0xff] }
 0xf9b   : > { %v8894_v54 = vmul.f32 0.01, %v8810_v52  ;;  %v8813_v48 = vadd.f32 %v17725_v46, %v8652_v45  ;;  %v13895_v55 = vpop.f32.mrb[112].mxu1  ;;  %14267 = vmatprep.mubr.bf16.mxu1 %v8950_v2  ;;  %v18357_v2 = vld [vmem:[#allocation32_spill] sm:$0xff] }
 0xf9c   : > { %v13896_v31 = vpop.f32.mrb[113].mxu1 }
 0xf9d   : > { %v8895_v30 = vmul.f32 0.01, %v8813_v48  ;;  %v13897_v3 = vadd.f32 %v13896_v31, %v13895_v55  ;;  %v13898_v37 = vpop.f32.mrb[114].mxu1  ;;  %v8926_v42 = vmax.f32 %v8810_v52, %v8894_v54  ;;  %v8523_v54 = vadd.f32 %v18357_v2, %v17759_v0  ;;  %v15023_v2 = vld [vmem:[#allocation13 + $0x78] sm:$0xff]  }
 0xf9e   : > { %v13899_v4 = vpop.f32.mrb[115].mxu1  ;;  %14301 = vmatprep.subr.bf16.mxu1 %v15023_v2 }
 0xf9f   : > { %v8927_v32 = vmax.f32 %v8813_v48, %v8895_v30  ;;  %v8657_v25 = vadd.f32 %v13897_v3, %v8496_v12  ;;  %v13900_v5 = vadd.f32 %v13899_v4, %v13898_v37  ;;  %v18358_v30 = vld [vmem:[#allocation35_spill] sm:$0xff]  ;;  %14302 = vmatpush3.bf16.msra.mxu1 %v15023_v2 }
 0xfa0   : > { %v18359_v4 = vld [vmem:[#allocation55_spill] sm:$0xff] }
 0xfa1   : > { %v8951_v20 = vpack.c.bf16 %v8927_v32, %v8926_v42  ;;  %v8818_v46 = vadd.f32 %v17727_v63, %v8657_v25  ;;  %v8660_v18 = vadd.f32 %v13900_v5, %v8499_v23  ;;  %v18360_v5 = vld [vmem:[#allocation31_spill] sm:$0xff] }
 0xfa3   : > { %v8896_v38 = vmul.f32 0.01, %v8818_v46  ;;  %v8821_v36 = vadd.f32 %v17729_v15, %v8660_v18  ;;  %v13901_v14 = vpop.f32.mrb[116].mxu1  ;;  %14268 = vmatmul.mubr.bf16.gmra.mrb[156].mxu1 %v8951_v20  ;;  %v8528_v20 = vadd.f32 %v18360_v5, %v17759_v0 }
 0xfa4   : > { %v13902_v10 = vpop.f32.mrb[117].mxu1 }
 0xfa5   : > { %v8897_v51 = vmul.f32 0.01, %v8821_v36  ;;  %v13903_v22 = vadd.f32 %v13902_v10, %v13901_v14  ;;  %v13904_v62 = vpop.f32.mrb[118].mxu1  ;;  %v8928_v63 = vmax.f32 %v8818_v46, %v8896_v38 }
 0xfa6   : > { %v13905_v40 = vpop.f32.mrb[119].mxu1 }
 0xfa7   : > { %v8665_v29 = vadd.f32 %v13903_v22, %v8504_v24  ;;  %v13906_v13 = vadd.f32 %v13905_v40, %v13904_v62  ;;  %v8929_v56 = vmax.f32 %v8821_v36, %v8897_v51  ;;  %v18361_v36 = vld [vmem:[#allocation51_spill] sm:$0xff]  ;;  %v18362_v40 = vld [vmem:[#allocation54_spill] sm:$0xff] }
 0xfa8   : > { %v8531_v14 = vadd.f32 %v18361_v36, %v17759_v0 }
 0xfa9   : > { %v8826_v34 = vadd.f32 %v17731_v17, %v8665_v29  ;;  %v8668_v15 = vadd.f32 %v13906_v13, %v8507_v33  ;;  %v8952_v16 = vpack.c.bf16 %v8929_v56, %v8928_v63  ;;  %v18363_v56 = vld [vmem:[#allocation38_spill] sm:$0xff] }
 0xfab   : > { %v8898_v1 = vmul.f32 0.01, %v8826_v34  ;;  %v8829_v50 = vadd.f32 %v17733_v57, %v8668_v15  ;;  %v13907_v47 = vpop.f32.mrb[120].mxu1  ;;  %14271 = vmatprep.mubr.bf16.mxu1 %v8952_v16 }
 0xfac   : > { %v13908_v26 = vpop.f32.mrb[121].mxu1 }
 0xfad   : > { %v8899_v19 = vmul.f32 0.01, %v8829_v50  ;;  %v13909_v7 = vadd.f32 %v13908_v26, %v13907_v47  ;;  %v13910_v6 = vpop.f32.mrb[122].mxu1  ;;  %v8930_v58 = vmax.f32 %v8826_v34, %v8898_v1  ;;  %v18364_v1 = vld [vmem:[#allocation50_spill] sm:$0xff] }
 0xfae   : > { %v13911_v39 = vpop.f32.mrb[123].mxu1 }
 0xfaf   : > { %v8931_v17 = vmax.f32 %v8829_v50, %v8899_v19  ;;  %v8673_v21 = vadd.f32 %v13909_v7, %v8512_v53  ;;  %v13912_v9 = vadd.f32 %v13911_v39, %v13910_v6  ;;  %v8536_v50 = vadd.f32 %v18364_v1, %v17759_v0  ;;  %v18365_v19 = vld [vmem:[#allocation34_spill] sm:$0xff] }
 0xfb0   : > { %v8539_v7 = vadd.f32 %v18365_v19, %v17759_v0  ;;  %v17857_v19 = vld [vmem:[#allocation15] ss:$0 sm:$0xff] }
 0xfb1   : > { %v8953_v61 = vpack.c.bf16 %v8931_v17, %v8930_v58  ;;  %v8834_v57 = vadd.f32 %v17735_v41, %v8673_v21  ;;  %v8676_v11 = vadd.f32 %v13912_v9, %v8515_v60  ;;  %v18366_v21 = vld [vmem:[#allocation37_spill] sm:$0xff] }
 0xfb3   : > { %v8900_v8 = vmul.f32 0.01, %v8834_v57  ;;  %v8837_v28 = vadd.f32 %v17737_v44, %v8676_v11  ;;  %v13913_v27 = vpop.f32.mrb[124].mxu1  ;;  %14272 = vmatmul.mubr.bf16.gmra.mrb[160].mxu1 %v8953_v61 }
 0xfb4   : > { %v13914_v35 = vpop.f32.mrb[125].mxu1 }
 0xfb5   : > { %v8901_v52 = vmul.f32 0.01, %v8837_v28  ;;  %v13915_v43 = vadd.f32 %v13914_v35, %v13913_v27  ;;  %v13916_v45 = vpop.f32.mrb[126].mxu1  ;;  %v8932_v41 = vmax.f32 %v8834_v57, %v8900_v8  ;;  %v18367_v8 = vld [vmem:[#allocation57_spill] sm:$0xff] }
 0xfb6   : > { %v13917_v48 = vpop.f32.mrb[127].mxu1 }
 0xfb7   : > { %v8681_v55 = vadd.f32 %v13915_v43, %v8520_v59  ;;  %v13918_v31 = vadd.f32 %v13917_v48, %v13916_v45  ;;  %v8933_v12 = vmax.f32 %v8837_v28, %v8901_v52  ;;  %v8544_v59 = vadd.f32 %v18368_v49, %v17759_v0 }
 0xfb9   : > { %v8842_v3 = vadd.f32 %v18358_v30, %v8681_v55  ;;  %v8684_v44 = vadd.f32 %v13918_v31, %v8523_v54  ;;  %v8954_v37 = vpack.c.bf16 %v8933_v12, %v8932_v41  ;;  %v18369_v54 = vld [vmem:[#allocation53_spill] sm:$0xff] }
 0xfba   : > { %v8547_v48 = vadd.f32 %v18369_v54, %v17759_v0  ;;  %v15030_v54 = vld [vmem:[#allocation13 + $0xb0] sm:$0xff]  }
 0xfbb   : > { %v8902_v23 = vmul.f32 0.01, %v8842_v3  ;;  %v8845_v42 = vadd.f32 %v18359_v4, %v8684_v44  ;;  %v13919_v32 = vpop.f32.mrb[128].mxu1  ;;  %14275 = vmatprep.mubr.bf16.mxu1 %v8954_v37  ;;  %v18370_v44 = vld [vmem:[#allocation56_spill] sm:$0xff] }
 0xfbc   : > { %v13920_v25 = vpop.f32.mrb[129].mxu1 }
 0xfbd   : > { %v8903_v46 = vmul.f32 0.01, %v8845_v42  ;;  %v13921_v18 = vadd.f32 %v13920_v25, %v13919_v32  ;;  %v13922_v38 = vpop.f32.mrb[130].mxu1  ;;  %v8934_v24 = vmax.f32 %v8842_v3, %v8902_v23 }
 0xfbe   : > { %v13923_v10 = vpop.f32.mrb[131].mxu1 }
 0xfbf   : > { %v8935_v51 = vmax.f32 %v8845_v42, %v8903_v46  ;;  %v8689_v22 = vadd.f32 %v13921_v18, %v8528_v20  ;;  %v13924_v62 = vadd.f32 %v13923_v10, %v13922_v38  ;;  %v18371_v42 = vld [vmem:[#allocation40_spill] sm:$0xff] }
 0xfc0   : > { %v18372_v20 = vld [vmem:[#allocation52_spill] sm:$0xff] }
 0xfc1   : > { %v8955_v33 = vpack.c.bf16 %v8935_v51, %v8934_v24  ;;  %v8850_v29 = vadd.f32 %v18362_v40, %v8689_v22  ;;  %v8692_v13 = vadd.f32 %v13924_v62, %v8531_v14  ;;  %v8552_v46 = vadd.f32 %v18372_v20, %v17759_v0  ;;  %v18373_v14 = vld [vmem:[#allocation36_spill] sm:$0xff]  ;;  %v18374_v40 = vld [vmem:[#allocation39_spill] sm:$0xff] }
 0xfc2   : > { %v8555_v10 = vadd.f32 %v18373_v14, %v17759_v0  ;;  %v15025_v0 = vld [vmem:[#allocation13 + $0x88] sm:$0xff]  }
 0xfc3   : > { %v8904_v63 = vmul.f32 0.01, %v8850_v29  ;;  %v8853_v34 = vadd.f32 %v18363_v56, %v8692_v13  ;;  %v13925_v15 = vpop.f32.mrb[132].mxu1  ;;  %14276 = vmatmul.mubr.bf16.gmra.mrb[164].mxu1 %v8955_v33 }
 0xfc4   : > { %v13926_v16 = vpop.f32.mrb[133].mxu1 }
 0xfc5   : > { %v8905_v47 = vmul.f32 0.01, %v8853_v34  ;;  %v13927_v26 = vadd.f32 %v13926_v16, %v13925_v15  ;;  %v13928_v53 = vpop.f32.mrb[134].mxu1  ;;  %v8936_v58 = vmax.f32 %v8850_v29, %v8904_v63 }
 0xfc6   : > { %v13929_v6 = vpop.f32.mrb[135].mxu1 }
 0xfc7   : > { %v8697_v60 = vadd.f32 %v13927_v26, %v8536_v50  ;;  %v13930_v39 = vadd.f32 %v13929_v6, %v13928_v53  ;;  %v8937_v17 = vmax.f32 %v8853_v34, %v8905_v47  ;;  %v18375_v34 = vld [vmem:[#allocation59_spill] sm:$0xff]  ;;  %v15024_v26 = vld [vmem:[#allocation13 + $0x80] sm:$0xff]   ;;  %v15026_v53 = vld [vmem:[#allocation13 + $0x90] sm:$0xff]  }
 0xfc8   : > { %14335 = vmatprep.subr.bf16.mxu0 %v15024_v26  ;;  %v15027_v6 = vld [vmem:[#allocation13 + $0x98] sm:$0xff]  }
 0xfc9   : > { %v8858_v9 = vadd.f32 %v18366_v21, %v8697_v60  ;;  %v8700_v61 = vadd.f32 %v13930_v39, %v8539_v7  ;;  %v8956_v57 = vpack.c.bf16 %v8937_v17, %v8936_v58  ;;  %14336 = vmatpush3.bf16.msra.mxu0 %v15024_v26 }
 0xfca   : > { %14337 = vmatprep.subr.bf16.mxu0 %v15025_v0 }
 0xfcb   : > { %v8906_v11 = vmul.f32 0.01, %v8858_v9  ;;  %v8861_v28 = vadd.f32 %v18367_v8, %v8700_v61  ;;  %v13931_v27 = vpop.f32.mrb[136].mxu1  ;;  %14279 = vmatprep.mubr.bf16.mxu1 %v8956_v57  ;;  %v15028_v8 = vld [vmem:[#allocation13 + $0xa0] sm:$0xff]  }
 0xfcc   : > { %v13932_v35 = vpop.f32.mrb[137].mxu1 }
 0xfcd   : > { %v8907_v52 = vmul.f32 0.01, %v8861_v28  ;;  %v13933_v43 = vadd.f32 %v13932_v35, %v13931_v27  ;;  %v13934_v45 = vpop.f32.mrb[138].mxu1  ;;  %v8938_v31 = vmax.f32 %v8858_v9, %v8906_v11  ;;  %14338 = vmatpush3.bf16.msra.mxu0 %v15025_v0 }
 0xfce   : > { %v13935_v55 = vpop.f32.mrb[139].mxu1  ;;  %14339 = vmatprep.subr.bf16.mxu0 %v15026_v53 }
 0xfcf   : > { %v8939_v41 = vmax.f32 %v8861_v28, %v8907_v52  ;;  %v8705_v12 = vadd.f32 %v13933_v43, %v8544_v59  ;;  %v13936_v30 = vadd.f32 %v13935_v55, %v13934_v45  ;;  %v15029_v43 = vld [vmem:[#allocation13 + $0xa8] sm:$0xff]   ;;  %v15031_v55 = vld [vmem:[#allocation13 + $0xb8] sm:$0xff]  }
 0xfd1   : > { %v8957_v3 = vpack.c.bf16 %v8939_v41, %v8938_v31  ;;  %v8866_v37 = vadd.f32 %v18370_v44, %v8705_v12  ;;  %v8708_v23 = vadd.f32 %v13936_v30, %v8547_v48  ;;  %14340 = vmatpush3.bf16.msra.mxu0 %v15026_v53 }
 0xfd2   : > { %14341 = vmatprep.subr.bf16.mxu0 %v15027_v6 }
 0xfd3   : > { %v8908_v4 = vmul.f32 0.01, %v8866_v37  ;;  %v8869_v32 = vadd.f32 %v18371_v42, %v8708_v23  ;;  %v13937_v25 = vpop.f32.mrb[140].mxu1  ;;  %14280 = vmatmul.mubr.bf16.gmra.mrb[168].mxu1 %v8957_v3 }
 0xfd4   : > { %v13938_v5 = vpop.f32.mrb[141].mxu1 }
 0xfd5   : > { %v8909_v18 = vmul.f32 0.01, %v8869_v32  ;;  %v13939_v38 = vadd.f32 %v13938_v5, %v13937_v25  ;;  %v13940_v36 = vpop.f32.mrb[142].mxu1  ;;  %v8940_v62 = vmax.f32 %v8866_v37, %v8908_v4  ;;  %14342 = vmatpush3.bf16.msra.mxu0 %v15027_v6 }
 0xfd6   : > { %v13941_v24 = vpop.f32.mrb[143].mxu1  ;;  %14343 = vmatprep.subr.bf16.mxu0 %v15028_v8 }
 0xfd7   : > { %v8713_v51 = vadd.f32 %v13939_v38, %v8552_v46  ;;  %v13942_v22 = vadd.f32 %v13941_v24, %v13940_v36  ;;  %v8941_v33 = vmax.f32 %v8869_v32, %v8909_v18 }
 0xfd9   : > { %v8874_v29 = vadd.f32 %v18374_v40, %v8713_v51  ;;  %v8716_v13 = vadd.f32 %v13942_v22, %v8555_v10  ;;  %v8958_v63 = vpack.c.bf16 %v8941_v33, %v8940_v62  ;;  %14344 = vmatpush3.bf16.msra.mxu0 %v15028_v8 }
 0xfda   : > { %14345 = vmatprep.subr.bf16.mxu0 %v15029_v43 }
 0xfdb   : > { %v8910_v56 = vmul.f32 0.01, %v8874_v29  ;;  %v8877_v15 = vadd.f32 %v18375_v34, %v8716_v13  ;;  %14283 = vmatprep.mubr.bf16.mxu1 %v8958_v63 }
 0xfdd   : > { %v8911_v16 = vmul.f32 0.01, %v8877_v15  ;;  %v8942_v1 = vmax.f32 %v8874_v29, %v8910_v56  ;;  %14346 = vmatpush3.bf16.msra.mxu0 %v15029_v43 }
 0xfde   : > { %14347 = vmatprep.subr.bf16.mxu0 %v15030_v54 }
 0xfdf   : > { %v8943_v50 = vmax.f32 %v8877_v15, %v8911_v16 }
 0xfe1   : > { %v8959_v47 = vpack.c.bf16 %v8943_v50, %v8942_v1  ;;  %14348 = vmatpush3.bf16.msra.mxu0 %v15030_v54 }
 0xfe2   : > { %14349 = vmatprep.subr.bf16.mxu0 %v15031_v55 }
 0xfe3   : > { %14284 = vmatmul.mubr.bf16.gmra.mrb[172].mxu1 %v8959_v47 }
 0xfe5   : > { %14350 = vmatpush3.bf16.msra.mxu0 %v15031_v55 }
0x1046   : > { %v14257_v7 = vpop.f32.mrb[144].mxu1 }
0x1047   : > { %v9074_v60 = vadd.f32 %v14257_v7, %v17857_v19  ;;  %v9065_v39 = vpop.f32.mrb[145].mxu1 }
0x1048   : > { %v9066_v58 = vadd.f32 %v17857_v19, %v9065_v39  ;;  %v14258_v17 = vpop.f32.mrb[146].mxu1 }
0x1049   : > { %v9194_v21 = vmul.f32 0.01, %v9074_v60  ;;  %v9077_v9 = vadd.f32 %v14258_v17, %v17857_v19  ;;  %v9068_v61 = vpop.f32.mrb[147].mxu1 }
0x104a   : > { %v9192_v57 = vmul.f32 0.01, %v9066_v58  ;;  %v9069_v11 = vadd.f32 %v17857_v19, %v9068_v61 }
0x104b   : > { %v9195_v28 = vmul.f32 0.01, %v9077_v9  ;;  %v9226_v35 = vmax.f32 %v9074_v60, %v9194_v21 }
0x104c   : > { %v9193_v27 = vmul.f32 0.01, %v9069_v11  ;;  %v9224_v59 = vmax.f32 %v9066_v58, %v9192_v57 }
0x104d   : > { %v9227_v49 = vmax.f32 %v9077_v9, %v9195_v28 }
0x104e   : > { %v9225_v52 = vmax.f32 %v9069_v11, %v9193_v27 }
0x104f   : > { %v9257_v45 = vpack.c.bf16 %v9227_v49, %v9226_v35 }
0x1050   : > { %v9256_v2 = vpack.c.bf16 %v9225_v52, %v9224_v59 }
0x1052   : > { %14303 = vmatprep.mubr.bf16.mxu1 %v9256_v2 }
0x1053   : > { %14304 = vmatmul.mubr.bf16.vlgmr.msra.gmra.mrb[176].mxu1 %v9257_v45 }
0x1056   : > { %v14261_v48 = vpop.f32.mrb[148].mxu1 }
0x1057   : > { %v9090_v31 = vadd.f32 %v14261_v48, %v17857_v19  ;;  %v9081_v41 = vpop.f32.mrb[149].mxu1 }
0x1058   : > { %v9082_v12 = vadd.f32 %v17857_v19, %v9081_v41  ;;  %v14262_v30 = vpop.f32.mrb[150].mxu1 }
0x1059   : > { %v9198_v3 = vmul.f32 0.01, %v9090_v31  ;;  %v9093_v44 = vadd.f32 %v14262_v30, %v17857_v19  ;;  %v9084_v37 = vpop.f32.mrb[151].mxu1 }
0x105a   : > { %v9196_v23 = vmul.f32 0.01, %v9082_v12  ;;  %v9085_v4 = vadd.f32 %v17857_v19, %v9084_v37 }
0x105b   : > { %v9199_v42 = vmul.f32 0.01, %v9093_v44  ;;  %v9230_v25 = vmax.f32 %v9090_v31, %v9198_v3 }
0x105c   : > { %v9197_v32 = vmul.f32 0.01, %v9085_v4  ;;  %v9228_v20 = vmax.f32 %v9082_v12, %v9196_v23 }
0x105d   : > { %v9231_v5 = vmax.f32 %v9093_v44, %v9199_v42 }
0x105e   : > { %v9229_v46 = vmax.f32 %v9085_v4, %v9197_v32 }
0x105f   : > { %v9259_v18 = vpack.c.bf16 %v9231_v5, %v9230_v25 }
0x1060   : > { %v9258_v38 = vpack.c.bf16 %v9229_v46, %v9228_v20 }
0x1062   : > { %14307 = vmatprep.mubr.bf16.mxu1 %v9258_v38 }
0x1063   : > { %14308 = vmatmul.mubr.bf16.gmra.mrb[180].mxu1 %v9259_v18 }
0x1066   : > { %v14265_v36 = vpop.f32.mrb[152].mxu1 }
0x1067   : > { %v9106_v14 = vadd.f32 %v14265_v36, %v17857_v19  ;;  %v9097_v10 = vpop.f32.mrb[153].mxu1 }
0x1068   : > { %v9098_v24 = vadd.f32 %v17857_v19, %v9097_v10  ;;  %v14266_v51 = vpop.f32.mrb[154].mxu1 }
0x1069   : > { %v9202_v22 = vmul.f32 0.01, %v9106_v14  ;;  %v9109_v62 = vadd.f32 %v14266_v51, %v17857_v19  ;;  %v9100_v33 = vpop.f32.mrb[155].mxu1 }
0x106a   : > { %v9200_v40 = vmul.f32 0.01, %v9098_v24  ;;  %v9101_v29 = vadd.f32 %v17857_v19, %v9100_v33 }
0x106b   : > { %v9203_v13 = vmul.f32 0.01, %v9109_v62  ;;  %v9234_v56 = vmax.f32 %v9106_v14, %v9202_v22 }
0x106c   : > { %v9201_v63 = vmul.f32 0.01, %v9101_v29  ;;  %v9232_v15 = vmax.f32 %v9098_v24, %v9200_v40 }
0x106d   : > { %v9235_v34 = vmax.f32 %v9109_v62, %v9203_v13 }
0x106e   : > { %v9233_v16 = vmax.f32 %v9101_v29, %v9201_v63 }
0x106f   : > { %v9261_v1 = vpack.c.bf16 %v9235_v34, %v9234_v56 }
0x1070   : > { %v9260_v50 = vpack.c.bf16 %v9233_v16, %v9232_v15 }
0x1072   : > { %14311 = vmatprep.mubr.bf16.mxu1 %v9260_v50 }
0x1073   : > { %14312 = vmatmul.mubr.bf16.gmra.mrb[184].mxu1 %v9261_v1 }
0x1076   : > { %v14269_v47 = vpop.f32.mrb[156].mxu1 }
0x1077   : > { %v9122_v26 = vadd.f32 %v14269_v47, %v17857_v19  ;;  %v9113_v0 = vpop.f32.mrb[157].mxu1 }
0x1078   : > { %v9114_v53 = vadd.f32 %v17857_v19, %v9113_v0  ;;  %v14270_v7 = vpop.f32.mrb[158].mxu1 }
0x1079   : > { %v9206_v6 = vmul.f32 0.01, %v9122_v26  ;;  %v9125_v60 = vadd.f32 %v14270_v7, %v17857_v19  ;;  %v9116_v39 = vpop.f32.mrb[159].mxu1 }
0x107a   : > { %v9204_v58 = vmul.f32 0.01, %v9114_v53  ;;  %v9117_v17 = vadd.f32 %v17857_v19, %v9116_v39 }
0x107b   : > { %v9207_v21 = vmul.f32 0.01, %v9125_v60  ;;  %v9238_v61 = vmax.f32 %v9122_v26, %v9206_v6 }
0x107c   : > { %v9205_v9 = vmul.f32 0.01, %v9117_v17  ;;  %v9236_v11 = vmax.f32 %v9114_v53, %v9204_v58 }
0x107d   : > { %v9239_v57 = vmax.f32 %v9125_v60, %v9207_v21 }
0x107e   : > { %v9237_v8 = vmax.f32 %v9117_v17, %v9205_v9 }
0x107f   : > { %v9263_v28 = vpack.c.bf16 %v9239_v57, %v9238_v61 }
0x1080   : > { %v9262_v27 = vpack.c.bf16 %v9237_v8, %v9236_v11 }
0x1082   : > { %14315 = vmatprep.mubr.bf16.mxu1 %v9262_v27 }
0x1083   : > { %14316 = vmatmul.mubr.bf16.gmra.mrb[188].mxu1 %v9263_v28 }
0x1086   : > { %v14273_v35 = vpop.f32.mrb[160].mxu1 }
0x1087   : > { %v9138_v49 = vadd.f32 %v14273_v35, %v17857_v19  ;;  %v9129_v59 = vpop.f32.mrb[161].mxu1 }
0x1088   : > { %v9130_v52 = vadd.f32 %v17857_v19, %v9129_v59  ;;  %v14274_v43 = vpop.f32.mrb[162].mxu1 }
0x1089   : > { %v9210_v45 = vmul.f32 0.01, %v9138_v49  ;;  %v9141_v2 = vadd.f32 %v14274_v43, %v17857_v19  ;;  %v9132_v54 = vpop.f32.mrb[163].mxu1 }
0x108a   : > { %v9208_v48 = vmul.f32 0.01, %v9130_v52  ;;  %v9133_v55 = vadd.f32 %v17857_v19, %v9132_v54 }
0x108b   : > { %v9211_v31 = vmul.f32 0.01, %v9141_v2  ;;  %v9242_v12 = vmax.f32 %v9138_v49, %v9210_v45 }
0x108c   : > { %v9209_v41 = vmul.f32 0.01, %v9133_v55  ;;  %v9240_v3 = vmax.f32 %v9130_v52, %v9208_v48 }
0x108d   : > { %v9243_v30 = vmax.f32 %v9141_v2, %v9211_v31  ;;  %v15034_v31 = vld [vmem:[#allocation16 + $0x4] ss:$8 sps:$4 sm:$0xff]  }
0x108e   : > { %v9241_v44 = vmax.f32 %v9133_v55, %v9209_v41  ;;  %v15032_v55 = vld [vmem:[#allocation16] ss:$8 sps:$4 sm:$0xff]   ;;  %v17891_v41 = vld [vmem:[#allocation15 + $0x1] ss:$0 sm:$0xff]  ;;  %10008 = vmatprep.subr.bf16.mxu1 %v15034_v31 }
0x108f   : > { %v9265_v37 = vpack.c.bf16 %v9243_v30, %v9242_v12  ;;  %v15037_v12 = vld [vmem:[#allocation16 + $0x14] ss:$8 sps:$4 sm:$0xff]   ;;  %10009 = vmatpush1.bf16.msra.mxu1 %v15032_v55 }
0x1090   : > { %v9264_v23 = vpack.c.bf16 %v9241_v44, %v9240_v3  ;;  %v15035_v3 = vld [vmem:[#allocation16 + $0x10] ss:$8 sps:$4 sm:$0xff]   ;;  %10010 = vmatprep.subr.bf16.mxu1 %v15037_v12 }
0x1092   : > { %14319 = vmatprep.mubr.bf16.mxu1 %v9264_v23 }
0x1093   : > { %14320 = vmatmul.mubr.bf16.gmra.mrb[192].mxu1 %v9265_v37  ;;  %v15040_v37 = vld [vmem:[#allocation16 + $0x24] ss:$8 sps:$4 sm:$0xff]  }
0x1094   : > { %10011 = vmatpush1.bf16.msra.mxu1 %v15035_v3 }
0x1095   : > { %10012 = vmatprep.subr.bf16.mxu1 %v15040_v37 }
0x1096   : > { %v14277_v4 = vpop.f32.mrb[164].mxu1 }
0x1097   : > { %v9154_v42 = vadd.f32 %v14277_v4, %v17857_v19  ;;  %v9145_v32 = vpop.f32.mrb[165].mxu1 }
0x1098   : > { %v9146_v25 = vadd.f32 %v17857_v19, %v9145_v32  ;;  %v14278_v5 = vpop.f32.mrb[166].mxu1 }
0x1099   : > { %v9214_v20 = vmul.f32 0.01, %v9154_v42  ;;  %v9157_v46 = vadd.f32 %v14278_v5, %v17857_v19  ;;  %v9148_v18 = vpop.f32.mrb[167].mxu1 }
0x109a   : > { %v9212_v38 = vmul.f32 0.01, %v9146_v25  ;;  %v9149_v36 = vadd.f32 %v17857_v19, %v9148_v18 }
0x109b   : > { %v9215_v14 = vmul.f32 0.01, %v9157_v46  ;;  %v9246_v24 = vmax.f32 %v9154_v42, %v9214_v20 }
0x109c   : > { %v9213_v10 = vmul.f32 0.01, %v9149_v36  ;;  %v9244_v22 = vmax.f32 %v9146_v25, %v9212_v38  ;;  %v15043_v38 = vld [vmem:[#allocation16 + $0x34] ss:$8 sps:$4 sm:$0xff]  }
0x109d   : > { %v9247_v51 = vmax.f32 %v9157_v46, %v9215_v14  ;;  %v15038_v46 = vld [vmem:[#allocation16 + $0x20] ss:$8 sps:$4 sm:$0xff]  }
0x109e   : > { %v9245_v62 = vmax.f32 %v9149_v36, %v9213_v10  ;;  %10013 = vmatpush1.bf16.msra.mxu1 %v15038_v46 }
0x109f   : > { %v9267_v33 = vpack.c.bf16 %v9247_v51, %v9246_v24  ;;  %10014 = vmatprep.subr.bf16.mxu1 %v15043_v38 }
0x10a0   : > { %v9266_v40 = vpack.c.bf16 %v9245_v62, %v9244_v22  ;;  %v15041_v22 = vld [vmem:[#allocation16 + $0x30] ss:$8 sps:$4 sm:$0xff]  }
0x10a2   : > { %14323 = vmatprep.mubr.bf16.mxu1 %v9266_v40  ;;  %10015 = vmatpush1.bf16.msra.mxu1 %v15041_v22 }
0x10a3   : > { %14324 = vmatmul.mubr.bf16.gmra.mrb[196].mxu1 %v9267_v33  ;;  %v15046_v33 = vld [vmem:[#allocation16 + $0x44] ss:$8 sps:$4 sm:$0xff]  }
0x10a4   : > { %10016 = vmatprep.subr.bf16.mxu1 %v15046_v33 }
0x10a6   : > { %v14281_v29 = vpop.f32.mrb[168].mxu1 }
0x10a7   : > { %v9170_v13 = vadd.f32 %v14281_v29, %v17857_v19  ;;  %v9161_v63 = vpop.f32.mrb[169].mxu1  ;;  %v15044_v29 = vld [vmem:[#allocation16 + $0x40] ss:$8 sps:$4 sm:$0xff]  }
0x10a8   : > { %v9162_v56 = vadd.f32 %v17857_v19, %v9161_v63  ;;  %v14282_v34 = vpop.f32.mrb[170].mxu1  ;;  %10017 = vmatpush1.bf16.msra.mxu1 %v15044_v29 }
0x10a9   : > { %v9218_v15 = vmul.f32 0.01, %v9170_v13  ;;  %v9173_v16 = vadd.f32 %v14282_v34, %v17857_v19  ;;  %v9164_v1 = vpop.f32.mrb[171].mxu1 }
0x10aa   : > { %v9216_v50 = vmul.f32 0.01, %v9162_v56  ;;  %v9165_v47 = vadd.f32 %v17857_v19, %v9164_v1 }
0x10ab   : > { %v9219_v26 = vmul.f32 0.01, %v9173_v16  ;;  %v9250_v53 = vmax.f32 %v9170_v13, %v9218_v15  ;;  %v15049_v13 = vld [vmem:[#allocation16 + $0x54] ss:$8 sps:$4 sm:$0xff]  }
0x10ac   : > { %v9217_v0 = vmul.f32 0.01, %v9165_v47  ;;  %v9248_v6 = vmax.f32 %v9162_v56, %v9216_v50  ;;  %v15047_v56 = vld [vmem:[#allocation16 + $0x50] ss:$8 sps:$4 sm:$0xff]   ;;  %10018 = vmatprep.subr.bf16.mxu1 %v15049_v13 }
0x10ad   : > { %v9251_v7 = vmax.f32 %v9173_v16, %v9219_v26  ;;  %v15052_v16 = vld [vmem:[#allocation16 + $0x64] ss:$8 sps:$4 sm:$0xff]   ;;  %10019 = vmatpush1.bf16.msra.mxu1 %v15047_v56 }
0x10ae   : > { %v9249_v60 = vmax.f32 %v9165_v47, %v9217_v0  ;;  %10020 = vmatprep.subr.bf16.mxu1 %v15052_v16 }
0x10af   : > { %v9269_v39 = vpack.c.bf16 %v9251_v7, %v9250_v53 }
0x10b0   : > { %v9268_v58 = vpack.c.bf16 %v9249_v60, %v9248_v6  ;;  %v15050_v6 = vld [vmem:[#allocation16 + $0x60] ss:$8 sps:$4 sm:$0xff]  }
0x10b1   : > { %10021 = vmatpush1.bf16.msra.mxu1 %v15050_v6 }
0x10b2   : > { %14327 = vmatprep.mubr.bf16.mxu1 %v9268_v58 }
0x10b3   : > { %14328 = vmatmul.mubr.bf16.gmra.mrb[200].mxu1 %v9269_v39 }
0x10b6   : > { %v14285_v17 = vpop.f32.mrb[172].mxu1 }
0x10b7   : > { %v9186_v21 = vadd.f32 %v14285_v17, %v17857_v19  ;;  %v9177_v9 = vpop.f32.mrb[173].mxu1 }
0x10b8   : > { %v9178_v61 = vadd.f32 %v17857_v19, %v9177_v9  ;;  %v14286_v57 = vpop.f32.mrb[174].mxu1 }
0x10b9   : > { %v9222_v11 = vmul.f32 0.01, %v9186_v21  ;;  %v9189_v8 = vadd.f32 %v14286_v57, %v17857_v19  ;;  %v9180_v28 = vpop.f32.mrb[175].mxu1 }
0x10ba   : > { %v9220_v27 = vmul.f32 0.01, %v9178_v61  ;;  %v9181_v35 = vadd.f32 %v17857_v19, %v9180_v28 }
0x10bb   : > { %v9223_v49 = vmul.f32 0.01, %v9189_v8  ;;  %v9254_v52 = vmax.f32 %v9186_v21, %v9222_v11 }
0x10bc   : > { %v9221_v59 = vmul.f32 0.01, %v9181_v35  ;;  %v9252_v45 = vmax.f32 %v9178_v61, %v9220_v27 }
0x10bd   : > { %v9255_v43 = vmax.f32 %v9189_v8, %v9223_v49 }
0x10be   : > { %v9253_v2 = vmax.f32 %v9181_v35, %v9221_v59 }
0x10bf   : > { %v9271_v54 = vpack.c.bf16 %v9255_v43, %v9254_v52 }
0x10c0   : > { %v9270_v48 = vpack.c.bf16 %v9253_v2, %v9252_v45 }
0x10c2   : > { %14331 = vmatprep.mubr.bf16.mxu1 %v9270_v48 }
0x10c3   : > { %14332 = vmatmul.mubr.bf16.gmra.mrb[204].mxu1 %v9271_v54 }
0x1126   : > { %v14305_v30 = vpop.f32.mrb[176].mxu1 }
0x1127   : > { %v9388_v19 = vadd.f32 %v14305_v30, %v17891_v41  ;;  %v9379_v44 = vpop.f32.mrb[177].mxu1 }
0x1128   : > { %v9380_v23 = vadd.f32 %v17891_v41, %v9379_v44  ;;  %v14306_v4 = vpop.f32.mrb[178].mxu1 }
0x1129   : > { %v9508_v42 = vmul.f32 0.01, %v9388_v19  ;;  %v9391_v32 = vadd.f32 %v14306_v4, %v17891_v41  ;;  %v9382_v25 = vpop.f32.mrb[179].mxu1 }
0x112a   : > { %v9506_v5 = vmul.f32 0.01, %v9380_v23  ;;  %v9383_v20 = vadd.f32 %v17891_v41, %v9382_v25 }
0x112b   : > { %v9509_v18 = vmul.f32 0.01, %v9391_v32  ;;  %v9540_v14 = vmax.f32 %v9388_v19, %v9508_v42 }
0x112c   : > { %v9507_v36 = vmul.f32 0.01, %v9383_v20  ;;  %v9538_v24 = vmax.f32 %v9380_v23, %v9506_v5 }
0x112d   : > { %v9541_v10 = vmax.f32 %v9391_v32, %v9509_v18 }
0x112e   : > { %v9539_v51 = vmax.f32 %v9383_v20, %v9507_v36 }
0x112f   : > { %v9571_v62 = vpack.c.bf16 %v9541_v10, %v9540_v14 }
0x1130   : > { %v9570_v40 = vpack.c.bf16 %v9539_v51, %v9538_v24 }
0x1132   : > { %14351 = vmatprep.mubr.bf16.mxu0 %v9570_v40 }
0x1133   : > { %14352 = vmatmul.mubr.bf16.vlgmr.msra.gmra.mrb[176].mxu0 %v9571_v62 }
0x1136   : > { %v14309_v63 = vpop.f32.mrb[180].mxu1 }
0x1137   : > { %v9404_v34 = vadd.f32 %v14309_v63, %v17891_v41  ;;  %v9395_v15 = vpop.f32.mrb[181].mxu1 }
0x1138   : > { %v9396_v1 = vadd.f32 %v17891_v41, %v9395_v15  ;;  %v14310_v50 = vpop.f32.mrb[182].mxu1 }
0x1139   : > { %v9512_v47 = vmul.f32 0.01, %v9404_v34  ;;  %v9407_v26 = vadd.f32 %v14310_v50, %v17891_v41  ;;  %v9398_v0 = vpop.f32.mrb[183].mxu1 }
0x113a   : > { %v9510_v53 = vmul.f32 0.01, %v9396_v1  ;;  %v9399_v7 = vadd.f32 %v17891_v41, %v9398_v0 }
0x113b   : > { %v9513_v60 = vmul.f32 0.01, %v9407_v26  ;;  %v9544_v58 = vmax.f32 %v9404_v34, %v9512_v47 }
0x113c   : > { %v9511_v39 = vmul.f32 0.01, %v9399_v7  ;;  %v9542_v21 = vmax.f32 %v9396_v1, %v9510_v53 }
0x113d   : > { %v9545_v17 = vmax.f32 %v9407_v26, %v9513_v60 }
0x113e   : > { %v9543_v9 = vmax.f32 %v9399_v7, %v9511_v39 }
0x113f   : > { %v9573_v61 = vpack.c.bf16 %v9545_v17, %v9544_v58 }
0x1140   : > { %v9572_v57 = vpack.c.bf16 %v9543_v9, %v9542_v21 }
0x1142   : > { %14355 = vmatprep.mubr.bf16.mxu0 %v9572_v57 }
0x1143   : > { %14356 = vmatmul.mubr.bf16.gmra.mrb[180].mxu0 %v9573_v61 }
0x1146   : > { %v14313_v11 = vpop.f32.mrb[184].mxu1 }
0x1147   : > { %v9420_v8 = vadd.f32 %v14313_v11, %v17891_v41  ;;  %v9411_v28 = vpop.f32.mrb[185].mxu1 }
0x1148   : > { %v9412_v27 = vadd.f32 %v17891_v41, %v9411_v28  ;;  %v14314_v35 = vpop.f32.mrb[186].mxu1 }
0x1149   : > { %v9516_v49 = vmul.f32 0.01, %v9420_v8  ;;  %v9423_v59 = vadd.f32 %v14314_v35, %v17891_v41  ;;  %v9414_v52 = vpop.f32.mrb[187].mxu1 }
0x114a   : > { %v9514_v43 = vmul.f32 0.01, %v9412_v27  ;;  %v9415_v45 = vadd.f32 %v17891_v41, %v9414_v52 }
0x114b   : > { %v9517_v2 = vmul.f32 0.01, %v9423_v59  ;;  %v9548_v48 = vmax.f32 %v9420_v8, %v9516_v49 }
0x114c   : > { %v9515_v54 = vmul.f32 0.01, %v9415_v45  ;;  %v9546_v31 = vmax.f32 %v9412_v27, %v9514_v43 }
0x114d   : > { %v9549_v55 = vmax.f32 %v9423_v59, %v9517_v2 }
0x114e   : > { %v9547_v12 = vmax.f32 %v9415_v45, %v9515_v54 }
0x114f   : > { %v9575_v30 = vpack.c.bf16 %v9549_v55, %v9548_v48 }
0x1150   : > { %v9574_v3 = vpack.c.bf16 %v9547_v12, %v9546_v31 }
0x1152   : > { %14359 = vmatprep.mubr.bf16.mxu0 %v9574_v3 }
0x1153   : > { %14360 = vmatmul.mubr.bf16.gmra.mrb[184].mxu0 %v9575_v30 }
0x1156   : > { %v14317_v19 = vpop.f32.mrb[188].mxu1 }
0x1157   : > { %v9436_v44 = vadd.f32 %v14317_v19, %v17891_v41  ;;  %v9427_v37 = vpop.f32.mrb[189].mxu1 }
0x1158   : > { %v9428_v23 = vadd.f32 %v17891_v41, %v9427_v37  ;;  %v14318_v4 = vpop.f32.mrb[190].mxu1 }
0x1159   : > { %v9520_v42 = vmul.f32 0.01, %v9436_v44  ;;  %v9439_v32 = vadd.f32 %v14318_v4, %v17891_v41  ;;  %v9430_v25 = vpop.f32.mrb[191].mxu1 }
0x115a   : > { %v9518_v5 = vmul.f32 0.01, %v9428_v23  ;;  %v9431_v20 = vadd.f32 %v17891_v41, %v9430_v25 }
0x115b   : > { %v9521_v46 = vmul.f32 0.01, %v9439_v32  ;;  %v9552_v38 = vmax.f32 %v9436_v44, %v9520_v42 }
0x115c   : > { %v9519_v18 = vmul.f32 0.01, %v9431_v20  ;;  %v9550_v14 = vmax.f32 %v9428_v23, %v9518_v5  ;;  %v15055_v23 = vld [vmem:[#allocation16 + $0x74] ss:$8 sps:$4 sm:$0xff]  }
0x115d   : > { %v9553_v36 = vmax.f32 %v9439_v32, %v9521_v46  ;;  %v15053_v32 = vld [vmem:[#allocation16 + $0x70] ss:$8 sps:$4 sm:$0xff]   ;;  %10022 = vmatprep.subr.bf16.mxu1 %v15055_v23 }
0x115e   : > { %v9551_v10 = vmax.f32 %v9431_v20, %v9519_v18  ;;  %10023 = vmatpush1.bf16.msra.mxu1 %v15053_v32  ;;  %v15582_v18 = vmov 0  }
0x115f   : > { %v9577_v24 = vpack.c.bf16 %v9553_v36, %v9552_v38  ;;  %10040 = vmatprep.mubr.bf16.mxu1 %v15582_v18 }
0x1160   : > { %v9576_v51 = vpack.c.bf16 %v9551_v10, %v9550_v14 }
0x1162   : > { %14363 = vmatprep.mubr.bf16.mxu0 %v9576_v51 }
0x1163   : > { %14364 = vmatmul.mubr.bf16.gmra.mrb[188].mxu0 %v9577_v24 }
0x1166   : > { %v14321_v22 = vpop.f32.mrb[192].mxu1 }
0x1167   : > { %v9452_v62 = vadd.f32 %v14321_v22, %v17891_v41  ;;  %v9443_v33 = vpop.f32.mrb[193].mxu1 }
0x1168   : > { %v9444_v40 = vadd.f32 %v17891_v41, %v9443_v33  ;;  %v14322_v29 = vpop.f32.mrb[194].mxu1 }
0x1169   : > { %v9524_v13 = vmul.f32 0.01, %v9452_v62  ;;  %v9455_v63 = vadd.f32 %v14322_v29, %v17891_v41  ;;  %v9446_v56 = vpop.f32.mrb[195].mxu1 }
0x116a   : > { %v9522_v34 = vmul.f32 0.01, %v9444_v40  ;;  %v9447_v15 = vadd.f32 %v17891_v41, %v9446_v56 }
0x116b   : > { %v9525_v16 = vmul.f32 0.01, %v9455_v63  ;;  %v9556_v50 = vmax.f32 %v9452_v62, %v9524_v13 }
0x116c   : > { %v9523_v1 = vmul.f32 0.01, %v9447_v15  ;;  %v9554_v26 = vmax.f32 %v9444_v40, %v9522_v34 }
0x116d   : > { %v9557_v47 = vmax.f32 %v9455_v63, %v9525_v16 }
0x116e   : > { %v9555_v0 = vmax.f32 %v9447_v15, %v9523_v1 }
0x116f   : > { %v9579_v53 = vpack.c.bf16 %v9557_v47, %v9556_v50  ;;  %v17926_v50 = vld [vmem:[#allocation15 + $0x2] ss:$0 sm:$0xff] }
0x1170   : > { %v9578_v7 = vpack.c.bf16 %v9555_v0, %v9554_v26 }
0x1172   : > { %14367 = vmatprep.mubr.bf16.mxu0 %v9578_v7 }
0x1173   : > { %14368 = vmatmul.mubr.bf16.gmra.mrb[192].mxu0 %v9579_v53 }
0x1176   : > { %v14325_v6 = vpop.f32.mrb[196].mxu1 }
0x1177   : > { %v9468_v60 = vadd.f32 %v14325_v6, %v17891_v41  ;;  %v9459_v39 = vpop.f32.mrb[197].mxu1 }
0x1178   : > { %v9460_v58 = vadd.f32 %v17891_v41, %v9459_v39  ;;  %v14326_v17 = vpop.f32.mrb[198].mxu1 }
0x1179   : > { %v9528_v21 = vmul.f32 0.01, %v9468_v60  ;;  %v9471_v9 = vadd.f32 %v14326_v17, %v17891_v41  ;;  %v9462_v61 = vpop.f32.mrb[199].mxu1  ;;  %v15056_v17 = vld [vmem:[#allocation19 + $0x40] sm:$0xff]  }
0x117a   : > { %v9526_v57 = vmul.f32 0.01, %v9460_v58  ;;  %v9463_v11 = vadd.f32 %v17891_v41, %v9462_v61  ;;  %14127 = vmatprep.subr.bf16.mxu0 %v15056_v17 }
0x117b   : > { %v9529_v8 = vmul.f32 0.01, %v9471_v9  ;;  %v9560_v27 = vmax.f32 %v9468_v60, %v9528_v21  ;;  %v15057_v21 = vld [vmem:[#allocation19] sm:$0xff]  }
0x117c   : > { %v9527_v28 = vmul.f32 0.01, %v9463_v11  ;;  %v9558_v49 = vmax.f32 %v9460_v58, %v9526_v57  ;;  %14128 = vmatpush3.bf16.msra.mxu0 %v15057_v21 }
0x117d   : > { %v9561_v35 = vmax.f32 %v9471_v9, %v9529_v8  ;;  %v15058_v9 = vld [vmem:[#allocation19 + $0x48] sm:$0xff]  }
0x117e   : > { %v9559_v59 = vmax.f32 %v9463_v11, %v9527_v28  ;;  %v15059_v28 = vld [vmem:[#allocation19 + $0x8] sm:$0xff]   ;;  %14129 = vmatprep.subr.bf16.mxu0 %v15058_v9 }
0x117f   : > { %v9581_v52 = vpack.c.bf16 %v9561_v35, %v9560_v27 }
0x1180   : > { %v9580_v43 = vpack.c.bf16 %v9559_v59, %v9558_v49  ;;  %v15060_v49 = vld [vmem:[#allocation19 + $0x50] sm:$0xff]   ;;  %14130 = vmatpush3.bf16.msra.mxu0 %v15059_v28 }
0x1181   : > { %14131 = vmatprep.subr.bf16.mxu0 %v15060_v49 }
0x1182   : > { %14371 = vmatprep.mubr.bf16.mxu0 %v9580_v43  ;;  %v15061_v43 = vld [vmem:[#allocation19 + $0x10] sm:$0xff]  }
0x1183   : > { %14372 = vmatmul.mubr.bf16.gmra.mrb[196].mxu0 %v9581_v52 }
0x1184   : > { %14132 = vmatpush3.bf16.msra.mxu0 %v15061_v43 }
0x1186   : > { %v14329_v45 = vpop.f32.mrb[200].mxu1 }
0x1187   : > { %v9484_v2 = vadd.f32 %v14329_v45, %v17891_v41  ;;  %v9475_v54 = vpop.f32.mrb[201].mxu1  ;;  %v15062_v45 = vld [vmem:[#allocation19 + $0x58] sm:$0xff]  }
0x1188   : > { %v9476_v48 = vadd.f32 %v17891_v41, %v9475_v54  ;;  %v14330_v55 = vpop.f32.mrb[202].mxu1  ;;  %14133 = vmatprep.subr.bf16.mxu0 %v15062_v45 }
0x1189   : > { %v9532_v31 = vmul.f32 0.01, %v9484_v2  ;;  %v9487_v12 = vadd.f32 %v14330_v55, %v17891_v41  ;;  %v9478_v30 = vpop.f32.mrb[203].mxu1 }
0x118a   : > { %v9530_v3 = vmul.f32 0.01, %v9476_v48  ;;  %v9479_v19 = vadd.f32 %v17891_v41, %v9478_v30 }
0x118b   : > { %v9533_v44 = vmul.f32 0.01, %v9487_v12  ;;  %v9564_v4 = vmax.f32 %v9484_v2, %v9532_v31  ;;  %v15063_v2 = vld [vmem:[#allocation19 + $0x18] sm:$0xff]  }
0x118c   : > { %v9531_v37 = vmul.f32 0.01, %v9479_v19  ;;  %v9562_v25 = vmax.f32 %v9476_v48, %v9530_v3  ;;  %v15064_v48 = vld [vmem:[#allocation19 + $0x60] sm:$0xff]   ;;  %14134 = vmatpush3.bf16.msra.mxu0 %v15063_v2 }
0x118d   : > { %v9565_v42 = vmax.f32 %v9487_v12, %v9533_v44  ;;  %14135 = vmatprep.subr.bf16.mxu0 %v15064_v48 }
0x118e   : > { %v9563_v5 = vmax.f32 %v9479_v19, %v9531_v37  ;;  %v15065_v37 = vld [vmem:[#allocation19 + $0x20] sm:$0xff]  }
0x118f   : > { %v9583_v20 = vpack.c.bf16 %v9565_v42, %v9564_v4  ;;  %v15066_v42 = vld [vmem:[#allocation19 + $0x68] sm:$0xff]  }
0x1190   : > { %v9582_v46 = vpack.c.bf16 %v9563_v5, %v9562_v25  ;;  %14136 = vmatpush3.bf16.msra.mxu0 %v15065_v37 }
0x1191   : > { %14137 = vmatprep.subr.bf16.mxu0 %v15066_v42 }
0x1192   : > { %14375 = vmatprep.mubr.bf16.mxu0 %v9582_v46  ;;  %v15067_v46 = vld [vmem:[#allocation19 + $0x28] sm:$0xff]  }
0x1193   : > { %14376 = vmatmul.mubr.bf16.gmra.mrb[200].mxu0 %v9583_v20 }
0x1194   : > { %14138 = vmatpush3.bf16.msra.mxu0 %v15067_v46 }
0x1196   : > { %v14333_v38 = vpop.f32.mrb[204].mxu1 }
0x1197   : > { %v9500_v36 = vadd.f32 %v14333_v38, %v17891_v41  ;;  %v9491_v14 = vpop.f32.mrb[205].mxu1 }
0x1198   : > { %v9492_v10 = vadd.f32 %v17891_v41, %v9491_v14  ;;  %v14334_v24 = vpop.f32.mrb[206].mxu1  ;;  %v15068_v14 = vld [vmem:[#allocation19 + $0x70] sm:$0xff]  }
0x1199   : > { %v9536_v51 = vmul.f32 0.01, %v9500_v36  ;;  %v9503_v22 = vadd.f32 %v14334_v24, %v17891_v41  ;;  %v9494_v62 = vpop.f32.mrb[207].mxu1  ;;  %14139 = vmatprep.subr.bf16.mxu0 %v15068_v14 }
0x119a   : > { %v9534_v33 = vmul.f32 0.01, %v9492_v10  ;;  %v9495_v40 = vadd.f32 %v17891_v41, %v9494_v62 }
0x119b   : > { %v9537_v29 = vmul.f32 0.01, %v9503_v22  ;;  %v9568_v63 = vmax.f32 %v9500_v36, %v9536_v51  ;;  %v15069_v51 = vld [vmem:[#allocation19 + $0x30] sm:$0xff]  }
0x119c   : > { %v9535_v13 = vmul.f32 0.01, %v9495_v40  ;;  %v9566_v34 = vmax.f32 %v9492_v10, %v9534_v33  ;;  %14140 = vmatpush3.bf16.msra.mxu0 %v15069_v51 }
0x119d   : > { %v9569_v56 = vmax.f32 %v9503_v22, %v9537_v29 }
0x119e   : > { %v9567_v15 = vmax.f32 %v9495_v40, %v9535_v13 }
0x119f   : > { %v9585_v16 = vpack.c.bf16 %v9569_v56, %v9568_v63 }
0x11a0   : > { %v9584_v1 = vpack.c.bf16 %v9567_v15, %v9566_v34 }
0x11a2   : > { %14379 = vmatprep.mubr.bf16.mxu0 %v9584_v1 }
0x11a3   : > { %14380 = vmatmul.mubr.bf16.gmra.mrb[204].mxu0 %v9585_v16 }
0x1206   : > { %v14353_v47 = vpop.f32.mrb[176].mxu0 }
0x1207   : > { %v9702_v26 = vadd.f32 %v14353_v47, %v17926_v50  ;;  %v9693_v0 = vpop.f32.mrb[177].mxu0 }
0x1208   : > { %v9694_v53 = vadd.f32 %v17926_v50, %v9693_v0  ;;  %v14354_v7 = vpop.f32.mrb[178].mxu0 }
0x1209   : > { %v9822_v41 = vmul.f32 0.01, %v9702_v26  ;;  %v9705_v6 = vadd.f32 %v14354_v7, %v17926_v50  ;;  %v9696_v60 = vpop.f32.mrb[179].mxu0 }
0x120a   : > { %v9820_v39 = vmul.f32 0.01, %v9694_v53  ;;  %v9697_v58 = vadd.f32 %v17926_v50, %v9696_v60 }
0x120b   : > { %v9823_v61 = vmul.f32 0.01, %v9705_v6  ;;  %v9854_v11 = vmax.f32 %v9702_v26, %v9822_v41 }
0x120c   : > { %v9821_v57 = vmul.f32 0.01, %v9697_v58  ;;  %v9852_v27 = vmax.f32 %v9694_v53, %v9820_v39 }
0x120d   : > { %v9855_v8 = vmax.f32 %v9705_v6, %v9823_v61 }
0x120e   : > { %v9853_v35 = vmax.f32 %v9697_v58, %v9821_v57 }
0x120f   : > { %v9885_v59 = vpack.c.bf16 %v9855_v8, %v9854_v11 }
0x1210   : > { %v9884_v52 = vpack.c.bf16 %v9853_v35, %v9852_v27 }
0x1212   : > { %10041 = vmatmul.mubr.bf16.vlgmr.msra.gmra.mrb[208].mxu1 %v9884_v52 }
0x1213   : > { %10050 = vmatprep.mubr.bf16.mxu1 %v15582_v18 }
0x1216   : > { %v14357_v54 = vpop.f32.mrb[180].mxu0 }
0x1217   : > { %v9718_v55 = vadd.f32 %v14357_v54, %v17926_v50  ;;  %v9709_v31 = vpop.f32.mrb[181].mxu0 }
0x1218   : > { %v9710_v12 = vadd.f32 %v17926_v50, %v9709_v31  ;;  %v14358_v30 = vpop.f32.mrb[182].mxu0 }
0x1219   : > { %v9826_v3 = vmul.f32 0.01, %v9718_v55  ;;  %v9721_v19 = vadd.f32 %v14358_v30, %v17926_v50  ;;  %v9712_v44 = vpop.f32.mrb[183].mxu0 }
0x121a   : > { %v9824_v23 = vmul.f32 0.01, %v9710_v12  ;;  %v9713_v4 = vadd.f32 %v17926_v50, %v9712_v44  ;;  %10051 = vmatmul.mubr.bf16.gmra.mrb[212].mxu1 %v9885_v59 }
0x121b   : > { %v9827_v32 = vmul.f32 0.01, %v9721_v19  ;;  %10060 = vmatprep.mubr.bf16.mxu1 %v15582_v18  ;;  %v9858_v5 = vmax.f32 %v9718_v55, %v9826_v3 }
0x121c   : > { %v9825_v25 = vmul.f32 0.01, %v9713_v4  ;;  %v9856_v38 = vmax.f32 %v9710_v12, %v9824_v23 }
0x121d   : > { %v9859_v20 = vmax.f32 %v9721_v19, %v9827_v32 }
0x121e   : > { %v9857_v36 = vmax.f32 %v9713_v4, %v9825_v25 }
0x121f   : > { %v9887_v10 = vpack.c.bf16 %v9859_v20, %v9858_v5 }
0x1220   : > { %v9886_v24 = vpack.c.bf16 %v9857_v36, %v9856_v38 }
0x1222   : > { %10061 = vmatmul.mubr.bf16.gmra.mrb[216].mxu1 %v9886_v24 }
0x1223   : > { %10070 = vmatprep.mubr.bf16.mxu1 %v15582_v18 }
0x1226   : > { %v14361_v22 = vpop.f32.mrb[184].mxu0 }
0x1227   : > { %v9734_v62 = vadd.f32 %v14361_v22, %v17926_v50  ;;  %v9725_v33 = vpop.f32.mrb[185].mxu0 }
0x1228   : > { %v9726_v40 = vadd.f32 %v17926_v50, %v9725_v33  ;;  %v14362_v29 = vpop.f32.mrb[186].mxu0 }
0x1229   : > { %v9830_v13 = vmul.f32 0.01, %v9734_v62  ;;  %v9737_v63 = vadd.f32 %v14362_v29, %v17926_v50  ;;  %v9728_v56 = vpop.f32.mrb[187].mxu0 }
0x122a   : > { %v9828_v34 = vmul.f32 0.01, %v9726_v40  ;;  %v9729_v15 = vadd.f32 %v17926_v50, %v9728_v56  ;;  %10071 = vmatmul.mubr.bf16.gmra.mrb[220].mxu1 %v9887_v10 }
0x122b   : > { %v9831_v16 = vmul.f32 0.01, %v9737_v63  ;;  %10080 = vmatprep.mubr.bf16.mxu1 %v15582_v18  ;;  %v9862_v47 = vmax.f32 %v9734_v62, %v9830_v13 }
0x122c   : > { %v9829_v1 = vmul.f32 0.01, %v9729_v15  ;;  %v9860_v0 = vmax.f32 %v9726_v40, %v9828_v34 }
0x122d   : > { %v9863_v26 = vmax.f32 %v9737_v63, %v9831_v16 }
0x122e   : > { %v9861_v53 = vmax.f32 %v9729_v15, %v9829_v1 }
0x122f   : > { %v9889_v7 = vpack.c.bf16 %v9863_v26, %v9862_v47 }
0x1230   : > { %v9888_v41 = vpack.c.bf16 %v9861_v53, %v9860_v0 }
0x1232   : > { %10081 = vmatmul.mubr.bf16.gmra.mrb[224].mxu1 %v9888_v41 }
0x1233   : > { %10090 = vmatprep.mubr.bf16.mxu1 %v15582_v18 }
0x1236   : > { %v14365_v6 = vpop.f32.mrb[188].mxu0 }
0x1237   : > { %v9750_v60 = vadd.f32 %v14365_v6, %v17926_v50  ;;  %v9741_v39 = vpop.f32.mrb[189].mxu0 }
0x1238   : > { %v9742_v58 = vadd.f32 %v17926_v50, %v9741_v39  ;;  %v14366_v17 = vpop.f32.mrb[190].mxu0 }
0x1239   : > { %v9834_v21 = vmul.f32 0.01, %v9750_v60  ;;  %v9753_v9 = vadd.f32 %v14366_v17, %v17926_v50  ;;  %v9744_v61 = vpop.f32.mrb[191].mxu0  ;;  %v15070_v17 = vld [vmem:[#allocation19 + $0x78] sm:$0xff]  }
0x123a   : > { %v9832_v57 = vmul.f32 0.01, %v9742_v58  ;;  %v9745_v11 = vadd.f32 %v17926_v50, %v9744_v61  ;;  %10091 = vmatmul.mubr.bf16.gmra.mrb[228].mxu1 %v9889_v7  ;;  %v15071_v61 = vld [vmem:[#allocation19 + $0x38] sm:$0xff]   ;;  %14141 = vmatprep.subr.bf16.mxu0 %v15070_v17 }
0x123b   : > { %v9835_v8 = vmul.f32 0.01, %v9753_v9  ;;  %10100 = vmatprep.mubr.bf16.mxu1 %v15582_v18  ;;  %v9866_v27 = vmax.f32 %v9750_v60, %v9834_v21  ;;  %14142 = vmatpush3.bf16.msra.mxu0 %v15071_v61 }
0x123c   : > { %v9833_v28 = vmul.f32 0.01, %v9745_v11  ;;  %v9864_v49 = vmax.f32 %v9742_v58, %v9832_v57 }
0x123d   : > { %v9867_v35 = vmax.f32 %v9753_v9, %v9835_v8 }
0x123e   : > { %v9865_v59 = vmax.f32 %v9745_v11, %v9833_v28 }
0x123f   : > { %v9891_v52 = vpack.c.bf16 %v9867_v35, %v9866_v27 }
0x1240   : > { %v9890_v43 = vpack.c.bf16 %v9865_v59, %v9864_v49 }
0x1242   : > { %10101 = vmatmul.mubr.bf16.gmra.mrb[232].mxu1 %v9890_v43 }
0x1243   : > { %10110 = vmatprep.mubr.bf16.mxu1 %v15582_v18 }
0x1246   : > { %v14369_v45 = vpop.f32.mrb[192].mxu0 }
0x1247   : > { %v9766_v2 = vadd.f32 %v14369_v45, %v17926_v50  ;;  %v9757_v54 = vpop.f32.mrb[193].mxu0 }
0x1248   : > { %v9758_v48 = vadd.f32 %v17926_v50, %v9757_v54  ;;  %v14370_v55 = vpop.f32.mrb[194].mxu0 }
0x1249   : > { %v9838_v31 = vmul.f32 0.01, %v9766_v2  ;;  %v9769_v12 = vadd.f32 %v14370_v55, %v17926_v50  ;;  %v9760_v30 = vpop.f32.mrb[195].mxu0 }
0x124a   : > { %v9836_v3 = vmul.f32 0.01, %v9758_v48  ;;  %v9761_v19 = vadd.f32 %v17926_v50, %v9760_v30  ;;  %10111 = vmatmul.mubr.bf16.gmra.mrb[236].mxu1 %v9891_v52 }
0x124b   : > { %v9839_v44 = vmul.f32 0.01, %v9769_v12  ;;  %10120 = vmatprep.mubr.bf16.mxu1 %v15582_v18  ;;  %v9870_v23 = vmax.f32 %v9766_v2, %v9838_v31 }
0x124c   : > { %v9837_v37 = vmul.f32 0.01, %v9761_v19  ;;  %v9868_v42 = vmax.f32 %v9758_v48, %v9836_v3 }
0x124d   : > { %v9871_v4 = vmax.f32 %v9769_v12, %v9839_v44 }
0x124e   : > { %v9869_v32 = vmax.f32 %v9761_v19, %v9837_v37 }
0x124f   : > { %v9893_v25 = vpack.c.bf16 %v9871_v4, %v9870_v23  ;;  %v9918_v23 = vlaneseq }
0x1250   : > { %v9892_v5 = vpack.c.bf16 %v9869_v32, %v9868_v42  ;;  %v9916_v32 = vld [vmem:[#allocation18] sm:$0x3] }
0x1251   : > { %v9919_v4 = vshrl.u32 %v9918_v23, 7 }
0x1252   : > { %10121 = vmatmul.mubr.bf16.gmra.mrb[240].mxu1 %v9892_v5 }
0x1253   : > { %10130 = vmatprep.mubr.bf16.mxu1 %v15582_v18  ;;  %v9920_v42 = vsub.s32 0, %v9919_v4 }
0x1256   : > { %v14373_v20 = vpop.f32.mrb[196].mxu0 }
0x1257   : > { %v9782_v46 = vadd.f32 %v14373_v20, %v17926_v50  ;;  %v9773_v38 = vpop.f32.mrb[197].mxu0 }
0x1258   : > { %v9774_v36 = vadd.f32 %v17926_v50, %v9773_v38  ;;  %v14374_v14 = vpop.f32.mrb[198].mxu0 }
0x1259   : > { %v9842_v10 = vmul.f32 0.01, %v9782_v46  ;;  %v9785_v24 = vadd.f32 %v14374_v14, %v17926_v50  ;;  %v9776_v51 = vpop.f32.mrb[199].mxu0 }
0x125a   : > { %v9840_v22 = vmul.f32 0.01, %v9774_v36  ;;  %v9777_v62 = vadd.f32 %v17926_v50, %v9776_v51  ;;  %10131 = vmatmul.mubr.bf16.gmra.mrb[244].mxu1 %v9893_v25  ;;  %v17975_v25 = vrot.slane %v9916_v32, %v9920_v42 }
0x125b   : > { %v9843_v33 = vmul.f32 0.01, %v9785_v24  ;;  %10140 = vmatprep.mubr.bf16.mxu1 %v15582_v18  ;;  %v9874_v29 = vmax.f32 %v9782_v46, %v9842_v10 }
0x125c   : > { %v9841_v40 = vmul.f32 0.01, %v9777_v62  ;;  %v9872_v63 = vmax.f32 %v9774_v36, %v9840_v22 }
0x125d   : > { %v9875_v13 = vmax.f32 %v9785_v24, %v9843_v33 }
0x125e   : > { %v9873_v56 = vmax.f32 %v9777_v62, %v9841_v40 }
0x125f   : > { %v9895_v34 = vpack.c.bf16 %v9875_v13, %v9874_v29 }
0x1260   : > { %v9894_v15 = vpack.c.bf16 %v9873_v56, %v9872_v63 }
0x1262   : > { %10141 = vmatmul.mubr.bf16.gmra.mrb[248].mxu1 %v9894_v15 }
0x1263   : > { %10150 = vmatprep.mubr.bf16.mxu1 %v15582_v18 }
0x1266   : > { %v14377_v16 = vpop.f32.mrb[200].mxu0 }
0x1267   : > { %v9798_v1 = vadd.f32 %v14377_v16, %v17926_v50  ;;  %v9789_v47 = vpop.f32.mrb[201].mxu0 }
0x1268   : > { %v9790_v26 = vadd.f32 %v17926_v50, %v9789_v47  ;;  %v14378_v0 = vpop.f32.mrb[202].mxu0 }
0x1269   : > { %v9846_v53 = vmul.f32 0.01, %v9798_v1  ;;  %v9801_v7 = vadd.f32 %v14378_v0, %v17926_v50  ;;  %v9792_v41 = vpop.f32.mrb[203].mxu0 }
0x126a   : > { %v9844_v6 = vmul.f32 0.01, %v9790_v26  ;;  %v9793_v60 = vadd.f32 %v17926_v50, %v9792_v41  ;;  %10151 = vmatmul.mubr.bf16.gmra.mrb[252].mxu1 %v9895_v34 }
0x126b   : > { %v9847_v39 = vmul.f32 0.01, %v9801_v7  ;;  %10160 = vmatprep.mubr.bf16.mxu1 %v15582_v18  ;;  %v9878_v21 = vmax.f32 %v9798_v1, %v9846_v53 }
0x126c   : > { %v9845_v58 = vmul.f32 0.01, %v9793_v60  ;;  %v9876_v57 = vmax.f32 %v9790_v26, %v9844_v6 }
0x126d   : > { %v9879_v9 = vmax.f32 %v9801_v7, %v9847_v39 }
0x126e   : > { %v9877_v11 = vmax.f32 %v9793_v60, %v9845_v58 }
0x126f   : > { %v9897_v8 = vpack.c.bf16 %v9879_v9, %v9878_v21 }
0x1270   : > { %v9896_v28 = vpack.c.bf16 %v9877_v11, %v9876_v57 }
0x1272   : > { %10161 = vmatmul.mubr.bf16.gmra.mrb[0].mxu1 %v9896_v28 }
0x1273   : > { %10170 = vmatprep.mubr.bf16.mxu1 %v15582_v18 }
0x1276   : > { %v14381_v27 = vpop.f32.mrb[204].mxu0 }
0x1277   : > { %v9814_v35 = vadd.f32 %v14381_v27, %v17926_v50  ;;  %v9805_v49 = vpop.f32.mrb[205].mxu0 }
0x1278   : > { %v9806_v59 = vadd.f32 %v17926_v50, %v9805_v49  ;;  %v14382_v52 = vpop.f32.mrb[206].mxu0 }
0x1279   : > { %v9850_v43 = vmul.f32 0.01, %v9814_v35  ;;  %v9817_v45 = vadd.f32 %v14382_v52, %v17926_v50  ;;  %v9808_v2 = vpop.f32.mrb[207].mxu0 }
0x127a   : > { %v9848_v54 = vmul.f32 0.01, %v9806_v59  ;;  %v9809_v48 = vadd.f32 %v17926_v50, %v9808_v2  ;;  %10171 = vmatmul.mubr.bf16.gmra.mrb[4].mxu1 %v9897_v8  ;;  %v9924_v50 = vsub.s32 1, %v9919_v4 }
0x127b   : > { %v9851_v55 = vmul.f32 0.01, %v9817_v45  ;;  %10180 = vmatprep.mubr.bf16.mxu1 %v15582_v18  ;;  %v9882_v12 = vmax.f32 %v9814_v35, %v9850_v43 }
0x127c   : > { %v9849_v31 = vmul.f32 0.01, %v9809_v48  ;;  %v9880_v3 = vmax.f32 %v9806_v59, %v9848_v54  ;;  %v17977_v5 = vrot.slane %v9916_v32, %v9924_v50 }
0x127d   : > { %v9883_v30 = vmax.f32 %v9817_v45, %v9851_v55 }
0x127e   : > { %v9881_v19 = vmax.f32 %v9809_v48, %v9849_v31 }
0x127f   : > { %v9899_v44 = vpack.c.bf16 %v9883_v30, %v9882_v12 }
0x1280   : > { %v9898_v37 = vpack.c.bf16 %v9881_v19, %v9880_v3 }
0x1282   : > { %10181 = vmatmul.mubr.bf16.gmra.mrb[8].mxu1 %v9898_v37 }
0x1283   : > { %10190 = vmatprep.mubr.bf16.mxu1 %v15582_v18 }
0x128a   : > { %10191 = vmatmul.mubr.bf16.gmra.mrb[12].mxu1 %v9899_v44 }
0x12e5   : > { %v10042_v20 = vpop.f32.mrb[208].mxu1 }
0x12e6   : > { %v10043_v46 = vadd.f32 %v10042_v20, %v17975_v25  ;;  %v10044_v38 = vpop.f32.mrb[209].mxu1 }
0x12e7   : > { %v10045_v36 = vadd.f32 %v10044_v38, %v17977_v5  ;;  %v10046_v14 = vpop.f32.mrb[210].mxu1 }
0x12e8   : > { %v10201_v10 = vmul.f32 0.01, %v10043_v46  ;;  %v10047_v18 = vadd.f32 %v10046_v14, %v17975_v25  ;;  %v10048_v24 = vpop.f32.mrb[211].mxu1 }
0x12e9   : > { %v10202_v51 = vmul.f32 0.01, %v10045_v36  ;;  %v10049_v22 = vadd.f32 %v10048_v24, %v17977_v5 }
0x12ea   : > { %v10203_v62 = vmul.f32 0.01, %v10047_v18  ;;  %v10265_v40 = vmax.f32 %v10043_v46, %v10201_v10 }
0x12eb   : > { %v10204_v33 = vmul.f32 0.01, %v10049_v22  ;;  %v10266_v13 = vmax.f32 %v10045_v36, %v10202_v51 }
0x12ec   : > { %v10267_v29 = vmax.f32 %v10047_v18, %v10203_v62 }
0x12ed   : > { %v10268_v63 = vmax.f32 %v10049_v22, %v10204_v33  ;;  %v10052_v56 = vpop.f32.mrb[212].mxu1 }
0x12ee   : > { %v10329_v34 = vpack.c.bf16 %v10267_v29, %v10265_v40  ;;  %v10053_v15 = vadd.f32 %v10052_v56, %v17975_v25  ;;  %v10054_v16 = vpop.f32.mrb[213].mxu1 }
0x12ef   : > { %v10055_v1 = vadd.f32 %v10054_v16, %v17977_v5  ;;  %v10056_v47 = vpop.f32.mrb[214].mxu1  ;;  %v10330_v26 = vpack.c.bf16 %v10268_v63, %v10266_v13 }
0x12f0   : > { %v10205_v0 = vmul.f32 0.01, %v10053_v15  ;;  %v10057_v53 = vadd.f32 %v10056_v47, %v17975_v25  ;;  %v10058_v7 = vpop.f32.mrb[215].mxu1 }
0x12f1   : > { %v10206_v41 = vmul.f32 0.01, %v10055_v1  ;;  %v10059_v6 = vadd.f32 %v10058_v7, %v17977_v5  ;;  %10528 = vmatprep.mubr.bf16.mxu0 %v10330_v26 }
0x12f2   : > { %v10207_v60 = vmul.f32 0.01, %v10057_v53  ;;  %10529 = vmatmul.mubr.bf16.vlgmr.msra.gmra.mrb[208].mxu0 %v10329_v34  ;;  %v10269_v58 = vmax.f32 %v10053_v15, %v10205_v0 }
0x12f3   : > { %v10208_v39 = vmul.f32 0.01, %v10059_v6  ;;  %v10270_v21 = vmax.f32 %v10055_v1, %v10206_v41 }
0x12f4   : > { %v10271_v17 = vmax.f32 %v10057_v53, %v10207_v60 }
0x12f5   : > { %v10272_v9 = vmax.f32 %v10059_v6, %v10208_v39  ;;  %v10062_v61 = vpop.f32.mrb[216].mxu1 }
0x12f6   : > { %v10331_v57 = vpack.c.bf16 %v10271_v17, %v10269_v58  ;;  %v10063_v11 = vadd.f32 %v10062_v61, %v17975_v25  ;;  %v10064_v8 = vpop.f32.mrb[217].mxu1 }
0x12f7   : > { %v10065_v28 = vadd.f32 %v10064_v8, %v17977_v5  ;;  %v10066_v27 = vpop.f32.mrb[218].mxu1  ;;  %v10332_v35 = vpack.c.bf16 %v10272_v9, %v10270_v21 }
0x12f8   : > { %v10209_v49 = vmul.f32 0.01, %v10063_v11  ;;  %v10067_v59 = vadd.f32 %v10066_v27, %v17975_v25  ;;  %v10068_v52 = vpop.f32.mrb[219].mxu1 }
0x12f9   : > { %v10210_v43 = vmul.f32 0.01, %v10065_v28  ;;  %v10069_v45 = vadd.f32 %v10068_v52, %v17977_v5  ;;  %10536 = vmatprep.mubr.bf16.mxu0 %v10332_v35 }
0x12fa   : > { %v10211_v2 = vmul.f32 0.01, %v10067_v59  ;;  %10537 = vmatmul.mubr.bf16.gmra.mrb[212].mxu0 %v10331_v57  ;;  %v10273_v48 = vmax.f32 %v10063_v11, %v10209_v49 }
0x12fb   : > { %v10212_v54 = vmul.f32 0.01, %v10069_v45  ;;  %v10274_v31 = vmax.f32 %v10065_v28, %v10210_v43 }
0x12fc   : > { %v10275_v55 = vmax.f32 %v10067_v59, %v10211_v2 }
0x12fd   : > { %v10276_v12 = vmax.f32 %v10069_v45, %v10212_v54  ;;  %v10072_v30 = vpop.f32.mrb[220].mxu1 }
0x12fe   : > { %v10333_v3 = vpack.c.bf16 %v10275_v55, %v10273_v48  ;;  %v10073_v19 = vadd.f32 %v10072_v30, %v17975_v25  ;;  %v10074_v44 = vpop.f32.mrb[221].mxu1 }
0x12ff   : > { %v10075_v37 = vadd.f32 %v10074_v44, %v17977_v5  ;;  %v10076_v23 = vpop.f32.mrb[222].mxu1  ;;  %v10334_v4 = vpack.c.bf16 %v10276_v12, %v10274_v31 }
0x1300   : > { %v10213_v42 = vmul.f32 0.01, %v10073_v19  ;;  %v10077_v32 = vadd.f32 %v10076_v23, %v17975_v25  ;;  %v10078_v50 = vpop.f32.mrb[223].mxu1 }
0x1301   : > { %v10214_v20 = vmul.f32 0.01, %v10075_v37  ;;  %v10079_v46 = vadd.f32 %v10078_v50, %v17977_v5  ;;  %10544 = vmatprep.mubr.bf16.mxu0 %v10334_v4 }
0x1302   : > { %v10215_v38 = vmul.f32 0.01, %v10077_v32  ;;  %10545 = vmatmul.mubr.bf16.gmra.mrb[216].mxu0 %v10333_v3  ;;  %v10277_v14 = vmax.f32 %v10073_v19, %v10213_v42 }
0x1303   : > { %v10216_v36 = vmul.f32 0.01, %v10079_v46  ;;  %v10278_v18 = vmax.f32 %v10075_v37, %v10214_v20 }
0x1304   : > { %v10279_v10 = vmax.f32 %v10077_v32, %v10215_v38 }
0x1305   : > { %v10280_v24 = vmax.f32 %v10079_v46, %v10216_v36  ;;  %v10082_v51 = vpop.f32.mrb[224].mxu1 }
0x1306   : > { %v10335_v22 = vpack.c.bf16 %v10279_v10, %v10277_v14  ;;  %v10083_v62 = vadd.f32 %v10082_v51, %v17975_v25  ;;  %v10084_v33 = vpop.f32.mrb[225].mxu1 }
0x1307   : > { %v10085_v40 = vadd.f32 %v10084_v33, %v17977_v5  ;;  %v10086_v29 = vpop.f32.mrb[226].mxu1  ;;  %v10336_v13 = vpack.c.bf16 %v10280_v24, %v10278_v18 }
0x1308   : > { %v10217_v63 = vmul.f32 0.01, %v10083_v62  ;;  %v10087_v56 = vadd.f32 %v10086_v29, %v17975_v25  ;;  %v10088_v34 = vpop.f32.mrb[227].mxu1 }
0x1309   : > { %v10218_v15 = vmul.f32 0.01, %v10085_v40  ;;  %v10089_v16 = vadd.f32 %v10088_v34, %v17977_v5  ;;  %10552 = vmatprep.mubr.bf16.mxu0 %v10336_v13 }
0x130a   : > { %v10219_v1 = vmul.f32 0.01, %v10087_v56  ;;  %10553 = vmatmul.mubr.bf16.gmra.mrb[220].mxu0 %v10335_v22  ;;  %v10281_v26 = vmax.f32 %v10083_v62, %v10217_v63 }
0x130b   : > { %v10220_v47 = vmul.f32 0.01, %v10089_v16  ;;  %v10282_v53 = vmax.f32 %v10085_v40, %v10218_v15 }
0x130c   : > { %v10283_v0 = vmax.f32 %v10087_v56, %v10219_v1 }
0x130d   : > { %v10284_v7 = vmax.f32 %v10089_v16, %v10220_v47  ;;  %v10092_v41 = vpop.f32.mrb[228].mxu1 }
0x130e   : > { %v10337_v6 = vpack.c.bf16 %v10283_v0, %v10281_v26  ;;  %v10093_v60 = vadd.f32 %v10092_v41, %v17975_v25  ;;  %v10094_v39 = vpop.f32.mrb[229].mxu1 }
0x130f   : > { %v10095_v58 = vadd.f32 %v10094_v39, %v17977_v5  ;;  %v10096_v17 = vpop.f32.mrb[230].mxu1  ;;  %v10338_v21 = vpack.c.bf16 %v10284_v7, %v10282_v53 }
0x1310   : > { %v10221_v9 = vmul.f32 0.01, %v10093_v60  ;;  %v10097_v61 = vadd.f32 %v10096_v17, %v17975_v25  ;;  %v10098_v57 = vpop.f32.mrb[231].mxu1 }
0x1311   : > { %v10222_v11 = vmul.f32 0.01, %v10095_v58  ;;  %v10099_v8 = vadd.f32 %v10098_v57, %v17977_v5  ;;  %10560 = vmatprep.mubr.bf16.mxu0 %v10338_v21 }
0x1312   : > { %v10223_v28 = vmul.f32 0.01, %v10097_v61  ;;  %10561 = vmatmul.mubr.bf16.gmra.mrb[224].mxu0 %v10337_v6  ;;  %v10285_v35 = vmax.f32 %v10093_v60, %v10221_v9 }
0x1313   : > { %v10224_v27 = vmul.f32 0.01, %v10099_v8  ;;  %v10286_v59 = vmax.f32 %v10095_v58, %v10222_v11 }
0x1314   : > { %v10287_v49 = vmax.f32 %v10097_v61, %v10223_v28 }
0x1315   : > { %v10288_v52 = vmax.f32 %v10099_v8, %v10224_v27  ;;  %v10102_v43 = vpop.f32.mrb[232].mxu1 }
0x1316   : > { %v10339_v45 = vpack.c.bf16 %v10287_v49, %v10285_v35  ;;  %v10103_v2 = vadd.f32 %v10102_v43, %v17975_v25  ;;  %v10104_v54 = vpop.f32.mrb[233].mxu1 }
0x1317   : > { %v10105_v48 = vadd.f32 %v10104_v54, %v17977_v5  ;;  %v10106_v55 = vpop.f32.mrb[234].mxu1  ;;  %v10340_v31 = vpack.c.bf16 %v10288_v52, %v10286_v59 }
0x1318   : > { %v10225_v12 = vmul.f32 0.01, %v10103_v2  ;;  %v10107_v30 = vadd.f32 %v10106_v55, %v17975_v25  ;;  %v10108_v3 = vpop.f32.mrb[235].mxu1 }
0x1319   : > { %v10226_v19 = vmul.f32 0.01, %v10105_v48  ;;  %v10109_v44 = vadd.f32 %v10108_v3, %v17977_v5  ;;  %10568 = vmatprep.mubr.bf16.mxu0 %v10340_v31 }
0x131a   : > { %v10227_v37 = vmul.f32 0.01, %v10107_v30  ;;  %10569 = vmatmul.mubr.bf16.gmra.mrb[228].mxu0 %v10339_v45  ;;  %v10289_v4 = vmax.f32 %v10103_v2, %v10225_v12 }
0x131b   : > { %v10228_v23 = vmul.f32 0.01, %v10109_v44  ;;  %v10290_v32 = vmax.f32 %v10105_v48, %v10226_v19 }
0x131c   : > { %v10291_v42 = vmax.f32 %v10107_v30, %v10227_v37 }
0x131d   : > { %v10292_v50 = vmax.f32 %v10109_v44, %v10228_v23  ;;  %v10112_v20 = vpop.f32.mrb[236].mxu1 }
0x131e   : > { %v10341_v46 = vpack.c.bf16 %v10291_v42, %v10289_v4  ;;  %v10113_v38 = vadd.f32 %v10112_v20, %v17975_v25  ;;  %v10114_v36 = vpop.f32.mrb[237].mxu1 }
0x131f   : > { %v10115_v14 = vadd.f32 %v10114_v36, %v17977_v5  ;;  %v10116_v10 = vpop.f32.mrb[238].mxu1  ;;  %v10342_v18 = vpack.c.bf16 %v10292_v50, %v10290_v32 }
0x1320   : > { %v10229_v24 = vmul.f32 0.01, %v10113_v38  ;;  %v10117_v51 = vadd.f32 %v10116_v10, %v17975_v25  ;;  %v10118_v22 = vpop.f32.mrb[239].mxu1 }
0x1321   : > { %v10230_v62 = vmul.f32 0.01, %v10115_v14  ;;  %v10119_v33 = vadd.f32 %v10118_v22, %v17977_v5  ;;  %10576 = vmatprep.mubr.bf16.mxu0 %v10342_v18 }
0x1322   : > { %v10231_v40 = vmul.f32 0.01, %v10117_v51  ;;  %10577 = vmatmul.mubr.bf16.gmra.mrb[232].mxu0 %v10341_v46  ;;  %v10293_v13 = vmax.f32 %v10113_v38, %v10229_v24 }
0x1323   : > { %v10232_v29 = vmul.f32 0.01, %v10119_v33  ;;  %v10294_v56 = vmax.f32 %v10115_v14, %v10230_v62 }
0x1324   : > { %v10295_v63 = vmax.f32 %v10117_v51, %v10231_v40 }
0x1325   : > { %v10296_v34 = vmax.f32 %v10119_v33, %v10232_v29  ;;  %v10122_v15 = vpop.f32.mrb[240].mxu1 }
0x1326   : > { %v10343_v16 = vpack.c.bf16 %v10295_v63, %v10293_v13  ;;  %v10123_v1 = vadd.f32 %v10122_v15, %v17975_v25  ;;  %v10124_v47 = vpop.f32.mrb[241].mxu1 }
0x1327   : > { %v10125_v26 = vadd.f32 %v10124_v47, %v17977_v5  ;;  %v10126_v0 = vpop.f32.mrb[242].mxu1  ;;  %v10344_v53 = vpack.c.bf16 %v10296_v34, %v10294_v56 }
0x1328   : > { %v10233_v7 = vmul.f32 0.01, %v10123_v1  ;;  %v10127_v41 = vadd.f32 %v10126_v0, %v17975_v25  ;;  %v10128_v6 = vpop.f32.mrb[243].mxu1 }
0x1329   : > { %v10234_v60 = vmul.f32 0.01, %v10125_v26  ;;  %v10129_v39 = vadd.f32 %v10128_v6, %v17977_v5  ;;  %10584 = vmatprep.mubr.bf16.mxu0 %v10344_v53 }
0x132a   : > { %v10235_v58 = vmul.f32 0.01, %v10127_v41  ;;  %10585 = vmatmul.mubr.bf16.gmra.mrb[236].mxu0 %v10343_v16  ;;  %v10297_v21 = vmax.f32 %v10123_v1, %v10233_v7 }
0x132b   : > { %v10236_v17 = vmul.f32 0.01, %v10129_v39  ;;  %v10298_v61 = vmax.f32 %v10125_v26, %v10234_v60 }
0x132c   : > { %v10299_v9 = vmax.f32 %v10127_v41, %v10235_v58 }
0x132d   : > { %v10300_v57 = vmax.f32 %v10129_v39, %v10236_v17  ;;  %v10132_v11 = vpop.f32.mrb[244].mxu1 }
0x132e   : > { %v10345_v8 = vpack.c.bf16 %v10299_v9, %v10297_v21  ;;  %v10133_v28 = vadd.f32 %v10132_v11, %v17975_v25  ;;  %v10134_v27 = vpop.f32.mrb[245].mxu1 }
0x132f   : > { %v10135_v35 = vadd.f32 %v10134_v27, %v17977_v5  ;;  %v10136_v49 = vpop.f32.mrb[246].mxu1  ;;  %v10346_v59 = vpack.c.bf16 %v10300_v57, %v10298_v61 }
0x1330   : > { %v10237_v52 = vmul.f32 0.01, %v10133_v28  ;;  %v10137_v43 = vadd.f32 %v10136_v49, %v17975_v25  ;;  %v10138_v45 = vpop.f32.mrb[247].mxu1 }
0x1331   : > { %v10238_v2 = vmul.f32 0.01, %v10135_v35  ;;  %v10139_v54 = vadd.f32 %v10138_v45, %v17977_v5  ;;  %10592 = vmatprep.mubr.bf16.mxu0 %v10346_v59 }
0x1332   : > { %v10239_v48 = vmul.f32 0.01, %v10137_v43  ;;  %10593 = vmatmul.mubr.bf16.gmra.mrb[240].mxu0 %v10345_v8  ;;  %v10301_v31 = vmax.f32 %v10133_v28, %v10237_v52 }
0x1333   : > { %v10240_v55 = vmul.f32 0.01, %v10139_v54  ;;  %v10302_v30 = vmax.f32 %v10135_v35, %v10238_v2 }
0x1334   : > { %v10303_v12 = vmax.f32 %v10137_v43, %v10239_v48 }
0x1335   : > { %v10304_v3 = vmax.f32 %v10139_v54, %v10240_v55  ;;  %v10142_v19 = vpop.f32.mrb[248].mxu1 }
0x1336   : > { %v10347_v44 = vpack.c.bf16 %v10303_v12, %v10301_v31  ;;  %v10143_v37 = vadd.f32 %v10142_v19, %v17975_v25  ;;  %v10144_v23 = vpop.f32.mrb[249].mxu1 }
0x1337   : > { %v10145_v4 = vadd.f32 %v10144_v23, %v17977_v5  ;;  %v10146_v42 = vpop.f32.mrb[250].mxu1  ;;  %v10348_v32 = vpack.c.bf16 %v10304_v3, %v10302_v30 }
0x1338   : > { %v10241_v50 = vmul.f32 0.01, %v10143_v37  ;;  %v10147_v20 = vadd.f32 %v10146_v42, %v17975_v25  ;;  %v10148_v46 = vpop.f32.mrb[251].mxu1 }
0x1339   : > { %v10242_v38 = vmul.f32 0.01, %v10145_v4  ;;  %v10149_v36 = vadd.f32 %v10148_v46, %v17977_v5  ;;  %10600 = vmatprep.mubr.bf16.mxu0 %v10348_v32 }
0x133a   : > { %v10243_v14 = vmul.f32 0.01, %v10147_v20  ;;  %10601 = vmatmul.mubr.bf16.gmra.mrb[244].mxu0 %v10347_v44  ;;  %v10305_v18 = vmax.f32 %v10143_v37, %v10241_v50 }
0x133b   : > { %v10244_v10 = vmul.f32 0.01, %v10149_v36  ;;  %v10306_v51 = vmax.f32 %v10145_v4, %v10242_v38 }
0x133c   : > { %v10307_v24 = vmax.f32 %v10147_v20, %v10243_v14 }
0x133d   : > { %v10308_v22 = vmax.f32 %v10149_v36, %v10244_v10  ;;  %v10152_v62 = vpop.f32.mrb[252].mxu1 }
0x133e   : > { %v10349_v33 = vpack.c.bf16 %v10307_v24, %v10305_v18  ;;  %v10153_v40 = vadd.f32 %v10152_v62, %v17975_v25  ;;  %v10154_v29 = vpop.f32.mrb[253].mxu1 }
0x133f   : > { %v10155_v13 = vadd.f32 %v10154_v29, %v17977_v5  ;;  %v10156_v63 = vpop.f32.mrb[254].mxu1  ;;  %v10350_v56 = vpack.c.bf16 %v10308_v22, %v10306_v51 }
0x1340   : > { %v10245_v34 = vmul.f32 0.01, %v10153_v40  ;;  %v10157_v15 = vadd.f32 %v10156_v63, %v17975_v25  ;;  %v10158_v16 = vpop.f32.mrb[255].mxu1 }
0x1341   : > { %v10246_v1 = vmul.f32 0.01, %v10155_v13  ;;  %v10159_v47 = vadd.f32 %v10158_v16, %v17977_v5  ;;  %10608 = vmatprep.mubr.bf16.mxu0 %v10350_v56 }
0x1342   : > { %v10247_v26 = vmul.f32 0.01, %v10157_v15  ;;  %10609 = vmatmul.mubr.bf16.gmra.mrb[248].mxu0 %v10349_v33  ;;  %v10309_v53 = vmax.f32 %v10153_v40, %v10245_v34 }
0x1343   : > { %v10248_v0 = vmul.f32 0.01, %v10159_v47  ;;  %v10310_v41 = vmax.f32 %v10155_v13, %v10246_v1 }
0x1344   : > { %v10311_v7 = vmax.f32 %v10157_v15, %v10247_v26 }
0x1345   : > { %v10312_v6 = vmax.f32 %v10159_v47, %v10248_v0  ;;  %v10162_v60 = vpop.f32.mrb[0].mxu1 }
0x1346   : > { %v10351_v39 = vpack.c.bf16 %v10311_v7, %v10309_v53  ;;  %v10163_v58 = vadd.f32 %v10162_v60, %v17975_v25  ;;  %v10164_v17 = vpop.f32.mrb[1].mxu1 }
0x1347   : > { %v10165_v21 = vadd.f32 %v10164_v17, %v17977_v5  ;;  %v10166_v9 = vpop.f32.mrb[2].mxu1  ;;  %v10352_v61 = vpack.c.bf16 %v10312_v6, %v10310_v41 }
0x1348   : > { %v10249_v57 = vmul.f32 0.01, %v10163_v58  ;;  %v10167_v11 = vadd.f32 %v10166_v9, %v17975_v25  ;;  %v10168_v8 = vpop.f32.mrb[3].mxu1 }
0x1349   : > { %v10250_v28 = vmul.f32 0.01, %v10165_v21  ;;  %v10169_v27 = vadd.f32 %v10168_v8, %v17977_v5  ;;  %10616 = vmatprep.mubr.bf16.mxu0 %v10352_v61 }
0x134a   : > { %v10251_v35 = vmul.f32 0.01, %v10167_v11  ;;  %10617 = vmatmul.mubr.bf16.gmra.mrb[252].mxu0 %v10351_v39  ;;  %v10313_v59 = vmax.f32 %v10163_v58, %v10249_v57 }
0x134b   : > { %v10252_v49 = vmul.f32 0.01, %v10169_v27  ;;  %v10314_v43 = vmax.f32 %v10165_v21, %v10250_v28 }
0x134c   : > { %v10315_v52 = vmax.f32 %v10167_v11, %v10251_v35 }
0x134d   : > { %v10316_v45 = vmax.f32 %v10169_v27, %v10252_v49  ;;  %v10172_v2 = vpop.f32.mrb[4].mxu1 }
0x134e   : > { %v10353_v54 = vpack.c.bf16 %v10315_v52, %v10313_v59  ;;  %v10173_v48 = vadd.f32 %v10172_v2, %v17975_v25  ;;  %v10174_v55 = vpop.f32.mrb[5].mxu1  ;;  %v18043_v52 = vld [vmem:[#allocation21] ss:$0 sm:$0xff] }
0x134f   : > { %v10175_v31 = vadd.f32 %v10174_v55, %v17977_v5  ;;  %v10176_v12 = vpop.f32.mrb[6].mxu1  ;;  %v10354_v30 = vpack.c.bf16 %v10316_v45, %v10314_v43 }
0x1350   : > { %v10253_v3 = vmul.f32 0.01, %v10173_v48  ;;  %v10177_v19 = vadd.f32 %v10176_v12, %v17975_v25  ;;  %v10178_v44 = vpop.f32.mrb[7].mxu1 }
0x1351   : > { %v10254_v37 = vmul.f32 0.01, %v10175_v31  ;;  %v10179_v23 = vadd.f32 %v10178_v44, %v17977_v5  ;;  %10624 = vmatprep.mubr.bf16.mxu0 %v10354_v30 }
0x1352   : > { %v10255_v4 = vmul.f32 0.01, %v10177_v19  ;;  %10625 = vmatmul.mubr.bf16.gmra.mrb[0].mxu0 %v10353_v54  ;;  %v10317_v32 = vmax.f32 %v10173_v48, %v10253_v3 }
0x1353   : > { %v10256_v42 = vmul.f32 0.01, %v10179_v23  ;;  %v10318_v20 = vmax.f32 %v10175_v31, %v10254_v37 }
0x1354   : > { %v10319_v50 = vmax.f32 %v10177_v19, %v10255_v4 }
0x1355   : > { %v10320_v46 = vmax.f32 %v10179_v23, %v10256_v42  ;;  %v10182_v38 = vpop.f32.mrb[8].mxu1 }
0x1356   : > { %v10355_v36 = vpack.c.bf16 %v10319_v50, %v10317_v32  ;;  %v10183_v14 = vadd.f32 %v10182_v38, %v17975_v25  ;;  %v10184_v10 = vpop.f32.mrb[9].mxu1 }
0x1357   : > { %v10185_v18 = vadd.f32 %v10184_v10, %v17977_v5  ;;  %v10186_v24 = vpop.f32.mrb[10].mxu1  ;;  %v10356_v51 = vpack.c.bf16 %v10320_v46, %v10318_v20 }
0x1358   : > { %v10257_v22 = vmul.f32 0.01, %v10183_v14  ;;  %v10187_v62 = vadd.f32 %v10186_v24, %v17975_v25  ;;  %v10188_v33 = vpop.f32.mrb[11].mxu1 }
0x1359   : > { %v10258_v40 = vmul.f32 0.01, %v10185_v18  ;;  %v10189_v29 = vadd.f32 %v10188_v33, %v17977_v5  ;;  %10632 = vmatprep.mubr.bf16.mxu0 %v10356_v51 }
0x135a   : > { %v10259_v13 = vmul.f32 0.01, %v10187_v62  ;;  %10633 = vmatmul.mubr.bf16.gmra.mrb[4].mxu0 %v10355_v36  ;;  %v10321_v56 = vmax.f32 %v10183_v14, %v10257_v22 }
0x135b   : > { %v10260_v63 = vmul.f32 0.01, %v10189_v29  ;;  %v10322_v15 = vmax.f32 %v10185_v18, %v10258_v40 }
0x135c   : > { %v10323_v34 = vmax.f32 %v10187_v62, %v10259_v13 }
0x135d   : > { %v10324_v16 = vmax.f32 %v10189_v29, %v10260_v63  ;;  %v10192_v1 = vpop.f32.mrb[12].mxu1 }
0x135e   : > { %v10357_v47 = vpack.c.bf16 %v10323_v34, %v10321_v56  ;;  %v10193_v26 = vadd.f32 %v10192_v1, %v17975_v25  ;;  %v10194_v0 = vpop.f32.mrb[13].mxu1 }
0x135f   : > { %v10195_v53 = vadd.f32 %v10194_v0, %v17977_v5  ;;  %v10196_v7 = vpop.f32.mrb[14].mxu1  ;;  %v10358_v41 = vpack.c.bf16 %v10324_v16, %v10322_v15 }
0x1360   : > { %v10261_v6 = vmul.f32 0.01, %v10193_v26  ;;  %v10197_v60 = vadd.f32 %v10196_v7, %v17975_v25  ;;  %v10198_v39 = vpop.f32.mrb[15].mxu1 }
0x1361   : > { %v10262_v58 = vmul.f32 0.01, %v10195_v53  ;;  %v10199_v17 = vadd.f32 %v10198_v39, %v17977_v5  ;;  %10640 = vmatprep.mubr.bf16.mxu0 %v10358_v41 }
0x1362   : > { %v10263_v21 = vmul.f32 0.01, %v10197_v60  ;;  %10641 = vmatmul.mubr.bf16.gmra.mrb[8].mxu0 %v10357_v47  ;;  %v10325_v61 = vmax.f32 %v10193_v26, %v10261_v6 }
0x1363   : > { %v10264_v9 = vmul.f32 0.01, %v10199_v17  ;;  %v10326_v11 = vmax.f32 %v10195_v53, %v10262_v58 }
0x1364   : > { %v10327_v57 = vmax.f32 %v10197_v60, %v10263_v21 }
0x1365   : > { %v10328_v8 = vmax.f32 %v10199_v17, %v10264_v9 }
0x1366   : > { %v10359_v28 = vpack.c.bf16 %v10327_v57, %v10325_v61 }
0x1367   : > { %v10360_v27 = vpack.c.bf16 %v10328_v8, %v10326_v11 }
0x1369   : > { %10648 = vmatprep.mubr.bf16.mxu0 %v10360_v27 }
0x136a   : > { %10649 = vmatmul.mubr.bf16.gmra.mrb[12].mxu0 %v10359_v28 }
0x13c5   : > { %v14143_v35 = vpop.f32.mrb[208].mxu0 }
0x13c6   : > { %v14144_v49 = vpop.f32.mrb[209].mxu0 }
0x13c7   : > { %v14145_v25 = vadd.f32 %v14144_v49, %v14143_v35  ;;  %v14146_v59 = vpop.f32.mrb[210].mxu0 }
0x13c8   : > { %v14147_v5 = vpop.f32.mrb[211].mxu0 }
0x13c9   : > { %v14148_v43 = vadd.f32 %v14147_v5, %v14146_v59  ;;  %v10531_v45 = vadd.f32 %v14145_v25, %v18043_v52 }
0x13cb   : > { %v10534_v2 = vadd.f32 %v14148_v43, %v18043_v52 }
0x13cd   : > { %v11611_v54 = vpack.c.bf16 %v10534_v2, %v10531_v45  ;;  %v14149_v48 = vpop.f32.mrb[212].mxu0 }
0x13ce   : > { %v14150_v55 = vpop.f32.mrb[213].mxu0 }
0x13cf   : > { %11612 = vst [vmem:[%s18048_s13] sm:$0xff] %v11611_v54   ;;  %v14151_v31 = vadd.f32 %v14150_v55, %v14149_v48  ;;  %v14152_v12 = vpop.f32.mrb[214].mxu0 }
0x13d0   : > { %v14153_v30 = vpop.f32.mrb[215].mxu0 }
0x13d1   : > { %v14154_v3 = vadd.f32 %v14153_v30, %v14152_v12  ;;  %v10539_v19 = vadd.f32 %v14151_v31, %v18043_v52 }
0x13d3   : > { %v10542_v44 = vadd.f32 %v14154_v3, %v18043_v52 }
0x13d5   : > { %v11616_v37 = vpack.c.bf16 %v10542_v44, %v10539_v19  ;;  %v14155_v23 = vpop.f32.mrb[216].mxu0 }
0x13d6   : > { %v14156_v4 = vpop.f32.mrb[217].mxu0 }
0x13d7   : > { %11688 = vst [vmem:[%s18048_s13 + $0x8] sm:$0xff] %v11616_v37   ;;  %v14157_v42 = vadd.f32 %v14156_v4, %v14155_v23  ;;  %v14158_v32 = vpop.f32.mrb[218].mxu0 }
0x13d8   : > { %v14159_v50 = vpop.f32.mrb[219].mxu0 }
0x13d9   : > { %v14160_v20 = vadd.f32 %v14159_v50, %v14158_v32  ;;  %v10547_v46 = vadd.f32 %v14157_v42, %v18043_v52 }
0x13db   : > { %v10550_v38 = vadd.f32 %v14160_v20, %v18043_v52 }
0x13dd   : > { %v11621_v36 = vpack.c.bf16 %v10550_v38, %v10547_v46  ;;  %v14161_v14 = vpop.f32.mrb[220].mxu0 }
0x13de   : > { %v14162_v10 = vpop.f32.mrb[221].mxu0 }
0x13df   : > { %11689 = vst [vmem:[%s18048_s13 + $0x10] sm:$0xff] %v11621_v36   ;;  %v14163_v18 = vadd.f32 %v14162_v10, %v14161_v14  ;;  %v14164_v24 = vpop.f32.mrb[222].mxu0 }
0x13e0   : > { %v14165_v51 = vpop.f32.mrb[223].mxu0 }
0x13e1   : > { %v14166_v22 = vadd.f32 %v14165_v51, %v14164_v24  ;;  %v10555_v62 = vadd.f32 %v14163_v18, %v18043_v52 }
0x13e3   : > { %v10558_v33 = vadd.f32 %v14166_v22, %v18043_v52 }
0x13e5   : > { %v11626_v40 = vpack.c.bf16 %v10558_v33, %v10555_v62  ;;  %v14167_v29 = vpop.f32.mrb[224].mxu0 }
0x13e6   : > { %v14168_v13 = vpop.f32.mrb[225].mxu0 }
0x13e7   : > { %11690 = vst [vmem:[%s18048_s13 + $0x18] sm:$0xff] %v11626_v40   ;;  %v14169_v63 = vadd.f32 %v14168_v13, %v14167_v29  ;;  %v14170_v56 = vpop.f32.mrb[226].mxu0 }
0x13e8   : > { %v14171_v34 = vpop.f32.mrb[227].mxu0 }
0x13e9   : > { %v14172_v15 = vadd.f32 %v14171_v34, %v14170_v56  ;;  %v10563_v16 = vadd.f32 %v14169_v63, %v18043_v52 }
0x13eb   : > { %v10566_v1 = vadd.f32 %v14172_v15, %v18043_v52 }
0x13ed   : > { %v11631_v47 = vpack.c.bf16 %v10566_v1, %v10563_v16  ;;  %v14173_v26 = vpop.f32.mrb[228].mxu0 }
0x13ee   : > { %v14174_v0 = vpop.f32.mrb[229].mxu0 }
0x13ef   : > { %11691 = vst [vmem:[%s18048_s13 + $0x20] sm:$0xff] %v11631_v47   ;;  %v14175_v53 = vadd.f32 %v14174_v0, %v14173_v26  ;;  %v14176_v7 = vpop.f32.mrb[230].mxu0 }
0x13f0   : > { %v14177_v41 = vpop.f32.mrb[231].mxu0 }
0x13f1   : > { %v14178_v6 = vadd.f32 %v14177_v41, %v14176_v7  ;;  %v10571_v60 = vadd.f32 %v14175_v53, %v18043_v52 }
0x13f3   : > { %v10574_v39 = vadd.f32 %v14178_v6, %v18043_v52 }
0x13f5   : > { %v11636_v58 = vpack.c.bf16 %v10574_v39, %v10571_v60  ;;  %v14179_v17 = vpop.f32.mrb[232].mxu0 }
0x13f6   : > { %v14180_v21 = vpop.f32.mrb[233].mxu0 }
0x13f7   : > { %11692 = vst [vmem:[%s18048_s13 + $0x28] sm:$0xff] %v11636_v58   ;;  %v14181_v9 = vadd.f32 %v14180_v21, %v14179_v17  ;;  %v14182_v61 = vpop.f32.mrb[234].mxu0 }
0x13f8   : > { %v14183_v57 = vpop.f32.mrb[235].mxu0 }
0x13f9   : > { %v14184_v11 = vadd.f32 %v14183_v57, %v14182_v61  ;;  %v10579_v8 = vadd.f32 %v14181_v9, %v18043_v52 }
0x13fb   : > { %v10582_v28 = vadd.f32 %v14184_v11, %v18043_v52 }
0x13fd   : > { %v11641_v27 = vpack.c.bf16 %v10582_v28, %v10579_v8  ;;  %v14185_v35 = vpop.f32.mrb[236].mxu0 }
0x13fe   : > { %v14186_v49 = vpop.f32.mrb[237].mxu0 }
0x13ff   : > { %11693 = vst [vmem:[%s18048_s13 + $0x30] sm:$0xff] %v11641_v27   ;;  %v14187_v25 = vadd.f32 %v14186_v49, %v14185_v35  ;;  %v14188_v59 = vpop.f32.mrb[238].mxu0 }
0x1400   : > { %v14189_v5 = vpop.f32.mrb[239].mxu0 }
0x1401   : > { %v14190_v43 = vadd.f32 %v14189_v5, %v14188_v59  ;;  %v10587_v45 = vadd.f32 %v14187_v25, %v18043_v52 }
0x1403   : > { %v10590_v2 = vadd.f32 %v14190_v43, %v18043_v52 }
0x1405   : > { %v11646_v54 = vpack.c.bf16 %v10590_v2, %v10587_v45  ;;  %v14191_v48 = vpop.f32.mrb[240].mxu0 }
0x1406   : > { %v14192_v55 = vpop.f32.mrb[241].mxu0 }
0x1407   : > { %11694 = vst [vmem:[%s18048_s13 + $0x38] sm:$0xff] %v11646_v54   ;;  %v14193_v31 = vadd.f32 %v14192_v55, %v14191_v48  ;;  %v14194_v12 = vpop.f32.mrb[242].mxu0 }
0x1408   : > { %v14195_v30 = vpop.f32.mrb[243].mxu0 }
0x1409   : > { %v14196_v3 = vadd.f32 %v14195_v30, %v14194_v12  ;;  %v10595_v19 = vadd.f32 %v14193_v31, %v18043_v52 }
0x140b   : > { %v10598_v44 = vadd.f32 %v14196_v3, %v18043_v52 }
0x140d   : > { %v11651_v37 = vpack.c.bf16 %v10598_v44, %v10595_v19  ;;  %v14197_v23 = vpop.f32.mrb[244].mxu0 }
0x140e   : > { %v14198_v4 = vpop.f32.mrb[245].mxu0 }
0x140f   : > { %11695 = vst [vmem:[%s18048_s13 + $0x40] sm:$0xff] %v11651_v37   ;;  %v14199_v42 = vadd.f32 %v14198_v4, %v14197_v23  ;;  %v14200_v32 = vpop.f32.mrb[246].mxu0 }
0x1410   : > { %v14201_v50 = vpop.f32.mrb[247].mxu0 }
0x1411   : > { %v14202_v20 = vadd.f32 %v14201_v50, %v14200_v32  ;;  %v10603_v46 = vadd.f32 %v14199_v42, %v18043_v52 }
0x1413   : > { %v10606_v38 = vadd.f32 %v14202_v20, %v18043_v52 }
0x1415   : > { %v11656_v36 = vpack.c.bf16 %v10606_v38, %v10603_v46  ;;  %v14203_v14 = vpop.f32.mrb[248].mxu0 }
0x1416   : > { %v14204_v10 = vpop.f32.mrb[249].mxu0 }
0x1417   : > { %11696 = vst [vmem:[%s18048_s13 + $0x48] sm:$0xff] %v11656_v36   ;;  %v14205_v18 = vadd.f32 %v14204_v10, %v14203_v14  ;;  %v14206_v24 = vpop.f32.mrb[250].mxu0 }
0x1418   : > { %v14207_v51 = vpop.f32.mrb[251].mxu0 }
0x1419   : > { %v14208_v22 = vadd.f32 %v14207_v51, %v14206_v24  ;;  %v10611_v62 = vadd.f32 %v14205_v18, %v18043_v52 }
0x141b   : > { %v10614_v33 = vadd.f32 %v14208_v22, %v18043_v52 }
0x141d   : > { %v11661_v40 = vpack.c.bf16 %v10614_v33, %v10611_v62  ;;  %v14209_v29 = vpop.f32.mrb[252].mxu0 }
0x141e   : > { %v14210_v13 = vpop.f32.mrb[253].mxu0 }
0x141f   : > { %11697 = vst [vmem:[%s18048_s13 + $0x50] sm:$0xff] %v11661_v40   ;;  %v14211_v63 = vadd.f32 %v14210_v13, %v14209_v29  ;;  %v14212_v56 = vpop.f32.mrb[254].mxu0 }
0x1420   : > { %v14213_v34 = vpop.f32.mrb[255].mxu0 }
0x1421   : > { %v14214_v15 = vadd.f32 %v14213_v34, %v14212_v56  ;;  %v10619_v16 = vadd.f32 %v14211_v63, %v18043_v52 }
0x1423   : > { %v10622_v1 = vadd.f32 %v14214_v15, %v18043_v52 }
0x1425   : > { %v11666_v47 = vpack.c.bf16 %v10622_v1, %v10619_v16  ;;  %v14215_v26 = vpop.f32.mrb[0].mxu0 }
0x1426   : > { %v14216_v0 = vpop.f32.mrb[1].mxu0 }
0x1427   : > { %11698 = vst [vmem:[%s18048_s13 + $0x58] sm:$0xff] %v11666_v47   ;;  %v14217_v53 = vadd.f32 %v14216_v0, %v14215_v26  ;;  %v14218_v7 = vpop.f32.mrb[2].mxu0 }
0x1428   : > { %v14219_v41 = vpop.f32.mrb[3].mxu0 }
0x1429   : > { %v14220_v6 = vadd.f32 %v14219_v41, %v14218_v7  ;;  %v10627_v60 = vadd.f32 %v14217_v53, %v18043_v52 }
0x142b   : > { %v10630_v39 = vadd.f32 %v14220_v6, %v18043_v52 }
0x142d   : > { %v11671_v58 = vpack.c.bf16 %v10630_v39, %v10627_v60  ;;  %v14221_v17 = vpop.f32.mrb[4].mxu0 }
0x142e   : > { %v14222_v21 = vpop.f32.mrb[5].mxu0 }
0x142f   : > { %11699 = vst [vmem:[%s18048_s13 + $0x60] sm:$0xff] %v11671_v58   ;;  %v14223_v9 = vadd.f32 %v14222_v21, %v14221_v17  ;;  %v14224_v61 = vpop.f32.mrb[6].mxu0 }
0x1430   : > { %v14225_v57 = vpop.f32.mrb[7].mxu0 }
0x1431   : > { %v14226_v11 = vadd.f32 %v14225_v57, %v14224_v61  ;;  %v10635_v8 = vadd.f32 %v14223_v9, %v18043_v52 }
0x1433   : > { %v10638_v28 = vadd.f32 %v14226_v11, %v18043_v52 }
0x1435   : > { %v11676_v27 = vpack.c.bf16 %v10638_v28, %v10635_v8  ;;  %v14227_v35 = vpop.f32.mrb[8].mxu0 }
0x1436   : > { %v14228_v49 = vpop.f32.mrb[9].mxu0 }
0x1437   : > { %11700 = vst [vmem:[%s18048_s13 + $0x68] sm:$0xff] %v11676_v27   ;;  %v14229_v25 = vadd.f32 %v14228_v49, %v14227_v35  ;;  %v14230_v59 = vpop.f32.mrb[10].mxu0 }
0x1438   : > { %v14231_v5 = vpop.f32.mrb[11].mxu0 }
0x1439   : > { %v14232_v43 = vadd.f32 %v14231_v5, %v14230_v59  ;;  %v10643_v45 = vadd.f32 %v14229_v25, %v18043_v52 }
0x143b   : > { %v10646_v2 = vadd.f32 %v14232_v43, %v18043_v52 }
0x143d   : > { %v11681_v54 = vpack.c.bf16 %v10646_v2, %v10643_v45  ;;  %v14233_v48 = vpop.f32.mrb[12].mxu0 }
0x143e   : > { %v14234_v55 = vpop.f32.mrb[13].mxu0 }
0x143f   : > { %11701 = vst [vmem:[%s18048_s13 + $0x70] sm:$0xff] %v11681_v54   ;;  %v14235_v31 = vadd.f32 %v14234_v55, %v14233_v48  ;;  %v14236_v12 = vpop.f32.mrb[14].mxu0 }
0x1440   : > { %v14237_v30 = vpop.f32.mrb[15].mxu0 }
0x1441   : > { %v14238_v3 = vadd.f32 %v14237_v30, %v14236_v12  ;;  %v10651_v19 = vadd.f32 %v14235_v31, %v18043_v52 }
0x1443   : > { %v10654_v44 = vadd.f32 %v14238_v3, %v18043_v52 }
0x1445   : > { %v11686_v37 = vpack.c.bf16 %v10654_v44, %v10651_v19 }
0x1447   : > { %11702 = vst [vmem:[%s18048_s13 + $0x78] sm:$0xff] %v11686_v37  }
0x1448   : > { %15488 = shalt.err (!%p15485_p3)
}
0x1449   : > { %s15489_s0 = scalar_lea.hbm %s18100_s1, 2048  ;;  %s15493_s30 = scalar_lea.hbm %s18376_s2, 4096 }
0x144a   : > { %p15490_p6 = scmp.ne.s32.totalorder %s18100_s1, %s15489_s0  ;;  %p15494_p9 = scmp.lt.u32.totalorder %s18100_s1, %s18376_s2 }
0x144b   : > { %p15495_p12 = scmp.lt.u32.totalorder %s15493_s30, %s15489_s0  ;;  %p15497_p13 = scmp.lt.u32.totalorder %s15489_s0, %s18100_s1 }
0x144c   : > { %p15491_p7 = pnand %p15490_p6, %p18377_p0 }
0x144d   : > { %p15496_p1 = por %p15495_p12, %p15494_p9 }
0x144e   : > { %p15492_p5 = pneg %p15491_p7 }
0x144f   : > { %p15498_p2 = por %p15497_p13, %p15496_p1 }
0x1451   : > { %p15499_p8 = pnand %p15498_p2, %p15492_p5 }
0x1453   : > { %15502 = shalt.err (!%p15499_p8)
}
0x1454   : > { %s15584_s14 = smov 64   ;;  %s15585_s23 = smov 4  }
0x1455   : > { %14444 = dma.vmem_to_hbm [thread:$0]  (%p18377_p0), %s18102_s28, 2048, %s18100_s1, %s10818_s3, %s15584_s14, %s15584_s14, %s15585_s23  }
0x1456 PF: > { %s10846_s21 = sand.u32 1, %s15549_s17   ;;  %p18378_p4 = scmp.ne.s32.totalorder %s18219_s25, 0 }
0x1457   : > { %p18379_p10 = scmp.ge.s32.totalorder %s15561_s20, 2  ;;  %s10847_s15 = scalar_lea.sflag [#allocation6], %s10846_s21 }
0x1459   : > { %p14482_p11 = pnand %p18379_p10, %p18378_p4 }
0x145b   : > { %15544 = dma.done.wait (!%p14482_p11), %s10847_s15, 2048  }
0x145c   : > { %15546 = vsyncadd (!%p14482_p11), %s10847_s15, 4294965248  ;;  %p29_p3 = scmp.ge.s32.totalorder %s15935_s16, 4   ;;  %s18380_s17 = smov %s15553_s18 }
0x145d   : > { %s18381_s18 = smov %s15557_s19  ;;  %s18382_s19 = smov %s15946_s29 }
0x145e   : > { %s18383_s20 = smov %s15935_s16  ;;  %31 = sbr.rel (!%p29_p3) target bundleno = 16 (0x10), region = 187 }
0x1465   :  { %10852 = vsyncpa [#allocation5], 1 }
0x1466   :  { %10854 = vsyncpa [#allocation5 + $0x1], 1 }
0x1467   :  { %10855 = vsyncpa [#allocation8], 1 }
0x1468   :  { %10856 = vsyncpa [#allocation11], 1 }
0x1469   :  { %10857 = vsyncpa [#allocation14], 1 }
0x146a   :  { %10858 = vsyncpa [#allocation17], 1 }
0x146b   :  { %10859 = vsyncpa [#allocation20], 1 }
0x146c   :  { %10860 = vsyncpa [#allocation6], 1 }
0x146d   :  { %10862 = vsyncpa [#allocation6 + $0x1], 1 }

</bundles_post_ra>
